<compile_context>
chip_gen: v7x
topology: tpu7x:2x2x1
jax: 0.10.0
libtpu: 0.0.40
codegen_flags: <defaults>
</compile_context>

<pallas_src>
import functools

import jax
import jax.numpy as jnp
from jax.experimental import pallas as pl
from jax.experimental.pallas import tpu as pltpu

BN_EPS = 1e-5  # nn.BatchNorm2d default eps


# ---------------------------------------------------------------------------
# Pallas kernel: full Up.forward for one batch element
# ---------------------------------------------------------------------------
def _up_double_conv_kernel(x1_ref, x2_ref, up_ref,
                           w1a_ref, w1b_ref, b1_ref,
                           w2_ref, b2_ref, o_ref,
                           pad2_ref, pad1_ref, padm_ref):
    # Shapes (per grid step / batch element):
    #   x1:  (1, Hin, Win, C1)   bf16   (deep feature, to be upsampled)
    #   x2:  (1, H,   W,   C2)   bf16   (skip connection)
    #   up:  (H*W, Hin*Win)      bf16   (bilinear+pad interpolation matrix)
    #   w1a: (9, C2, Cmid) bf16   w1b: (9, C1, Cmid) bf16   b1: (1, Cmid) f32
    #   w2:  (9, Cmid, Cout) bf16                           b2: (1, Cout) f32
    #   o:   (1, H, W, Cout)     f32
    _, Hin, Win, C1 = x1_ref.shape
    _, H, W, C2 = x2_ref.shape
    Cmid = w2_ref.shape[1]
    Cout = o_ref.shape[3]

    # --- bilinear upsample (align_corners=True) + F.pad of x1: one matmul ----
    x1_flat = x1_ref[0].reshape(Hin * Win, C1)                    # bf16
    x1_up = jnp.dot(up_ref[...], x1_flat,
                    preferred_element_type=jnp.float32)           # (H*W, C1) f32

    # --- stage conv1 inputs in zero-padded VMEM scratch (halo = 1) -----------
    pad2_ref[...] = jnp.zeros_like(pad2_ref)
    pad1_ref[...] = jnp.zeros_like(pad1_ref)
    pad2_ref[1:H + 1, 1:W + 1, :] = x2_ref[0]
    pad1_ref[1:H + 1, 1:W + 1, :] = x1_up.reshape(H, W, C1).astype(jnp.bfloat16)

    # --- conv1 (3x3 over concat([x2, x1_up])) + folded BN1 + ReLU ------------
    # concat is never formed: the weight is split into the x2 slab (w1a) and
    # the x1_up slab (w1b) and both are accumulated into the same f32 acc.
    acc = jnp.broadcast_to(b1_ref[...], (H * W, Cmid)).astype(jnp.float32)
    for t in range(9):
        dy, dx = t // 3, t % 3
        p2 = pad2_ref[dy:dy + H, dx:dx + W, :].reshape(H * W, C2)   # bf16
        p1 = pad1_ref[dy:dy + H, dx:dx + W, :].reshape(H * W, C1)   # bf16
        acc = acc + jnp.dot(p2, w1a_ref[t], preferred_element_type=jnp.float32)
        acc = acc + jnp.dot(p1, w1b_ref[t], preferred_element_type=jnp.float32)
    h = jnp.maximum(acc, 0.0)                                       # ReLU (f32)

    # --- conv2 (3x3) + folded BN2 + ReLU -------------------------------------
    padm_ref[...] = jnp.zeros_like(padm_ref)
    padm_ref[1:H + 1, 1:W + 1, :] = h.reshape(H, W, Cmid).astype(jnp.bfloat16)
    acc2 = jnp.broadcast_to(b2_ref[...], (H * W, Cout)).astype(jnp.float32)
    for t in range(9):
        dy, dx = t // 3, t % 3
        pm = padm_ref[dy:dy + H, dx:dx + W, :].reshape(H * W, Cmid)  # bf16
        acc2 = acc2 + jnp.dot(pm, w2_ref[t], preferred_element_type=jnp.float32)
    y = jnp.maximum(acc2, 0.0)                                       # ReLU (f32)

    o_ref[0] = y.reshape(H, W, Cout).astype(o_ref.dtype)


# ---------------------------------------------------------------------------
# Host-side parameter preparation
# ---------------------------------------------------------------------------
def _interp_matrix_1d(n_out, n_in):
    """1-D bilinear interpolation matrix (align_corners=True), shape (n_out, n_in)."""
    if n_in == 1 or n_out == 1:
        return jnp.ones((n_out, n_in), jnp.float32) / n_in
    pos = jnp.arange(n_out, dtype=jnp.float32) * (n_in - 1) / (n_out - 1)
    i0 = jnp.clip(jnp.floor(pos).astype(jnp.int32), 0, n_in - 2)
    frac = pos - i0.astype(jnp.float32)
    rows = jnp.arange(n_out)
    m = jnp.zeros((n_out, n_in), jnp.float32)
    m = m.at[rows, i0].add(1.0 - frac)
    m = m.at[rows, i0 + 1].add(frac)
    return m


def _fold_bn_into_conv(w_oihw, gamma, beta, mean, var, eps=BN_EPS):
    """Fold eval-mode BatchNorm into a bias-free conv. Returns ((9, I, O), (O,))."""
    scale = gamma / jnp.sqrt(var + eps)                     # (O,)
    w = w_oihw * scale[:, None, None, None]
    b = beta - mean * scale
    wk = jnp.transpose(w, (2, 3, 1, 0)).reshape(9, w.shape[1], w.shape[0])
    return wk, b


def init_up_params(key, in_channels, out_channels):
    """Synthetic (deterministic) weights for Up(in_channels, out_channels, bilinear=True)."""
    mid = in_channels // 2
    ks = jax.random.split(key, 10)
    p = {}
    p["w1"] = jax.random.normal(ks[0], (mid, in_channels, 3, 3), jnp.float32) \
        / jnp.sqrt(9.0 * in_channels)
    p["bn1_gamma"] = 1.0 + 0.05 * jax.random.normal(ks[1], (mid,), jnp.float32)
    p["bn1_beta"] = 0.05 * jax.random.normal(ks[2], (mid,), jnp.float32)
    p["bn1_mean"] = 0.05 * jax.random.normal(ks[3], (mid,), jnp.float32)
    p["bn1_var"] = 1.0 + 0.1 * jax.random.uniform(ks[4], (mid,), jnp.float32)
    p["w2"] = jax.random.normal(ks[5], (out_channels, mid, 3, 3), jnp.float32) \
        / jnp.sqrt(9.0 * mid)
    p["bn2_gamma"] = 1.0 + 0.05 * jax.random.normal(ks[6], (out_channels,), jnp.float32)
    p["bn2_beta"] = 0.05 * jax.random.normal(ks[7], (out_channels,), jnp.float32)
    p["bn2_mean"] = 0.05 * jax.random.normal(ks[8], (out_channels,), jnp.float32)
    p["bn2_var"] = 1.0 + 0.1 * jax.random.uniform(ks[9], (out_channels,), jnp.float32)
    return p


def prepare_up_params(params, x1_shape, x2_shape):
    """Fold BN, split conv1 weights for the (never-materialized) concat, and build
    the combined bilinear-upsample + F.pad interpolation matrix."""
    _, C1, Hin, Win = x1_shape
    _, C2, H2, W2 = x2_shape
    in_channels = params["w1"].shape[1]
    assert in_channels == C1 + C2, "conv1 expects cat([x2, x1]) channels"
    Hup, Wup = 2 * Hin, 2 * Win
    diffY, diffX = H2 - Hup, W2 - Wup
    assert diffY >= 0 and diffX >= 0

    wk1, b1 = _fold_bn_into_conv(params["w1"], params["bn1_gamma"], params["bn1_beta"],
                                 params["bn1_mean"], params["bn1_var"])
    wk2, b2 = _fold_bn_into_conv(params["w2"], params["bn2_gamma"], params["bn2_beta"],
                                 params["bn2_mean"], params["bn2_var"])

    # Combined "bilinear upsample then zero-pad to (H2, W2)" operator.
    wh = _interp_matrix_1d(Hup, Hin)
    ww = _interp_matrix_1d(Wup, Win)
    m_up = jnp.kron(wh, ww).reshape(Hup, Wup, Hin * Win)
    m = jnp.zeros((H2, W2, Hin * Win), jnp.float32)
    m = m.at[diffY // 2: diffY // 2 + Hup, diffX // 2: diffX // 2 + Wup, :].set(m_up)
    up_mat = m.reshape(H2 * W2, Hin * Win)

    return dict(
        up=up_mat.astype(jnp.bfloat16),
        w1a=wk1[:, :C2, :].astype(jnp.bfloat16),   # conv1 weights acting on x2 channels
        w1b=wk1[:, C2:, :].astype(jnp.bfloat16),   # conv1 weights acting on upsampled x1
        b1=b1.reshape(1, -1).astype(jnp.float32),
        w2=wk2.astype(jnp.bfloat16),
        b2=b2.reshape(1, -1).astype(jnp.float32),
    )


# ---------------------------------------------------------------------------
# Forward pass
# ---------------------------------------------------------------------------
def up_forward(x1, x2, prepared):
    # x1: (B, C1, Hin, Win), x2: (B, C2, H2, W2)  -- PyTorch NCHW convention.
    B, C1, Hin, Win = x1.shape
    _, C2, H2, W2 = x2.shape
    Cmid = prepared["b1"].shape[-1]
    Cout = prepared["b2"].shape[-1]
    HW = H2 * W2
    K_up = Hin * Win

    # NCHW -> NHWC (channels on the lane axis), bf16 MXU operands.
    x1n = jnp.transpose(x1, (0, 2, 3, 1)).astype(jnp.bfloat16)
    x2n = jnp.transpose(x2, (0, 2, 3, 1)).astype(jnp.bfloat16)

    out = pl.pallas_call(
        _up_double_conv_kernel,
        out_shape=jax.ShapeDtypeStruct((B, H2, W2, Cout), jnp.float32),
        grid=(B,),
        in_specs=[
            pl.BlockSpec((1, Hin, Win, C1), lambda b: (b, 0, 0, 0)),
            pl.BlockSpec((1, H2, W2, C2), lambda b: (b, 0, 0, 0)),
            pl.BlockSpec((HW, K_up), lambda b: (0, 0)),
            pl.BlockSpec((9, C2, Cmid), lambda b: (0, 0, 0)),
            pl.BlockSpec((9, C1, Cmid), lambda b: (0, 0, 0)),
            pl.BlockSpec((1, Cmid), lambda b: (0, 0)),
            pl.BlockSpec((9, Cmid, Cout), lambda b: (0, 0, 0)),
            pl.BlockSpec((1, Cout), lambda b: (0, 0)),
        ],
        out_specs=pl.BlockSpec((1, H2, W2, Cout), lambda b: (b, 0, 0, 0)),
        scratch_shapes=[
            pltpu.VMEM((H2 + 2, W2 + 2, C2), jnp.bfloat16),    # padded x2
            pltpu.VMEM((H2 + 2, W2 + 2, C1), jnp.bfloat16),    # padded upsampled x1
            pltpu.VMEM((H2 + 2, W2 + 2, Cmid), jnp.bfloat16),  # padded mid activation
        ],
        compiler_params=pltpu.CompilerParams(
            dimension_semantics=("parallel",),
            vmem_limit_bytes=32 * 1024 * 1024,
        ),
    )(x1n, x2n, prepared["up"], prepared["w1a"], prepared["w1b"], prepared["b1"],
      prepared["w2"], prepared["b2"])

    # NHWC -> NCHW
    return jnp.transpose(out, (0, 3, 1, 2))


# ---------------------------------------------------------------------------
if __name__ == "__main__":
    key = jax.random.PRNGKey(0)
    k_params, k1, k2 = jax.random.split(key, 3)

    B = 2
    C1, C2 = 32, 32              # x1 (decoder path) / x2 (skip connection) channels
    Hin = Win = 8                # x1 spatial
    H2 = W2 = 16                 # x2 spatial (2x upsample target)
    in_channels = C1 + C2        # 64 -> DoubleConv(in=64, out=32, mid=32)
    out_channels = 32

    x1 = jax.random.normal(k1, (B, C1, Hin, Win), jnp.float32)
    x2 = jax.random.normal(k2, (B, C2, H2, W2), jnp.float32)

    params = init_up_params(k_params, in_channels, out_channels)
    prepared = prepare_up_params(params, x1.shape, x2.shape)

    fwd = jax.jit(functools.partial(up_forward, prepared=prepared))
    y = fwd(x1, x2)
    jax.block_until_ready(y)

    assert y.shape == (B, out_channels, H2, W2)
    assert y.dtype == jnp.float32
    assert bool(jnp.all(jnp.isfinite(y)))
    print("KERNEL_OK")
</pallas_src>

<mosaic_0001>
module attributes {stable_mosaic.version = 11 : i64} {
  func.func @_up_double_conv_kernel(%arg0: i32, %arg1: memref<1x8x8x32xbf16, #tpu.memory_space<vmem>>, %arg2: memref<1x16x16x32xbf16, #tpu.memory_space<vmem>>, %arg3: memref<256x64xbf16, #tpu.memory_space<vmem>>, %arg4: memref<9x32x32xbf16, #tpu.memory_space<vmem>>, %arg5: memref<9x32x32xbf16, #tpu.memory_space<vmem>>, %arg6: memref<1x32xf32, #tpu.memory_space<vmem>>, %arg7: memref<9x32x32xbf16, #tpu.memory_space<vmem>>, %arg8: memref<1x32xf32, #tpu.memory_space<vmem>>, %arg9: memref<1x16x16x32xf32, #tpu.memory_space<vmem>>, %arg10: memref<18x18x32xbf16, #tpu.memory_space<vmem>>, %arg11: memref<18x18x32xbf16, #tpu.memory_space<vmem>>, %arg12: memref<18x18x32xbf16, #tpu.memory_space<vmem>>) attributes {dimension_semantics = [#tpu.dimension_semantics<parallel>], iteration_bounds = array<i64: 2>, scalar_prefetch = 0 : i64, scratch_operands = 3 : i64, tpu.core_type = #tpu.core_type<tc>, window_params = [{transform_indices = @transform_0, window_bounds = array<i64: 1, 8, 8, 32>}, {transform_indices = @transform_1, window_bounds = array<i64: 1, 16, 16, 32>}, {pipeline_mode = #tpu.pipeline_mode<synchronous>, transform_indices = @transform_2, window_bounds = array<i64: 256, 64>}, {pipeline_mode = #tpu.pipeline_mode<synchronous>, transform_indices = @transform_3, window_bounds = array<i64: 9, 32, 32>}, {pipeline_mode = #tpu.pipeline_mode<synchronous>, transform_indices = @transform_4, window_bounds = array<i64: 9, 32, 32>}, {pipeline_mode = #tpu.pipeline_mode<synchronous>, transform_indices = @transform_5, window_bounds = array<i64: 1, 32>}, {pipeline_mode = #tpu.pipeline_mode<synchronous>, transform_indices = @transform_6, window_bounds = array<i64: 9, 32, 32>}, {pipeline_mode = #tpu.pipeline_mode<synchronous>, transform_indices = @transform_7, window_bounds = array<i64: 1, 32>}, {transform_indices = @transform_8, window_bounds = array<i64: 1, 16, 16, 32>}]} {
    %c0 = arith.constant 0 : index
    %c0_0 = arith.constant 0 : index
    %c0_1 = arith.constant 0 : index
    %c0_2 = arith.constant 0 : index
    %0 = vector.load %arg1[%c0, %c0_0, %c0_1, %c0_2] : memref<1x8x8x32xbf16, #tpu.memory_space<vmem>>, vector<1x8x8x32xbf16>
    %1 = vector.shape_cast %0 : vector<1x8x8x32xbf16> to vector<8x8x32xbf16>
    %2 = vector.shape_cast %1 : vector<8x8x32xbf16> to vector<64x32xbf16>
    %c0_3 = arith.constant 0 : index
    %c0_4 = arith.constant 0 : index
    %3 = vector.load %arg3[%c0_3, %c0_4] : memref<256x64xbf16, #tpu.memory_space<vmem>>, vector<256x64xbf16>
    %cst = arith.constant dense<0.000000e+00> : vector<256x32xf32>
    %4 = tpu.matmul %3, %2, %cst {dimension_numbers = #tpu.dot_dimension_numbers<[1], [0], [0], [1], [0, 0, 1, 1], [], []>} : vector<256x64xbf16>, vector<64x32xbf16>, vector<256x32xf32> -> vector<256x32xf32>
    %cst_5 = arith.constant 0.000000e+00 : bf16
    %5 = vector.broadcast %cst_5 : bf16 to vector<18x18x32xbf16>
    %c0_6 = arith.constant 0 : index
    %c0_7 = arith.constant 0 : index
    %c0_8 = arith.constant 0 : index
    %6 = vector.load %arg10[%c0_6, %c0_7, %c0_8] : memref<18x18x32xbf16, #tpu.memory_space<vmem>>, vector<18x18x32xbf16>
    tpu.vector_store %arg10[%c0_6, %c0_7, %c0_8], %5 {strides = array<i32>} : memref<18x18x32xbf16, #tpu.memory_space<vmem>>, vector<18x18x32xbf16>,
    %cst_9 = arith.constant 0.000000e+00 : bf16
    %7 = vector.broadcast %cst_9 : bf16 to vector<18x18x32xbf16>
    %c0_10 = arith.constant 0 : index
    %c0_11 = arith.constant 0 : index
    %c0_12 = arith.constant 0 : index
    %8 = vector.load %arg11[%c0_10, %c0_11, %c0_12] : memref<18x18x32xbf16, #tpu.memory_space<vmem>>, vector<18x18x32xbf16>
    tpu.vector_store %arg11[%c0_10, %c0_11, %c0_12], %7 {strides = array<i32>} : memref<18x18x32xbf16, #tpu.memory_space<vmem>>, vector<18x18x32xbf16>,
    %c0_13 = arith.constant 0 : index
    %c0_14 = arith.constant 0 : index
    %c0_15 = arith.constant 0 : index
    %c0_16 = arith.constant 0 : index
    %9 = vector.load %arg2[%c0_13, %c0_14, %c0_15, %c0_16] : memref<1x16x16x32xbf16, #tpu.memory_space<vmem>>, vector<1x16x16x32xbf16>
    %10 = vector.shape_cast %9 : vector<1x16x16x32xbf16> to vector<16x16x32xbf16>
    %c1 = arith.constant 1 : index
    %c1_17 = arith.constant 1 : index
    %c0_18 = arith.constant 0 : index
    %11 = vector.load %arg10[%c1, %c1_17, %c0_18] : memref<18x18x32xbf16, #tpu.memory_space<vmem>>, vector<16x16x32xbf16>
    tpu.vector_store %arg10[%c1, %c1_17, %c0_18], %10 {strides = array<i32>} : memref<18x18x32xbf16, #tpu.memory_space<vmem>>, vector<16x16x32xbf16>,
    %12 = vector.shape_cast %4 : vector<256x32xf32> to vector<16x16x32xf32>
    %13 = arith.truncf %12 : vector<16x16x32xf32> to vector<16x16x32xbf16>
    %c1_19 = arith.constant 1 : index
    %c1_20 = arith.constant 1 : index
    %c0_21 = arith.constant 0 : index
    %14 = vector.load %arg11[%c1_19, %c1_20, %c0_21] : memref<18x18x32xbf16, #tpu.memory_space<vmem>>, vector<16x16x32xbf16>
    tpu.vector_store %arg11[%c1_19, %c1_20, %c0_21], %13 {strides = array<i32>} : memref<18x18x32xbf16, #tpu.memory_space<vmem>>, vector<16x16x32xbf16>,
    %c0_22 = arith.constant 0 : index
    %c0_23 = arith.constant 0 : index
    %15 = vector.load %arg6[%c0_22, %c0_23] : memref<1x32xf32, #tpu.memory_space<vmem>>, vector<1x32xf32>
    %16 = vector.shape_cast %15 : vector<1x32xf32> to vector<1x32xf32>
    %17 = vector.broadcast %16 : vector<1x32xf32> to vector<256x32xf32>
    %c0_24 = arith.constant 0 : index
    %c0_25 = arith.constant 0 : index
    %c0_26 = arith.constant 0 : index
    %18 = vector.load %arg10[%c0_24, %c0_25, %c0_26] : memref<18x18x32xbf16, #tpu.memory_space<vmem>>, vector<16x16x32xbf16>
    %19 = vector.shape_cast %18 : vector<16x16x32xbf16> to vector<256x32xbf16>
    %c0_27 = arith.constant 0 : index
    %c0_28 = arith.constant 0 : index
    %c0_29 = arith.constant 0 : index
    %20 = vector.load %arg11[%c0_27, %c0_28, %c0_29] : memref<18x18x32xbf16, #tpu.memory_space<vmem>>, vector<16x16x32xbf16>
    %21 = vector.shape_cast %20 : vector<16x16x32xbf16> to vector<256x32xbf16>
    %c0_30 = arith.constant 0 : index
    %c0_31 = arith.constant 0 : index
    %c0_32 = arith.constant 0 : index
    %22 = vector.load %arg4[%c0_30, %c0_31, %c0_32] : memref<9x32x32xbf16, #tpu.memory_space<vmem>>, vector<1x32x32xbf16>
    %23 = vector.shape_cast %22 : vector<1x32x32xbf16> to vector<32x32xbf16>
    %cst_33 = arith.constant dense<0.000000e+00> : vector<256x32xf32>
    %24 = tpu.matmul %19, %23, %cst_33 {dimension_numbers = #tpu.dot_dimension_numbers<[1], [0], [0], [1], [0, 0, 1, 1], [], []>} : vector<256x32xbf16>, vector<32x32xbf16>, vector<256x32xf32> -> vector<256x32xf32>
    %25 = arith.addf %17, %24 : vector<256x32xf32>
    %c0_34 = arith.constant 0 : index
    %c0_35 = arith.constant 0 : index
    %c0_36 = arith.constant 0 : index
    %26 = vector.load %arg5[%c0_34, %c0_35, %c0_36] : memref<9x32x32xbf16, #tpu.memory_space<vmem>>, vector<1x32x32xbf16>
    %27 = vector.shape_cast %26 : vector<1x32x32xbf16> to vector<32x32xbf16>
    %cst_37 = arith.constant dense<0.000000e+00> : vector<256x32xf32>
    %28 = tpu.matmul %21, %27, %cst_37 {dimension_numbers = #tpu.dot_dimension_numbers<[1], [0], [0], [1], [0, 0, 1, 1], [], []>} : vector<256x32xbf16>, vector<32x32xbf16>, vector<256x32xf32> -> vector<256x32xf32>
    %29 = arith.addf %25, %28 : vector<256x32xf32>
    %c0_38 = arith.constant 0 : index
    %c1_39 = arith.constant 1 : index
    %c0_40 = arith.constant 0 : index
    %30 = vector.load %arg10[%c0_38, %c1_39, %c0_40] : memref<18x18x32xbf16, #tpu.memory_space<vmem>>, vector<16x16x32xbf16>
    %31 = vector.shape_cast %30 : vector<16x16x32xbf16> to vector<256x32xbf16>
    %c0_41 = arith.constant 0 : index
    %c1_42 = arith.constant 1 : index
    %c0_43 = arith.constant 0 : index
    %32 = vector.load %arg11[%c0_41, %c1_42, %c0_43] : memref<18x18x32xbf16, #tpu.memory_space<vmem>>, vector<16x16x32xbf16>
    %33 = vector.shape_cast %32 : vector<16x16x32xbf16> to vector<256x32xbf16>
    %c1_44 = arith.constant 1 : index
    %c0_45 = arith.constant 0 : index
    %c0_46 = arith.constant 0 : index
    %34 = vector.load %arg4[%c1_44, %c0_45, %c0_46] : memref<9x32x32xbf16, #tpu.memory_space<vmem>>, vector<1x32x32xbf16>
    %35 = vector.shape_cast %34 : vector<1x32x32xbf16> to vector<32x32xbf16>
    %cst_47 = arith.constant dense<0.000000e+00> : vector<256x32xf32>
    %36 = tpu.matmul %31, %35, %cst_47 {dimension_numbers = #tpu.dot_dimension_numbers<[1], [0], [0], [1], [0, 0, 1, 1], [], []>} : vector<256x32xbf16>, vector<32x32xbf16>, vector<256x32xf32> -> vector<256x32xf32>
    %37 = arith.addf %29, %36 : vector<256x32xf32>
    %c1_48 = arith.constant 1 : index
    %c0_49 = arith.constant 0 : index
    %c0_50 = arith.constant 0 : index
    %38 = vector.load %arg5[%c1_48, %c0_49, %c0_50] : memref<9x32x32xbf16, #tpu.memory_space<vmem>>, vector<1x32x32xbf16>
    %39 = vector.shape_cast %38 : vector<1x32x32xbf16> to vector<32x32xbf16>
    %cst_51 = arith.constant dense<0.000000e+00> : vector<256x32xf32>
    %40 = tpu.matmul %33, %39, %cst_51 {dimension_numbers = #tpu.dot_dimension_numbers<[1], [0], [0], [1], [0, 0, 1, 1], [], []>} : vector<256x32xbf16>, vector<32x32xbf16>, vector<256x32xf32> -> vector<256x32xf32>
    %41 = arith.addf %37, %40 : vector<256x32xf32>
    %c0_52 = arith.constant 0 : index
    %c2 = arith.constant 2 : index
    %c0_53 = arith.constant 0 : index
    %42 = vector.load %arg10[%c0_52, %c2, %c0_53] : memref<18x18x32xbf16, #tpu.memory_space<vmem>>, vector<16x16x32xbf16>
    %43 = vector.shape_cast %42 : vector<16x16x32xbf16> to vector<256x32xbf16>
    %c0_54 = arith.constant 0 : index
    %c2_55 = arith.constant 2 : index
    %c0_56 = arith.constant 0 : index
    %44 = vector.load %arg11[%c0_54, %c2_55, %c0_56] : memref<18x18x32xbf16, #tpu.memory_space<vmem>>, vector<16x16x32xbf16>
    %45 = vector.shape_cast %44 : vector<16x16x32xbf16> to vector<256x32xbf16>
    %c2_57 = arith.constant 2 : index
    %c0_58 = arith.constant 0 : index
    %c0_59 = arith.constant 0 : index
    %46 = vector.load %arg4[%c2_57, %c0_58, %c0_59] : memref<9x32x32xbf16, #tpu.memory_space<vmem>>, vector<1x32x32xbf16>
    %47 = vector.shape_cast %46 : vector<1x32x32xbf16> to vector<32x32xbf16>
    %cst_60 = arith.constant dense<0.000000e+00> : vector<256x32xf32>
    %48 = tpu.matmul %43, %47, %cst_60 {dimension_numbers = #tpu.dot_dimension_numbers<[1], [0], [0], [1], [0, 0, 1, 1], [], []>} : vector<256x32xbf16>, vector<32x32xbf16>, vector<256x32xf32> -> vector<256x32xf32>
    %49 = arith.addf %41, %48 : vector<256x32xf32>
    %c2_61 = arith.constant 2 : index
    %c0_62 = arith.constant 0 : index
    %c0_63 = arith.constant 0 : index
    %50 = vector.load %arg5[%c2_61, %c0_62, %c0_63] : memref<9x32x32xbf16, #tpu.memory_space<vmem>>, vector<1x32x32xbf16>
    %51 = vector.shape_cast %50 : vector<1x32x32xbf16> to vector<32x32xbf16>
    %cst_64 = arith.constant dense<0.000000e+00> : vector<256x32xf32>
    %52 = tpu.matmul %45, %51, %cst_64 {dimension_numbers = #tpu.dot_dimension_numbers<[1], [0], [0], [1], [0, 0, 1, 1], [], []>} : vector<256x32xbf16>, vector<32x32xbf16>, vector<256x32xf32> -> vector<256x32xf32>
    %53 = arith.addf %49, %52 : vector<256x32xf32>
    %c1_65 = arith.constant 1 : index
    %c0_66 = arith.constant 0 : index
    %c0_67 = arith.constant 0 : index
    %54 = vector.load %arg10[%c1_65, %c0_66, %c0_67] : memref<18x18x32xbf16, #tpu.memory_space<vmem>>, vector<16x16x32xbf16>
    %55 = vector.shape_cast %54 : vector<16x16x32xbf16> to vector<256x32xbf16>
    %c1_68 = arith.constant 1 : index
    %c0_69 = arith.constant 0 : index
    %c0_70 = arith.constant 0 : index
    %56 = vector.load %arg11[%c1_68, %c0_69, %c0_70] : memref<18x18x32xbf16, #tpu.memory_space<vmem>>, vector<16x16x32xbf16>
    %57 = vector.shape_cast %56 : vector<16x16x32xbf16> to vector<256x32xbf16>
    %c3 = arith.constant 3 : index
    %c0_71 = arith.constant 0 : index
    %c0_72 = arith.constant 0 : index
    %58 = vector.load %arg4[%c3, %c0_71, %c0_72] : memref<9x32x32xbf16, #tpu.memory_space<vmem>>, vector<1x32x32xbf16>
    %59 = vector.shape_cast %58 : vector<1x32x32xbf16> to vector<32x32xbf16>
    %cst_73 = arith.constant dense<0.000000e+00> : vector<256x32xf32>
    %60 = tpu.matmul %55, %59, %cst_73 {dimension_numbers = #tpu.dot_dimension_numbers<[1], [0], [0], [1], [0, 0, 1, 1], [], []>} : vector<256x32xbf16>, vector<32x32xbf16>, vector<256x32xf32> -> vector<256x32xf32>
    %61 = arith.addf %53, %60 : vector<256x32xf32>
    %c3_74 = arith.constant 3 : index
    %c0_75 = arith.constant 0 : index
    %c0_76 = arith.constant 0 : index
    %62 = vector.load %arg5[%c3_74, %c0_75, %c0_76] : memref<9x32x32xbf16, #tpu.memory_space<vmem>>, vector<1x32x32xbf16>
    %63 = vector.shape_cast %62 : vector<1x32x32xbf16> to vector<32x32xbf16>
    %cst_77 = arith.constant dense<0.000000e+00> : vector<256x32xf32>
    %64 = tpu.matmul %57, %63, %cst_77 {dimension_numbers = #tpu.dot_dimension_numbers<[1], [0], [0], [1], [0, 0, 1, 1], [], []>} : vector<256x32xbf16>, vector<32x32xbf16>, vector<256x32xf32> -> vector<256x32xf32>
    %65 = arith.addf %61, %64 : vector<256x32xf32>
    %c1_78 = arith.constant 1 : index
    %c1_79 = arith.constant 1 : index
    %c0_80 = arith.constant 0 : index
    %66 = vector.load %arg10[%c1_78, %c1_79, %c0_80] : memref<18x18x32xbf16, #tpu.memory_space<vmem>>, vector<16x16x32xbf16>
    %67 = vector.shape_cast %66 : vector<16x16x32xbf16> to vector<256x32xbf16>
    %c1_81 = arith.constant 1 : index
    %c1_82 = arith.constant 1 : index
    %c0_83 = arith.constant 0 : index
    %68 = vector.load %arg11[%c1_81, %c1_82, %c0_83] : memref<18x18x32xbf16, #tpu.memory_space<vmem>>, vector<16x16x32xbf16>
    %69 = vector.shape_cast %68 : vector<16x16x32xbf16> to vector<256x32xbf16>
    %c4 = arith.constant 4 : index
    %c0_84 = arith.constant 0 : index
    %c0_85 = arith.constant 0 : index
    %70 = vector.load %arg4[%c4, %c0_84, %c0_85] : memref<9x32x32xbf16, #tpu.memory_space<vmem>>, vector<1x32x32xbf16>
    %71 = vector.shape_cast %70 : vector<1x32x32xbf16> to vector<32x32xbf16>
    %cst_86 = arith.constant dense<0.000000e+00> : vector<256x32xf32>
    %72 = tpu.matmul %67, %71, %cst_86 {dimension_numbers = #tpu.dot_dimension_numbers<[1], [0], [0], [1], [0, 0, 1, 1], [], []>} : vector<256x32xbf16>, vector<32x32xbf16>, vector<256x32xf32> -> vector<256x32xf32>
    %73 = arith.addf %65, %72 : vector<256x32xf32>
    %c4_87 = arith.constant 4 : index
    %c0_88 = arith.constant 0 : index
    %c0_89 = arith.constant 0 : index
    %74 = vector.load %arg5[%c4_87, %c0_88, %c0_89] : memref<9x32x32xbf16, #tpu.memory_space<vmem>>, vector<1x32x32xbf16>
    %75 = vector.shape_cast %74 : vector<1x32x32xbf16> to vector<32x32xbf16>
    %cst_90 = arith.constant dense<0.000000e+00> : vector<256x32xf32>
    %76 = tpu.matmul %69, %75, %cst_90 {dimension_numbers = #tpu.dot_dimension_numbers<[1], [0], [0], [1], [0, 0, 1, 1], [], []>} : vector<256x32xbf16>, vector<32x32xbf16>, vector<256x32xf32> -> vector<256x32xf32>
    %77 = arith.addf %73, %76 : vector<256x32xf32>
    %c1_91 = arith.constant 1 : index
    %c2_92 = arith.constant 2 : index
    %c0_93 = arith.constant 0 : index
    %78 = vector.load %arg10[%c1_91, %c2_92, %c0_93] : memref<18x18x32xbf16, #tpu.memory_space<vmem>>, vector<16x16x32xbf16>
    %79 = vector.shape_cast %78 : vector<16x16x32xbf16> to vector<256x32xbf16>
    %c1_94 = arith.constant 1 : index
    %c2_95 = arith.constant 2 : index
    %c0_96 = arith.constant 0 : index
    %80 = vector.load %arg11[%c1_94, %c2_95, %c0_96] : memref<18x18x32xbf16, #tpu.memory_space<vmem>>, vector<16x16x32xbf16>
    %81 = vector.shape_cast %80 : vector<16x16x32xbf16> to vector<256x32xbf16>
    %c5 = arith.constant 5 : index
    %c0_97 = arith.constant 0 : index
    %c0_98 = arith.constant 0 : index
    %82 = vector.load %arg4[%c5, %c0_97, %c0_98] : memref<9x32x32xbf16, #tpu.memory_space<vmem>>, vector<1x32x32xbf16>
    %83 = vector.shape_cast %82 : vector<1x32x32xbf16> to vector<32x32xbf16>
    %cst_99 = arith.constant dense<0.000000e+00> : vector<256x32xf32>
    %84 = tpu.matmul %79, %83, %cst_99 {dimension_numbers = #tpu.dot_dimension_numbers<[1], [0], [0], [1], [0, 0, 1, 1], [], []>} : vector<256x32xbf16>, vector<32x32xbf16>, vector<256x32xf32> -> vector<256x32xf32>
    %85 = arith.addf %77, %84 : vector<256x32xf32>
    %c5_100 = arith.constant 5 : index
    %c0_101 = arith.constant 0 : index
    %c0_102 = arith.constant 0 : index
    %86 = vector.load %arg5[%c5_100, %c0_101, %c0_102] : memref<9x32x32xbf16, #tpu.memory_space<vmem>>, vector<1x32x32xbf16>
    %87 = vector.shape_cast %86 : vector<1x32x32xbf16> to vector<32x32xbf16>
    %cst_103 = arith.constant dense<0.000000e+00> : vector<256x32xf32>
    %88 = tpu.matmul %81, %87, %cst_103 {dimension_numbers = #tpu.dot_dimension_numbers<[1], [0], [0], [1], [0, 0, 1, 1], [], []>} : vector<256x32xbf16>, vector<32x32xbf16>, vector<256x32xf32> -> vector<256x32xf32>
    %89 = arith.addf %85, %88 : vector<256x32xf32>
    %c2_104 = arith.constant 2 : index
    %c0_105 = arith.constant 0 : index
    %c0_106 = arith.constant 0 : index
    %90 = vector.load %arg10[%c2_104, %c0_105, %c0_106] : memref<18x18x32xbf16, #tpu.memory_space<vmem>>, vector<16x16x32xbf16>
    %91 = vector.shape_cast %90 : vector<16x16x32xbf16> to vector<256x32xbf16>
    %c2_107 = arith.constant 2 : index
    %c0_108 = arith.constant 0 : index
    %c0_109 = arith.constant 0 : index
    %92 = vector.load %arg11[%c2_107, %c0_108, %c0_109] : memref<18x18x32xbf16, #tpu.memory_space<vmem>>, vector<16x16x32xbf16>
    %93 = vector.shape_cast %92 : vector<16x16x32xbf16> to vector<256x32xbf16>
    %c6 = arith.constant 6 : index
    %c0_110 = arith.constant 0 : index
    %c0_111 = arith.constant 0 : index
    %94 = vector.load %arg4[%c6, %c0_110, %c0_111] : memref<9x32x32xbf16, #tpu.memory_space<vmem>>, vector<1x32x32xbf16>
    %95 = vector.shape_cast %94 : vector<1x32x32xbf16> to vector<32x32xbf16>
    %cst_112 = arith.constant dense<0.000000e+00> : vector<256x32xf32>
    %96 = tpu.matmul %91, %95, %cst_112 {dimension_numbers = #tpu.dot_dimension_numbers<[1], [0], [0], [1], [0, 0, 1, 1], [], []>} : vector<256x32xbf16>, vector<32x32xbf16>, vector<256x32xf32> -> vector<256x32xf32>
    %97 = arith.addf %89, %96 : vector<256x32xf32>
    %c6_113 = arith.constant 6 : index
    %c0_114 = arith.constant 0 : index
    %c0_115 = arith.constant 0 : index
    %98 = vector.load %arg5[%c6_113, %c0_114, %c0_115] : memref<9x32x32xbf16, #tpu.memory_space<vmem>>, vector<1x32x32xbf16>
    %99 = vector.shape_cast %98 : vector<1x32x32xbf16> to vector<32x32xbf16>
    %cst_116 = arith.constant dense<0.000000e+00> : vector<256x32xf32>
    %100 = tpu.matmul %93, %99, %cst_116 {dimension_numbers = #tpu.dot_dimension_numbers<[1], [0], [0], [1], [0, 0, 1, 1], [], []>} : vector<256x32xbf16>, vector<32x32xbf16>, vector<256x32xf32> -> vector<256x32xf32>
    %101 = arith.addf %97, %100 : vector<256x32xf32>
    %c2_117 = arith.constant 2 : index
    %c1_118 = arith.constant 1 : index
    %c0_119 = arith.constant 0 : index
    %102 = vector.load %arg10[%c2_117, %c1_118, %c0_119] : memref<18x18x32xbf16, #tpu.memory_space<vmem>>, vector<16x16x32xbf16>
    %103 = vector.shape_cast %102 : vector<16x16x32xbf16> to vector<256x32xbf16>
    %c2_120 = arith.constant 2 : index
    %c1_121 = arith.constant 1 : index
    %c0_122 = arith.constant 0 : index
    %104 = vector.load %arg11[%c2_120, %c1_121, %c0_122] : memref<18x18x32xbf16, #tpu.memory_space<vmem>>, vector<16x16x32xbf16>
    %105 = vector.shape_cast %104 : vector<16x16x32xbf16> to vector<256x32xbf16>
    %c7 = arith.constant 7 : index
    %c0_123 = arith.constant 0 : index
    %c0_124 = arith.constant 0 : index
    %106 = vector.load %arg4[%c7, %c0_123, %c0_124] : memref<9x32x32xbf16, #tpu.memory_space<vmem>>, vector<1x32x32xbf16>
    %107 = vector.shape_cast %106 : vector<1x32x32xbf16> to vector<32x32xbf16>
    %cst_125 = arith.constant dense<0.000000e+00> : vector<256x32xf32>
    %108 = tpu.matmul %103, %107, %cst_125 {dimension_numbers = #tpu.dot_dimension_numbers<[1], [0], [0], [1], [0, 0, 1, 1], [], []>} : vector<256x32xbf16>, vector<32x32xbf16>, vector<256x32xf32> -> vector<256x32xf32>
    %109 = arith.addf %101, %108 : vector<256x32xf32>
    %c7_126 = arith.constant 7 : index
    %c0_127 = arith.constant 0 : index
    %c0_128 = arith.constant 0 : index
    %110 = vector.load %arg5[%c7_126, %c0_127, %c0_128] : memref<9x32x32xbf16, #tpu.memory_space<vmem>>, vector<1x32x32xbf16>
    %111 = vector.shape_cast %110 : vector<1x32x32xbf16> to vector<32x32xbf16>
    %cst_129 = arith.constant dense<0.000000e+00> : vector<256x32xf32>
    %112 = tpu.matmul %105, %111, %cst_129 {dimension_numbers = #tpu.dot_dimension_numbers<[1], [0], [0], [1], [0, 0, 1, 1], [], []>} : vector<256x32xbf16>, vector<32x32xbf16>, vector<256x32xf32> -> vector<256x32xf32>
    %113 = arith.addf %109, %112 : vector<256x32xf32>
    %c2_130 = arith.constant 2 : index
    %c2_131 = arith.constant 2 : index
    %c0_132 = arith.constant 0 : index
    %114 = vector.load %arg10[%c2_130, %c2_131, %c0_132] : memref<18x18x32xbf16, #tpu.memory_space<vmem>>, vector<16x16x32xbf16>
    %115 = vector.shape_cast %114 : vector<16x16x32xbf16> to vector<256x32xbf16>
    %c2_133 = arith.constant 2 : index
    %c2_134 = arith.constant 2 : index
    %c0_135 = arith.constant 0 : index
    %116 = vector.load %arg11[%c2_133, %c2_134, %c0_135] : memref<18x18x32xbf16, #tpu.memory_space<vmem>>, vector<16x16x32xbf16>
    %117 = vector.shape_cast %116 : vector<16x16x32xbf16> to vector<256x32xbf16>
    %c8 = arith.constant 8 : index
    %c0_136 = arith.constant 0 : index
    %c0_137 = arith.constant 0 : index
    %118 = vector.load %arg4[%c8, %c0_136, %c0_137] : memref<9x32x32xbf16, #tpu.memory_space<vmem>>, vector<1x32x32xbf16>
    %119 = vector.shape_cast %118 : vector<1x32x32xbf16> to vector<32x32xbf16>
    %cst_138 = arith.constant dense<0.000000e+00> : vector<256x32xf32>
    %120 = tpu.matmul %115, %119, %cst_138 {dimension_numbers = #tpu.dot_dimension_numbers<[1], [0], [0], [1], [0, 0, 1, 1], [], []>} : vector<256x32xbf16>, vector<32x32xbf16>, vector<256x32xf32> -> vector<256x32xf32>
    %121 = arith.addf %113, %120 : vector<256x32xf32>
    %c8_139 = arith.constant 8 : index
    %c0_140 = arith.constant 0 : index
    %c0_141 = arith.constant 0 : index
    %122 = vector.load %arg5[%c8_139, %c0_140, %c0_141] : memref<9x32x32xbf16, #tpu.memory_space<vmem>>, vector<1x32x32xbf16>
    %123 = vector.shape_cast %122 : vector<1x32x32xbf16> to vector<32x32xbf16>
    %cst_142 = arith.constant dense<0.000000e+00> : vector<256x32xf32>
    %124 = tpu.matmul %117, %123, %cst_142 {dimension_numbers = #tpu.dot_dimension_numbers<[1], [0], [0], [1], [0, 0, 1, 1], [], []>} : vector<256x32xbf16>, vector<32x32xbf16>, vector<256x32xf32> -> vector<256x32xf32>
    %125 = arith.addf %121, %124 : vector<256x32xf32>
    %cst_143 = arith.constant 0.000000e+00 : f32
    %126 = vector.broadcast %cst_143 : f32 to vector<256x32xf32>
    %127 = arith.maximumf %125, %126 : vector<256x32xf32>
    %cst_144 = arith.constant 0.000000e+00 : bf16
    %128 = vector.broadcast %cst_144 : bf16 to vector<18x18x32xbf16>
    %c0_145 = arith.constant 0 : index
    %c0_146 = arith.constant 0 : index
    %c0_147 = arith.constant 0 : index
    %129 = vector.load %arg12[%c0_145, %c0_146, %c0_147] : memref<18x18x32xbf16, #tpu.memory_space<vmem>>, vector<18x18x32xbf16>
    tpu.vector_store %arg12[%c0_145, %c0_146, %c0_147], %128 {strides = array<i32>} : memref<18x18x32xbf16, #tpu.memory_space<vmem>>, vector<18x18x32xbf16>,
    %130 = vector.shape_cast %127 : vector<256x32xf32> to vector<16x16x32xf32>
    %131 = arith.truncf %130 : vector<16x16x32xf32> to vector<16x16x32xbf16>
    %c1_148 = arith.constant 1 : index
    %c1_149 = arith.constant 1 : index
    %c0_150 = arith.constant 0 : index
    %132 = vector.load %arg12[%c1_148, %c1_149, %c0_150] : memref<18x18x32xbf16, #tpu.memory_space<vmem>>, vector<16x16x32xbf16>
    tpu.vector_store %arg12[%c1_148, %c1_149, %c0_150], %131 {strides = array<i32>} : memref<18x18x32xbf16, #tpu.memory_space<vmem>>, vector<16x16x32xbf16>,
    %c0_151 = arith.constant 0 : index
    %c0_152 = arith.constant 0 : index
    %133 = vector.load %arg8[%c0_151, %c0_152] : memref<1x32xf32, #tpu.memory_space<vmem>>, vector<1x32xf32>
    %134 = vector.shape_cast %133 : vector<1x32xf32> to vector<1x32xf32>
    %135 = vector.broadcast %134 : vector<1x32xf32> to vector<256x32xf32>
    %c0_153 = arith.constant 0 : index
    %c0_154 = arith.constant 0 : index
    %c0_155 = arith.constant 0 : index
    %136 = vector.load %arg12[%c0_153, %c0_154, %c0_155] : memref<18x18x32xbf16, #tpu.memory_space<vmem>>, vector<16x16x32xbf16>
    %137 = vector.shape_cast %136 : vector<16x16x32xbf16> to vector<256x32xbf16>
    %c0_156 = arith.constant 0 : index
    %c0_157 = arith.constant 0 : index
    %c0_158 = arith.constant 0 : index
    %138 = vector.load %arg7[%c0_156, %c0_157, %c0_158] : memref<9x32x32xbf16, #tpu.memory_space<vmem>>, vector<1x32x32xbf16>
    %139 = vector.shape_cast %138 : vector<1x32x32xbf16> to vector<32x32xbf16>
    %cst_159 = arith.constant dense<0.000000e+00> : vector<256x32xf32>
    %140 = tpu.matmul %137, %139, %cst_159 {dimension_numbers = #tpu.dot_dimension_numbers<[1], [0], [0], [1], [0, 0, 1, 1], [], []>} : vector<256x32xbf16>, vector<32x32xbf16>, vector<256x32xf32> -> vector<256x32xf32>
    %141 = arith.addf %135, %140 : vector<256x32xf32>
    %c0_160 = arith.constant 0 : index
    %c1_161 = arith.constant 1 : index
    %c0_162 = arith.constant 0 : index
    %142 = vector.load %arg12[%c0_160, %c1_161, %c0_162] : memref<18x18x32xbf16, #tpu.memory_space<vmem>>, vector<16x16x32xbf16>
    %143 = vector.shape_cast %142 : vector<16x16x32xbf16> to vector<256x32xbf16>
    %c1_163 = arith.constant 1 : index
    %c0_164 = arith.constant 0 : index
    %c0_165 = arith.constant 0 : index
    %144 = vector.load %arg7[%c1_163, %c0_164, %c0_165] : memref<9x32x32xbf16, #tpu.memory_space<vmem>>, vector<1x32x32xbf16>
    %145 = vector.shape_cast %144 : vector<1x32x32xbf16> to vector<32x32xbf16>
    %cst_166 = arith.constant dense<0.000000e+00> : vector<256x32xf32>
    %146 = tpu.matmul %143, %145, %cst_166 {dimension_numbers = #tpu.dot_dimension_numbers<[1], [0], [0], [1], [0, 0, 1, 1], [], []>} : vector<256x32xbf16>, vector<32x32xbf16>, vector<256x32xf32> -> vector<256x32xf32>
    %147 = arith.addf %141, %146 : vector<256x32xf32>
    %c0_167 = arith.constant 0 : index
    %c2_168 = arith.constant 2 : index
    %c0_169 = arith.constant 0 : index
    %148 = vector.load %arg12[%c0_167, %c2_168, %c0_169] : memref<18x18x32xbf16, #tpu.memory_space<vmem>>, vector<16x16x32xbf16>
    %149 = vector.shape_cast %148 : vector<16x16x32xbf16> to vector<256x32xbf16>
    %c2_170 = arith.constant 2 : index
    %c0_171 = arith.constant 0 : index
    %c0_172 = arith.constant 0 : index
    %150 = vector.load %arg7[%c2_170, %c0_171, %c0_172] : memref<9x32x32xbf16, #tpu.memory_space<vmem>>, vector<1x32x32xbf16>
    %151 = vector.shape_cast %150 : vector<1x32x32xbf16> to vector<32x32xbf16>
    %cst_173 = arith.constant dense<0.000000e+00> : vector<256x32xf32>
    %152 = tpu.matmul %149, %151, %cst_173 {dimension_numbers = #tpu.dot_dimension_numbers<[1], [0], [0], [1], [0, 0, 1, 1], [], []>} : vector<256x32xbf16>, vector<32x32xbf16>, vector<256x32xf32> -> vector<256x32xf32>
    %153 = arith.addf %147, %152 : vector<256x32xf32>
    %c1_174 = arith.constant 1 : index
    %c0_175 = arith.constant 0 : index
    %c0_176 = arith.constant 0 : index
    %154 = vector.load %arg12[%c1_174, %c0_175, %c0_176] : memref<18x18x32xbf16, #tpu.memory_space<vmem>>, vector<16x16x32xbf16>
    %155 = vector.shape_cast %154 : vector<16x16x32xbf16> to vector<256x32xbf16>
    %c3_177 = arith.constant 3 : index
    %c0_178 = arith.constant 0 : index
    %c0_179 = arith.constant 0 : index
    %156 = vector.load %arg7[%c3_177, %c0_178, %c0_179] : memref<9x32x32xbf16, #tpu.memory_space<vmem>>, vector<1x32x32xbf16>
    %157 = vector.shape_cast %156 : vector<1x32x32xbf16> to vector<32x32xbf16>
    %cst_180 = arith.constant dense<0.000000e+00> : vector<256x32xf32>
    %158 = tpu.matmul %155, %157, %cst_180 {dimension_numbers = #tpu.dot_dimension_numbers<[1], [0], [0], [1], [0, 0, 1, 1], [], []>} : vector<256x32xbf16>, vector<32x32xbf16>, vector<256x32xf32> -> vector<256x32xf32>
    %159 = arith.addf %153, %158 : vector<256x32xf32>
    %c1_181 = arith.constant 1 : index
    %c1_182 = arith.constant 1 : index
    %c0_183 = arith.constant 0 : index
    %160 = vector.load %arg12[%c1_181, %c1_182, %c0_183] : memref<18x18x32xbf16, #tpu.memory_space<vmem>>, vector<16x16x32xbf16>
    %161 = vector.shape_cast %160 : vector<16x16x32xbf16> to vector<256x32xbf16>
    %c4_184 = arith.constant 4 : index
    %c0_185 = arith.constant 0 : index
    %c0_186 = arith.constant 0 : index
    %162 = vector.load %arg7[%c4_184, %c0_185, %c0_186] : memref<9x32x32xbf16, #tpu.memory_space<vmem>>, vector<1x32x32xbf16>
    %163 = vector.shape_cast %162 : vector<1x32x32xbf16> to vector<32x32xbf16>
    %cst_187 = arith.constant dense<0.000000e+00> : vector<256x32xf32>
    %164 = tpu.matmul %161, %163, %cst_187 {dimension_numbers = #tpu.dot_dimension_numbers<[1], [0], [0], [1], [0, 0, 1, 1], [], []>} : vector<256x32xbf16>, vector<32x32xbf16>, vector<256x32xf32> -> vector<256x32xf32>
    %165 = arith.addf %159, %164 : vector<256x32xf32>
    %c1_188 = arith.constant 1 : index
    %c2_189 = arith.constant 2 : index
    %c0_190 = arith.constant 0 : index
    %166 = vector.load %arg12[%c1_188, %c2_189, %c0_190] : memref<18x18x32xbf16, #tpu.memory_space<vmem>>, vector<16x16x32xbf16>
    %167 = vector.shape_cast %166 : vector<16x16x32xbf16> to vector<256x32xbf16>
    %c5_191 = arith.constant 5 : index
    %c0_192 = arith.constant 0 : index
    %c0_193 = arith.constant 0 : index
    %168 = vector.load %arg7[%c5_191, %c0_192, %c0_193] : memref<9x32x32xbf16, #tpu.memory_space<vmem>>, vector<1x32x32xbf16>
    %169 = vector.shape_cast %168 : vector<1x32x32xbf16> to vector<32x32xbf16>
    %cst_194 = arith.constant dense<0.000000e+00> : vector<256x32xf32>
    %170 = tpu.matmul %167, %169, %cst_194 {dimension_numbers = #tpu.dot_dimension_numbers<[1], [0], [0], [1], [0, 0, 1, 1], [], []>} : vector<256x32xbf16>, vector<32x32xbf16>, vector<256x32xf32> -> vector<256x32xf32>
    %171 = arith.addf %165, %170 : vector<256x32xf32>
    %c2_195 = arith.constant 2 : index
    %c0_196 = arith.constant 0 : index
    %c0_197 = arith.constant 0 : index
    %172 = vector.load %arg12[%c2_195, %c0_196, %c0_197] : memref<18x18x32xbf16, #tpu.memory_space<vmem>>, vector<16x16x32xbf16>
    %173 = vector.shape_cast %172 : vector<16x16x32xbf16> to vector<256x32xbf16>
    %c6_198 = arith.constant 6 : index
    %c0_199 = arith.constant 0 : index
    %c0_200 = arith.constant 0 : index
    %174 = vector.load %arg7[%c6_198, %c0_199, %c0_200] : memref<9x32x32xbf16, #tpu.memory_space<vmem>>, vector<1x32x32xbf16>
    %175 = vector.shape_cast %174 : vector<1x32x32xbf16> to vector<32x32xbf16>
    %cst_201 = arith.constant dense<0.000000e+00> : vector<256x32xf32>
    %176 = tpu.matmul %173, %175, %cst_201 {dimension_numbers = #tpu.dot_dimension_numbers<[1], [0], [0], [1], [0, 0, 1, 1], [], []>} : vector<256x32xbf16>, vector<32x32xbf16>, vector<256x32xf32> -> vector<256x32xf32>
    %177 = arith.addf %171, %176 : vector<256x32xf32>
    %c2_202 = arith.constant 2 : index
    %c1_203 = arith.constant 1 : index
    %c0_204 = arith.constant 0 : index
    %178 = vector.load %arg12[%c2_202, %c1_203, %c0_204] : memref<18x18x32xbf16, #tpu.memory_space<vmem>>, vector<16x16x32xbf16>
    %179 = vector.shape_cast %178 : vector<16x16x32xbf16> to vector<256x32xbf16>
    %c7_205 = arith.constant 7 : index
    %c0_206 = arith.constant 0 : index
    %c0_207 = arith.constant 0 : index
    %180 = vector.load %arg7[%c7_205, %c0_206, %c0_207] : memref<9x32x32xbf16, #tpu.memory_space<vmem>>, vector<1x32x32xbf16>
    %181 = vector.shape_cast %180 : vector<1x32x32xbf16> to vector<32x32xbf16>
    %cst_208 = arith.constant dense<0.000000e+00> : vector<256x32xf32>
    %182 = tpu.matmul %179, %181, %cst_208 {dimension_numbers = #tpu.dot_dimension_numbers<[1], [0], [0], [1], [0, 0, 1, 1], [], []>} : vector<256x32xbf16>, vector<32x32xbf16>, vector<256x32xf32> -> vector<256x32xf32>
    %183 = arith.addf %177, %182 : vector<256x32xf32>
    %c2_209 = arith.constant 2 : index
    %c2_210 = arith.constant 2 : index
    %c0_211 = arith.constant 0 : index
    %184 = vector.load %arg12[%c2_209, %c2_210, %c0_211] : memref<18x18x32xbf16, #tpu.memory_space<vmem>>, vector<16x16x32xbf16>
    %185 = vector.shape_cast %184 : vector<16x16x32xbf16> to vector<256x32xbf16>
    %c8_212 = arith.constant 8 : index
    %c0_213 = arith.constant 0 : index
    %c0_214 = arith.constant 0 : index
    %186 = vector.load %arg7[%c8_212, %c0_213, %c0_214] : memref<9x32x32xbf16, #tpu.memory_space<vmem>>, vector<1x32x32xbf16>
    %187 = vector.shape_cast %186 : vector<1x32x32xbf16> to vector<32x32xbf16>
    %cst_215 = arith.constant dense<0.000000e+00> : vector<256x32xf32>
    %188 = tpu.matmul %185, %187, %cst_215 {dimension_numbers = #tpu.dot_dimension_numbers<[1], [0], [0], [1], [0, 0, 1, 1], [], []>} : vector<256x32xbf16>, vector<32x32xbf16>, vector<256x32xf32> -> vector<256x32xf32>
    %189 = arith.addf %183, %188 : vector<256x32xf32>
    %cst_216 = arith.constant 0.000000e+00 : f32
    %190 = vector.broadcast %cst_216 : f32 to vector<256x32xf32>
    %191 = arith.maximumf %189, %190 : vector<256x32xf32>
    %192 = vector.shape_cast %191 : vector<256x32xf32> to vector<16x16x32xf32>
    %c0_217 = arith.constant 0 : index
    %c0_218 = arith.constant 0 : index
    %c0_219 = arith.constant 0 : index
    %c0_220 = arith.constant 0 : index
    %193 = vector.load %arg9[%c0_217, %c0_218, %c0_219, %c0_220] : memref<1x16x16x32xf32, #tpu.memory_space<vmem>>, vector<1x16x16x32xf32>
    %194 = vector.shape_cast %193 : vector<1x16x16x32xf32> to vector<16x16x32xf32>
    %195 = vector.shape_cast %192 : vector<16x16x32xf32> to vector<1x16x16x32xf32>
    tpu.vector_store %arg9[%c0_217, %c0_218, %c0_219, %c0_220], %195 {strides = array<i32>} : memref<1x16x16x32xf32, #tpu.memory_space<vmem>>, vector<1x16x16x32xf32>,
    return
  }
  func.func @transform_0(%arg0: i32) -> (i32, i32, i32, i32) {
    %c0_i32 = arith.constant 0 : i32
    %c0_i32_0 = arith.constant 0 : i32
    %c0_i32_1 = arith.constant 0 : i32
    %c0_i32_2 = arith.constant 0 : i32
    return %arg0, %c0_i32, %c0_i32_0, %c0_i32_1 : i32, i32, i32, i32
  }
  func.func @transform_1(%arg0: i32) -> (i32, i32, i32, i32) {
    %c0_i32 = arith.constant 0 : i32
    %c0_i32_0 = arith.constant 0 : i32
    %c0_i32_1 = arith.constant 0 : i32
    %c0_i32_2 = arith.constant 0 : i32
    return %arg0, %c0_i32, %c0_i32_0, %c0_i32_1 : i32, i32, i32, i32
  }
  func.func @transform_2(%arg0: i32) -> (i32, i32) {
    %c0_i32 = arith.constant 0 : i32
    %c0_i32_0 = arith.constant 0 : i32
    %c0_i32_1 = arith.constant 0 : i32
    return %c0_i32, %c0_i32_0 : i32, i32
  }
  func.func @transform_3(%arg0: i32) -> (i32, i32, i32) {
    %c0_i32 = arith.constant 0 : i32
    %c0_i32_0 = arith.constant 0 : i32
    %c0_i32_1 = arith.constant 0 : i32
    %c0_i32_2 = arith.constant 0 : i32
    return %c0_i32, %c0_i32_0, %c0_i32_1 : i32, i32, i32
  }
  func.func @transform_4(%arg0: i32) -> (i32, i32, i32) {
    %c0_i32 = arith.constant 0 : i32
    %c0_i32_0 = arith.constant 0 : i32
    %c0_i32_1 = arith.constant 0 : i32
    %c0_i32_2 = arith.constant 0 : i32
    return %c0_i32, %c0_i32_0, %c0_i32_1 : i32, i32, i32
  }
  func.func @transform_5(%arg0: i32) -> (i32, i32) {
    %c0_i32 = arith.constant 0 : i32
    %c0_i32_0 = arith.constant 0 : i32
    %c0_i32_1 = arith.constant 0 : i32
    return %c0_i32, %c0_i32_0 : i32, i32
  }
  func.func @transform_6(%arg0: i32) -> (i32, i32, i32) {
    %c0_i32 = arith.constant 0 : i32
    %c0_i32_0 = arith.constant 0 : i32
    %c0_i32_1 = arith.constant 0 : i32
    %c0_i32_2 = arith.constant 0 : i32
    return %c0_i32, %c0_i32_0, %c0_i32_1 : i32, i32, i32
  }
  func.func @transform_7(%arg0: i32) -> (i32, i32) {
    %c0_i32 = arith.constant 0 : i32
    %c0_i32_0 = arith.constant 0 : i32
    %c0_i32_1 = arith.constant 0 : i32
    return %c0_i32, %c0_i32_0 : i32, i32
  }
  func.func @transform_8(%arg0: i32) -> (i32, i32, i32, i32) {
    %c0_i32 = arith.constant 0 : i32
    %c0_i32_0 = arith.constant 0 : i32
    %c0_i32_1 = arith.constant 0 : i32
    %c0_i32_2 = arith.constant 0 : i32
    return %arg0, %c0_i32, %c0_i32_0, %c0_i32_1 : i32, i32, i32, i32
  }
}

</mosaic_0001>

<bundles_post_ra>
// kernel: up_forward.1
= control target key start
LH: loop header
LB: loop body
LE: loop exit
PB: predicated region body
PF: predicated region fallthrough
CT: control target
= control target key end

     0   :  { %13 = vsyncpa [#allocation6], 0  ;;  %s26030_s0 = inlined_call_operand.vmem [shape: bf16[2,8,8,32], index: 0, kind: input, shape index: {}]   ;;  %s26031_s1 = inlined_call_operand.vmem [shape: bf16[2,16,16,32], index: 1, kind: input, shape index: {}]   ;;  %s26032_s2 = inlined_call_operand.vmem [shape: bf16[256,64], index: 2, kind: input, shape index: {}]   ;;  %s26033_s3 = inlined_call_operand.vmem [shape: bf16[9,32,32], index: 3, kind: input, shape index: {}]   ;;  %s26034_s4 = inlined_call_operand.vmem [shape: bf16[9,32,32], index: 4, kind: input, shape index: {}]   ;;  %s26035_s5 = inlined_call_operand.vmem [shape: f32[1,32], index: 5, kind: input, shape index: {}]   ;;  %s26036_s6 = inlined_call_operand.vmem [shape: bf16[9,32,32], index: 6, kind: input, shape index: {}]   ;;  %s26037_s7 = inlined_call_operand.vmem [shape: f32[1,32], index: 7, kind: input, shape index: {}]   ;;  %s26038_s8 = inlined_call_operand.hbm [shape: f32[2,16,16,32], index: 8, kind: output, shape index: {}]  }
   0x1   :  { %15 = vsyncpa [#allocation6 + $0x1], 0  ;;  %s21149_s27 = smov 0   ;;  %s21151_s28 = smov 0  }
   0x2   :  { %s21153_s29 = smov 0   ;;  %s21155_s30 = smov 0  }
   0x3 LB: > { %s21170_s9 = sadd.s32 4294967295, %s21098_s30   ;;  %s16889_s10 = sadd.s32 4294967294, %s21098_s30   ;;  %s21098_s30 = sphi %s21155_s30, %s26386_s30   ;;  %s21094_s29 = sphi %s21153_s29, %s26385_s29   ;;  %s21090_s28 = sphi %s21151_s28, %s26384_s28   ;;  %s21086_s27 = sphi %s21149_s27, %s26383_s27  }
   0x4   : > { %s21174_s11 = sadd.s32 1, %s21098_s30   ;;  %s206_s12 = sadd.s32 1, %s21094_s29 }
   0x5   : > { %s203_s13 = ssub.s32 %s21098_s30, %s21174_s11  ;;  %p216_p0 = scmp.ne.s32.totalorder %s21094_s29, %s21090_s28 }
   0x6   : > { %p204_p1 = scmp.eq.s32.totalorder %s203_s13, 0  ;;  %p217_p2 = scmp.eq.s32.totalorder %s21170_s9, 1 }
   0x7   : > { %p222_p3 = scmp.ne.s32.totalorder %s21090_s28, %s21086_s27  ;;  %p223_p4 = scmp.eq.s32.totalorder %s16889_s10, 1 }
   0x8   : > { %s21185_s14 = scalar_select %p204_p1, %s21094_s29, %s206_s12  }
   0x9   : > { %p21187_p5 = por %p217_p2, %p216_p0  ;;  %p21191_p6 = por %p223_p4, %p222_p3 }
   0xa   : > { %p16892_p7 = scmp.ge.s32.totalorder %s21098_s30, 1  ;;  %p275_p8 = scmp.lt.s32.totalorder %s21098_s30, 3 }
   0xc   : > { %p276_p9 = pnand %p16892_p7, %p275_p8 }
   0xe   : > { %279 = sbr.rel (%p276_p9) target bundleno = 2168 (0x878), region = 52 }
  0x15   : > { %p314_p10 = scmp.lt.s32.totalorder %s21170_s9, 1  ;;  %v20658_v0 = vld [vmem:[%s26032_s2] sm:$0xff]   ;;  %vm469_vm0 = vcmask 523264   ;;  %vm679_vm1 = vcmask 257024   ;;  %v21100_v2 = vmov 0   ;;  %vm682_vm2 = vcmask 253952  }
  0x16   : > { %18744 = vmatprep.mubr.msk.bf16.mxu0 %vm469_vm0, %v20658_v0  ;;  %680 = vst.msk [vmem:[#allocation2] sm:$0xf] %vm679_vm1, %v21100_v2  ;;  %681 = vst.msk [vmem:[#allocation2 + $0x4] sm:$0xf] %vm679_vm1, %v21100_v2  ;;  %v20659_v6 = vld [vmem:[%s26032_s2 + $0x8] sm:$0xff]   ;;  %v20660_v7 = vld [vmem:[%s26032_s2 + $0x10] sm:$0xff]  }
  0x17   : > { %s21202_s19 = scalar_select %p314_p10, %s21170_s9, 1  ;;  %684 = vst.msk [vmem:[#allocation2 + $0xc] sm:$0xf] %vm679_vm1, %v21100_v2  ;;  %685 = vst.msk [vmem:[#allocation2 + $0x10] sm:$0xf] %vm679_vm1, %v21100_v2  ;;  %v20674_v8 = vld [vmem:[%s26033_s3] sm:$0xff]  }
  0x18   : > { %687 = vst.msk [vmem:[#allocation2 + $0x18] sm:$0xf] %vm679_vm1, %v21100_v2  ;;  %688 = vst.msk [vmem:[#allocation2 + $0x1c] sm:$0xf] %vm679_vm1, %v21100_v2  ;;  %v20675_v9 = vld [vmem:[%s26033_s3 + $0x8] sm:$0xff]   ;;  %vm4080_vm3 = vcmask 1042432  }
  0x19   : > { %s18163_s20 = sshll.u32 %s21202_s19, 5  ;;  %690 = vst.msk [vmem:[#allocation2 + $0x24] sm:$0xf] %vm679_vm1, %v21100_v2  ;;  %691 = vst.msk [vmem:[#allocation2 + $0x28] sm:$0xf] %vm679_vm1, %v21100_v2  ;;  %s18164_s24 = sshll.u32 %s21202_s19, 7 }
  0x1a   : > { %s21209_s23 = scalar_lea.vmem %s26030_s0, %s18163_s20  ;;  %693 = vst.msk [vmem:[#allocation2 + $0x30] sm:$0xf] %vm679_vm1, %v21100_v2  ;;  %694 = vst.msk [vmem:[#allocation2 + $0x34] sm:$0xf] %vm679_vm1, %v21100_v2  ;;  %s21553_s18 = scalar_lea.vmem %s26031_s1, %s18164_s24  ;;  %v20676_v10 = vld [vmem:[%s26033_s3 + $0x20] sm:$0xff]   ;;  %vm4081_vm4 = vcmask 1046532  }
  0x1b   : > { %v21212_v1 = vld [vmem:[%s21209_s23] sm:$0xff]   ;;  %696 = vst.msk [vmem:[#allocation2 + $0x3c] sm:$0xf] %vm679_vm1, %v21100_v2  ;;  %697 = vst.msk [vmem:[#allocation2 + $0x40] sm:$0xf] %vm679_vm1, %v21100_v2  ;;  %v20655_v3 = vld [vmem:[%s21209_s23 + $0x8] sm:$0xff]   ;;  %18920 = vmatprep.subr.bf16.mxu1 %v20676_v10 }
  0x1c   : > { %699 = vst.msk [vmem:[#allocation2 + $0x48] sm:$0xf] %vm679_vm1, %v21100_v2  ;;  %700 = vst.msk [vmem:[#allocation2 + $0x4c] sm:$0xf] %vm679_vm1, %v21100_v2  ;;  %18736 = vmatprep.subr.bf16.mxu0 %v21212_v1  ;;  %v20656_v4 = vld [vmem:[%s21209_s23 + $0x10] sm:$0xff]   ;;  %v20657_v5 = vld [vmem:[%s21209_s23 + $0x18] sm:$0xff]   ;;  %18921 = vmatpush3.bf16.msra.mxu1 %v20676_v10 }
  0x1d   : > { %702 = vst.msk [vmem:[#allocation2 + $0x54] sm:$0xf] %vm679_vm1, %v21100_v2  ;;  %703 = vst.msk [vmem:[#allocation2 + $0x58] sm:$0xf] %vm679_vm1, %v21100_v2  ;;  %18737 = vmatpush3.bf16.msra.mxu0 %v21212_v1  ;;  %v789_v11 = vld [vmem:[%s21553_s18] sm:$0xf] }
  0x1e   : > { %705 = vst.msk [vmem:[#allocation2 + $0x60] sm:$0xf] %vm679_vm1, %v21100_v2  ;;  %706 = vst.msk [vmem:[#allocation2 + $0x64] sm:$0xf] %vm679_vm1, %v21100_v2  ;;  %18738 = vmatprep.subr.bf16.mxu0 %v20655_v3  ;;  %v790_v12 = vld [vmem:[%s21553_s18 + $0x4] sm:$0xf] }
  0x1f   : > { %708 = vst.msk [vmem:[#allocation2 + $0x6c] sm:$0xf] %vm679_vm1, %v21100_v2  ;;  %709 = vst.msk [vmem:[#allocation2 + $0x70] sm:$0xf] %vm679_vm1, %v21100_v2  ;;  %vm821_vm5 = vsmask.f32 256 }
  0x20   : > { %711 = vst.msk [vmem:[#allocation2 + $0x78] sm:$0xf] %vm679_vm1, %v21100_v2  ;;  %712 = vst.msk [vmem:[#allocation2 + $0x7c] sm:$0xf] %vm679_vm1, %v21100_v2  ;;  %vm822_vm6 = vsmask.f32 4368 }
  0x21   : > { %714 = vst.msk [vmem:[#allocation2 + $0x84] sm:$0xf] %vm679_vm1, %v21100_v2  ;;  %715 = vst.msk [vmem:[#allocation2 + $0x88] sm:$0xf] %vm679_vm1, %v21100_v2  ;;  %18739 = vmatpush3.bf16.msra.mxu0 %v20655_v3  ;;  %v825_v13 = vshrl.u32 %v789_v11, 16  ;;  %v828_v14 = vshll.u32 %v789_v11, 16 }
  0x22   : > { %717 = vst.msk [vmem:[#allocation2 + $0x90] sm:$0xf] %vm679_vm1, %v21100_v2  ;;  %718 = vst.msk [vmem:[#allocation2 + $0x94] sm:$0xf] %vm679_vm1, %v21100_v2  ;;  %18740 = vmatprep.subr.bf16.mxu0 %v20656_v4  ;;  %v20661_v15 = vld [vmem:[%s26032_s2 + $0x18] sm:$0xff]   ;;  %v833_v16 = vshrl.u32 %v790_v12, 16 }
  0x23   : > { %720 = vst.msk [vmem:[#allocation2 + $0x9c] sm:$0xf] %vm679_vm1, %v21100_v2  ;;  %721 = vst.msk [vmem:[#allocation2 + $0xa0] sm:$0xf] %vm679_vm1, %v21100_v2  ;;  %v836_v17 = vshll.u32 %v790_v12, 16  ;;  %v20662_v20 = vld [vmem:[%s26032_s2 + $0x20] sm:$0xff]  }
  0x24   : > { %723 = vst.msk [vmem:[#allocation2 + $0xa8] sm:$0xf] %vm679_vm1, %v21100_v2  ;;  %724 = vst.msk [vmem:[#allocation2 + $0xac] sm:$0xf] %vm679_vm1, %v21100_v2  ;;  %vm1146_vm7 = vsmask.f32 7938 }
  0x25   : > { %726 = vst.msk [vmem:[#allocation2 + $0xb4] sm:$0xf] %vm679_vm1, %v21100_v2  ;;  %727 = vst.msk [vmem:[#allocation2 + $0xb8] sm:$0xf] %vm679_vm1, %v21100_v2  ;;  %18741 = vmatpush3.bf16.msra.mxu0 %v20656_v4  ;;  %v1148_v18 = vld [vmem:[#allocation2 + $0xc] sm:$0xf] }
  0x26   : > { %729 = vst.msk [vmem:[#allocation2 + $0xc0] sm:$0xf] %vm679_vm1, %v21100_v2  ;;  %730 = vst.msk [vmem:[#allocation2 + $0xc4] sm:$0xf] %vm679_vm1, %v21100_v2  ;;  %18742 = vmatprep.subr.bf16.mxu0 %v20657_v5  ;;  %v827_v21 = vrot.slane %v825_v13, 7  ;;  %v26118_v22 = vmov 0 }
  0x27   : > { %732 = vst.msk [vmem:[#allocation2 + $0xcc] sm:$0xf] %vm679_vm1, %v21100_v2  ;;  %733 = vst.msk [vmem:[#allocation2 + $0xd0] sm:$0xf] %vm679_vm1, %v21100_v2  ;;  %v835_v23 = vrot.slane %v833_v16, 7  ;;  %v20679_v24 = vld [vmem:[%s26033_s3 + $0x28] sm:$0xff]  }
  0x28   : > { %735 = vst.msk [vmem:[#allocation3] sm:$0xf] %vm679_vm1, %v21100_v2  ;;  %736 = vst.msk [vmem:[#allocation3 + $0x4] sm:$0xf] %vm679_vm1, %v21100_v2  ;;  %v2538_v25 = vld [vmem:[#allocation2 + $0x4] sm:$0xf]  ;;  %v830_v28 = vor.u32 %v828_v14, %v827_v21  ;;  %18922 = vmatprep.subr.bf16.mxu1 %v20679_v24 }
  0x29   : > { %738 = vst.msk [vmem:[#allocation3 + $0xc] sm:$0xf] %vm679_vm1, %v21100_v2  ;;  %739 = vst.msk [vmem:[#allocation3 + $0x10] sm:$0xf] %vm679_vm1, %v21100_v2  ;;  %18743 = vmatpush3.bf16.msra.mxu0 %v20657_v5  ;;  %v26121_v27 = vmov 0  ;;  %v831_v29 = vrot.slane %v827_v21, 4  ;;  %v838_v32 = vor.u32 %v836_v17, %v835_v23  ;;  %18923 = vmatpush3.bf16.msra.mxu1 %v20679_v24 }
  0x2a   : > { %741 = vst.msk [vmem:[#allocation3 + $0x18] sm:$0xf] %vm679_vm1, %v21100_v2  ;;  %742 = vst.msk [vmem:[#allocation3 + $0x1c] sm:$0xf] %vm679_vm1, %v21100_v2  ;;  %18776 = vmatprep.subr.bf16.mxu0 %v20674_v8  ;;  %v4016_v30 = vld [vmem:[#allocation2] sm:$0xe] }
  0x2b   : > { %744 = vst.msk [vmem:[#allocation3 + $0x24] sm:$0xf] %vm679_vm1, %v21100_v2  ;;  %745 = vst.msk [vmem:[#allocation3 + $0x28] sm:$0xf] %vm679_vm1, %v21100_v2  ;;  %v21597_v31 = vld [vmem:[%s26034_s4 + $0x20] sm:$0xff]   ;;  %v17111_v33 = vrot.slane %v4016_v30, 9 }
  0x2c   : > { %747 = vst.msk [vmem:[#allocation3 + $0x30] sm:$0xf] %vm679_vm1, %v21100_v2  ;;  %748 = vst.msk [vmem:[#allocation3 + $0x34] sm:$0xf] %vm679_vm1, %v21100_v2  ;;  %18745 = vmatmul.mubr.msk.bf16.vlgmr.msra.gmra.mrb[0].mxu0 %vm469_vm0, %v20659_v6  ;;  %v4085_v34 = vrot.slane %v2538_v25, 5  ;;  %18956 = vmatprep.subr.bf16.mxu1 %v21597_v31  ;;  %v26124_v40 = vmov 0 }
  0x2d   : > { %750 = vst.msk [vmem:[#allocation3 + $0x3c] sm:$0xf] %vm679_vm1, %v21100_v2  ;;  %751 = vst.msk [vmem:[#allocation3 + $0x40] sm:$0xf] %vm679_vm1, %v21100_v2  ;;  %18748 = vmatprep.mubr.msk.bf16.mxu0 %vm469_vm0, %v20660_v7  ;;  %18777 = vmatpush3.bf16.msra.mxu0 %v20674_v8  ;;  %v791_v42 = vld [vmem:[%s21553_s18 + $0x8] sm:$0xf] }
  0x2e   : > { %753 = vst.msk [vmem:[#allocation3 + $0x48] sm:$0xf] %vm679_vm1, %v21100_v2  ;;  %754 = vst.msk [vmem:[#allocation3 + $0x4c] sm:$0xf] %vm679_vm1, %v21100_v2  ;;  %18778 = vmatprep.subr.bf16.mxu0 %v20675_v9  ;;  %v4087_v39 = vrot.slane %v4085_v34, 4  ;;  %v840_v43 = vrot.slane %v835_v23, 4 }
  0x2f   : > { %756 = vst.msk [vmem:[#allocation3 + $0x54] sm:$0xf] %vm679_vm1, %v21100_v2  ;;  %757 = vst.msk [vmem:[#allocation3 + $0x58] sm:$0xf] %vm679_vm1, %v21100_v2  ;;  %v792_v44 = vld [vmem:[%s21553_s18 + $0xc] sm:$0xf] }
  0x30   : > { %759 = vst.msk [vmem:[#allocation3 + $0x60] sm:$0xf] %vm679_vm1, %v21100_v2  ;;  %760 = vst.msk [vmem:[#allocation3 + $0x64] sm:$0xf] %vm679_vm1, %v21100_v2  ;;  %v842_v45 = vshrl.u32 %v791_v42, 16  ;;  %v845_v46 = vshll.u32 %v791_v42, 16 }
  0x31   : > { %762 = vst.msk [vmem:[#allocation3 + $0x6c] sm:$0xf] %vm679_vm1, %v21100_v2  ;;  %763 = vst.msk [vmem:[#allocation3 + $0x70] sm:$0xf] %vm679_vm1, %v21100_v2  ;;  %18779 = vmatpush3.bf16.msra.mxu0 %v20675_v9  ;;  %vm1958_vm12 = vcmask 261120   ;;  %v850_v48 = vshrl.u32 %v792_v44, 16 }
  0x32   : > { %765 = vst.msk [vmem:[#allocation3 + $0x78] sm:$0xf] %vm679_vm1, %v21100_v2  ;;  %766 = vst.msk [vmem:[#allocation3 + $0x7c] sm:$0xf] %vm679_vm1, %v21100_v2  ;;  %v853_v49 = vshll.u32 %v792_v44, 16  ;;  %v20663_v51 = vld [vmem:[%s26032_s2 + $0x28] sm:$0xff]  }
  0x33   : > { %768 = vst.msk [vmem:[#allocation3 + $0x84] sm:$0xf] %vm679_vm1, %v21100_v2  ;;  %769 = vst.msk [vmem:[#allocation3 + $0x88] sm:$0xf] %vm679_vm1, %v21100_v2  ;;  %v793_v50 = vld [vmem:[%s21553_s18 + $0x10] sm:$0xf] }
  0x34   : > { %771 = vst.msk [vmem:[#allocation3 + $0x90] sm:$0xf] %vm679_vm1, %v21100_v2  ;;  %772 = vst.msk [vmem:[#allocation3 + $0x94] sm:$0xf] %vm679_vm1, %v21100_v2  ;;  %18749 = vmatmul.mubr.msk.bf16.gmra.mrb[4].mxu0 %vm469_vm0, %v20661_v15  ;;  %v20664_v52 = vld [vmem:[%s26032_s2 + $0x30] sm:$0xff]   ;;  %v844_v55 = vrot.slane %v842_v45, 7 }
  0x35   : > { %774 = vst.msk [vmem:[#allocation3 + $0x9c] sm:$0xf] %vm679_vm1, %v21100_v2  ;;  %775 = vst.msk [vmem:[#allocation3 + $0xa0] sm:$0xf] %vm679_vm1, %v21100_v2  ;;  %18752 = vmatprep.mubr.msk.bf16.mxu0 %vm469_vm0, %v20662_v20  ;;  %v794_v56 = vld [vmem:[%s21553_s18 + $0x14] sm:$0xf] }
  0x36   : > { %777 = vst.msk [vmem:[#allocation3 + $0xa8] sm:$0xf] %vm679_vm1, %v21100_v2  ;;  %778 = vst.msk [vmem:[#allocation3 + $0xac] sm:$0xf] %vm679_vm1, %v21100_v2  ;;  %v859_v57 = vshrl.u32 %v793_v50, 16  ;;  %v852_v58 = vrot.slane %v850_v48, 7  ;;  %v847_v63 = vor.u32 %v845_v46, %v844_v55 }
  0x37   : > { %780 = vst.msk [vmem:[#allocation3 + $0xb4] sm:$0xf] %vm679_vm1, %v21100_v2  ;;  %781 = vst.msk [vmem:[#allocation3 + $0xb8] sm:$0xf] %vm679_vm1, %v21100_v2  ;;  %v1157_v59 = vld [vmem:[#allocation2 + $0x18] sm:$0xf] }
  0x38   : > { %783 = vst.msk [vmem:[#allocation3 + $0xc0] sm:$0xf] %vm679_vm1, %v21100_v2  ;;  %784 = vst.msk [vmem:[#allocation3 + $0xc4] sm:$0xf] %vm679_vm1, %v21100_v2  ;;  %v862_v60 = vshll.u32 %v793_v50, 16  ;;  %v867_v61 = vshrl.u32 %v794_v56, 16  ;;  %v855_v5 = vor.u32 %v853_v49, %v852_v58 }
  0x39   : > { %786 = vst.msk [vmem:[#allocation3 + $0xcc] sm:$0xf] %vm679_vm1, %v21100_v2  ;;  %787 = vst.msk [vmem:[#allocation3 + $0xd0] sm:$0xf] %vm679_vm1, %v21100_v2  ;;  %v870_v62 = vshll.u32 %v794_v56, 16  ;;  %v848_v0 = vrot.slane %v844_v55, 4 }
  0x3a   : > { %11377 = vst.msk [vmem:[#allocation4] sm:$0xf] %vm679_vm1, %v21100_v2  ;;  %11378 = vst.msk [vmem:[#allocation4 + $0x4] sm:$0xf] %vm679_vm1, %v21100_v2  ;;  %v861_v1 = vrot.slane %v859_v57, 7  ;;  %v857_v6 = vrot.slane %v852_v58, 4 }
  0x3b   : > { %11380 = vst.msk [vmem:[#allocation4 + $0xc] sm:$0xf] %vm679_vm1, %v21100_v2  ;;  %11381 = vst.msk [vmem:[#allocation4 + $0x10] sm:$0xf] %vm679_vm1, %v21100_v2  ;;  %v795_v4 = vld [vmem:[%s21553_s18 + $0x18] sm:$0xf] }
  0x3c   : > { %11383 = vst.msk [vmem:[#allocation4 + $0x18] sm:$0xf] %vm679_vm1, %v21100_v2  ;;  %11384 = vst.msk [vmem:[#allocation4 + $0x1c] sm:$0xf] %vm679_vm1, %v21100_v2  ;;  %v869_v7 = vrot.slane %v867_v61, 7  ;;  %v876_v9 = vshrl.u32 %v795_v4, 16  ;;  %v864_v12 = vor.u32 %v862_v60, %v861_v1  ;;  %18753 = vmatmul.mubr.msk.bf16.gmra.mrb[8].mxu0 %vm469_vm0, %v20663_v51 }
  0x3d   : > { %11386 = vst.msk [vmem:[#allocation4 + $0x24] sm:$0xf] %vm679_vm1, %v21100_v2  ;;  %11387 = vst.msk [vmem:[#allocation4 + $0x28] sm:$0xf] %vm679_vm1, %v21100_v2  ;;  %v796_v8 = vld [vmem:[%s21553_s18 + $0x1c] sm:$0xf]  ;;  %18756 = vmatprep.mubr.msk.bf16.mxu0 %vm469_vm0, %v20664_v52 }
  0x3e   : > { %11389 = vst.msk [vmem:[#allocation4 + $0x30] sm:$0xf] %vm679_vm1, %v21100_v2  ;;  %11390 = vst.msk [vmem:[#allocation4 + $0x34] sm:$0xf] %vm679_vm1, %v21100_v2  ;;  %v865_v13 = vrot.slane %v861_v1, 4  ;;  %v879_v14 = vshll.u32 %v795_v4, 16 }
  0x3f   : > { %11392 = vst.msk [vmem:[#allocation4 + $0x3c] sm:$0xf] %vm679_vm1, %v21100_v2  ;;  %11393 = vst.msk [vmem:[#allocation4 + $0x40] sm:$0xf] %vm679_vm1, %v21100_v2  ;;  %v874_v23 = vrot.slane %v869_v7, 4  ;;  %v887_v44 = vshll.u32 %v796_v8, 16 }
  0x40   : > { %11395 = vst.msk [vmem:[#allocation4 + $0x48] sm:$0xf] %vm679_vm1, %v21100_v2  ;;  %11396 = vst.msk [vmem:[#allocation4 + $0x4c] sm:$0xf] %vm679_vm1, %v21100_v2  ;;  %v1171_v30 = vld [vmem:[#allocation2 + $0x30] sm:$0xf] }
  0x41   : > { %11398 = vst.msk [vmem:[#allocation4 + $0x54] sm:$0xf] %vm679_vm1, %v21100_v2  ;;  %11399 = vst.msk [vmem:[#allocation4 + $0x58] sm:$0xf] %vm679_vm1, %v21100_v2  ;;  %v1178_v57 = vld [vmem:[#allocation2 + $0x3c] sm:$0xf] }
  0x42   : > { %11401 = vst.msk [vmem:[#allocation4 + $0x60] sm:$0xf] %vm679_vm1, %v21100_v2  ;;  %11402 = vst.msk [vmem:[#allocation4 + $0x64] sm:$0xf] %vm679_vm1, %v21100_v2  ;;  %v799_v58 = vld [vmem:[%s21553_s18 + $0x28] sm:$0xf] }
  0x43   : > { %11404 = vst.msk [vmem:[#allocation4 + $0x6c] sm:$0xf] %vm679_vm1, %v21100_v2  ;;  %11405 = vst.msk [vmem:[#allocation4 + $0x70] sm:$0xf] %vm679_vm1, %v21100_v2  ;;  %vm2585_vm13 = vsmask.f32 3328 }
  0x44   : > { %11407 = vst.msk [vmem:[#allocation4 + $0x78] sm:$0xf] %vm679_vm1, %v21100_v2  ;;  %11408 = vst.msk [vmem:[#allocation4 + $0x7c] sm:$0xf] %vm679_vm1, %v21100_v2  ;;  %vm2586_vm14 = vsmask.f32 7440 }
  0x45   : > { %11410 = vst.msk [vmem:[#allocation4 + $0x84] sm:$0xf] %vm679_vm1, %v21100_v2  ;;  %11411 = vst.msk [vmem:[#allocation4 + $0x88] sm:$0xf] %vm679_vm1, %v21100_v2  ;;  %s18229_s24 = sshll.u32 %s21170_s9, 12  ;;  %s21101_s20 = smov [#allocation5]  }
  0x46   : > { %11413 = vst.msk [vmem:[#allocation4 + $0x90] sm:$0xf] %vm679_vm1, %v21100_v2  ;;  %11414 = vst.msk [vmem:[#allocation4 + $0x94] sm:$0xf] %vm679_vm1, %v21100_v2  ;;  %s25977_s13 = scalar_lea.hbm %s26038_s8, %s18229_s24  ;;  %s21040_s21 = sshll.u32 %s21101_s20, 4  ;;  %s21041_s21 = int_to_ptr.vmem [resolvable:$false] %s21040_s21 }
  0x47   : > { %11416 = vst.msk [vmem:[#allocation4 + $0x9c] sm:$0xf] %vm679_vm1, %v21100_v2  ;;  %11417 = vst.msk [vmem:[#allocation4 + $0xa0] sm:$0xf] %vm679_vm1, %v21100_v2  ;;  %s21042_s19 = scalar_lea.vmem %s21041_s21, 8192 }
  0x48   : > { %11419 = vst.msk [vmem:[#allocation4 + $0xa8] sm:$0xf] %vm679_vm1, %v21100_v2  ;;  %11420 = vst.msk [vmem:[#allocation4 + $0xac] sm:$0xf] %vm679_vm1, %v21100_v2 }
  0x49   : > { %11422 = vst.msk [vmem:[#allocation4 + $0xb4] sm:$0xf] %vm679_vm1, %v21100_v2  ;;  %11423 = vst.msk [vmem:[#allocation4 + $0xb8] sm:$0xf] %vm679_vm1, %v21100_v2 }
  0x4a   : > { %11425 = vst.msk [vmem:[#allocation4 + $0xc0] sm:$0xf] %vm679_vm1, %v21100_v2  ;;  %11426 = vst.msk [vmem:[#allocation4 + $0xc4] sm:$0xf] %vm679_vm1, %v21100_v2 }
  0x4b   : > { %11428 = vst.msk [vmem:[#allocation4 + $0xcc] sm:$0xf] %vm679_vm1, %v21100_v2  ;;  %11429 = vst.msk [vmem:[#allocation4 + $0xd0] sm:$0xf] %vm679_vm1, %v21100_v2 }
  0x4c   : > { %683 = vst.msk [vmem:[#allocation2 + $0x8] sm:$0x1] %vm682_vm2, %v21100_v2  ;;  %686 = vst.msk [vmem:[#allocation2 + $0x14] sm:$0x1] %vm682_vm2, %v21100_v2 }
  0x4d   : > { %689 = vst.msk [vmem:[#allocation2 + $0x20] sm:$0x1] %vm682_vm2, %v21100_v2  ;;  %692 = vst.msk [vmem:[#allocation2 + $0x2c] sm:$0x1] %vm682_vm2, %v21100_v2 }
  0x4e   : > { %695 = vst.msk [vmem:[#allocation2 + $0x38] sm:$0x1] %vm682_vm2, %v21100_v2  ;;  %698 = vst.msk [vmem:[#allocation2 + $0x44] sm:$0x1] %vm682_vm2, %v21100_v2 }
  0x4f   : > { %701 = vst.msk [vmem:[#allocation2 + $0x50] sm:$0x1] %vm682_vm2, %v21100_v2  ;;  %704 = vst.msk [vmem:[#allocation2 + $0x5c] sm:$0x1] %vm682_vm2, %v21100_v2 }
  0x50   : > { %707 = vst.msk [vmem:[#allocation2 + $0x68] sm:$0x1] %vm682_vm2, %v21100_v2  ;;  %710 = vst.msk [vmem:[#allocation2 + $0x74] sm:$0x1] %vm682_vm2, %v21100_v2 }
  0x51   : > { %713 = vst.msk [vmem:[#allocation2 + $0x80] sm:$0x1] %vm682_vm2, %v21100_v2  ;;  %716 = vst.msk [vmem:[#allocation2 + $0x8c] sm:$0x1] %vm682_vm2, %v21100_v2 }
  0x52   : > { %719 = vst.msk [vmem:[#allocation2 + $0x98] sm:$0x1] %vm682_vm2, %v21100_v2  ;;  %722 = vst.msk [vmem:[#allocation2 + $0xa4] sm:$0x1] %vm682_vm2, %v21100_v2 }
  0x53   : > { %725 = vst.msk [vmem:[#allocation2 + $0xb0] sm:$0x1] %vm682_vm2, %v21100_v2  ;;  %728 = vst.msk [vmem:[#allocation2 + $0xbc] sm:$0x1] %vm682_vm2, %v21100_v2  ;;  %v2539_v26 = vld [vmem:[#allocation2 + $0x8] sm:$0x1] }
  0x54   : > { %731 = vst.msk [vmem:[#allocation2 + $0xc8] sm:$0x1] %vm682_vm2, %v21100_v2  ;;  %734 = vst.msk [vmem:[#allocation2 + $0xd4] sm:$0x1] %vm682_vm2, %v21100_v2  ;;  %v4088_v36 = vrot.slane %v2539_v26, 5 }
  0x55   : > { %737 = vst.msk [vmem:[#allocation3 + $0x8] sm:$0x1] %vm682_vm2, %v21100_v2  ;;  %740 = vst.msk [vmem:[#allocation3 + $0x14] sm:$0x1] %vm682_vm2, %v21100_v2  ;;  %v1154_v41 = vld [vmem:[#allocation2 + $0x14] sm:$0x1] }
  0x56   : > { %743 = vst.msk [vmem:[#allocation3 + $0x20] sm:$0x1] %vm682_vm2, %v21100_v2  ;;  %746 = vst.msk [vmem:[#allocation3 + $0x2c] sm:$0x1] %vm682_vm2, %v21100_v2  ;;  %v1161_v3 = vld [vmem:[#allocation2 + $0x20] sm:$0x1] }
  0x57   : > { %749 = vst.msk [vmem:[#allocation3 + $0x38] sm:$0x1] %vm682_vm2, %v21100_v2  ;;  %752 = vst.msk [vmem:[#allocation3 + $0x44] sm:$0x1] %vm682_vm2, %v21100_v2  ;;  %v1168_v24 = vld [vmem:[#allocation2 + $0x2c] sm:$0x1] }
  0x58   : > { %755 = vst.msk [vmem:[#allocation3 + $0x50] sm:$0x1] %vm682_vm2, %v21100_v2  ;;  %758 = vst.msk [vmem:[#allocation3 + $0x5c] sm:$0x1] %vm682_vm2, %v21100_v2  ;;  %v1175_v48 = vld [vmem:[#allocation2 + $0x38] sm:$0x1] }
  0x59   : > { %761 = vst.msk [vmem:[#allocation3 + $0x68] sm:$0x1] %vm682_vm2, %v21100_v2  ;;  %764 = vst.msk [vmem:[#allocation3 + $0x74] sm:$0x1] %vm682_vm2, %v21100_v2 }
  0x5a   : > { %767 = vst.msk [vmem:[#allocation3 + $0x80] sm:$0x1] %vm682_vm2, %v21100_v2  ;;  %770 = vst.msk [vmem:[#allocation3 + $0x8c] sm:$0x1] %vm682_vm2, %v21100_v2 }
  0x5b   : > { %773 = vst.msk [vmem:[#allocation3 + $0x98] sm:$0x1] %vm682_vm2, %v21100_v2  ;;  %776 = vst.msk [vmem:[#allocation3 + $0xa4] sm:$0x1] %vm682_vm2, %v21100_v2 }
  0x5c   : > { %779 = vst.msk [vmem:[#allocation3 + $0xb0] sm:$0x1] %vm682_vm2, %v21100_v2  ;;  %782 = vst.msk [vmem:[#allocation3 + $0xbc] sm:$0x1] %vm682_vm2, %v21100_v2 }
  0x5d   : > { %785 = vst.msk [vmem:[#allocation3 + $0xc8] sm:$0x1] %vm682_vm2, %v21100_v2  ;;  %788 = vst.msk [vmem:[#allocation3 + $0xd4] sm:$0x1] %vm682_vm2, %v21100_v2 }
  0x5e   : > { %11379 = vst.msk [vmem:[#allocation4 + $0x8] sm:$0x1] %vm682_vm2, %v21100_v2  ;;  %11382 = vst.msk [vmem:[#allocation4 + $0x14] sm:$0x1] %vm682_vm2, %v21100_v2 }
  0x5f   : > { %11385 = vst.msk [vmem:[#allocation4 + $0x20] sm:$0x1] %vm682_vm2, %v21100_v2  ;;  %11388 = vst.msk [vmem:[#allocation4 + $0x2c] sm:$0x1] %vm682_vm2, %v21100_v2 }
  0x60   : > { %11391 = vst.msk [vmem:[#allocation4 + $0x38] sm:$0x1] %vm682_vm2, %v21100_v2  ;;  %11394 = vst.msk [vmem:[#allocation4 + $0x44] sm:$0x1] %vm682_vm2, %v21100_v2 }
  0x61   : > { %11397 = vst.msk [vmem:[#allocation4 + $0x50] sm:$0x1] %vm682_vm2, %v21100_v2  ;;  %11400 = vst.msk [vmem:[#allocation4 + $0x5c] sm:$0x1] %vm682_vm2, %v21100_v2 }
  0x62   : > { %11403 = vst.msk [vmem:[#allocation4 + $0x68] sm:$0x1] %vm682_vm2, %v21100_v2  ;;  %11406 = vst.msk [vmem:[#allocation4 + $0x74] sm:$0x1] %vm682_vm2, %v21100_v2 }
  0x63   : > { %11409 = vst.msk [vmem:[#allocation4 + $0x80] sm:$0x1] %vm682_vm2, %v21100_v2  ;;  %11412 = vst.msk [vmem:[#allocation4 + $0x8c] sm:$0x1] %vm682_vm2, %v21100_v2 }
  0x64   : > { %11415 = vst.msk [vmem:[#allocation4 + $0x98] sm:$0x1] %vm682_vm2, %v21100_v2  ;;  %11418 = vst.msk [vmem:[#allocation4 + $0xa4] sm:$0x1] %vm682_vm2, %v21100_v2 }
  0x65   : > { %11421 = vst.msk [vmem:[#allocation4 + $0xb0] sm:$0x1] %vm682_vm2, %v21100_v2  ;;  %11424 = vst.msk [vmem:[#allocation4 + $0xbc] sm:$0x1] %vm682_vm2, %v21100_v2 }
  0x66   : > { %11427 = vst.msk [vmem:[#allocation4 + $0xc8] sm:$0x1] %vm682_vm2, %v21100_v2  ;;  %11430 = vst.msk [vmem:[#allocation4 + $0xd4] sm:$0x1] %vm682_vm2, %v21100_v2  ;;  %v1164_v2 = vld [vmem:[#allocation2 + $0x24] sm:$0xf] }
  0x67   : > { %vm21573_vm8 = vmor %vm4080_vm3, %vm4081_vm4 }
  0x68   : > { %vm21581_vm9 = vmand %vm679_vm1, %vm1146_vm7  ;;  %v4086_v38 = vsel %vm21573_vm8, %v17111_v33, %v4085_v34  ;;  %v4089_v47 = vsel %vm21573_vm8, %v4087_v39, %v4088_v36  ;;  %v797_v34 = vld [vmem:[%s21553_s18 + $0x20] sm:$0xf] }
  0x69   : > { %v26119_v22 = vsel %vm21581_vm9, 4294967295, %v26118_v22  ;;  %vm21590_vm10 = vmor %vm821_vm5, %vm822_vm6  ;;  %v1149_v35 = vsel %vm21581_vm9, %v830_v28, %v1148_v18  ;;  %v17147_v53 = vcombine.low %v4086_v38, %v4089_v47  ;;  %v1158_v11 = vsel %vm21581_vm9, %v847_v63, %v1157_v59 }
  0x6a   : > { %26120 = vst [vmem:[#allocation8_spill] sm:$0xff] %v26119_v22  ;;  %v26122_v27 = vsel %vm21590_vm10, 4294967295, %v26121_v27  ;;  %v839_v37 = vsel %vm21590_vm10, %v831_v29, %v838_v32  ;;  %1150 = vst [vmem:[#allocation2 + $0xc] sm:$0xf] %v1149_v35  ;;  %v856_v17 = vsel %vm21590_vm10, %v848_v0, %v855_v5  ;;  %v872_v18 = vor.u32 %v870_v62, %v869_v7  ;;  %v20665_v35 = vld [vmem:[%s26032_s2 + $0x38] sm:$0xff]   ;;  %v20667_v0 = vld [vmem:[%s26032_s2 + $0x48] sm:$0xff]  }
  0x6b   : > { %26123 = vst [vmem:[#allocation9_spill] sm:$0xff] %v26122_v27  ;;  %vm21609_vm11 = vmand %vm682_vm2, %vm821_vm5  ;;  %18924 = vmatprep.mubr.msk.bf16.mxu1 %vm1958_vm12, %v17147_v53  ;;  %v1165_v26 = vsel %vm21581_vm9, %v864_v12, %v1164_v2  ;;  %v878_v28 = vrot.slane %v876_v9, 7  ;;  %v884_v29 = vshrl.u32 %v796_v8, 16  ;;  %v893_v47 = vshrl.u32 %v797_v34, 16  ;;  %v798_v53 = vld [vmem:[%s21553_s18 + $0x24] sm:$0xf]  ;;  %18757 = vmatmul.mubr.msk.bf16.gmra.mrb[12].mxu0 %vm469_vm0, %v20665_v35 }
  0x6c   : > { %v26125_v40 = vsel %vm21609_vm11, 4294967295, %v26124_v40  ;;  %1151 = vst.msk [vmem:[#allocation2 + $0x10] sm:$0xf] %vm679_vm1, %v839_v37  ;;  %v1155_v54 = vsel %vm21609_vm11, %v840_v43, %v1154_v41  ;;  %1159 = vst [vmem:[#allocation2 + $0x18] sm:$0xf] %v1158_v11  ;;  %v1162_v20 = vsel %vm21609_vm11, %v857_v6, %v1161_v3  ;;  %v873_v25 = vsel %vm21590_vm10, %v865_v13, %v872_v18  ;;  %v20666_v41 = vld [vmem:[%s26032_s2 + $0x40] sm:$0xff]  }
  0x6d   : > { %26126 = vst [vmem:[#allocation10_spill] sm:$0xff] %v26125_v40  ;;  %1156 = vst [vmem:[#allocation2 + $0x14] sm:$0x1] %v1155_v54  ;;  %v1169_v38 = vsel %vm21609_vm11, %v874_v23, %v1168_v24  ;;  %v881_v39 = vor.u32 %v879_v14, %v878_v28  ;;  %v882_v42 = vrot.slane %v878_v28, 4  ;;  %v886_v43 = vrot.slane %v884_v29, 7  ;;  %v20689_v54 = vld [vmem:[%s26034_s4 + $0x28] sm:$0xff]   ;;  %18760 = vmatprep.mubr.msk.bf16.mxu0 %vm469_vm0, %v20666_v41 }
  0x6e   : > { %1160 = vst.msk [vmem:[#allocation2 + $0x1c] sm:$0xf] %vm679_vm1, %v856_v17  ;;  %1163 = vst [vmem:[#allocation2 + $0x20] sm:$0x1] %v1162_v20  ;;  %v895_v62 = vrot.slane %v893_v47, 7  ;;  %v896_v63 = vshll.u32 %v797_v34, 16 }
  0x6f   : > { %1166 = vst [vmem:[#allocation2 + $0x24] sm:$0xf] %v1165_v26  ;;  %1167 = vst.msk [vmem:[#allocation2 + $0x28] sm:$0xf] %vm679_vm1, %v873_v25  ;;  %v1172_v46 = vsel %vm21581_vm9, %v881_v39, %v1171_v30  ;;  %v889_v51 = vor.u32 %v887_v44, %v886_v43  ;;  %v891_v52 = vrot.slane %v886_v43, 4  ;;  %v901_v12 = vshrl.u32 %v798_v53, 16 }
  0x70   : > { %1170 = vst [vmem:[#allocation2 + $0x2c] sm:$0x1] %v1169_v38  ;;  %1173 = vst [vmem:[#allocation2 + $0x30] sm:$0xf] %v1172_v46  ;;  %v21679_v3 = vld [vmem:[%s21553_s18 + $0x2c] sm:$0xf]  ;;  %v898_v8 = vor.u32 %v896_v63, %v895_v62 }
  0x71   : > { %v4017_v10 = vld [vmem:[#allocation2 + $0xc] sm:$0xe]  ;;  %v890_v61 = vsel %vm21590_vm10, %v882_v42, %v889_v51  ;;  %v1176_v2 = vsel %vm21609_vm11, %v891_v52, %v1175_v48  ;;  %v899_v9 = vrot.slane %v895_v62, 4  ;;  %v904_v13 = vshll.u32 %v798_v53, 16  ;;  %v20668_v14 = vld [vmem:[%s26032_s2 + $0x50] sm:$0xff]   ;;  %v20669_v44 = vld [vmem:[%s26032_s2 + $0x58] sm:$0xff]  }
  0x72   : > { %v17112_v16 = vrot.slane %v4017_v10, 9  ;;  %1174 = vst.msk [vmem:[#allocation2 + $0x34] sm:$0xf] %vm679_vm1, %v890_v61  ;;  %1177 = vst [vmem:[#allocation2 + $0x38] sm:$0x1] %v1176_v2  ;;  %v1179_v17 = vsel %vm21581_vm9, %v898_v8, %v1178_v57  ;;  %v910_v18 = vshrl.u32 %v799_v58, 16 }
  0x73   : > { %v2541_v15 = vld [vmem:[#allocation2 + $0x10] sm:$0xf]  ;;  %v4018_v50 = vld [vmem:[#allocation2 + $0x18] sm:$0xe]  ;;  %v903_v24 = vrot.slane %v901_v12, 7  ;;  %v913_v30 = vshll.u32 %v799_v58, 16  ;;  %18761 = vmatmul.mubr.msk.bf16.gmra.mrb[16].mxu0 %vm469_vm0, %v20667_v0  ;;  %vm21913_vm15 = vmor %vm2585_vm13, %vm2586_vm14 }
  0x74   : > { %v4092_v21 = vrot.slane %v2541_v15, 5  ;;  %v2542_v32 = vld [vmem:[#allocation2 + $0x14] sm:$0x1]  ;;  %v17113_v56 = vrot.slane %v4018_v50, 9  ;;  %1180 = vst [vmem:[#allocation2 + $0x3c] sm:$0xf] %v1179_v17  ;;  %18764 = vmatprep.mubr.msk.bf16.mxu0 %vm469_vm0, %v20668_v14 }
  0x75   : > { %v4095_v37 = vrot.slane %v2542_v32, 5  ;;  %v2544_v55 = vld [vmem:[#allocation2 + $0x1c] sm:$0xf]  ;;  %v2545_v59 = vld [vmem:[#allocation2 + $0x20] sm:$0x1]  ;;  %v912_v29 = vrot.slane %v910_v18, 7  ;;  %v906_v34 = vor.u32 %v904_v13, %v903_v24 }
  0x76   : > { %v4094_v33 = vrot.slane %v4092_v21, 4  ;;  %v4093_v36 = vsel %vm21573_vm8, %v17112_v16, %v4092_v21  ;;  %v4099_v60 = vrot.slane %v2544_v55, 5  ;;  %v4102_v1 = vrot.slane %v2545_v59, 5  ;;  %v2547_v6 = vld [vmem:[#allocation2 + $0x28] sm:$0xf]  ;;  %v20670_v51 = vld [vmem:[%s26032_s2 + $0x60] sm:$0xff]  }
  0x77   : > { %v4019_v7 = vld [vmem:[#allocation2 + $0x24] sm:$0xe]  ;;  %v2548_v10 = vld [vmem:[#allocation2 + $0x2c] sm:$0x1]  ;;  %v4106_v11 = vrot.slane %v2547_v6, 5  ;;  %v918_v32 = vshrl.u32 %v21679_v3, 16  ;;  %v915_v42 = vor.u32 %v913_v30, %v912_v29 }
  0x78   : > { %v4096_v45 = vsel %vm21573_vm8, %v4094_v33, %v4095_v37  ;;  %v4100_v4 = vsel %vm21573_vm8, %v17113_v56, %v4099_v60  ;;  %v4101_v5 = vrot.slane %v4099_v60, 4  ;;  %v4109_v16 = vrot.slane %v2548_v10, 5  ;;  %v4020_v25 = vld [vmem:[#allocation2 + $0x30] sm:$0xe]  ;;  %v1182_v28 = vld [vmem:[#allocation2 + $0x44] sm:$0x1] }
  0x79   : > { %v17148_v49 = vcombine.low %v4093_v36, %v4096_v45  ;;  %v4108_v23 = vrot.slane %v4106_v11, 4  ;;  %v17115_v26 = vrot.slane %v4020_v25, 9  ;;  %v908_v35 = vrot.slane %v903_v24, 4  ;;  %v1185_v37 = vld [vmem:[#allocation2 + $0x48] sm:$0xf] }
  0x7a   : > { %v4103_v15 = vsel %vm21573_vm8, %v4101_v5, %v4102_v1  ;;  %v921_v36 = vshll.u32 %v21679_v3, 16  ;;  %v801_v38 = vld [vmem:[%s21553_s18 + $0x30] sm:$0xf]  ;;  %v2550_v41 = vld [vmem:[#allocation2 + $0x34] sm:$0xf]  ;;  %v916_v43 = vrot.slane %v912_v29, 4  ;;  %v907_v45 = vsel %vm21590_vm10, %v899_v9, %v906_v34 }
  0x7b   : > { %18925 = vmatmul.mubr.msk.bf16.vlgmr.msra.gmra.mrb[0].mxu1 %vm1958_vm12, %v17148_v49  ;;  %v17149_v20 = vcombine.low %v4100_v4, %v4103_v15  ;;  %v4110_v33 = vsel %vm21573_vm8, %v4108_v23, %v4109_v16  ;;  %v2551_v46 = vld [vmem:[#allocation2 + $0x38] sm:$0x1]  ;;  %v4113_v47 = vrot.slane %v2550_v41, 5  ;;  %v1183_v48 = vsel %vm21609_vm11, %v908_v35, %v1182_v28  ;;  %v802_v50 = vld [vmem:[%s21553_s18 + $0x34] sm:$0xf]  ;;  %18765 = vmatmul.mubr.msk.bf16.gmra.mrb[20].mxu0 %vm469_vm0, %v20669_v44  ;;  %v20671_v23 = vld [vmem:[%s26032_s2 + $0x68] sm:$0xff]  }
  0x7c   : > { %18957 = vmatpush3.bf16.msra.mxu1 %v21597_v31  ;;  %v17114_v31 = vrot.slane %v4019_v7, 9  ;;  %v920_v49 = vrot.slane %v918_v32, 7  ;;  %1181 = vst.msk [vmem:[#allocation2 + $0x40] sm:$0xf] %vm679_vm1, %v907_v45  ;;  %v4116_v52 = vrot.slane %v2551_v46, 5  ;;  %v1186_v53 = vsel %vm21581_vm9, %v915_v42, %v1185_v37  ;;  %18768 = vmatprep.mubr.msk.bf16.mxu0 %vm469_vm0, %v20670_v51 }
  0x7d   : > { %18958 = vmatprep.subr.bf16.mxu1 %v20689_v54  ;;  %18928 = vmatprep.mubr.msk.bf16.mxu1 %vm1958_vm12, %v17149_v20  ;;  %1184 = vst [vmem:[#allocation2 + $0x44] sm:$0x1] %v1183_v48  ;;  %v930_v55 = vshll.u32 %v801_v38, 16  ;;  %v1189_v56 = vld [vmem:[#allocation2 + $0x50] sm:$0x1]  ;;  %v4114_v57 = vsel %vm21573_vm8, %v17115_v26, %v4113_v47  ;;  %v4115_v58 = vrot.slane %v4113_v47, 4 }
  0x7e   : > { %v4107_v21 = vsel %vm21573_vm8, %v17114_v31, %v4106_v11  ;;  %v923_v59 = vor.u32 %v921_v36, %v920_v49  ;;  %v925_v60 = vrot.slane %v920_v49, 4  ;;  %1187 = vst [vmem:[#allocation2 + $0x48] sm:$0xf] %v1186_v53  ;;  %v803_v61 = vld [vmem:[%s21553_s18 + $0x38] sm:$0xf]  ;;  %v935_v1 = vshrl.u32 %v802_v50, 16 }
  0x7f   : > { %v17150_v39 = vcombine.low %v4107_v21, %v4110_v33  ;;  %v804_v62 = vld [vmem:[%s21553_s18 + $0x3c] sm:$0xf]  ;;  %v4117_v2 = vsel %vm21573_vm8, %v4115_v58, %v4116_v52  ;;  %v938_v5 = vshll.u32 %v802_v50, 16  ;;  %v1192_v6 = vld [vmem:[#allocation2 + $0x54] sm:$0xf]  ;;  %v944_v12 = vshrl.u32 %v803_v61, 16 }
  0x80   : > { %18959 = vmatpush3.bf16.msra.mxu1 %v20689_v54  ;;  %v927_v54 = vshrl.u32 %v801_v38, 16  ;;  %v4021_v63 = vld [vmem:[#allocation2 + $0x3c] sm:$0xe]  ;;  %v924_v4 = vsel %vm21590_vm10, %v916_v43, %v923_v59  ;;  %v17151_v7 = vcombine.low %v4114_v57, %v4117_v2  ;;  %v937_v10 = vrot.slane %v935_v1, 7  ;;  %v1196_v31 = vld [vmem:[#allocation2 + $0x5c] sm:$0x1] }
  0x81   : > { %v17116_v3 = vrot.slane %v4021_v63, 9  ;;  %1188 = vst.msk [vmem:[#allocation2 + $0x4c] sm:$0xf] %vm679_vm1, %v924_v4  ;;  %v1190_v11 = vsel %vm21609_vm11, %v925_v60, %v1189_v56  ;;  %v947_v13 = vshll.u32 %v803_v61, 16  ;;  %v952_v14 = vshrl.u32 %v804_v62, 16  ;;  %v20672_v33 = vld [vmem:[%s26032_s2 + $0x70] sm:$0xff]  }
  0x82   : > { %v929_v0 = vrot.slane %v927_v54, 7  ;;  %v940_v15 = vor.u32 %v938_v5, %v937_v10  ;;  %v942_v16 = vrot.slane %v937_v10, 4  ;;  %1191 = vst [vmem:[#allocation2 + $0x50] sm:$0x1] %v1190_v11  ;;  %v955_v18 = vshll.u32 %v804_v62, 16 }
  0x83   : > { %18929 = vmatmul.mubr.msk.bf16.gmra.mrb[4].mxu1 %vm1958_vm12, %v17150_v39  ;;  %v1199_v20 = vld [vmem:[#allocation2 + $0x60] sm:$0xf]  ;;  %v946_v25 = vrot.slane %v944_v12, 7  ;;  %v954_v32 = vrot.slane %v952_v14, 7  ;;  %v806_v44 = vld [vmem:[%s21553_s18 + $0x44] sm:$0xf]  ;;  %18769 = vmatmul.mubr.msk.bf16.gmra.mrb[24].mxu0 %vm469_vm0, %v20671_v23 }
  0x84   : > { %v932_v8 = vor.u32 %v930_v55, %v929_v0  ;;  %v933_v9 = vrot.slane %v929_v0, 4  ;;  %18932 = vmatprep.mubr.msk.bf16.mxu1 %vm1958_vm12, %v17151_v7  ;;  %v805_v21 = vld [vmem:[%s21553_s18 + $0x40] sm:$0xf]  ;;  %v2554_v26 = vld [vmem:[#allocation2 + $0x44] sm:$0x1]  ;;  %v1197_v30 = vsel %vm21609_vm11, %v942_v16, %v1196_v31  ;;  %v969_v57 = vshrl.u32 %v806_v44, 16  ;;  %18772 = vmatprep.mubr.msk.bf16.mxu0 %vm469_vm0, %v20672_v33 }
  0x85   : > { %v2553_v24 = vld [vmem:[#allocation2 + $0x40] sm:$0xf]  ;;  %v4123_v34 = vrot.slane %v2554_v26, 5  ;;  %v4022_v35 = vld [vmem:[#allocation2 + $0x48] sm:$0xe]  ;;  %v949_v36 = vor.u32 %v947_v13, %v946_v25  ;;  %v950_v37 = vrot.slane %v946_v25, 4  ;;  %v957_v43 = vor.u32 %v955_v18, %v954_v32 }
  0x86   : > { %v1193_v17 = vsel %vm21581_vm9, %v932_v8, %v1192_v6  ;;  %v4120_v28 = vrot.slane %v2553_v24, 5  ;;  %v941_v29 = vsel %vm21590_vm10, %v933_v9, %v940_v15  ;;  %1198 = vst [vmem:[#allocation2 + $0x5c] sm:$0x1] %v1197_v30  ;;  %v961_v38 = vshrl.u32 %v805_v21, 16  ;;  %v1203_v45 = vld [vmem:[#allocation2 + $0x68] sm:$0x1] }
  0x87   : > { %1194 = vst [vmem:[#allocation2 + $0x54] sm:$0xf] %v1193_v17  ;;  %1195 = vst.msk [vmem:[#allocation2 + $0x58] sm:$0xf] %vm679_vm1, %v941_v29  ;;  %v17117_v42 = vrot.slane %v4022_v35, 9  ;;  %v959_v47 = vrot.slane %v954_v32, 4  ;;  %v1200_v48 = vsel %vm21581_vm9, %v949_v36, %v1199_v20  ;;  %v958_v51 = vsel %vm21590_vm10, %v950_v37, %v957_v43 }
  0x88   : > { %v4121_v39 = vsel %vm21573_vm8, %v17116_v3, %v4120_v28  ;;  %v4122_v41 = vrot.slane %v4120_v28, 4  ;;  %v2556_v46 = vld [vmem:[#allocation2 + $0x4c] sm:$0xf]  ;;  %1201 = vst [vmem:[#allocation2 + $0x60] sm:$0xf] %v1200_v48  ;;  %v963_v52 = vrot.slane %v961_v38, 7 }
  0x89   : > { %v4127_v50 = vrot.slane %v2556_v46, 5  ;;  %v807_v53 = vld [vmem:[%s21553_s18 + $0x48] sm:$0xf]  ;;  %v2557_v55 = vld [vmem:[#allocation2 + $0x50] sm:$0x1]  ;;  %v964_v56 = vshll.u32 %v805_v21, 16  ;;  %v1204_v0 = vsel %vm21609_vm11, %v959_v47, %v1203_v45 }
  0x8a   : > { %v4124_v49 = vsel %vm21573_vm8, %v4122_v41, %v4123_v34  ;;  %1202 = vst.msk [vmem:[#allocation2 + $0x64] sm:$0xf] %vm679_vm1, %v958_v51  ;;  %v972_v58 = vshll.u32 %v806_v44, 16  ;;  %v1206_v59 = vld [vmem:[#allocation2 + $0x6c] sm:$0xf]  ;;  %v4130_v62 = vrot.slane %v2557_v55, 5 }
  0x8b   : > { %v17152_v54 = vcombine.low %v4121_v39, %v4124_v49  ;;  %v4128_v60 = vsel %vm21573_vm8, %v17117_v42, %v4127_v50  ;;  %v4129_v61 = vrot.slane %v4127_v50, 4  ;;  %v966_v2 = vor.u32 %v964_v56, %v963_v52  ;;  %1205 = vst [vmem:[#allocation2 + $0x68] sm:$0x1] %v1204_v0  ;;  %v1210_v5 = vld [vmem:[#allocation2 + $0x74] sm:$0x1]  ;;  %v20673_v6 = vld [vmem:[%s26032_s2 + $0x78] sm:$0xff]  }
  0x8c   : > { %v967_v3 = vrot.slane %v963_v52, 4  ;;  %v971_v4 = vrot.slane %v969_v57, 7  ;;  %v808_v9 = vld [vmem:[%s21553_s18 + $0x4c] sm:$0xf]  ;;  %v978_v10 = vshrl.u32 %v807_v53, 16  ;;  %v20677_v17 = vld [vmem:[#allocation2] sm:$0xff]   ;;  %18773 = vmatmul.mubr.msk.bf16.gmra.mrb[28].mxu0 %vm469_vm0, %v20673_v6 }
  0x8d   : > { %18933 = vmatmul.mubr.msk.bf16.gmra.mrb[8].mxu1 %vm1958_vm12, %v17152_v54  ;;  %v4131_v7 = vsel %vm21573_vm8, %v4129_v61, %v4130_v62  ;;  %v2560_v11 = vld [vmem:[#allocation2 + $0x5c] sm:$0x1]  ;;  %v1213_v15 = vld [vmem:[#allocation2 + $0x78] sm:$0xf]  ;;  %v809_v16 = vld [vmem:[%s21553_s18 + $0x50] sm:$0xf]  ;;  %v1207_v20 = vsel %vm21581_vm9, %v966_v2, %v1206_v59  ;;  %18780 = vmatprep.mubr.msk.bf16.mxu0 %vm1958_vm12, %v20677_v17 }
  0x8e   : > { %v4023_v63 = vld [vmem:[#allocation2 + $0x54] sm:$0xe]  ;;  %v2559_v8 = vld [vmem:[#allocation2 + $0x58] sm:$0xf]  ;;  %v17153_v31 = vcombine.low %v4128_v60, %v4131_v7  ;;  %v974_v13 = vor.u32 %v972_v58, %v971_v4  ;;  %v976_v14 = vrot.slane %v971_v4, 4  ;;  %v4137_v18 = vrot.slane %v2560_v11, 5 }
  0x8f   : > { %v17118_v1 = vrot.slane %v4023_v63, 9  ;;  %v4134_v12 = vrot.slane %v2559_v8, 5  ;;  %v980_v21 = vrot.slane %v978_v10, 7  ;;  %v981_v23 = vshll.u32 %v807_v53, 16  ;;  %1208 = vst [vmem:[#allocation2 + $0x6c] sm:$0xf] %v1207_v20 }
  0x90   : > { %18936 = vmatprep.mubr.msk.bf16.mxu1 %vm1958_vm12, %v17153_v31  ;;  %v975_v26 = vsel %vm21590_vm10, %v967_v3, %v974_v13  ;;  %v4024_v28 = vld [vmem:[#allocation2 + $0x60] sm:$0xe]  ;;  %v1211_v29 = vsel %vm21609_vm11, %v976_v14, %v1210_v5  ;;  %v810_v30 = vld [vmem:[%s21553_s18 + $0x54] sm:$0xf]  ;;  %v986_v38 = vshrl.u32 %v808_v9, 16  ;;  %v989_v42 = vshll.u32 %v808_v9, 16 }
  0x91   : > { %v4135_v24 = vsel %vm21573_vm8, %v17118_v1, %v4134_v12  ;;  %v4136_v25 = vrot.slane %v4134_v12, 4  ;;  %1209 = vst.msk [vmem:[#allocation2 + $0x70] sm:$0xf] %vm679_vm1, %v975_v26  ;;  %v2562_v32 = vld [vmem:[#allocation2 + $0x64] sm:$0xf]  ;;  %v17119_v33 = vrot.slane %v4024_v28, 9  ;;  %v983_v34 = vor.u32 %v981_v23, %v980_v21 }
  0x92   : > { %1212 = vst [vmem:[#allocation2 + $0x74] sm:$0x1] %v1211_v29  ;;  %v4141_v36 = vrot.slane %v2562_v32, 5  ;;  %v984_v37 = vrot.slane %v980_v21, 4  ;;  %v2563_v41 = vld [vmem:[#allocation2 + $0x68] sm:$0x1] }
  0x93   : > { %v4138_v35 = vsel %vm21573_vm8, %v4136_v25, %v4137_v18  ;;  %v1214_v43 = vsel %vm21581_vm9, %v983_v34, %v1213_v15  ;;  %v995_v44 = vshrl.u32 %v809_v16, 16  ;;  %v20678_v45 = vld [vmem:[#allocation2 + $0xc] sm:$0xff]   ;;  %v4144_v48 = vrot.slane %v2563_v41, 5  ;;  %v20681_v50 = vld [vmem:[#allocation2 + $0x18] sm:$0xff]   ;;  %v1220_v57 = vld [vmem:[#allocation2 + $0x84] sm:$0xf] }
  0x94   : > { %v17154_v39 = vcombine.low %v4135_v24, %v4138_v35  ;;  %v4142_v46 = vsel %vm21573_vm8, %v17119_v33, %v4141_v36  ;;  %v4143_v47 = vrot.slane %v4141_v36, 4  ;;  %v988_v49 = vrot.slane %v986_v38, 7  ;;  %1215 = vst [vmem:[#allocation2 + $0x78] sm:$0xf] %v1214_v43  ;;  %18781 = vmatmul.mubr.msk.bf16.vlgmr.msra.gmra.mrb[32].mxu0 %vm1958_vm12, %v20678_v45  ;;  %v20682_v11 = vld [vmem:[#allocation2 + $0x24] sm:$0xff]   ;;  %v20683_v12 = vld [vmem:[#allocation2 + $0x30] sm:$0xff]  }
  0x95   : > { %v997_v51 = vrot.slane %v995_v44, 7  ;;  %v998_v52 = vshll.u32 %v809_v16, 16  ;;  %v1003_v53 = vshrl.u32 %v810_v30, 16  ;;  %v1006_v54 = vshll.u32 %v810_v30, 16  ;;  %18784 = vmatprep.mubr.msk.bf16.mxu0 %vm1958_vm12, %v20681_v50  ;;  %v1217_v15 = vld [vmem:[#allocation2 + $0x80] sm:$0x1] }
  0x96   : > { %18937 = vmatmul.mubr.msk.bf16.gmra.mrb[12].mxu1 %vm1958_vm12, %v17154_v39  ;;  %v4145_v55 = vsel %vm21573_vm8, %v4143_v47, %v4144_v48  ;;  %v991_v56 = vor.u32 %v989_v42, %v988_v49  ;;  %v4025_v59 = vld [vmem:[#allocation2 + $0x6c] sm:$0xe]  ;;  %v993_v7 = vrot.slane %v988_v49, 4  ;;  %v811_v16 = vld [vmem:[%s21553_s18 + $0x58] sm:$0xf]  ;;  %v20684_v26 = vld [vmem:[#allocation2 + $0x3c] sm:$0xff]  }
  0x97   : > { %v17155_v58 = vcombine.low %v4142_v46, %v4145_v55  ;;  %v1000_v60 = vor.u32 %v998_v52, %v997_v51  ;;  %v1001_v61 = vrot.slane %v997_v51, 4  ;;  %v1005_v62 = vrot.slane %v1003_v53, 7  ;;  %v1224_v18 = vld [vmem:[#allocation2 + $0x8c] sm:$0x1]  ;;  %v812_v20 = vld [vmem:[%s21553_s18 + $0x5c] sm:$0xf] }
  0x98   : > { %v2565_v63 = vld [vmem:[#allocation2 + $0x70] sm:$0xf]  ;;  %v17120_v0 = vrot.slane %v4025_v59, 9  ;;  %v992_v1 = vsel %vm21590_vm10, %v984_v37, %v991_v56  ;;  %v1218_v17 = vsel %vm21609_vm11, %v993_v7, %v1217_v15  ;;  %v1012_v21 = vshrl.u32 %v811_v16, 16  ;;  %v813_v25 = vld [vmem:[%s21553_s18 + $0x60] sm:$0xf] }
  0x99   : > { %18940 = vmatprep.mubr.msk.bf16.mxu1 %vm1958_vm12, %v17155_v58  ;;  %v2566_v2 = vld [vmem:[#allocation2 + $0x74] sm:$0x1]  ;;  %v4148_v3 = vrot.slane %v2565_v63, 5  ;;  %1216 = vst.msk [vmem:[#allocation2 + $0x7c] sm:$0xf] %vm679_vm1, %v992_v1  ;;  %v1008_v4 = vor.u32 %v1006_v54, %v1005_v62  ;;  %v1221_v5 = vsel %vm21581_vm9, %v1000_v60, %v1220_v57  ;;  %v1010_v31 = vrot.slane %v1005_v62, 4 }
  0x9a   : > { %v4151_v6 = vrot.slane %v2566_v2, 5  ;;  %1222 = vst [vmem:[#allocation2 + $0x84] sm:$0xf] %v1221_v5  ;;  %1219 = vst [vmem:[#allocation2 + $0x80] sm:$0x1] %v1218_v17  ;;  %v1020_v24 = vshrl.u32 %v812_v20, 16 }
  0x9b   : > { %v4149_v8 = vsel %vm21573_vm8, %v17120_v0, %v4148_v3  ;;  %v4150_v9 = vrot.slane %v4148_v3, 4  ;;  %v1009_v10 = vsel %vm21590_vm10, %v1001_v61, %v1008_v4  ;;  %v1225_v23 = vsel %vm21609_vm11, %v1010_v31, %v1224_v18  ;;  %v814_v32 = vld [vmem:[%s21553_s18 + $0x64] sm:$0xf]  ;;  %v20685_v42 = vld [vmem:[#allocation2 + $0x48] sm:$0xff]   ;;  %v1227_v44 = vld [vmem:[#allocation2 + $0x90] sm:$0xf] }
  0x9c   : > { %1223 = vst.msk [vmem:[#allocation2 + $0x88] sm:$0xf] %vm679_vm1, %v1009_v10  ;;  %18785 = vmatmul.mubr.msk.bf16.gmra.mrb[36].mxu0 %vm1958_vm12, %v20682_v11  ;;  %1226 = vst [vmem:[#allocation2 + $0x8c] sm:$0x1] %v1225_v23  ;;  %v1014_v28 = vrot.slane %v1012_v21, 7  ;;  %v1015_v29 = vshll.u32 %v811_v16, 16 }
  0x9d   : > { %v4152_v13 = vsel %vm21573_vm8, %v4150_v9, %v4151_v6  ;;  %18788 = vmatprep.mubr.msk.bf16.mxu0 %vm1958_vm12, %v20683_v12  ;;  %v1023_v30 = vshll.u32 %v812_v20, 16  ;;  %v1029_v33 = vshrl.u32 %v813_v25, 16  ;;  %v1022_v34 = vrot.slane %v1020_v24, 7  ;;  %v1234_v50 = vld [vmem:[#allocation2 + $0x9c] sm:$0xf]  ;;  %v20686_v11 = vld [vmem:[#allocation2 + $0x54] sm:$0xff]  }
  0x9e   : > { %v17156_v14 = vcombine.low %v4149_v8, %v4152_v13  ;;  %v1032_v35 = vshll.u32 %v813_v25, 16  ;;  %v1037_v36 = vshrl.u32 %v814_v32, 16  ;;  %v1040_v37 = vshll.u32 %v814_v32, 16  ;;  %v4026_v57 = vld [vmem:[#allocation2 + $0x78] sm:$0xe]  ;;  %v20687_v18 = vld [vmem:[#allocation2 + $0x60] sm:$0xff]  }
  0x9f   : > { %v1017_v38 = vor.u32 %v1015_v29, %v1014_v28  ;;  %v1018_v39 = vrot.slane %v1014_v28, 4  ;;  %v1031_v41 = vrot.slane %v1029_v33, 7  ;;  %v1025_v43 = vor.u32 %v1023_v30, %v1022_v34  ;;  %v1231_v5 = vld [vmem:[#allocation2 + $0x98] sm:$0x1]  ;;  %v1238_v10 = vld [vmem:[#allocation2 + $0xa4] sm:$0x1] }
  0xa0   : > { %18941 = vmatmul.mubr.msk.bf16.gmra.mrb[16].mxu1 %vm1958_vm12, %v17156_v14  ;;  %v1039_v45 = vrot.slane %v1037_v36, 7  ;;  %v2568_v46 = vld [vmem:[#allocation2 + $0x7c] sm:$0xf]  ;;  %v1027_v54 = vrot.slane %v1022_v34, 4  ;;  %v17121_v61 = vrot.slane %v4026_v57, 9 }
  0xa1   : > { %v1228_v47 = vsel %vm21581_vm9, %v1017_v38, %v1227_v44  ;;  %v1034_v48 = vor.u32 %v1032_v35, %v1031_v41  ;;  %v1035_v49 = vrot.slane %v1031_v41, 4  ;;  %v4155_v51 = vrot.slane %v2568_v46, 5  ;;  %v2569_v56 = vld [vmem:[#allocation2 + $0x80] sm:$0x1]  ;;  %v4027_v2 = vld [vmem:[#allocation2 + $0x84] sm:$0xe] }
  0xa2   : > { %v1026_v53 = vsel %vm21590_vm10, %v1018_v39, %v1025_v43  ;;  %1229 = vst [vmem:[#allocation2 + $0x90] sm:$0xf] %v1228_v47  ;;  %v1042_v55 = vor.u32 %v1040_v37, %v1039_v45  ;;  %v1044_v59 = vrot.slane %v1039_v45, 4  ;;  %v4158_v63 = vrot.slane %v2569_v56, 5  ;;  %v815_v31 = vld [vmem:[%s21553_s18 + $0x68] sm:$0xf] }
  0xa3   : > { %v2571_v52 = vld [vmem:[#allocation2 + $0x88] sm:$0xf]  ;;  %1230 = vst.msk [vmem:[#allocation2 + $0x94] sm:$0xf] %vm679_vm1, %v1026_v53  ;;  %v1235_v60 = vsel %vm21581_vm9, %v1034_v48, %v1234_v50  ;;  %v4157_v62 = vrot.slane %v4155_v51, 4  ;;  %v4156_v6 = vsel %vm21573_vm8, %v17121_v61, %v4155_v51  ;;  %v17122_v8 = vrot.slane %v4027_v2, 9 }
  0xa4   : > { %18789 = vmatmul.mubr.msk.bf16.gmra.mrb[40].mxu0 %vm1958_vm12, %v20684_v26  ;;  %v4162_v58 = vrot.slane %v2571_v52, 5  ;;  %v2572_v0 = vld [vmem:[#allocation2 + $0x8c] sm:$0x1]  ;;  %v1043_v1 = vsel %vm21590_vm10, %v1035_v49, %v1042_v55  ;;  %1236 = vst [vmem:[#allocation2 + $0x9c] sm:$0xf] %v1235_v60  ;;  %v1232_v9 = vsel %vm21609_vm11, %v1027_v54, %v1231_v5  ;;  %v1239_v14 = vsel %vm21609_vm11, %v1044_v59, %v1238_v10  ;;  %v20690_v56 = vld [vmem:[#allocation2 + $0x78] sm:$0xff]  }
  0xa5   : > { %18792 = vmatprep.mubr.msk.bf16.mxu0 %vm1958_vm12, %v20685_v42  ;;  %v4165_v4 = vrot.slane %v2572_v0, 5  ;;  %1237 = vst.msk [vmem:[#allocation2 + $0xa0] sm:$0xf] %vm679_vm1, %v1043_v1  ;;  %v4159_v7 = vsel %vm21573_vm8, %v4157_v62, %v4158_v63  ;;  %1233 = vst [vmem:[#allocation2 + $0x98] sm:$0x1] %v1232_v9  ;;  %v1046_v16 = vshrl.u32 %v815_v31, 16 }
  0xa6   : > { %v4164_v3 = vrot.slane %v4162_v58, 4  ;;  %v17157_v12 = vcombine.low %v4156_v6, %v4159_v7  ;;  %v816_v15 = vld [vmem:[%s21553_s18 + $0x6c] sm:$0xf]  ;;  %v817_v17 = vld [vmem:[%s21553_s18 + $0x70] sm:$0xf]  ;;  %v4163_v20 = vsel %vm21573_vm8, %v17122_v8, %v4162_v58  ;;  %v1049_v21 = vshll.u32 %v815_v31, 16 }
  0xa7   : > { %1240 = vst [vmem:[#allocation2 + $0xa4] sm:$0x1] %v1239_v14  ;;  %v1054_v23 = vshrl.u32 %v816_v15, 16  ;;  %v1057_v24 = vshll.u32 %v816_v15, 16  ;;  %v1048_v26 = vrot.slane %v1046_v16, 7  ;;  %v1063_v28 = vshrl.u32 %v817_v17, 16 }
  0xa8   : > { %v4166_v13 = vsel %vm21573_vm8, %v4164_v3, %v4165_v4  ;;  %18944 = vmatprep.mubr.msk.bf16.mxu1 %vm1958_vm12, %v17157_v12  ;;  %v1241_v30 = vld [vmem:[#allocation2 + $0xa8] sm:$0xf]  ;;  %v1066_v32 = vshll.u32 %v817_v17, 16  ;;  %v818_v44 = vld [vmem:[%s21553_s18 + $0x74] sm:$0xf]  ;;  %v20688_v51 = vld [vmem:[#allocation2 + $0x6c] sm:$0xff]  }
  0xa9   : > { %v17158_v25 = vcombine.low %v4163_v20, %v4166_v13  ;;  %v1056_v29 = vrot.slane %v1054_v23, 7  ;;  %v1051_v34 = vor.u32 %v1049_v21, %v1048_v26  ;;  %v1052_v35 = vrot.slane %v1048_v26, 4  ;;  %v4028_v41 = vld [vmem:[#allocation2 + $0x90] sm:$0xe]  ;;  %v1248_v0 = vld [vmem:[#allocation2 + $0xb4] sm:$0xf] }
  0xaa   : > { %v2574_v33 = vld [vmem:[#allocation2 + $0x94] sm:$0xf]  ;;  %v1065_v36 = vrot.slane %v1063_v28, 7  ;;  %v17123_v46 = vrot.slane %v4028_v41, 9  ;;  %v1071_v62 = vshrl.u32 %v818_v44, 16  ;;  %v1074_v63 = vshll.u32 %v818_v44, 16 }
  0xab   : > { %18945 = vmatmul.mubr.msk.bf16.gmra.mrb[20].mxu1 %vm1958_vm12, %v17158_v25  ;;  %v4169_v37 = vrot.slane %v2574_v33, 5  ;;  %v1059_v39 = vor.u32 %v1057_v24, %v1056_v29  ;;  %v1242_v43 = vsel %vm21581_vm9, %v1051_v34, %v1241_v30  ;;  %v4029_v48 = vld [vmem:[#allocation2 + $0x9c] sm:$0xe]  ;;  %v1061_v55 = vrot.slane %v1056_v29, 4  ;;  %v1245_v4 = vld [vmem:[#allocation2 + $0xb0] sm:$0x1] }
  0xac   : > { %18793 = vmatmul.mubr.msk.bf16.gmra.mrb[44].mxu0 %vm1958_vm12, %v20686_v11  ;;  %v2577_v38 = vld [vmem:[#allocation2 + $0xa0] sm:$0xf]  ;;  %v2575_v45 = vld [vmem:[#allocation2 + $0x98] sm:$0x1]  ;;  %1243 = vst [vmem:[#allocation2 + $0xa8] sm:$0xf] %v1242_v43  ;;  %v1068_v50 = vor.u32 %v1066_v32, %v1065_v36 }
  0xad   : > { %18796 = vmatprep.mubr.msk.bf16.mxu0 %vm1958_vm12, %v20687_v18  ;;  %v4176_v42 = vrot.slane %v2577_v38, 5  ;;  %v4171_v47 = vrot.slane %v4169_v37, 4  ;;  %v1060_v49 = vsel %vm21590_vm10, %v1052_v35, %v1059_v39  ;;  %v4172_v52 = vrot.slane %v2575_v45, 5  ;;  %v1252_v5 = vld [vmem:[#allocation2 + $0xbc] sm:$0x1]  ;;  %v20696_v10 = vld [vmem:[%s26034_s4] sm:$0xff]  }
  0xae   : > { %v2578_v53 = vld [vmem:[#allocation2 + $0xa4] sm:$0x1]  ;;  %v17124_v54 = vrot.slane %v4029_v48, 9  ;;  %1244 = vst.msk [vmem:[#allocation2 + $0xac] sm:$0xf] %vm679_vm1, %v1060_v49  ;;  %v4170_v57 = vsel %vm21573_vm8, %v17123_v46, %v4169_v37  ;;  %v1249_v3 = vsel %vm21581_vm9, %v1068_v50, %v1248_v0  ;;  %v1069_v7 = vrot.slane %v1065_v36, 4  ;;  %18812 = vmatprep.subr.bf16.mxu0 %v20696_v10 }
  0xaf   : > { %v4178_v58 = vrot.slane %v4176_v42, 4  ;;  %v4179_v59 = vrot.slane %v2578_v53, 5  ;;  %v4173_v60 = vsel %vm21573_vm8, %v4171_v47, %v4172_v52  ;;  %v1073_v8 = vrot.slane %v1071_v62, 7  ;;  %1250 = vst [vmem:[#allocation2 + $0xb4] sm:$0xf] %v1249_v3  ;;  %v20691_v13 = vld [vmem:[#allocation2 + $0x84] sm:$0xff]   ;;  %18813 = vmatpush3.bf16.msra.mxu0 %v20696_v10 }
  0xb0   : > { %v4177_v61 = vsel %vm21573_vm8, %v17124_v54, %v4176_v42  ;;  %v17159_v1 = vcombine.low %v4170_v57, %v4173_v60  ;;  %v1246_v9 = vsel %vm21609_vm11, %v1061_v55, %v1245_v4  ;;  %v20692_v14 = vld [vmem:[#allocation2 + $0x90] sm:$0xff]   ;;  %v20697_v20 = vld [vmem:[%s26034_s4 + $0x8] sm:$0xff]   ;;  %v2973_v29 = vld [vmem:[#allocation3 + $0x4] sm:$0xf] }
  0xb1   : > { %v4180_v2 = vsel %vm21573_vm8, %v4178_v58, %v4179_v59  ;;  %1247 = vst [vmem:[#allocation2 + $0xb0] sm:$0x1] %v1246_v9  ;;  %v1076_v31 = vor.u32 %v1074_v63, %v1073_v8  ;;  %v1078_v11 = vrot.slane %v1073_v8, 4  ;;  %18814 = vmatprep.subr.bf16.mxu0 %v20697_v20  ;;  %v2974_v32 = vld [vmem:[#allocation3 + $0x8] sm:$0x1]  ;;  %v4261_v36 = vrot.slane %v2973_v29, 5 }
  0xb2   : > { %v17160_v6 = vcombine.low %v4177_v61, %v4180_v2  ;;  %18948 = vmatprep.mubr.msk.bf16.mxu1 %vm1958_vm12, %v17159_v1  ;;  %v4195_v33 = vld [vmem:[#allocation3] sm:$0xe]  ;;  %v4264_v37 = vrot.slane %v2974_v32, 5  ;;  %v20693_v38 = vld [vmem:[#allocation2 + $0x9c] sm:$0xff]   ;;  %v20872_v57 = vld [vmem:[#allocation2 + $0x10] sm:$0xf] }
  0xb3   : > { %v1077_v15 = vsel %vm21590_vm10, %v1069_v7, %v1076_v31  ;;  %v4030_v16 = vld [vmem:[#allocation2 + $0xa8] sm:$0xe]  ;;  %v1253_v18 = vsel %vm21609_vm11, %v1078_v11, %v1252_v5  ;;  %18815 = vmatpush3.bf16.msra.mxu0 %v20697_v20  ;;  %v17127_v35 = vrot.slane %v4195_v33, 9  ;;  %v4263_v45 = vrot.slane %v4261_v36, 4  ;;  %v20698_v55 = vld [vmem:[#allocation3] sm:$0xff]   ;;  %v21910_v4 = vld [vmem:[%s26033_s3 + $0x10] sm:$0xff]  }
  0xb4   : > { %18797 = vmatmul.mubr.msk.bf16.gmra.mrb[48].mxu0 %vm1958_vm12, %v20688_v51  ;;  %18949 = vmatmul.mubr.msk.bf16.gmra.mrb[24].mxu1 %vm1958_vm12, %v17160_v6  ;;  %1251 = vst.msk [vmem:[#allocation2 + $0xb8] sm:$0xf] %vm679_vm1, %v1077_v15  ;;  %v17125_v21 = vrot.slane %v4030_v16, 9  ;;  %1254 = vst [vmem:[#allocation2 + $0xbc] sm:$0x1] %v1253_v18  ;;  %v2622_v58 = vshll.u32 %v20872_v57, 16 }
  0xb5   : > { %18800 = vmatprep.mubr.msk.bf16.mxu0 %vm1958_vm12, %v20690_v56  ;;  %v2580_v12 = vld [vmem:[#allocation2 + $0xac] sm:$0xf]  ;;  %v4262_v47 = vsel %vm21573_vm8, %v17127_v35, %v4261_v36  ;;  %v4265_v50 = vsel %vm21573_vm8, %v4263_v45, %v4264_v37  ;;  %v21904_v56 = vld [vmem:[%s26033_s3 + $0x30] sm:$0xff]   ;;  %v2626_v59 = vshrl.u32 %v20872_v57, 16  ;;  %v20873_v62 = vld [vmem:[#allocation2 + $0x4] sm:$0xf]  ;;  %18848 = vmatprep.subr.bf16.mxu0 %v21910_v4 }
  0xb6   : > { %v4183_v17 = vrot.slane %v2580_v12, 5  ;;  %v4031_v24 = vld [vmem:[#allocation2 + $0xb4] sm:$0xe]  ;;  %v20694_v42 = vld [vmem:[#allocation2 + $0xa8] sm:$0xff]   ;;  %v17185_v52 = vcombine.low %v4262_v47, %v4265_v50  ;;  %18992 = vmatprep.subr.bf16.mxu1 %v21904_v56  ;;  %v2624_v60 = vrot.slane %v2622_v58, 5  ;;  %v2598_v63 = vshll.u32 %v20873_v62, 16 }
  0xb7   : > { %v17126_v30 = vrot.slane %v4031_v24, 9  ;;  %v2628_v61 = vrot.slane %v2626_v59, 4  ;;  %v2602_v0 = vshrl.u32 %v20873_v62, 16  ;;  %v20874_v2 = vld [vmem:[#allocation2 + $0x14] sm:$0x1] }
  0xb8   : > { %v4185_v23 = vrot.slane %v4183_v17, 4  ;;  %v2581_v25 = vld [vmem:[#allocation2 + $0xb0] sm:$0x1]  ;;  %v4184_v26 = vsel %vm21573_vm8, %v17125_v21, %v4183_v17  ;;  %v2632_v3 = vshll.u32 %v20874_v2, 16  ;;  %v2600_v5 = vrot.slane %v2598_v63, 5 }
  0xb9   : > { %v4186_v28 = vrot.slane %v2581_v25, 5  ;;  %v2629_v1 = vor.u32 %v2628_v61, %v2624_v60  ;;  %v2604_v6 = vrot.slane %v2602_v0, 4  ;;  %v20875_v7 = vld [vmem:[#allocation2 + $0x8] sm:$0x1]  ;;  %v2537_v9 = vld [vmem:[#allocation2] sm:$0xf] }
  0xba   : > { %v2608_v8 = vshll.u32 %v20875_v7, 16  ;;  %v2634_v31 = vrot.slane %v2632_v3, 5  ;;  %v2589_v11 = vshrl.u32 %v2537_v9, 16  ;;  %v2592_v12 = vshll.u32 %v2537_v9, 16  ;;  %v2543_v33 = vld [vmem:[#allocation2 + $0x18] sm:$0xf] }
  0xbb   : > { %v4187_v34 = vsel %vm21573_vm8, %v4185_v23, %v4186_v28  ;;  %v2583_v41 = vld [vmem:[#allocation2 + $0xb8] sm:$0xf]  ;;  %v2584_v43 = vld [vmem:[#allocation2 + $0xbc] sm:$0x1]  ;;  %v2630_v10 = vrot.slane %v2629_v1, 4  ;;  %v2605_v25 = vor.u32 %v2604_v6, %v2600_v5  ;;  %v2637_v36 = vshrl.u32 %v2543_v33, 16 }
  0xbc   : > { %18801 = vmatmul.mubr.msk.bf16.gmra.mrb[52].mxu0 %vm1958_vm12, %v20691_v13  ;;  %v17161_v39 = vcombine.low %v4184_v26, %v4187_v34  ;;  %v4190_v44 = vrot.slane %v2583_v41, 5  ;;  %v4193_v46 = vrot.slane %v2584_v43, 5  ;;  %v20695_v53 = vld [vmem:[#allocation2 + $0xb4] sm:$0xff]   ;;  %v2540_v13 = vld [vmem:[#allocation2 + $0xc] sm:$0xf]  ;;  %v2591_v16 = vrot.slane %v2589_v11, 4 }
  0xbd   : > { %18804 = vmatprep.mubr.msk.bf16.mxu0 %vm1958_vm12, %v20692_v14  ;;  %v2613_v14 = vshrl.u32 %v2540_v13, 16  ;;  %v2616_v15 = vshll.u32 %v2540_v13, 16  ;;  %v2594_v17 = vrot.slane %v2592_v12, 5  ;;  %v2610_v21 = vrot.slane %v2608_v8, 5  ;;  %v20879_v0 = vld [vmem:[#allocation2 + $0x2c] sm:$0x1] }
  0xbe   : > { %18952 = vmatprep.mubr.msk.bf16.mxu1 %vm1958_vm12, %v17161_v39  ;;  %v4191_v48 = vsel %vm21573_vm8, %v17126_v30, %v4190_v44  ;;  %v4192_v49 = vrot.slane %v4190_v44, 4  ;;  %v2635_v28 = vsel %vm21913_vm15, %v2630_v10, %v2634_v31  ;;  %v2606_v30 = vrot.slane %v2605_v25, 4  ;;  %v20880_v11 = vld [vmem:[#allocation2 + $0x34] sm:$0xf]  ;;  %v20962_v22 = vld [vmem:[#allocation2 + $0xa4] sm:$0x1] }
  0xbf   : > { %v2615_v18 = vrot.slane %v2613_v14, 4  ;;  %v2618_v20 = vrot.slane %v2616_v15, 5  ;;  %v2595_v24 = vor.u32 %v2594_v17, %v2591_v16  ;;  %v2640_v37 = vshll.u32 %v2543_v33, 16  ;;  %v2552_v14 = vld [vmem:[#allocation2 + $0x3c] sm:$0xf] }
  0xc0   : > { %v4194_v51 = vsel %vm21573_vm8, %v4192_v49, %v4193_v46  ;;  %v2611_v35 = vsel %vm21913_vm15, %v2606_v30, %v2610_v21  ;;  %v2639_v46 = vrot.slane %v2637_v36, 4  ;;  %v2680_v1 = vshll.u32 %v20879_v0, 16  ;;  %v20881_v33 = vld [vmem:[#allocation2 + $0x38] sm:$0x1] }
  0xc1   : > { %v17162_v54 = vcombine.low %v4191_v48, %v4194_v51  ;;  %v2619_v26 = vor.u32 %v2618_v20, %v2615_v18  ;;  %v2596_v29 = vrot.slane %v2595_v24, 4  ;;  %v2642_v47 = vrot.slane %v2640_v37, 5 }
  0xc2   : > { %v2694_v12 = vshll.u32 %v20880_v11, 16  ;;  %v2698_v13 = vshrl.u32 %v20880_v11, 16  ;;  %v2682_v16 = vrot.slane %v2680_v1, 5  ;;  %v2709_v25 = vshrl.u32 %v2552_v14, 16 }
  0xc3   : > { %18953 = vmatmul.mubr.msk.bf16.gmra.mrb[28].mxu1 %vm1958_vm12, %v17162_v54  ;;  %v2620_v32 = vrot.slane %v2619_v26, 4  ;;  %v2601_v34 = vsel %vm21913_vm15, %v2596_v29, %v2600_v5  ;;  %v2643_v54 = vor.u32 %v2642_v47, %v2639_v46  ;;  %v2549_v5 = vld [vmem:[#allocation2 + $0x30] sm:$0xf]  ;;  %v2712_v26 = vshll.u32 %v2552_v14, 16  ;;  %v1679_v14 = vld [vmem:[#allocation3 + $0xc] sm:$0xf] }
  0xc4   : > { %18805 = vmatmul.mubr.msk.bf16.gmra.mrb[56].mxu0 %vm1958_vm12, %v20693_v38  ;;  %18960 = vmatprep.mubr.msk.bf16.mxu1 %vm1958_vm12, %v17185_v52  ;;  %v2546_v38 = vld [vmem:[#allocation2 + $0x24] sm:$0xf]  ;;  %v21923_v39 = vcombine.low %v2601_v34, %v2611_v35  ;;  %v20877_v52 = vld [vmem:[#allocation2 + $0x28] sm:$0xf]  ;;  %v2685_v8 = vshrl.u32 %v2549_v5, 16  ;;  %v2688_v9 = vshll.u32 %v2549_v5, 16 }
  0xc5   : > { %18808 = vmatprep.mubr.msk.bf16.mxu0 %vm1958_vm12, %v20694_v42  ;;  %v2625_v41 = vsel %vm21913_vm15, %v2620_v32, %v2624_v60  ;;  %v20876_v42 = vld [vmem:[#allocation2 + $0x1c] sm:$0xf]  ;;  %v2661_v48 = vshrl.u32 %v2546_v38, 16  ;;  %v2664_v51 = vshll.u32 %v2546_v38, 16  ;;  %v2674_v59 = vshrl.u32 %v20877_v52, 16 }
  0xc6   : > { %v2646_v43 = vshll.u32 %v20876_v42, 16  ;;  %v2650_v44 = vshrl.u32 %v20876_v42, 16  ;;  %v21927_v45 = vcombine.low %v2625_v41, %v2635_v28  ;;  %v2644_v2 = vrot.slane %v2643_v54, 4  ;;  %v20882_v35 = vld [vmem:[#allocation2 + $0x40] sm:$0xf] }
  0xc7   : > { %v2663_v58 = vrot.slane %v2661_v48, 4  ;;  %v2666_v60 = vrot.slane %v2664_v51, 5  ;;  %v2676_v63 = vrot.slane %v2674_v59, 4  ;;  %v2687_v17 = vrot.slane %v2685_v8, 4 }
  0xc8   : > { %v2648_v49 = vrot.slane %v2646_v43, 5  ;;  %v2652_v50 = vrot.slane %v2650_v44, 4  ;;  %v2690_v18 = vrot.slane %v2688_v9, 5  ;;  %v21929_v20 = vrot.slane %v2694_v12, 5  ;;  %v1686_v9 = vld [vmem:[#allocation3 + $0x18] sm:$0xf] }
  0xc9   : > { %v2667_v3 = vor.u32 %v2666_v60, %v2663_v58  ;;  %v2700_v21 = vrot.slane %v2698_v13, 4  ;;  %v2704_v34 = vshll.u32 %v20881_v33, 16  ;;  %v2718_v36 = vshll.u32 %v20882_v35, 16  ;;  %v1683_v33 = vld [vmem:[#allocation3 + $0x14] sm:$0x1] }
  0xca   : > { %v2653_v61 = vor.u32 %v2652_v50, %v2648_v49  ;;  %v2691_v24 = vor.u32 %v2690_v18, %v2687_v17  ;;  %v2649_v28 = vsel %vm21913_vm15, %v2644_v2, %v2648_v49  ;;  %v2722_v37 = vshrl.u32 %v20882_v35, 16  ;;  %v20883_v50 = vld [vmem:[#allocation2 + $0x44] sm:$0x1] }
  0xcb   : > { %v2668_v31 = vrot.slane %v2667_v3, 4  ;;  %v2701_v41 = vor.u32 %v2700_v21, %v21929_v20  ;;  %v21942_v43 = vrot.slane %v2709_v25, 4  ;;  %v21944_v44 = vrot.slane %v2712_v26, 5  ;;  %v1690_v25 = vld [vmem:[#allocation3 + $0x20] sm:$0x1] }
  0xcc   : > { %18809 = vmatmul.mubr.msk.bf16.gmra.mrb[60].mxu0 %vm1958_vm12, %v20695_v53  ;;  %v2670_v53 = vshll.u32 %v20877_v52, 16  ;;  %v2654_v10 = vrot.slane %v2653_v61, 4  ;;  %v21939_v38 = vrot.slane %v2691_v24, 4  ;;  %v2728_v51 = vshll.u32 %v20883_v50, 16  ;;  %v21950_v52 = vld [vmem:[#allocation2 + $0x48] sm:$0xf] }
  0xcd   : > { %18816 = vmatprep.mubr.msk.bf16.mxu0 %vm1958_vm12, %v20698_v55  ;;  %v20878_v55 = vld [vmem:[#allocation2 + $0x20] sm:$0x1]  ;;  %v21956_v58 = vrot.slane %v2722_v37, 4  ;;  %v2715_v2 = vor.u32 %v21944_v44, %v21942_v43  ;;  %v2733_v3 = vshrl.u32 %v21950_v52, 16 }
  0xce   : > { %v2656_v57 = vshll.u32 %v20878_v55, 16  ;;  %v2672_v62 = vrot.slane %v2670_v53, 5  ;;  %v21952_v55 = vrot.slane %v2704_v34, 5  ;;  %v21967_v8 = vrot.slane %v2728_v51, 5 }
  0xcf   : > { %v2736_v51 = vshll.u32 %v21950_v52, 16  ;;  %v1700_v52 = vld [vmem:[#allocation3 + $0x30] sm:$0xf] }
  0xd0   : > { %v2658_v6 = vrot.slane %v2656_v57, 5  ;;  %v2677_v7 = vor.u32 %v2676_v63, %v2672_v62  ;;  %v2673_v30 = vsel %vm21913_vm15, %v2668_v31, %v2672_v62  ;;  %v21954_v57 = vrot.slane %v2718_v36, 5 }
  0xd1   : > { %v2697_v62 = vsel %vm21913_vm15, %v21939_v38, %v21929_v20  ;;  %v21962_v63 = vrot.slane %v2701_v41, 4 }
  0xd2   : > { %v2678_v15 = vrot.slane %v2677_v7, 4  ;;  %v2659_v29 = vsel %vm21913_vm15, %v2654_v10, %v2658_v6  ;;  %v2725_v12 = vor.u32 %v21956_v58, %v21954_v57 }
  0xd3   : > { %v21946_v48 = vcombine.low %v2649_v28, %v2659_v29 }
  0xd4   : > { %v2683_v32 = vsel %vm21913_vm15, %v2678_v15, %v2682_v16 }
  0xd5   : > { %v21948_v49 = vcombine.low %v2673_v30, %v2683_v32 }
  0xff   : > { %v18746_v42 = vpop.f32.mrb[0].mxu0 }
 0x100   : > { %v18167_v46 = vpack.c.bf16 %v18746_v42, %v18746_v42  ;;  %v552_v47 = vpop.f32.mrb[1].mxu0 }
 0x101   : > { %v18165_v53 = vpack.c.bf16 %v552_v47, %v552_v47  ;;  %v18747_v54 = vpop.f32.mrb[2].mxu0 }
 0x102   : > { %v1376_v59 = vshrl.u32 %v18167_v46, 16  ;;  %v18168_v61 = vpack.c.bf16 %v18747_v54, %v18747_v54  ;;  %v555_v60 = vpop.f32.mrb[3].mxu0  ;;  %v1379_v6 = vshll.u32 %v18167_v46, 16 }
 0x103   : > { %v1359_v0 = vshrl.u32 %v18165_v53, 16  ;;  %v18166_v1 = vpack.c.bf16 %v555_v60, %v555_v60  ;;  %v1362_v31 = vshll.u32 %v18165_v53, 16 }
 0x104   : > { %v1378_v5 = vrot.slane %v1376_v59, 7  ;;  %v1384_v7 = vshrl.u32 %v18168_v61, 16  ;;  %v1387_v16 = vshll.u32 %v18168_v61, 16  ;;  %v21985_v59 = vrot.slane %v2715_v2, 4  ;;  %v21994_v2 = vld [vmem:[#allocation2 + $0x4c] sm:$0xf] }
 0x105   : > { %v1361_v10 = vrot.slane %v1359_v0, 7  ;;  %v1367_v11 = vshrl.u32 %v18166_v1, 16  ;;  %v1370_v17 = vshll.u32 %v18166_v1, 16 }
 0x106   : > { %v1381_v13 = vor.u32 %v1379_v6, %v1378_v5  ;;  %v1386_v15 = vrot.slane %v1384_v7, 7  ;;  %v1382_v18 = vrot.slane %v1378_v5, 4  ;;  %v21988_v7 = vrot.slane %v2725_v12, 4 }
 0x107   : > { %v1364_v21 = vor.u32 %v1362_v31, %v1361_v10  ;;  %v1365_v24 = vrot.slane %v1361_v10, 4  ;;  %v1369_v26 = vrot.slane %v1367_v11, 7  ;;  %v18750_v28 = vpop.f32.mrb[4].mxu0  ;;  %v1693_v31 = vld [vmem:[#allocation3 + $0x24] sm:$0xf] }
 0x108   : > { %v1687_v29 = vsel %vm21581_vm9, %v1381_v13, %v1686_v9  ;;  %v1389_v30 = vor.u32 %v1387_v16, %v1386_v15  ;;  %v1391_v32 = vrot.slane %v1386_v15, 4  ;;  %v18171_v34 = vpack.c.bf16 %v18750_v28, %v18750_v28  ;;  %v568_v35 = vpop.f32.mrb[5].mxu0 }
 0x109   : > { %1688 = vst [vmem:[#allocation3 + $0x18] sm:$0xf] %v1687_v29  ;;  %v1680_v36 = vsel %vm21581_vm9, %v1364_v21, %v1679_v14  ;;  %v1372_v37 = vor.u32 %v1370_v17, %v1369_v26  ;;  %v1374_v41 = vrot.slane %v1369_v26, 4  ;;  %v18169_v42 = vpack.c.bf16 %v568_v35, %v568_v35  ;;  %v18751_v43 = vpop.f32.mrb[6].mxu0  ;;  %v1697_v26 = vld [vmem:[#allocation3 + $0x2c] sm:$0x1] }
 0x10a   : > { %1681 = vst [vmem:[#allocation3 + $0xc] sm:$0xf] %v1680_v36  ;;  %v1390_v44 = vsel %vm21590_vm10, %v1382_v18, %v1389_v30  ;;  %v1691_v46 = vsel %vm21609_vm11, %v1391_v32, %v1690_v25  ;;  %v1410_v47 = vshrl.u32 %v18171_v34, 16  ;;  %v571_v50 = vpop.f32.mrb[7].mxu0  ;;  %v1413_v60 = vshll.u32 %v18171_v34, 16  ;;  %v20717_v36 = vld [vmem:[%s26033_s3 + $0x18] sm:$0xff]  }
 0x10b   : > { %1689 = vst.msk [vmem:[#allocation3 + $0x1c] sm:$0xf] %vm679_vm1, %v1390_v44  ;;  %1692 = vst [vmem:[#allocation3 + $0x20] sm:$0x1] %v1691_v46  ;;  %v1373_v53 = vsel %vm21590_vm10, %v1365_v24, %v1372_v37  ;;  %v1684_v54 = vsel %vm21609_vm11, %v1374_v41, %v1683_v33  ;;  %v1393_v58 = vshrl.u32 %v18169_v42, 16  ;;  %v18172_v0 = vpack.c.bf16 %v18751_v43, %v18751_v43 }
 0x10c   : > { %1682 = vst.msk [vmem:[#allocation3 + $0x10] sm:$0xf] %vm679_vm1, %v1373_v53  ;;  %1685 = vst [vmem:[#allocation3 + $0x14] sm:$0x1] %v1684_v54  ;;  %v1412_v61 = vrot.slane %v1410_v47, 7  ;;  %v18170_v1 = vpack.c.bf16 %v571_v50, %v571_v50  ;;  %v1396_v6 = vshll.u32 %v18169_v42, 16 }
 0x10d   : > { %v1395_v5 = vrot.slane %v1393_v58, 7  ;;  %v21990_v9 = vrot.slane %v2733_v3, 4  ;;  %v1418_v11 = vshrl.u32 %v18172_v0, 16  ;;  %v21992_v13 = vrot.slane %v2736_v51, 5  ;;  %v1704_v18 = vld [vmem:[#allocation3 + $0x38] sm:$0x1] }
 0x10e   : > { %v1415_v10 = vor.u32 %v1413_v60, %v1412_v61  ;;  %v2742_v14 = vshll.u32 %v21994_v2, 16  ;;  %v1416_v15 = vrot.slane %v1412_v61, 4  ;;  %v1421_v17 = vshll.u32 %v18172_v0, 16  ;;  %v1714_v60 = vld [vmem:[#allocation3 + $0x48] sm:$0xf] }
 0x10f   : > { %v1398_v16 = vor.u32 %v1396_v6, %v1395_v5  ;;  %v1401_v21 = vshrl.u32 %v18170_v1, 16  ;;  %v18754_v24 = vpop.f32.mrb[8].mxu0  ;;  %v1399_v3 = vrot.slane %v1395_v5, 4  ;;  %v1420_v25 = vrot.slane %v1418_v11, 7 }
 0x110   : > { %v1701_v12 = vsel %vm21581_vm9, %v1415_v10, %v1700_v52  ;;  %v18175_v28 = vpack.c.bf16 %v18754_v24, %v18754_v24  ;;  %v584_v29 = vpop.f32.mrb[9].mxu0  ;;  %v1404_v33 = vshll.u32 %v18170_v1, 16  ;;  %v1707_v10 = vld [vmem:[#allocation3 + $0x3c] sm:$0xf]  ;;  %v2739_v20 = vor.u32 %v21992_v13, %v21990_v9 }
 0x111   : > { %1702 = vst [vmem:[#allocation3 + $0x30] sm:$0xf] %v1701_v12  ;;  %v1694_v30 = vsel %vm21581_vm9, %v1398_v16, %v1693_v31  ;;  %v1403_v32 = vrot.slane %v1401_v21, 7  ;;  %v18173_v34 = vpack.c.bf16 %v584_v29, %v584_v29  ;;  %v18755_v35 = vpop.f32.mrb[10].mxu0  ;;  %v1423_v37 = vor.u32 %v1421_v17, %v1420_v25  ;;  %v22014_v11 = vld [vmem:[#allocation3 + $0xc] sm:$0xe] }
 0x112   : > { %1695 = vst [vmem:[#allocation3 + $0x24] sm:$0xf] %v1694_v30  ;;  %v1425_v41 = vrot.slane %v1420_v25, 4  ;;  %v1444_v42 = vshrl.u32 %v18175_v28, 16  ;;  %v1447_v43 = vshll.u32 %v18175_v28, 16  ;;  %v587_v44 = vpop.f32.mrb[11].mxu0  ;;  %v18176_v0 = vpack.c.bf16 %v18755_v35, %v18755_v35 }
 0x113   : > { %v1406_v46 = vor.u32 %v1404_v33, %v1403_v32  ;;  %v1408_v47 = vrot.slane %v1403_v32, 4  ;;  %v1427_v50 = vshrl.u32 %v18173_v34, 16  ;;  %v1430_v51 = vshll.u32 %v18173_v34, 16  ;;  %v20699_v53 = vld [vmem:[#allocation3 + $0xc] sm:$0xff]   ;;  %v20700_v1 = vld [vmem:[#allocation3 + $0x18] sm:$0xff]  }
 0x114   : > { %v1424_v54 = vsel %vm21590_vm10, %v1416_v15, %v1423_v37  ;;  %v1705_v58 = vsel %vm21609_vm11, %v1425_v41, %v1704_v18  ;;  %v1446_v61 = vrot.slane %v1444_v42, 7  ;;  %v18174_v31 = vpack.c.bf16 %v587_v44, %v587_v44  ;;  %18817 = vmatmul.mubr.msk.bf16.vlgmr.msra.gmra.mrb[32].mxu0 %vm1958_vm12, %v20699_v53  ;;  %v22018_v21 = vld [vmem:[#allocation3 + $0x10] sm:$0xf] }
 0x115   : > { %1703 = vst.msk [vmem:[#allocation3 + $0x34] sm:$0xf] %vm679_vm1, %v1424_v54  ;;  %1706 = vst [vmem:[#allocation3 + $0x38] sm:$0x1] %v1705_v58  ;;  %v1407_v52 = vsel %vm21590_vm10, %v1399_v3, %v1406_v46  ;;  %v1698_v5 = vsel %vm21609_vm11, %v1408_v47, %v1697_v26  ;;  %v1429_v6 = vrot.slane %v1427_v50, 7  ;;  %v1452_v17 = vshrl.u32 %v18176_v0, 16  ;;  %18820 = vmatprep.mubr.msk.bf16.mxu0 %vm1958_vm12, %v20700_v1 }
 0x116   : > { %1696 = vst.msk [vmem:[#allocation3 + $0x28] sm:$0xf] %vm679_vm1, %v1407_v52  ;;  %1699 = vst [vmem:[#allocation3 + $0x2c] sm:$0x1] %v1698_v5  ;;  %v1449_v15 = vor.u32 %v1447_v43, %v1446_v61  ;;  %v1450_v16 = vrot.slane %v1446_v61, 4  ;;  %v1455_v18 = vshll.u32 %v18176_v0, 16  ;;  %18849 = vmatpush3.bf16.msra.mxu0 %v21910_v4 }
 0x117   : > { %v1432_v24 = vor.u32 %v1430_v51, %v1429_v6  ;;  %v1433_v12 = vrot.slane %v1429_v6, 4  ;;  %v1718_v3 = vld [vmem:[#allocation3 + $0x50] sm:$0x1]  ;;  %v1435_v25 = vshrl.u32 %v18174_v31, 16  ;;  %v1438_v26 = vshll.u32 %v18174_v31, 16  ;;  %18850 = vmatprep.subr.bf16.mxu0 %v20717_v36 }
 0x118   : > { %v1715_v29 = vsel %vm21581_vm9, %v1449_v15, %v1714_v60  ;;  %v1454_v30 = vrot.slane %v1452_v17, 7  ;;  %v17128_v34 = vrot.slane %v22014_v11, 9  ;;  %v4268_v42 = vrot.slane %v22018_v21, 5  ;;  %v1711_v46 = vld [vmem:[#allocation3 + $0x44] sm:$0x1] }
 0x119   : > { %1716 = vst [vmem:[#allocation3 + $0x48] sm:$0xf] %v1715_v29  ;;  %v1708_v35 = vsel %vm21581_vm9, %v1432_v24, %v1707_v10  ;;  %v1437_v4 = vrot.slane %v1435_v25, 7  ;;  %v1728_v58 = vld [vmem:[#allocation3 + $0x60] sm:$0xf] }
 0x11a   : > { %1709 = vst [vmem:[#allocation3 + $0x3c] sm:$0xf] %v1708_v35  ;;  %v1457_v43 = vor.u32 %v1455_v18, %v1454_v30  ;;  %v1459_v44 = vrot.slane %v1454_v30, 4  ;;  %18851 = vmatpush3.bf16.msra.mxu0 %v20717_v36  ;;  %v1721_v5 = vld [vmem:[#allocation3 + $0x54] sm:$0xf] }
 0x11b   : > { %v1440_v53 = vor.u32 %v1438_v26, %v1437_v4  ;;  %v1442_v54 = vrot.slane %v1437_v4, 4  ;;  %v4197_v10 = vld [vmem:[#allocation3 + $0x18] sm:$0xe]  ;;  %v2977_v17 = vld [vmem:[#allocation3 + $0x14] sm:$0x1] }
 0x11c   : > { %v1458_v0 = vsel %vm21590_vm10, %v1450_v16, %v1457_v43  ;;  %v1719_v1 = vsel %vm21609_vm11, %v1459_v44, %v1718_v3  ;;  %v2979_v25 = vld [vmem:[#allocation3 + $0x1c] sm:$0xf]  ;;  %v20703_v26 = vld [vmem:[#allocation3 + $0x30] sm:$0xff]   ;;  %v1732_v30 = vld [vmem:[#allocation3 + $0x68] sm:$0x1]  ;;  %v4270_v43 = vrot.slane %v4268_v42, 4 }
 0x11d   : > { %1717 = vst.msk [vmem:[#allocation3 + $0x4c] sm:$0xf] %vm679_vm1, %v1458_v0  ;;  %1720 = vst [vmem:[#allocation3 + $0x50] sm:$0x1] %v1719_v1  ;;  %v1441_v36 = vsel %vm21590_vm10, %v1433_v12, %v1440_v53  ;;  %v1712_v31 = vsel %vm21609_vm11, %v1442_v54, %v1711_v46  ;;  %v20702_v16 = vld [vmem:[#allocation3 + $0x24] sm:$0xff]  }
 0x11e   : > { %1710 = vst.msk [vmem:[#allocation3 + $0x40] sm:$0xf] %vm679_vm1, %v1441_v36  ;;  %1713 = vst [vmem:[#allocation3 + $0x44] sm:$0x1] %v1712_v31  ;;  %18821 = vmatmul.mubr.msk.bf16.gmra.mrb[36].mxu0 %vm1958_vm12, %v20702_v16 }
 0x11f   : > { %18824 = vmatprep.mubr.msk.bf16.mxu0 %vm1958_vm12, %v20703_v26 }
 0x13e   : > { %v18758_v28 = vpop.f32.mrb[12].mxu0 }
 0x13f   : > { %v18179_v32 = vpack.c.bf16 %v18758_v28, %v18758_v28  ;;  %v600_v33 = vpop.f32.mrb[13].mxu0 }
 0x140   : > { %v18177_v37 = vpack.c.bf16 %v600_v33, %v600_v33  ;;  %v18759_v41 = vpop.f32.mrb[14].mxu0  ;;  %v2980_v33 = vld [vmem:[#allocation3 + $0x20] sm:$0x1] }
 0x141   : > { %v1478_v47 = vshrl.u32 %v18179_v32, 16  ;;  %v1481_v50 = vshll.u32 %v18179_v32, 16  ;;  %v603_v51 = vpop.f32.mrb[15].mxu0  ;;  %v18180_v6 = vpack.c.bf16 %v18759_v41, %v18759_v41  ;;  %v4269_v41 = vsel %vm21573_vm8, %v17128_v34, %v4268_v42 }
 0x142   : > { %v1461_v61 = vshrl.u32 %v18177_v37, 16  ;;  %v1464_v60 = vshll.u32 %v18177_v37, 16  ;;  %v18178_v15 = vpack.c.bf16 %v603_v51, %v603_v51  ;;  %v17129_v51 = vrot.slane %v4197_v10, 9 }
 0x143   : > { %v1480_v52 = vrot.slane %v1478_v47, 7  ;;  %v1486_v24 = vshrl.u32 %v18180_v6, 16  ;;  %v1489_v3 = vshll.u32 %v18180_v6, 16  ;;  %v4278_v0 = vrot.slane %v2980_v33, 5  ;;  %v20719_v33 = vld [vmem:[%s26034_s4 + $0x30] sm:$0xff]  }
 0x144   : > { %v1463_v11 = vrot.slane %v1461_v61, 7  ;;  %v1469_v12 = vshrl.u32 %v18178_v15, 16  ;;  %v1472_v32 = vshll.u32 %v18178_v15, 16  ;;  %v2982_v15 = vld [vmem:[#allocation3 + $0x28] sm:$0xf] }
 0x145   : > { %v1483_v18 = vor.u32 %v1481_v50, %v1480_v52  ;;  %v1484_v21 = vrot.slane %v1480_v52, 4  ;;  %v1488_v37 = vrot.slane %v1486_v24, 7  ;;  %v4271_v50 = vrot.slane %v2977_v17, 5  ;;  %v4198_v17 = vld [vmem:[#allocation3 + $0x24] sm:$0xe] }
 0x146   : > { %v1466_v28 = vor.u32 %v1464_v60, %v1463_v11  ;;  %v1467_v29 = vrot.slane %v1463_v11, 4  ;;  %v18762_v35 = vpop.f32.mrb[16].mxu0  ;;  %v1471_v47 = vrot.slane %v1469_v12, 7  ;;  %v4275_v60 = vrot.slane %v2979_v25, 5  ;;  %v22064_v25 = vld [vmem:[%s26034_s4 + $0x10] sm:$0xff]  }
 0x147   : > { %v1729_v4 = vsel %vm21581_vm9, %v1483_v18, %v1728_v58  ;;  %v616_v44 = vpop.f32.mrb[17].mxu0  ;;  %v1491_v54 = vor.u32 %v1489_v3, %v1488_v37  ;;  %v1493_v61 = vrot.slane %v1488_v37, 4  ;;  %v1725_v58 = vld [vmem:[#allocation3 + $0x5c] sm:$0x1]  ;;  %v4272_v52 = vsel %vm21573_vm8, %v4270_v43, %v4271_v50  ;;  %v2983_v37 = vld [vmem:[#allocation3 + $0x2c] sm:$0x1]  ;;  %18884 = vmatprep.subr.bf16.mxu0 %v22064_v25 }
 0x148   : > { %1730 = vst [vmem:[#allocation3 + $0x60] sm:$0xf] %v1729_v4  ;;  %v1722_v46 = vsel %vm21581_vm9, %v1466_v28, %v1721_v5  ;;  %v18763_v53 = vpop.f32.mrb[18].mxu0  ;;  %v1474_v34 = vor.u32 %v1472_v32, %v1471_v47  ;;  %v1476_v42 = vrot.slane %v1471_v47, 4  ;;  %v18183_v6 = vpack.c.bf16 %v18762_v35, %v18762_v35  ;;  %v20710_v5 = vld [vmem:[%s26033_s3 + $0x38] sm:$0xff]   ;;  %v20705_v32 = vld [vmem:[#allocation3 + $0x48] sm:$0xff]  }
 0x149   : > { %1723 = vst [vmem:[#allocation3 + $0x54] sm:$0xf] %v1722_v46  ;;  %v619_v1 = vpop.f32.mrb[19].mxu0  ;;  %v1492_v10 = vsel %vm21590_vm10, %v1484_v21, %v1491_v54  ;;  %v1733_v36 = vsel %vm21609_vm11, %v1493_v61, %v1732_v30  ;;  %v17186_v31 = vcombine.low %v4269_v41, %v4272_v52  ;;  %v4276_v11 = vsel %vm21573_vm8, %v17129_v51, %v4275_v60  ;;  %v20704_v3 = vld [vmem:[#allocation3 + $0x3c] sm:$0xff]   ;;  %v1742_v28 = vld [vmem:[#allocation3 + $0x78] sm:$0xf] }
 0x14a   : > { %1731 = vst.msk [vmem:[#allocation3 + $0x64] sm:$0xf] %vm679_vm1, %v1492_v10  ;;  %1734 = vst [vmem:[#allocation3 + $0x68] sm:$0x1] %v1733_v36  ;;  %v1475_v16 = vsel %vm21590_vm10, %v1467_v29, %v1474_v34  ;;  %v1726_v18 = vsel %vm21609_vm11, %v1476_v42, %v1725_v58  ;;  %v4277_v24 = vrot.slane %v4275_v60, 4  ;;  %v1512_v21 = vshrl.u32 %v18183_v6, 16  ;;  %18825 = vmatmul.mubr.msk.bf16.gmra.mrb[40].mxu0 %vm1958_vm12, %v20704_v3 }
 0x14b   : > { %1724 = vst.msk [vmem:[#allocation3 + $0x58] sm:$0xf] %vm679_vm1, %v1475_v16  ;;  %1727 = vst [vmem:[#allocation3 + $0x5c] sm:$0x1] %v1726_v18  ;;  %18961 = vmatmul.mubr.msk.bf16.vlgmr.msra.gmra.mrb[0].mxu1 %vm1958_vm12, %v17186_v31  ;;  %v1515_v26 = vshll.u32 %v18183_v6, 16  ;;  %v18181_v30 = vpack.c.bf16 %v616_v44, %v616_v44  ;;  %v18184_v29 = vpack.c.bf16 %v18763_v53, %v18763_v53  ;;  %v17130_v41 = vrot.slane %v4198_v17, 9 }
 0x14c   : > { %v18182_v12 = vpack.c.bf16 %v619_v1, %v619_v1  ;;  %18993 = vmatpush3.bf16.msra.mxu1 %v21904_v56  ;;  %v4279_v35 = vsel %vm21573_vm8, %v4277_v24, %v4278_v0  ;;  %v1514_v4 = vrot.slane %v1512_v21, 7  ;;  %v4282_v43 = vrot.slane %v2982_v15, 5  ;;  %18828 = vmatprep.mubr.msk.bf16.mxu0 %vm1958_vm12, %v20705_v32  ;;  %v1735_v61 = vld [vmem:[#allocation3 + $0x6c] sm:$0xf]  ;;  %v1746_v60 = vld [vmem:[#allocation3 + $0x80] sm:$0x1] }
 0x14d   : > { %v17187_v44 = vcombine.low %v4276_v11, %v4279_v35  ;;  %v1495_v47 = vshrl.u32 %v18181_v30, 16  ;;  %v1498_v50 = vshll.u32 %v18181_v30, 16  ;;  %v1520_v51 = vshrl.u32 %v18184_v29, 16  ;;  %18994 = vmatprep.subr.bf16.mxu1 %v20710_v5  ;;  %v1739_v6 = vld [vmem:[#allocation3 + $0x74] sm:$0x1] }
 0x14e   : > { %v18766_v46 = vpop.f32.mrb[20].mxu0  ;;  %v1517_v54 = vor.u32 %v1515_v26, %v1514_v4  ;;  %v1518_v56 = vrot.slane %v1514_v4, 4  ;;  %v1523_v58 = vshll.u32 %v18184_v29, 16  ;;  %v1503_v0 = vshrl.u32 %v18182_v12, 16  ;;  %v4199_v36 = vld [vmem:[#allocation3 + $0x30] sm:$0xe] }
 0x14f   : > { %v632_v53 = vpop.f32.mrb[21].mxu0  ;;  %18964 = vmatprep.mubr.msk.bf16.mxu1 %vm1958_vm12, %v17187_v44  ;;  %v1497_v34 = vrot.slane %v1495_v47, 7  ;;  %v1522_v42 = vrot.slane %v1520_v51, 7  ;;  %v1506_v52 = vshll.u32 %v18182_v12, 16  ;;  %v4283_v10 = vsel %vm21573_vm8, %v17130_v41, %v4282_v43  ;;  %v2985_v18 = vld [vmem:[#allocation3 + $0x34] sm:$0xf] }
 0x150   : > { %v18767_v1 = vpop.f32.mrb[22].mxu0  ;;  %v1743_v11 = vsel %vm21581_vm9, %v1517_v54, %v1742_v28  ;;  %v1505_v15 = vrot.slane %v1503_v0, 7  ;;  %v4284_v17 = vrot.slane %v4282_v43, 4  ;;  %v4285_v16 = vrot.slane %v2983_v37, 5  ;;  %18995 = vmatpush3.bf16.msra.mxu1 %v20710_v5  ;;  %v2986_v30 = vld [vmem:[#allocation3 + $0x38] sm:$0x1] }
 0x151   : > { %v635_v31 = vpop.f32.mrb[23].mxu0  ;;  %1744 = vst [vmem:[#allocation3 + $0x78] sm:$0xf] %v1743_v11  ;;  %v1500_v24 = vor.u32 %v1498_v50, %v1497_v34  ;;  %v1501_v21 = vrot.slane %v1497_v34, 4  ;;  %v1525_v3 = vor.u32 %v1523_v58, %v1522_v42  ;;  %v1527_v26 = vrot.slane %v1522_v42, 4  ;;  %19028 = vmatprep.subr.bf16.mxu1 %v20719_v33 }
 0x152   : > { %v1508_v29 = vor.u32 %v1506_v52, %v1505_v15  ;;  %v1510_v12 = vrot.slane %v1505_v15, 4  ;;  %v4286_v32 = vsel %vm21573_vm8, %v4284_v17, %v4285_v16  ;;  %v17131_v35 = vrot.slane %v4199_v36, 9  ;;  %v20706_v4 = vld [vmem:[#allocation3 + $0x54] sm:$0xff]   ;;  %v2988_v43 = vld [vmem:[#allocation3 + $0x40] sm:$0xf] }
 0x153   : > { %v1736_v28 = vsel %vm21581_vm9, %v1500_v24, %v1735_v61  ;;  %v1526_v5 = vsel %vm21590_vm10, %v1518_v56, %v1525_v3  ;;  %v1747_v37 = vsel %vm21609_vm11, %v1527_v26, %v1746_v60  ;;  %v17188_v41 = vcombine.low %v4283_v10, %v4286_v32  ;;  %v4200_v44 = vld [vmem:[#allocation3 + $0x3c] sm:$0xe]  ;;  %18829 = vmatmul.mubr.msk.bf16.gmra.mrb[44].mxu0 %vm1958_vm12, %v20706_v4  ;;  %v20707_v56 = vld [vmem:[#allocation3 + $0x60] sm:$0xff]   ;;  %v4201_v3 = vld [vmem:[#allocation3 + $0x48] sm:$0xe] }
 0x154   : > { %1737 = vst [vmem:[#allocation3 + $0x6c] sm:$0xf] %v1736_v28  ;;  %1745 = vst.msk [vmem:[#allocation3 + $0x7c] sm:$0xf] %vm679_vm1, %v1526_v5  ;;  %v1509_v33 = vsel %vm21590_vm10, %v1501_v21, %v1508_v29  ;;  %v1740_v47 = vsel %vm21609_vm11, %v1510_v12, %v1739_v6  ;;  %v4289_v50 = vrot.slane %v2985_v18, 5  ;;  %v4292_v51 = vrot.slane %v2986_v30, 5  ;;  %18832 = vmatprep.mubr.msk.bf16.mxu0 %vm1958_vm12, %v20707_v56 }
 0x155   : > { %1748 = vst [vmem:[#allocation3 + $0x80] sm:$0x1] %v1747_v37  ;;  %1738 = vst.msk [vmem:[#allocation3 + $0x70] sm:$0xf] %vm679_vm1, %v1509_v33  ;;  %18965 = vmatmul.mubr.msk.bf16.gmra.mrb[4].mxu1 %vm1958_vm12, %v17188_v41  ;;  %v18187_v61 = vpack.c.bf16 %v18766_v46, %v18766_v46  ;;  %v18185_v58 = vpack.c.bf16 %v632_v53, %v632_v53  ;;  %v18188_v60 = vpack.c.bf16 %v18767_v1, %v18767_v1  ;;  %v1756_v1 = vld [vmem:[#allocation3 + $0x90] sm:$0xf] }
 0x156   : > { %v22096_v54 = vpop.f32.mrb[24].mxu0  ;;  %1741 = vst [vmem:[#allocation3 + $0x74] sm:$0x1] %v1740_v47  ;;  %v18186_v0 = vpack.c.bf16 %v635_v31, %v635_v31  ;;  %v4290_v42 = vsel %vm21573_vm8, %v17131_v35, %v4289_v50  ;;  %v4291_v52 = vrot.slane %v4289_v50, 4  ;;  %v17132_v6 = vrot.slane %v4200_v44, 9 }
 0x157   : > { %v22100_v34 = vpop.f32.mrb[25].mxu0  ;;  %v4296_v10 = vrot.slane %v2988_v43, 5  ;;  %v1546_v11 = vshrl.u32 %v18187_v61, 16  ;;  %v1549_v15 = vshll.u32 %v18187_v61, 16  ;;  %v1529_v17 = vshrl.u32 %v18185_v58, 16 }
 0x158   : > { %v22105_v36 = vpop.f32.mrb[26].mxu0  ;;  %v1532_v16 = vshll.u32 %v18185_v58, 16  ;;  %v4293_v53 = vsel %vm21573_vm8, %v4291_v52, %v4292_v51  ;;  %v1749_v31 = vld [vmem:[#allocation3 + $0x84] sm:$0xf]  ;;  %v1554_v18 = vshrl.u32 %v18188_v60, 16  ;;  %v1557_v24 = vshll.u32 %v18188_v60, 16 }
 0x159   : > { %v651_v46 = vpop.f32.mrb[27].mxu0  ;;  %v1537_v21 = vshrl.u32 %v18186_v0, 16  ;;  %v17189_v26 = vcombine.low %v4290_v42, %v4293_v53  ;;  %v1548_v30 = vrot.slane %v1546_v11, 7  ;;  %v1531_v29 = vrot.slane %v1529_v17, 7  ;;  %v1760_v12 = vld [vmem:[#allocation3 + $0x98] sm:$0x1] }
 0x15a   : > { %v1540_v32 = vshll.u32 %v18186_v0, 16  ;;  %v1753_v35 = vld [vmem:[#allocation3 + $0x8c] sm:$0x1]  ;;  %v2989_v4 = vld [vmem:[#allocation3 + $0x44] sm:$0x1]  ;;  %v1556_v28 = vrot.slane %v1554_v18, 7  ;;  %v4297_v37 = vsel %vm21573_vm8, %v17132_v6, %v4296_v10 }
 0x15b   : > { %v1539_v5 = vrot.slane %v1537_v21, 7  ;;  %v4298_v41 = vrot.slane %v4296_v10, 4  ;;  %v2991_v43 = vld [vmem:[#allocation3 + $0x4c] sm:$0xf]  ;;  %v2992_v44 = vld [vmem:[#allocation3 + $0x50] sm:$0x1]  ;;  %18968 = vmatprep.mubr.msk.bf16.mxu1 %vm1958_vm12, %v17189_v26  ;;  %v1551_v33 = vor.u32 %v1549_v15, %v1548_v30  ;;  %v1534_v50 = vor.u32 %v1532_v16, %v1531_v29 }
 0x15c   : > { %v1552_v47 = vrot.slane %v1548_v30, 4  ;;  %v1535_v51 = vrot.slane %v1531_v29, 4  ;;  %v1559_v56 = vor.u32 %v1557_v24, %v1556_v28  ;;  %v1561_v61 = vrot.slane %v1556_v28, 4  ;;  %v20708_v0 = vld [vmem:[#allocation3 + $0x6c] sm:$0xff]   ;;  %v20709_v17 = vld [vmem:[#allocation3 + $0x78] sm:$0xff]  }
 0x15d   : > { %v1542_v58 = vor.u32 %v1540_v32, %v1539_v5  ;;  %v1544_v60 = vrot.slane %v1539_v5, 4  ;;  %v1757_v52 = vsel %vm21581_vm9, %v1551_v33, %v1756_v1  ;;  %v1750_v6 = vsel %vm21581_vm9, %v1534_v50, %v1749_v31  ;;  %18833 = vmatmul.mubr.msk.bf16.gmra.mrb[48].mxu0 %vm1958_vm12, %v20708_v0  ;;  %v2994_v50 = vld [vmem:[#allocation3 + $0x58] sm:$0xf] }
 0x15e   : > { %v4299_v10 = vrot.slane %v2989_v4, 5  ;;  %v17133_v11 = vrot.slane %v4201_v3, 9  ;;  %1758 = vst [vmem:[#allocation3 + $0x90] sm:$0xf] %v1757_v52  ;;  %1751 = vst [vmem:[#allocation3 + $0x84] sm:$0xf] %v1750_v6  ;;  %v1560_v16 = vsel %vm21590_vm10, %v1552_v47, %v1559_v56  ;;  %v1761_v53 = vsel %vm21609_vm11, %v1561_v61, %v1760_v12  ;;  %18836 = vmatprep.mubr.msk.bf16.mxu0 %vm1958_vm12, %v20709_v17 }
 0x15f   : > { %v22112_v42 = vpop.f32.mrb[28].mxu0  ;;  %v1543_v18 = vsel %vm21590_vm10, %v1535_v51, %v1542_v58  ;;  %v1754_v1 = vsel %vm21609_vm11, %v1544_v60, %v1753_v35  ;;  %1759 = vst.msk [vmem:[#allocation3 + $0x94] sm:$0xf] %vm679_vm1, %v1560_v16  ;;  %1762 = vst [vmem:[#allocation3 + $0x98] sm:$0x1] %v1761_v53  ;;  %v4303_v21 = vrot.slane %v2991_v43, 5  ;;  %v18191_v26 = vpack.c.bf16 %v22096_v54, %v22096_v54 }
 0x160   : > { %v22118_v15 = vpop.f32.mrb[29].mxu0  ;;  %1752 = vst.msk [vmem:[#allocation3 + $0x88] sm:$0xf] %vm679_vm1, %v1543_v18  ;;  %1755 = vst [vmem:[#allocation3 + $0x8c] sm:$0x1] %v1754_v1  ;;  %v4300_v24 = vsel %vm21573_vm8, %v4298_v41, %v4299_v10  ;;  %v4306_v3 = vrot.slane %v2992_v44, 5  ;;  %v18189_v12 = vpack.c.bf16 %v22100_v34, %v22100_v34  ;;  %v18192_v32 = vpack.c.bf16 %v22105_v36, %v22105_v36 }
 0x161   : > { %v22129_v31 = vpop.f32.mrb[30].mxu0  ;;  %v17190_v29 = vcombine.low %v4297_v37, %v4300_v24  ;;  %v18190_v35 = vpack.c.bf16 %v651_v46, %v651_v46  ;;  %v4304_v4 = vsel %vm21573_vm8, %v17133_v11, %v4303_v21  ;;  %v4305_v28 = vrot.slane %v4303_v21, 4  ;;  %v4202_v43 = vld [vmem:[#allocation3 + $0x54] sm:$0xe]  ;;  %v1770_v54 = vld [vmem:[#allocation3 + $0xa8] sm:$0xf] }
 0x162   : > { %v22138_v30 = vpop.f32.mrb[31].mxu0  ;;  %v1580_v5 = vshrl.u32 %v18191_v26, 16  ;;  %v1583_v41 = vshll.u32 %v18191_v26, 16  ;;  %v1563_v44 = vshrl.u32 %v18189_v12, 16  ;;  %v1566_v33 = vshll.u32 %v18189_v12, 16 }
 0x163   : > { %18969 = vmatmul.mubr.msk.bf16.gmra.mrb[8].mxu1 %vm1958_vm12, %v17190_v29  ;;  %v1588_v37 = vshrl.u32 %v18192_v32, 16  ;;  %v1591_v47 = vshll.u32 %v18192_v32, 16  ;;  %v4307_v34 = vsel %vm21573_vm8, %v4305_v28, %v4306_v3  ;;  %v1763_v46 = vld [vmem:[#allocation3 + $0x9c] sm:$0xf]  ;;  %v1774_v51 = vld [vmem:[#allocation3 + $0xb0] sm:$0x1] }
 0x164   : > { %v1582_v36 = vrot.slane %v1580_v5, 7  ;;  %v1571_v56 = vshrl.u32 %v18190_v35, 16  ;;  %v1574_v61 = vshll.u32 %v18190_v35, 16  ;;  %v17191_v58 = vcombine.low %v4304_v4, %v4307_v34  ;;  %v1767_v52 = vld [vmem:[#allocation3 + $0xa4] sm:$0x1] }
 0x165   : > { %v1565_v60 = vrot.slane %v1563_v44, 7  ;;  %v1590_v0 = vrot.slane %v1588_v37, 7  ;;  %v2995_v6 = vld [vmem:[#allocation3 + $0x5c] sm:$0x1]  ;;  %v17134_v10 = vrot.slane %v4202_v43, 9  ;;  %v4310_v53 = vrot.slane %v2994_v50, 5 }
 0x166   : > { %v1585_v11 = vor.u32 %v1583_v41, %v1582_v36  ;;  %v1586_v17 = vrot.slane %v1582_v36, 4  ;;  %v1573_v16 = vrot.slane %v1571_v56, 7  ;;  %v2997_v18 = vld [vmem:[#allocation3 + $0x64] sm:$0xf]  ;;  %18972 = vmatprep.mubr.msk.bf16.mxu1 %vm1958_vm12, %v17191_v58  ;;  %v20712_v35 = vld [vmem:[#allocation3 + $0x90] sm:$0xff]   ;;  %v2707_v4 = vsel %vm21913_vm15, %v21962_v63, %v21952_v55 }
 0x167   : > { %v1568_v1 = vor.u32 %v1566_v33, %v1565_v60  ;;  %v1569_v24 = vrot.slane %v1565_v60, 4  ;;  %v1593_v21 = vor.u32 %v1591_v47, %v1590_v0  ;;  %v1595_v3 = vrot.slane %v1590_v0, 4  ;;  %v20711_v26 = vld [vmem:[#allocation3 + $0x84] sm:$0xff]  }
 0x168   : > { %v1771_v29 = vsel %vm21581_vm9, %v1585_v11, %v1770_v54  ;;  %v1576_v12 = vor.u32 %v1574_v61, %v1573_v16  ;;  %v1578_v32 = vrot.slane %v1573_v16, 4  ;;  %v4312_v43 = vrot.slane %v4310_v53, 4  ;;  %v4203_v54 = vld [vmem:[#allocation3 + $0x60] sm:$0xe]  ;;  %18837 = vmatmul.mubr.msk.bf16.gmra.mrb[52].mxu0 %vm1958_vm12, %v20711_v26  ;;  %v2998_v47 = vld [vmem:[#allocation3 + $0x68] sm:$0x1] }
 0x169   : > { %1772 = vst [vmem:[#allocation3 + $0xa8] sm:$0xf] %v1771_v29  ;;  %v1764_v28 = vsel %vm21581_vm9, %v1568_v1, %v1763_v46  ;;  %v1594_v5 = vsel %vm21590_vm10, %v1586_v17, %v1593_v21  ;;  %v1775_v41 = vsel %vm21609_vm11, %v1595_v3, %v1774_v51  ;;  %v4313_v37 = vrot.slane %v2995_v6, 5  ;;  %18840 = vmatprep.mubr.msk.bf16.mxu0 %vm1958_vm12, %v20712_v35  ;;  %v1784_v17 = vld [vmem:[#allocation3 + $0xc0] sm:$0xf] }
 0x16a   : > { %1765 = vst [vmem:[#allocation3 + $0x9c] sm:$0xf] %v1764_v28  ;;  %1773 = vst.msk [vmem:[#allocation3 + $0xac] sm:$0xf] %vm679_vm1, %v1594_v5  ;;  %v1577_v44 = vsel %vm21590_vm10, %v1569_v24, %v1576_v12  ;;  %v1768_v33 = vsel %vm21609_vm11, %v1578_v32, %v1767_v52  ;;  %v2746_v50 = vshrl.u32 %v21994_v2, 16  ;;  %v4311_v34 = vsel %vm21573_vm8, %v17134_v10, %v4310_v53 }
 0x16b   : > { %1776 = vst [vmem:[#allocation3 + $0xb0] sm:$0x1] %v1775_v41  ;;  %1766 = vst.msk [vmem:[#allocation3 + $0xa0] sm:$0xf] %vm679_vm1, %v1577_v44  ;;  %v4317_v36 = vrot.slane %v2997_v18, 5  ;;  %v18195_v46 = vpack.c.bf16 %v22112_v42, %v22112_v42  ;;  %v18193_v51 = vpack.c.bf16 %v22118_v15, %v22118_v15  ;;  %v4314_v56 = vsel %vm21573_vm8, %v4312_v43, %v4313_v37 }
 0x16c   : > { %1769 = vst [vmem:[#allocation3 + $0xa4] sm:$0x1] %v1768_v33  ;;  %v17135_v61 = vrot.slane %v4203_v54, 9  ;;  %v18196_v58 = vpack.c.bf16 %v22129_v31, %v22129_v31  ;;  %v18194_v60 = vpack.c.bf16 %v22138_v30, %v22138_v30  ;;  %v17192_v0 = vcombine.low %v4311_v34, %v4314_v56  ;;  %v3000_v53 = vld [vmem:[#allocation3 + $0x70] sm:$0xf] }
 0x16d   : > { %v4319_v52 = vrot.slane %v4317_v36, 4  ;;  %v4320_v6 = vrot.slane %v2998_v47, 5  ;;  %v1614_v10 = vshrl.u32 %v18195_v46, 16  ;;  %v1617_v11 = vshll.u32 %v18195_v46, 16  ;;  %v1777_v30 = vld [vmem:[#allocation3 + $0xb4] sm:$0xf] }
 0x16e   : > { %v4318_v42 = vsel %vm21573_vm8, %v17135_v61, %v4317_v36  ;;  %v1597_v15 = vshrl.u32 %v18193_v51, 16  ;;  %v1622_v16 = vshrl.u32 %v18196_v58, 16  ;;  %18973 = vmatmul.mubr.msk.bf16.gmra.mrb[12].mxu1 %vm1958_vm12, %v17192_v0  ;;  %v1600_v1 = vshll.u32 %v18193_v51, 16  ;;  %v1788_v24 = vld [vmem:[#allocation3 + $0xc8] sm:$0x1] }
 0x16f   : > { %v4321_v31 = vsel %vm21573_vm8, %v4319_v52, %v4320_v6  ;;  %v1616_v18 = vrot.slane %v1614_v10, 7  ;;  %v1605_v21 = vshrl.u32 %v18194_v60, 16  ;;  %v1625_v12 = vshll.u32 %v18196_v58, 16  ;;  %v1781_v32 = vld [vmem:[#allocation3 + $0xbc] sm:$0x1] }
 0x170   : > { %v17193_v3 = vcombine.low %v4318_v42, %v4321_v31  ;;  %v1599_v26 = vrot.slane %v1597_v15, 7  ;;  %v1624_v29 = vrot.slane %v1622_v16, 7  ;;  %v3001_v35 = vld [vmem:[#allocation3 + $0x74] sm:$0x1]  ;;  %v4204_v28 = vld [vmem:[#allocation3 + $0x6c] sm:$0xe] }
 0x171   : > { %v1619_v5 = vor.u32 %v1617_v11, %v1616_v18  ;;  %v1607_v41 = vrot.slane %v1605_v21, 7  ;;  %v1608_v43 = vshll.u32 %v18194_v60, 16  ;;  %v4324_v54 = vrot.slane %v3000_v53, 5  ;;  %v3003_v44 = vld [vmem:[#allocation3 + $0x7c] sm:$0xf]  ;;  %v20714_v52 = vld [vmem:[#allocation3 + $0xa8] sm:$0xff]  }
 0x172   : > { %v22188_v33 = vld [vmem:[#allocation3 + $0x88] sm:$0xf]  ;;  %18976 = vmatprep.mubr.msk.bf16.mxu1 %vm1958_vm12, %v17193_v3  ;;  %v1620_v37 = vrot.slane %v1616_v18, 4  ;;  %v1602_v47 = vor.u32 %v1600_v1, %v1599_v26  ;;  %v1627_v34 = vor.u32 %v1625_v12, %v1624_v29  ;;  %v1629_v36 = vrot.slane %v1624_v29, 4  ;;  %v4205_v46 = vld [vmem:[#allocation3 + $0x78] sm:$0xe] }
 0x173   : > { %v20713_v51 = vld [vmem:[#allocation3 + $0x9c] sm:$0xff]   ;;  %v1785_v56 = vsel %vm21581_vm9, %v1619_v5, %v1784_v17  ;;  %v1603_v61 = vrot.slane %v1599_v26, 4  ;;  %v1610_v58 = vor.u32 %v1608_v43, %v1607_v41  ;;  %v1612_v0 = vrot.slane %v1607_v41, 4  ;;  %v3009_v15 = vld [vmem:[#allocation3 + $0x94] sm:$0xf] }
 0x174   : > { %1786 = vst [vmem:[#allocation3 + $0xc0] sm:$0xf] %v1785_v56  ;;  %v1778_v60 = vsel %vm21581_vm9, %v1602_v47, %v1777_v30  ;;  %v1628_v6 = vsel %vm21590_vm10, %v1620_v37, %v1627_v34  ;;  %v1789_v10 = vsel %vm21609_vm11, %v1629_v36, %v1788_v24  ;;  %v4326_v42 = vrot.slane %v4324_v54, 4  ;;  %v3004_v11 = vld [vmem:[#allocation3 + $0x80] sm:$0x1]  ;;  %18841 = vmatmul.mubr.msk.bf16.gmra.mrb[56].mxu0 %vm1958_vm12, %v20713_v51 }
 0x175   : > { %1779 = vst [vmem:[#allocation3 + $0xb4] sm:$0xf] %v1778_v60  ;;  %1787 = vst.msk [vmem:[#allocation3 + $0xc4] sm:$0xf] %vm679_vm1, %v1628_v6  ;;  %v1611_v17 = vsel %vm21590_vm10, %v1603_v61, %v1610_v58  ;;  %v1782_v16 = vsel %vm21609_vm11, %v1612_v0, %v1781_v32  ;;  %v17136_v53 = vrot.slane %v4204_v28, 9  ;;  %v4327_v31 = vrot.slane %v3001_v35, 5  ;;  %18844 = vmatprep.mubr.msk.bf16.mxu0 %vm1958_vm12, %v20714_v52 }
 0x176   : > { %1790 = vst [vmem:[#allocation3 + $0xc8] sm:$0x1] %v1789_v10  ;;  %v3007_v18 = vld [vmem:[#allocation3 + $0x8c] sm:$0x1]  ;;  %v3010_v1 = vld [vmem:[#allocation3 + $0x98] sm:$0x1]  ;;  %v22218_v29 = vcombine.low %v2697_v62, %v2707_v4  ;;  %v2721_v12 = vsel %vm21913_vm15, %v21985_v59, %v21954_v57 }
 0x177   : > { %1780 = vst.msk [vmem:[#allocation3 + $0xb8] sm:$0xf] %vm679_vm1, %v1611_v17  ;;  %1783 = vst [vmem:[#allocation3 + $0xbc] sm:$0x1] %v1782_v16  ;;  %v4331_v30 = vrot.slane %v3003_v44, 5  ;;  %v4338_v21 = vrot.slane %v22188_v33, 5  ;;  %v4325_v32 = vsel %vm21573_vm8, %v17136_v53, %v4324_v54  ;;  %v4328_v35 = vsel %vm21573_vm8, %v4326_v42, %v4327_v31 }
 0x178   : > { %v4206_v24 = vld [vmem:[#allocation3 + $0x84] sm:$0xe]  ;;  %v4207_v3 = vld [vmem:[#allocation3 + $0x90] sm:$0xe]  ;;  %v3012_v26 = vld [vmem:[#allocation3 + $0xa0] sm:$0xf]  ;;  %v17194_v5 = vcombine.low %v4325_v32, %v4328_v35  ;;  %v2731_v53 = vsel %vm21913_vm15, %v21988_v7, %v21967_v8 }
 0x179   : > { %v17137_v28 = vrot.slane %v4205_v46, 9  ;;  %v4345_v55 = vrot.slane %v3009_v15, 5  ;;  %v3013_v63 = vld [vmem:[#allocation3 + $0xa4] sm:$0x1]  ;;  %v4333_v41 = vrot.slane %v4331_v30, 4  ;;  %v4334_v43 = vrot.slane %v3004_v11, 5 }
 0x17a   : > { %v4340_v38 = vrot.slane %v4338_v21, 4  ;;  %v4341_v62 = vrot.slane %v3007_v18, 5  ;;  %v4208_v44 = vld [vmem:[#allocation3 + $0x9c] sm:$0xe]  ;;  %v20885_v33 = vld [vmem:[#allocation2 + $0x50] sm:$0x1]  ;;  %18977 = vmatmul.mubr.msk.bf16.gmra.mrb[16].mxu1 %vm1958_vm12, %v17194_v5 }
 0x17b   : > { %v4347_v4 = vrot.slane %v4345_v55, 4  ;;  %v2752_v37 = vshll.u32 %v20885_v33, 16  ;;  %v4332_v54 = vsel %vm21573_vm8, %v17137_v28, %v4331_v30  ;;  %v4335_v47 = vsel %vm21573_vm8, %v4333_v41, %v4334_v43  ;;  %v3015_v46 = vld [vmem:[#allocation3 + $0xac] sm:$0xf]  ;;  %v4209_v51 = vld [vmem:[#allocation3 + $0xa8] sm:$0xe] }
 0x17c   : > { %v4348_v34 = vrot.slane %v3010_v1, 5  ;;  %v4352_v36 = vrot.slane %v3012_v26, 5  ;;  %v17195_v56 = vcombine.low %v4332_v54, %v4335_v47  ;;  %v17138_v9 = vrot.slane %v4206_v24, 9  ;;  %v3016_v58 = vld [vmem:[#allocation3 + $0xb0] sm:$0x1] }
 0x17d   : > { %v4342_v13 = vsel %vm21573_vm8, %v4340_v38, %v4341_v62  ;;  %v17139_v61 = vrot.slane %v4207_v3, 9  ;;  %v17140_v52 = vrot.slane %v4208_v44, 9  ;;  %v4355_v6 = vrot.slane %v3013_v63, 5  ;;  %v2558_v10 = vld [vmem:[#allocation2 + $0x54] sm:$0xf] }
 0x17e   : > { %v4349_v0 = vsel %vm21573_vm8, %v4347_v4, %v4348_v34  ;;  %v4354_v60 = vrot.slane %v4352_v36, 4  ;;  %18980 = vmatprep.mubr.msk.bf16.mxu1 %vm1958_vm12, %v17195_v56  ;;  %v4339_v42 = vsel %vm21573_vm8, %v17138_v9, %v4338_v21  ;;  %v4359_v15 = vrot.slane %v3015_v46, 5  ;;  %v20715_v17 = vld [vmem:[#allocation3 + $0xb4] sm:$0xff]   ;;  %v3019_v24 = vld [vmem:[#allocation3 + $0xbc] sm:$0x1] }
 0x17f   : > { %v4346_v11 = vsel %vm21573_vm8, %v17139_v61, %v4345_v55  ;;  %v22244_v16 = vld [vmem:[#allocation3 + $0xb4] sm:$0xe]  ;;  %v17196_v31 = vcombine.low %v4339_v42, %v4342_v13  ;;  %v17141_v1 = vrot.slane %v4209_v51, 9  ;;  %v22254_v30 = vld [vmem:[#allocation3 + $0xb8] sm:$0xf]  ;;  %v22258_v21 = vrot.slane %v2742_v14, 5  ;;  %18845 = vmatmul.mubr.msk.bf16.gmra.mrb[60].mxu0 %vm1958_vm12, %v20715_v17 }
 0x180   : > { %v22252_v18 = vsel %vm21573_vm8, %v4354_v60, %v4355_v6  ;;  %v17197_v3 = vcombine.low %v4346_v11, %v4349_v0  ;;  %v4353_v26 = vsel %vm21573_vm8, %v17140_v52, %v4352_v36  ;;  %v4361_v32 = vrot.slane %v4359_v15, 4  ;;  %18852 = vmatprep.mubr.msk.bf16.mxu0 %vm1958_vm12, %v21923_v39  ;;  %v2561_v62 = vld [vmem:[#allocation2 + $0x60] sm:$0xf]  ;;  %v20886_v44 = vld [vmem:[#allocation2 + $0x58] sm:$0xf] }
 0x181   : > { %v4366_v35 = vrot.slane %v22254_v30, 5  ;;  %v4362_v28 = vrot.slane %v3016_v58, 5  ;;  %v17142_v55 = vrot.slane %v22244_v16, 9  ;;  %v22267_v63 = vrot.slane %v2739_v20, 4  ;;  %v20887_v47 = vld [vmem:[#allocation2 + $0x5c] sm:$0x1] }
 0x182   : > { %v2748_v14 = vrot.slane %v2746_v50, 4  ;;  %v17198_v5 = vcombine.low %v4353_v26, %v22252_v18  ;;  %v4360_v41 = vsel %vm21573_vm8, %v17141_v1, %v4359_v15  ;;  %v4369_v43 = vrot.slane %v3019_v24, 5  ;;  %18981 = vmatmul.mubr.msk.bf16.gmra.mrb[20].mxu1 %vm1958_vm12, %v17196_v31  ;;  %v2564_v9 = vld [vmem:[#allocation2 + $0x6c] sm:$0xf]  ;;  %v20735_v52 = vld [vmem:[%s26034_s4 + $0x18] sm:$0xff]  }
 0x183   : > { %v2757_v38 = vshrl.u32 %v2558_v10, 16  ;;  %v4363_v4 = vsel %vm21573_vm8, %v4361_v32, %v4362_v28  ;;  %v2760_v20 = vshll.u32 %v2558_v10, 16  ;;  %v2766_v33 = vshll.u32 %v20886_v44, 16  ;;  %18984 = vmatprep.mubr.msk.bf16.mxu1 %vm1958_vm12, %v17197_v3  ;;  %v20888_v10 = vld [vmem:[#allocation2 + $0x64] sm:$0xf] }
 0x184   : > { %v2749_v39 = vor.u32 %v2748_v14, %v22258_v21  ;;  %v4368_v2 = vrot.slane %v4366_v35, 4  ;;  %v2770_v54 = vshrl.u32 %v20886_v44, 16  ;;  %v2776_v34 = vshll.u32 %v20887_v47, 16  ;;  %v20889_v30 = vld [vmem:[#allocation2 + $0x68] sm:$0x1] }
 0x185   : > { %v2759_v50 = vrot.slane %v2757_v38, 4  ;;  %v2754_v46 = vrot.slane %v2752_v37, 5  ;;  %v2762_v51 = vrot.slane %v2760_v20, 5  ;;  %v2768_v56 = vrot.slane %v2766_v33, 5  ;;  %v2567_v14 = vld [vmem:[#allocation2 + $0x78] sm:$0xf] }
 0x186   : > { %v2750_v36 = vrot.slane %v2749_v39, 4  ;;  %v2772_v13 = vrot.slane %v2770_v54, 4  ;;  %v2778_v61 = vrot.slane %v2776_v34, 5  ;;  %v2781_v58 = vshrl.u32 %v2561_v62, 16  ;;  %v2570_v39 = vld [vmem:[#allocation2 + $0x84] sm:$0xf] }
 0x187   : > { %v2784_v0 = vshll.u32 %v2561_v62, 16  ;;  %v17199_v60 = vcombine.low %v4360_v41, %v4363_v4  ;;  %v2763_v6 = vor.u32 %v2762_v51, %v2759_v50  ;;  %v2790_v42 = vshll.u32 %v20888_v10, 16  ;;  %18853 = vmatmul.mubr.msk.bf16.vlgmr.msra.gmra.mrb[32].mxu0 %vm1958_vm12, %v21927_v45  ;;  %v20890_v41 = vld [vmem:[#allocation2 + $0x70] sm:$0xf]  ;;  %v20891_v44 = vld [vmem:[#allocation2 + $0x7c] sm:$0xf] }
 0x188   : > { %v2794_v11 = vshrl.u32 %v20888_v10, 16  ;;  %v4370_v15 = vsel %vm21573_vm8, %v4368_v2, %v4369_v43  ;;  %v2773_v37 = vor.u32 %v2772_v13, %v2768_v56  ;;  %v2783_v17 = vrot.slane %v2781_v58, 4  ;;  %18856 = vmatprep.mubr.msk.bf16.mxu0 %vm1958_vm12, %v21946_v48  ;;  %18885 = vmatpush3.bf16.msra.mxu0 %v22064_v25  ;;  %v20718_v2 = vld [vmem:[#allocation2 + $0xc] sm:$0xff]  }
 0x189   : > { %v2786_v16 = vrot.slane %v2784_v0, 5  ;;  %v2764_v31 = vrot.slane %v2763_v6, 4  ;;  %v22288_v18 = vrot.slane %v2790_v42, 5  ;;  %v2800_v24 = vshll.u32 %v20889_v30, 16  ;;  %18886 = vmatprep.subr.bf16.mxu0 %v20735_v52  ;;  %v20894_v6 = vld [vmem:[#allocation2 + $0x88] sm:$0xf] }
 0x18a   : > { %v2796_v1 = vrot.slane %v2794_v11, 4  ;;  %v2774_v3 = vrot.slane %v2773_v37, 4  ;;  %v2805_v32 = vshrl.u32 %v2564_v9, 16  ;;  %v2808_v28 = vshll.u32 %v2564_v9, 16  ;;  %18985 = vmatmul.mubr.msk.bf16.gmra.mrb[24].mxu1 %vm1958_vm12, %v17198_v5  ;;  %v2573_v42 = vld [vmem:[#allocation2 + $0x90] sm:$0xf] }
 0x18b   : > { %v2787_v26 = vor.u32 %v2786_v16, %v2783_v17  ;;  %v4367_v45 = vsel %vm21573_vm8, %v17142_v55, %v4366_v35  ;;  %v22304_v48 = vcombine.low %v2721_v12, %v2731_v53  ;;  %v2814_v43 = vshll.u32 %v20890_v41, 16  ;;  %18988 = vmatprep.mubr.msk.bf16.mxu1 %vm1958_vm12, %v17199_v60 }
 0x18c   : > { %v2797_v25 = vor.u32 %v2796_v1, %v22288_v18  ;;  %v17200_v5 = vcombine.low %v4367_v45, %v4370_v15  ;;  %v2745_v35 = vsel %vm21913_vm15, %v22267_v63, %v22258_v21  ;;  %v2807_v8 = vrot.slane %v2805_v32, 4  ;;  %18887 = vmatpush3.bf16.msra.mxu0 %v20735_v52  ;;  %v20893_v52 = vld [vmem:[#allocation2 + $0x80] sm:$0x1] }
 0x18d   : > { %v2810_v7 = vrot.slane %v2808_v28, 5  ;;  %v2755_v55 = vsel %vm21913_vm15, %v2750_v36, %v2754_v46  ;;  %v2769_v57 = vsel %vm21913_vm15, %v2764_v31, %v2768_v56  ;;  %v2779_v59 = vsel %vm21913_vm15, %v2774_v3, %v2778_v61  ;;  %v20892_v36 = vld [vmem:[#allocation2 + $0x74] sm:$0x1]  ;;  %v20720_v28 = vld [vmem:[#allocation2 + $0x18] sm:$0xff]  }
 0x18e   : > { %v2818_v12 = vshrl.u32 %v20890_v41, 16  ;;  %v2788_v53 = vrot.slane %v2787_v26, 4  ;;  %v2802_v38 = vrot.slane %v2800_v24, 5  ;;  %v22318_v62 = vrot.slane %v2814_v43, 5  ;;  %v20895_v26 = vld [vmem:[#allocation2 + $0x8c] sm:$0x1] }
 0x18f   : > { %v2829_v4 = vshrl.u32 %v2567_v14, 16  ;;  %v2798_v21 = vrot.slane %v2797_v25, 4  ;;  %v2832_v20 = vshll.u32 %v2567_v14, 16  ;;  %v2838_v33 = vshll.u32 %v20891_v44, 16  ;;  %18857 = vmatmul.mubr.msk.bf16.gmra.mrb[36].mxu0 %vm1958_vm12, %v21948_v49  ;;  %v20721_v43 = vld [vmem:[#allocation2 + $0x24] sm:$0xff]  }
 0x190   : > { %v2820_v63 = vrot.slane %v2818_v12, 4  ;;  %v17045_v50 = vcombine.low %v2745_v35, %v2755_v55  ;;  %v22322_v54 = vcombine.low %v2769_v57, %v2779_v59  ;;  %v2811_v47 = vor.u32 %v2810_v7, %v2807_v8  ;;  %18860 = vmatprep.mubr.msk.bf16.mxu0 %vm1958_vm12, %v22218_v29  ;;  %v20896_v7 = vld [vmem:[#allocation2 + $0x94] sm:$0xf]  ;;  %v2576_v57 = vld [vmem:[#allocation2 + $0x9c] sm:$0xf] }
 0x191   : > { %v2831_v34 = vrot.slane %v2829_v4, 4  ;;  %v2824_v46 = vshll.u32 %v20892_v36, 16  ;;  %v2834_v51 = vrot.slane %v2832_v20, 5  ;;  %v22326_v56 = vrot.slane %v2838_v33, 5  ;;  %v20728_v59 = vld [vmem:[%s26034_s4 + $0x38] sm:$0xff]  }
 0x192   : > { %v2842_v9 = vshrl.u32 %v20891_v44, 16  ;;  %v2793_v13 = vsel %vm21913_vm15, %v2788_v53, %v22288_v18  ;;  %v2821_v49 = vor.u32 %v2820_v63, %v22318_v62  ;;  %v2853_v61 = vshrl.u32 %v2570_v39, 16  ;;  %18989 = vmatmul.mubr.msk.bf16.gmra.mrb[28].mxu1 %vm1958_vm12, %v17200_v5 }
 0x193   : > { %v2856_v58 = vshll.u32 %v2570_v39, 16  ;;  %v2803_v0 = vsel %vm21913_vm15, %v2798_v21, %v2802_v38  ;;  %v2848_v60 = vshll.u32 %v20893_v52, 16  ;;  %v2862_v10 = vshll.u32 %v20894_v6, 16  ;;  %18996 = vmatprep.mubr.msk.bf16.mxu1 %vm1958_vm12, %v20718_v2 }
 0x194   : > { %v2844_v29 = vrot.slane %v2842_v9, 4  ;;  %v2835_v11 = vor.u32 %v2834_v51, %v2831_v34  ;;  %v2855_v15 = vrot.slane %v2853_v61, 4  ;;  %v2866_v17 = vshrl.u32 %v20894_v6, 16  ;;  %v20898_v34 = vld [vmem:[#allocation2 + $0xa0] sm:$0xf]  ;;  %v20722_v6 = vld [vmem:[#allocation2 + $0x30] sm:$0xff]  }
 0x195   : > { %v2858_v37 = vrot.slane %v2856_v58, 5  ;;  %v22336_v16 = vrot.slane %v2811_v47, 4  ;;  %v22338_v31 = vrot.slane %v2824_v46, 5  ;;  %v22341_v1 = vrot.slane %v2862_v10, 5  ;;  %v2579_v51 = vld [vmem:[#allocation2 + $0xa8] sm:$0xf] }
 0x196   : > { %v2845_v18 = vor.u32 %v2844_v29, %v22326_v56  ;;  %v22343_v30 = vrot.slane %v2821_v49, 4  ;;  %v2868_v3 = vrot.slane %v2866_v17, 4  ;;  %v2872_v32 = vshll.u32 %v20895_v26, 16  ;;  %v20899_v61 = vld [vmem:[#allocation2 + $0x98] sm:$0x1]  ;;  %v20723_v10 = vld [vmem:[#allocation2 + $0x3c] sm:$0xff]  }
 0x197   : > { %v2859_v24 = vor.u32 %v2858_v37, %v2855_v15  ;;  %v17047_v14 = vcombine.low %v2793_v13, %v2803_v0  ;;  %v22345_v45 = vrot.slane %v2848_v60, 5  ;;  %v2877_v25 = vshrl.u32 %v2573_v42, 16  ;;  %18861 = vmatmul.mubr.msk.bf16.gmra.mrb[40].mxu0 %vm1958_vm12, %v22304_v48  ;;  %v20900_v15 = vld [vmem:[#allocation2 + $0xa4] sm:$0x1] }
 0x198   : > { %v2880_v41 = vshll.u32 %v2573_v42, 16  ;;  %v22349_v5 = vrot.slane %v2835_v11, 4  ;;  %v2846_v35 = vrot.slane %v2845_v18, 4  ;;  %v2869_v8 = vor.u32 %v2868_v3, %v22341_v1  ;;  %18864 = vmatprep.mubr.msk.bf16.mxu0 %vm1958_vm12, %v17045_v50  ;;  %v20897_v50 = vld [vmem:[%s26034_s4 + $0x30] sm:$0xff]  }
 0x199   : > { %v2886_v55 = vshll.u32 %v20896_v7, 16  ;;  %v2860_v12 = vrot.slane %v2859_v24, 4  ;;  %v2879_v53 = vrot.slane %v2877_v25, 4  ;;  %v2890_v4 = vshrl.u32 %v20896_v7, 16  ;;  %v2582_v24 = vld [vmem:[#allocation2 + $0xb4] sm:$0xf] }
 0x19a   : > { %v2882_v38 = vrot.slane %v2880_v41, 5  ;;  %v2817_v48 = vsel %vm21913_vm15, %v22336_v16, %v22318_v62  ;;  %v2827_v39 = vsel %vm21913_vm15, %v22343_v30, %v22338_v31  ;;  %v2874_v21 = vrot.slane %v2872_v32, 5  ;;  %18997 = vmatmul.mubr.msk.bf16.vlgmr.msra.gmra.mrb[0].mxu1 %vm1958_vm12, %v20720_v28 }
 0x19b   : > { %v22364_v63 = vrot.slane %v2886_v55, 5  ;;  %v2870_v20 = vrot.slane %v2869_v8, 4  ;;  %v2892_v33 = vrot.slane %v2890_v4, 4  ;;  %v2901_v2 = vshrl.u32 %v2576_v57, 16  ;;  %19029 = vmatpush3.bf16.msra.mxu1 %v20897_v50  ;;  %19000 = vmatprep.mubr.msk.bf16.mxu1 %vm1958_vm12, %v20721_v43  ;;  %v2972_v50 = vld [vmem:[#allocation3] sm:$0xf] }
 0x19c   : > { %v2883_v44 = vor.u32 %v2882_v38, %v2879_v53  ;;  %v2841_v62 = vsel %vm21913_vm15, %v22349_v5, %v22326_v56  ;;  %v2904_v47 = vshll.u32 %v2576_v57, 16  ;;  %v2910_v36 = vshll.u32 %v20898_v34, 16  ;;  %19030 = vmatprep.subr.bf16.mxu1 %v20728_v59  ;;  %v22385_v56 = vld [vmem:[%s26033_s3 + $0x40] sm:$0xff]   ;;  %v20902_v38 = vld [vmem:[#allocation2 + $0xb0] sm:$0x1] }
 0x19d   : > { %v2914_v46 = vshrl.u32 %v20898_v34, 16  ;;  %v2851_v9 = vsel %vm21913_vm15, %v2846_v35, %v22345_v45  ;;  %v2865_v13 = vsel %vm21913_vm15, %v2860_v12, %v22341_v1  ;;  %v2893_v49 = vor.u32 %v2892_v33, %v22364_v63  ;;  %v20901_v1 = vld [vmem:[#allocation2 + $0xac] sm:$0xf]  ;;  %v20904_v34 = vld [vmem:[#allocation2 + $0xbc] sm:$0x1] }
 0x19e   : > { %v2896_v58 = vshll.u32 %v20899_v61, 16  ;;  %v2903_v0 = vrot.slane %v2901_v2, 4  ;;  %v2906_v29 = vrot.slane %v2904_v47, 5  ;;  %v22387_v52 = vrot.slane %v2910_v36, 5 }
 0x19f   : > { %v2916_v60 = vrot.slane %v2914_v46, 4  ;;  %v2875_v42 = vsel %vm21913_vm15, %v2870_v20, %v2874_v21  ;;  %v2884_v11 = vrot.slane %v2883_v44, 4  ;;  %v2920_v37 = vshll.u32 %v20900_v15, 16  ;;  %18865 = vmatmul.mubr.msk.bf16.gmra.mrb[44].mxu0 %vm1958_vm12, %v22322_v54  ;;  %19031 = vmatpush3.bf16.msra.mxu1 %v20728_v59  ;;  %v819_v59 = vld [vmem:[%s21553_s18 + $0x78] sm:$0xf]  ;;  %v20724_v21 = vld [vmem:[#allocation2 + $0x48] sm:$0xff]  }
 0x1a0   : > { %v2925_v17 = vshrl.u32 %v2579_v51, 16  ;;  %v2907_v16 = vor.u32 %v2906_v29, %v2903_v0  ;;  %v2928_v18 = vshll.u32 %v2579_v51, 16  ;;  %v2934_v30 = vshll.u32 %v20901_v1, 16  ;;  %18868 = vmatprep.mubr.msk.bf16.mxu0 %vm1958_vm12, %v17047_v14  ;;  %19064 = vmatprep.subr.bf16.mxu1 %v22385_v56 }
 0x1a1   : > { %v2917_v31 = vor.u32 %v2916_v60, %v22387_v52  ;;  %v17048_v3 = vcombine.low %v2817_v48, %v2827_v39  ;;  %v2894_v26 = vrot.slane %v2893_v49, 4  ;;  %v2898_v32 = vrot.slane %v2896_v58, 5  ;;  %v820_v39 = vld [vmem:[%s21553_s18 + $0x7c] sm:$0xf]  ;;  %v1255_v58 = vld [vmem:[#allocation2 + $0xc0] sm:$0xf] }
 0x1a2   : > { %v2938_v28 = vshrl.u32 %v20901_v1, 16  ;;  %v17049_v45 = vcombine.low %v2841_v62, %v2851_v9  ;;  %v2908_v25 = vrot.slane %v2907_v16, 4  ;;  %v2927_v54 = vrot.slane %v2925_v17, 4  ;;  %19001 = vmatmul.mubr.msk.bf16.gmra.mrb[4].mxu1 %vm1958_vm12, %v20722_v6  ;;  %v20725_v62 = vld [vmem:[#allocation2 + $0x54] sm:$0xff]   ;;  %s311_s18 = sand.u32 1, %s21090_s28  }
 0x1a3   : > { %v2930_v41 = vrot.slane %v2928_v18, 5  ;;  %v22397_v43 = vcombine.low %v2865_v13, %v2875_v42  ;;  %v2918_v5 = vrot.slane %v2917_v31, 4  ;;  %v2922_v35 = vrot.slane %v2920_v37, 5  ;;  %19004 = vmatprep.mubr.msk.bf16.mxu1 %vm1958_vm12, %v20723_v10  ;;  %s16893_s23 = sshll.u32 %s311_s18, 8  ;;  %s25989_s9 = scalar_lea.sflag [#allocation6], %s311_s18 }
 0x1a4   : > { %v2949_v8 = vshrl.u32 %v2582_v24, 16  ;;  %v2889_v14 = vsel %vm21913_vm15, %v2884_v11, %v22364_v63  ;;  %v22403_v7 = vrot.slane %v2934_v30, 5  ;;  %v2940_v55 = vrot.slane %v2938_v28, 4  ;;  %v20903_v63 = vld [vmem:[#allocation2 + $0xb8] sm:$0xf]  ;;  %s25884_s25 = scalar_lea.vmem [#allocation5], %s16893_s23 }
 0x1a5   : > { %v2952_v57 = vshll.u32 %v2582_v24, 16  ;;  %v2899_v12 = vsel %vm21913_vm15, %v2894_v26, %v2898_v32  ;;  %v2913_v53 = vsel %vm21913_vm15, %v2908_v25, %v22387_v52  ;;  %v2944_v4 = vshll.u32 %v20902_v38, 16  ;;  %v20905_v30 = vld [vmem:[#allocation3 + $0x4] sm:$0xf]  ;;  %v20726_v25 = vld [vmem:[#allocation2 + $0x60] sm:$0xff]   ;;  %s16815_s26 = sshll.u32 %s25884_s25, 4  ;;  %s25979_s26 = int_to_ptr.vmem [resolvable:$true] %s16815_s26 }
 0x1a6   : > { %v2951_v48 = vrot.slane %v2949_v8, 4  ;;  %v2931_v20 = vor.u32 %v2930_v41, %v2927_v54  ;;  %v2958_v33 = vshll.u32 %v20903_v63, 16  ;;  %v2962_v2 = vshrl.u32 %v20903_v63, 16  ;;  %s21036_s17 = scalar_lea.vmem %s25979_s26, 4096  ;;  %p21043_p0 = scmp.lt.s32.totalorder %s25979_s26, %s21041_s21 }
 0x1a7   : > { %v2954_v44 = vrot.slane %v2952_v57, 5  ;;  %v2923_v47 = vsel %vm21913_vm15, %v2918_v5, %v2922_v35  ;;  %v2968_v36 = vshll.u32 %v20904_v34, 16  ;;  %v1080_v46 = vshrl.u32 %v819_v59, 16  ;;  %18869 = vmatmul.mubr.msk.bf16.gmra.mrb[48].mxu0 %vm1958_vm12, %v17048_v3  ;;  %v2975_v3 = vld [vmem:[#allocation3 + $0xc] sm:$0xf]  ;;  %p21037_p11 = scmp.ne.s32.totalorder %s25979_s26, %s21036_s17  ;;  %p21044_p1 = scmp.lt.s32.totalorder %s21042_s19, %s21036_s17 }
 0x1a8   : > { %v1083_v51 = vshll.u32 %v819_v59, 16  ;;  %v17051_v9 = vcombine.low %v2889_v14, %v2899_v12  ;;  %v2941_v13 = vor.u32 %v2940_v55, %v22403_v7  ;;  %v22416_v49 = vrot.slane %v2958_v33, 5  ;;  %18872 = vmatprep.mubr.msk.bf16.mxu0 %vm1958_vm12, %v17049_v45  ;;  %v20906_v55 = vld [vmem:[#allocation3 + $0x8] sm:$0x1]  ;;  %v2978_v12 = vld [vmem:[#allocation3 + $0x18] sm:$0xf] }
 0x1a9   : > { %v2964_v61 = vrot.slane %v2962_v2, 4  ;;  %v22419_v0 = vrot.slane %v2944_v4, 5  ;;  %v2955_v29 = vor.u32 %v2954_v44, %v2951_v48  ;;  %v1082_v52 = vrot.slane %v1080_v46, 7  ;;  %p21038_p12 = pnand %p21037_p11, %p21187_p5  ;;  %p21045_p2 = por %p21044_p1, %p21043_p0 }
 0x1aa   : > { %v1088_v60 = vshrl.u32 %v820_v39, 16  ;;  %v22421_v6 = vcombine.low %v2913_v53, %v2923_v47  ;;  %v2932_v10 = vrot.slane %v2931_v20, 4  ;;  %v1091_v11 = vshll.u32 %v820_v39, 16  ;;  %19005 = vmatmul.mubr.msk.bf16.gmra.mrb[8].mxu1 %vm1958_vm12, %v20724_v21  ;;  %v20727_v53 = vld [vmem:[#allocation2 + $0x6c] sm:$0xff]   ;;  %v20907_v39 = vld [vmem:[#allocation3 + $0x10] sm:$0xf] }
 0x1ab   : > { %v2965_v42 = vor.u32 %v2964_v61, %v22416_v49  ;;  %v1085_v15 = vor.u32 %v1083_v51, %v1082_v52  ;;  %v1086_v37 = vrot.slane %v1082_v52, 4  ;;  %v3021_v16 = vshrl.u32 %v2972_v50, 16  ;;  %19008 = vmatprep.mubr.msk.bf16.mxu1 %vm1958_vm12, %v20725_v62  ;;  %p21039_p13 = pneg %p21038_p12 }
 0x1ac   : > { %v22425_v17 = vrot.slane %v1088_v60, 7  ;;  %v2942_v31 = vrot.slane %v2941_v13, 4  ;;  %v2970_v18 = vrot.slane %v2968_v36, 5  ;;  %v3024_v1 = vshll.u32 %v2972_v50, 16  ;;  %v20908_v13 = vld [vmem:[#allocation3 + $0x1c] sm:$0xf] }
 0x1ad   : > { %v3030_v24 = vshll.u32 %v20905_v30, 16  ;;  %v2956_v26 = vrot.slane %v2955_v29, 4  ;;  %v1256_v28 = vsel %vm21581_vm9, %v1085_v15, %v1255_v58  ;;  %v3023_v45 = vrot.slane %v3021_v16, 4  ;;  %v2981_v29 = vld [vmem:[#allocation3 + $0x24] sm:$0xf]  ;;  %p21046_p3 = pnand %p21045_p2, %p21039_p13 }
 0x1ae   : > { %v1093_v32 = vor.u32 %v1091_v11, %v22425_v17  ;;  %v2966_v54 = vrot.slane %v2965_v42, 4  ;;  %1257 = vst [vmem:[#allocation2 + $0xc0] sm:$0xf] %v1256_v28  ;;  %v3026_v41 = vrot.slane %v3024_v1, 5  ;;  %v3034_v35 = vshrl.u32 %v20905_v30, 16  ;;  %v20729_v42 = vld [vmem:[#allocation2 + $0x78] sm:$0xff]  }
 0x1af   : > { %v22431_v5 = vrot.slane %v3030_v24, 5  ;;  %v2937_v8 = vsel %vm21913_vm15, %v2932_v10, %v22403_v7  ;;  %v3040_v57 = vshll.u32 %v20906_v55, 16  ;;  %v3045_v59 = vshrl.u32 %v2975_v3, 16  ;;  %18873 = vmatmul.mubr.msk.bf16.gmra.mrb[52].mxu0 %vm1958_vm12, %v22397_v43  ;;  %v20910_v28 = vld [vmem:[#allocation3 + $0x20] sm:$0x1] }
 0x1b0   : > { %v1094_v14 = vsel %vm21590_vm10, %v1086_v37, %v1093_v32  ;;  %v3027_v38 = vor.u32 %v3026_v41, %v3023_v45  ;;  %v3036_v4 = vrot.slane %v3034_v35, 4  ;;  %v3048_v48 = vshll.u32 %v2975_v3, 16  ;;  %18876 = vmatprep.mubr.msk.bf16.mxu0 %vm1958_vm12, %v17051_v9  ;;  %v20909_v37 = vld [vmem:[#allocation3 + $0x14] sm:$0x1]  ;;  %v2984_v41 = vld [vmem:[#allocation3 + $0x30] sm:$0xf] }
 0x1b1   : > { %1258 = vst.msk [vmem:[#allocation2 + $0xc4] sm:$0xf] %vm679_vm1, %v1094_v14  ;;  %v3054_v21 = vshll.u32 %v20907_v39, 16  ;;  %v2947_v7 = vsel %vm21913_vm15, %v2942_v31, %v22419_v0  ;;  %v2961_v20 = vsel %vm21913_vm15, %v2956_v26, %v22416_v49  ;;  %v3047_v44 = vrot.slane %v3045_v59, 4 }
 0x1b2   : > { %v3058_v63 = vshrl.u32 %v20907_v39, 16  ;;  %v2971_v43 = vsel %vm21913_vm15, %v2966_v54, %v2970_v18  ;;  %v3037_v33 = vor.u32 %v3036_v4, %v22431_v5  ;;  %v3050_v2 = vrot.slane %v3048_v48, 5  ;;  %19009 = vmatmul.mubr.msk.bf16.gmra.mrb[12].mxu1 %vm1958_vm12, %v20726_v25  ;;  %v20730_v18 = vld [vmem:[#allocation2 + $0x84] sm:$0xff]   ;;  %v20911_v25 = vld [vmem:[#allocation3 + $0x28] sm:$0xf] }
 0x1b3   : > { %v22451_v50 = vrot.slane %v3054_v21, 5  ;;  %v3042_v62 = vrot.slane %v3040_v57, 5  ;;  %v3069_v34 = vshrl.u32 %v2978_v12, 16  ;;  %v3072_v36 = vshll.u32 %v2978_v12, 16  ;;  %19012 = vmatprep.mubr.msk.bf16.mxu1 %vm1958_vm12, %v20727_v53  ;;  %v20912_v21 = vld [vmem:[#allocation3 + $0x34] sm:$0xf] }
 0x1b4   : > { %v3060_v47 = vrot.slane %v3058_v63, 4  ;;  %v3028_v46 = vrot.slane %v3027_v38, 4  ;;  %v3038_v51 = vrot.slane %v3037_v33, 4  ;;  %v3051_v9 = vor.u32 %v3050_v2, %v3047_v44  ;;  %v2987_v44 = vld [vmem:[#allocation3 + $0x3c] sm:$0xf] }
 0x1b5   : > { %v3078_v49 = vshll.u32 %v20908_v13, 16  ;;  %v17053_v61 = vcombine.low %v2937_v8, %v2947_v7  ;;  %v3082_v0 = vshrl.u32 %v20908_v13, 16  ;;  %v3071_v52 = vrot.slane %v3069_v34, 4 }
 0x1b6   : > { %v3061_v58 = vor.u32 %v3060_v47, %v22451_v50  ;;  %v3074_v60 = vrot.slane %v3072_v36, 5  ;;  %v17054_v11 = vcombine.low %v2961_v20, %v2971_v43  ;;  %v3052_v15 = vrot.slane %v3051_v9, 4 }
 0x1b7   : > { %v22456_v10 = vrot.slane %v3078_v49, 5  ;;  %v3064_v16 = vshll.u32 %v20909_v37, 16  ;;  %v3084_v31 = vrot.slane %v3082_v0, 4  ;;  %18877 = vmatmul.mubr.msk.bf16.gmra.mrb[56].mxu0 %vm1958_vm12, %v22421_v6  ;;  %v3033_v1 = vsel %vm21913_vm15, %v3028_v46, %v22431_v5  ;;  %v20915_v37 = vld [vmem:[#allocation3 + $0x38] sm:$0x1] }
 0x1b8   : > { %v3043_v30 = vsel %vm21913_vm15, %v3038_v51, %v3042_v62  ;;  %v3093_v24 = vshrl.u32 %v2981_v29, 16  ;;  %v3096_v3 = vshll.u32 %v2981_v29, 16  ;;  %18880 = vmatprep.mubr.msk.bf16.mxu0 %vm1958_vm12, %v17053_v61  ;;  %v3062_v26 = vrot.slane %v3061_v58, 4  ;;  %v20913_v62 = vld [vmem:[#allocation3 + $0x2c] sm:$0x1]  ;;  %v20732_v51 = vld [vmem:[#allocation2 + $0x9c] sm:$0xff]  }
 0x1b9   : > { %v3085_v32 = vor.u32 %v3084_v31, %v22456_v10  ;;  %v3088_v45 = vshll.u32 %v20910_v28, 16  ;;  %v3102_v54 = vshll.u32 %v20911_v25, 16  ;;  %v3075_v6 = vor.u32 %v3074_v60, %v3071_v52  ;;  %v20914_v52 = vld [vmem:[#allocation3 + $0x40] sm:$0xf] }
 0x1ba   : > { %v3095_v35 = vrot.slane %v3093_v24, 4  ;;  %v3098_v8 = vrot.slane %v3096_v3, 5  ;;  %v3106_v14 = vshrl.u32 %v20911_v25, 16  ;;  %19013 = vmatmul.mubr.msk.bf16.gmra.mrb[16].mxu1 %vm1958_vm12, %v20729_v42  ;;  %v17077_v5 = vcombine.low %v3033_v1, %v3043_v30  ;;  %v2990_v42 = vld [vmem:[#allocation3 + $0x48] sm:$0xf] }
 0x1bb   : > { %v3057_v55 = vsel %vm21913_vm15, %v3052_v15, %v22451_v50  ;;  %v3066_v57 = vrot.slane %v3064_v16, 5  ;;  %v22471_v59 = vrot.slane %v3102_v54, 5  ;;  %19016 = vmatprep.mubr.msk.bf16.mxu1 %vm1958_vm12, %v20730_v18  ;;  %v3086_v12 = vrot.slane %v3085_v32, 4  ;;  %v20731_v50 = vld [vmem:[#allocation2 + $0x90] sm:$0xff]   ;;  %v20916_v54 = vld [vmem:[#allocation3 + $0x4c] sm:$0xf] }
 0x1bc   : > { %v3108_v53 = vrot.slane %v3106_v14, 4  ;;  %v3117_v38 = vshrl.u32 %v2984_v41, 16  ;;  %v3120_v4 = vshll.u32 %v2984_v41, 16  ;;  %v3099_v39 = vor.u32 %v3098_v8, %v3095_v35 }
 0x1bd   : > { %v3067_v48 = vsel %vm21913_vm15, %v3062_v26, %v3066_v57  ;;  %v3126_v7 = vshll.u32 %v20912_v21, 16  ;;  %v3130_v20 = vshrl.u32 %v20912_v21, 16  ;;  %v3076_v63 = vrot.slane %v3075_v6, 4  ;;  %v2993_v6 = vld [vmem:[#allocation3 + $0x54] sm:$0xf] }
 0x1be   : > { %v3090_v43 = vrot.slane %v3088_v45, 5  ;;  %v3109_v33 = vor.u32 %v3108_v53, %v22471_v59  ;;  %v3119_v2 = vrot.slane %v3117_v38, 4  ;;  %v3112_v47 = vshll.u32 %v20913_v62, 16  ;;  %v20733_v57 = vld [vmem:[#allocation2 + $0xa8] sm:$0xff]  }
 0x1bf   : > { %v3122_v34 = vrot.slane %v3120_v4, 5  ;;  %v22477_v36 = vrot.slane %v3126_v7, 5  ;;  %v3132_v46 = vrot.slane %v3130_v20, 4  ;;  %18881 = vmatmul.mubr.msk.bf16.gmra.mrb[60].mxu0 %vm1958_vm12, %v17054_v11  ;;  %v17078_v9 = vcombine.low %v3057_v55, %v3067_v48  ;;  %v20919_v62 = vld [vmem:[#allocation3 + $0x50] sm:$0x1] }
 0x1c0   : > { %v3091_v13 = vsel %vm21913_vm15, %v3086_v12, %v3090_v43  ;;  %v3141_v49 = vshrl.u32 %v2987_v44, 16  ;;  %v3144_v61 = vshll.u32 %v2987_v44, 16  ;;  %18888 = vmatprep.mubr.msk.bf16.mxu0 %vm1958_vm12, %v17077_v5  ;;  %v3100_v58 = vrot.slane %v3099_v39, 4  ;;  %v20917_v5 = vld [vmem:[#allocation3 + $0x44] sm:$0x1] }
 0x1c1   : > { %v3110_v0 = vrot.slane %v3109_v33, 4  ;;  %v3133_v29 = vor.u32 %v3132_v46, %v22477_v36  ;;  %v3150_v60 = vshll.u32 %v20914_v52, 16  ;;  %v3081_v15 = vsel %vm21913_vm15, %v3076_v63, %v22456_v10  ;;  %v20918_v43 = vld [vmem:[#allocation3 + $0x58] sm:$0xf] }
 0x1c2   : > { %v3123_v11 = vor.u32 %v3122_v34, %v3119_v2  ;;  %v3136_v16 = vshll.u32 %v20915_v37, 16  ;;  %v3154_v31 = vshrl.u32 %v20914_v52, 16  ;;  %19017 = vmatmul.mubr.msk.bf16.gmra.mrb[20].mxu1 %vm1958_vm12, %v20731_v50  ;;  %v17079_v18 = vcombine.low %v3081_v15, %v3091_v13  ;;  %v2996_v2 = vld [vmem:[#allocation3 + $0x60] sm:$0xf] }
 0x1c3   : > { %v3114_v1 = vrot.slane %v3112_v47, 5  ;;  %v3143_v30 = vrot.slane %v3141_v49, 4  ;;  %v22488_v24 = vrot.slane %v3150_v60, 5  ;;  %19020 = vmatprep.mubr.msk.bf16.mxu1 %vm1958_vm12, %v20732_v51  ;;  %v3134_v3 = vrot.slane %v3133_v29, 4 }
 0x1c4   : > { %v3146_v26 = vrot.slane %v3144_v61, 5  ;;  %v3156_v32 = vrot.slane %v3154_v31, 4  ;;  %v3165_v28 = vshrl.u32 %v2990_v42, 16  ;;  %v3105_v10 = vsel %vm21913_vm15, %v3100_v58, %v22471_v59  ;;  %v20736_v59 = vld [vmem:[#allocation2 + $0xb4] sm:$0xff]  }
 0x1c5   : > { %v3115_v45 = vsel %vm21913_vm15, %v3110_v0, %v3114_v1  ;;  %v3168_v25 = vshll.u32 %v2990_v42, 16  ;;  %v3174_v41 = vshll.u32 %v20916_v54, 16  ;;  %v3124_v35 = vrot.slane %v3123_v11, 4  ;;  %v20737_v1 = vld [vmem:[#allocation2 + $0xc0] sm:$0xff]  }
 0x1c6   : > { %v3138_v8 = vrot.slane %v3136_v16, 5  ;;  %v3157_v14 = vor.u32 %v3156_v32, %v22488_v24  ;;  %v3160_v55 = vshll.u32 %v20917_v5, 16  ;;  %v3167_v12 = vrot.slane %v3165_v28, 4  ;;  %v20920_v16 = vld [vmem:[#allocation3 + $0x64] sm:$0xf] }
 0x1c7   : > { %v3170_v53 = vrot.slane %v3168_v25, 5  ;;  %v22497_v38 = vrot.slane %v3174_v41, 5  ;;  %v3178_v4 = vshrl.u32 %v20916_v54, 16  ;;  %18889 = vmatmul.mubr.msk.bf16.vlgmr.msra.gmra.mrb[32].mxu0 %vm1958_vm12, %v17078_v9  ;;  %v17080_v48 = vcombine.low %v3105_v10, %v3115_v45 }
 0x1c8   : > { %v3139_v39 = vsel %vm21913_vm15, %v3134_v3, %v3138_v8  ;;  %v3147_v21 = vor.u32 %v3146_v26, %v3143_v30  ;;  %v3189_v7 = vshrl.u32 %v2993_v6, 16  ;;  %18892 = vmatprep.mubr.msk.bf16.mxu0 %vm1958_vm12, %v17079_v18  ;;  %v3158_v20 = vrot.slane %v3157_v14, 4  ;;  %v2999_v18 = vld [vmem:[#allocation3 + $0x6c] sm:$0xf]  ;;  %v20921_v30 = vld [vmem:[#allocation3 + $0x5c] sm:$0x1] }
 0x1c9   : > { %v3180_v44 = vrot.slane %v3178_v4, 4  ;;  %v3192_v63 = vshll.u32 %v2993_v6, 16  ;;  %v3198_v33 = vshll.u32 %v20918_v43, 16  ;;  %v3171_v50 = vor.u32 %v3170_v53, %v3167_v12  ;;  %v20738_v8 = vld [vmem:[#allocation3 + $0xc] sm:$0xff]   ;;  %v3002_v12 = vld [vmem:[#allocation3 + $0x78] sm:$0xf] }
 0x1ca   : > { %v3184_v47 = vshll.u32 %v20919_v62, 16  ;;  %v3191_v34 = vrot.slane %v3189_v7, 4  ;;  %v3202_v46 = vshrl.u32 %v20918_v43, 16  ;;  %19021 = vmatmul.mubr.msk.bf16.gmra.mrb[24].mxu1 %vm1958_vm12, %v20733_v57  ;;  %v3129_v51 = vsel %vm21913_vm15, %v3124_v35, %v22477_v36 }
 0x1cb   : > { %v3162_v9 = vrot.slane %v3160_v55, 5  ;;  %v3181_v13 = vor.u32 %v3180_v44, %v22497_v38  ;;  %v3194_v49 = vrot.slane %v3192_v63, 5  ;;  %19024 = vmatprep.mubr.msk.bf16.mxu1 %vm1958_vm12, %v20736_v59  ;;  %v3148_v61 = vrot.slane %v3147_v21, 4  ;;  %v20922_v55 = vld [vmem:[#allocation3 + $0x70] sm:$0xf] }
 0x1cc   : > { %v22509_v58 = vrot.slane %v3198_v33, 5  ;;  %v3204_v0 = vrot.slane %v3202_v46, 4  ;;  %v3213_v29 = vshrl.u32 %v2996_v2, 16  ;;  %v17081_v52 = vcombine.low %v3129_v51, %v3139_v39  ;;  %v20923_v21 = vld [vmem:[#allocation3 + $0x68] sm:$0x1] }
 0x1cd   : > { %v3163_v60 = vsel %vm21913_vm15, %v3158_v20, %v3162_v9  ;;  %v3182_v42 = vrot.slane %v3181_v13, 4  ;;  %v3216_v15 = vshll.u32 %v2996_v2, 16  ;;  %v3172_v11 = vrot.slane %v3171_v50, 4  ;;  %v3005_v46 = vld [vmem:[#allocation3 + $0x84] sm:$0xf] }
 0x1ce   : > { %v3186_v37 = vrot.slane %v3184_v47, 5  ;;  %v3195_v36 = vor.u32 %v3194_v49, %v3191_v34  ;;  %v3222_v31 = vshll.u32 %v20920_v16, 16  ;;  %v3208_v3 = vshll.u32 %v20921_v30, 16  ;;  %v20924_v47 = vld [vmem:[#allocation3 + $0x7c] sm:$0xf] }
 0x1cf   : > { %v3215_v26 = vrot.slane %v3213_v29, 4  ;;  %v3218_v32 = vrot.slane %v3216_v15, 5  ;;  %v3226_v28 = vshrl.u32 %v20920_v16, 16  ;;  %18893 = vmatmul.mubr.msk.bf16.gmra.mrb[36].mxu0 %vm1958_vm12, %v17080_v48  ;;  %v3153_v10 = vsel %vm21913_vm15, %v3148_v61, %v22488_v24  ;;  %v20741_v16 = vld [vmem:[#allocation3 + $0x24] sm:$0xff]  }
 0x1d0   : > { %v3187_v45 = vsel %vm21913_vm15, %v3182_v42, %v3186_v37  ;;  %v3205_v25 = vor.u32 %v3204_v0, %v22509_v58  ;;  %v22520_v54 = vrot.slane %v3222_v31, 5  ;;  %18896 = vmatprep.mubr.msk.bf16.mxu0 %vm1958_vm12, %v17081_v52  ;;  %v17082_v41 = vcombine.low %v3153_v10, %v3163_v60  ;;  %v20925_v42 = vld [vmem:[#allocation3 + $0x74] sm:$0x1]  ;;  %v20926_v30 = vld [vmem:[#allocation3 + $0x88] sm:$0xf] }
 0x1d1   : > { %v3228_v6 = vrot.slane %v3226_v28, 4  ;;  %v3237_v35 = vshrl.u32 %v2999_v18, 16  ;;  %v3177_v14 = vsel %vm21913_vm15, %v3172_v11, %v22497_v38  ;;  %v22526_v5 = vrot.slane %v3195_v36, 4  ;;  %v20748_v37 = vld [vmem:[%s26033_s3 + $0x48] sm:$0xff]   ;;  %v20927_v10 = vld [vmem:[#allocation3 + $0x80] sm:$0x1] }
 0x1d2   : > { %v3240_v24 = vshll.u32 %v2999_v18, 16  ;;  %v3246_v57 = vshll.u32 %v20922_v55, 16  ;;  %19025 = vmatmul.mubr.msk.bf16.gmra.mrb[28].mxu1 %vm1958_vm12, %v20737_v1  ;;  %v17083_v53 = vcombine.low %v3177_v14, %v3187_v45  ;;  %v3210_v4 = vrot.slane %v3208_v3, 5 }
 0x1d3   : > { %v3219_v59 = vor.u32 %v3218_v32, %v3215_v26  ;;  %v3229_v48 = vor.u32 %v3228_v6, %v22520_v54  ;;  %19032 = vmatprep.mubr.msk.bf16.mxu1 %vm1958_vm12, %v20738_v8  ;;  %v3206_v39 = vrot.slane %v3205_v25, 4  ;;  %v3232_v7 = vshll.u32 %v20923_v21, 16  ;;  %v3008_v25 = vld [vmem:[#allocation3 + $0x90] sm:$0xf] }
 0x1d4   : > { %v22531_v20 = vrot.slane %v3246_v57, 5  ;;  %v3250_v38 = vshrl.u32 %v20922_v55, 16  ;;  %v3239_v44 = vrot.slane %v3237_v35, 4  ;;  %v3242_v63 = vrot.slane %v3240_v24, 5  ;;  %v22561_v57 = vld [vmem:[%s26034_s4 + $0x40] sm:$0xff]  }
 0x1d5   : > { %v3261_v43 = vshrl.u32 %v3002_v12, 16  ;;  %v3264_v33 = vshll.u32 %v3002_v12, 16  ;;  %v3201_v2 = vsel %vm21913_vm15, %v22526_v5, %v22509_v58  ;;  %v3230_v50 = vrot.slane %v3229_v48, 4  ;;  %v20740_v58 = vld [vmem:[#allocation3 + $0x18] sm:$0xff]  }
 0x1d6   : > { %v3252_v62 = vrot.slane %v3250_v38, 4  ;;  %v3270_v34 = vshll.u32 %v20924_v47, 16  ;;  %v3220_v51 = vrot.slane %v3219_v59, 4  ;;  %v3274_v49 = vshrl.u32 %v20924_v47, 16 }
 0x1d7   : > { %v3263_v9 = vrot.slane %v3261_v43, 4  ;;  %v3266_v13 = vrot.slane %v3264_v33, 5  ;;  %18897 = vmatmul.mubr.msk.bf16.gmra.mrb[40].mxu0 %vm1958_vm12, %v17082_v41  ;;  %v3211_v61 = vsel %vm21913_vm15, %v3206_v39, %v3210_v4  ;;  %v3234_v0 = vrot.slane %v3232_v7, 5  ;;  %v20928_v39 = vld [vmem:[#allocation3 + $0x94] sm:$0xf] }
 0x1d8   : > { %v3253_v29 = vor.u32 %v3252_v62, %v22531_v20  ;;  %v22541_v52 = vrot.slane %v3270_v34, 5  ;;  %18900 = vmatprep.mubr.msk.bf16.mxu0 %vm1958_vm12, %v17083_v53  ;;  %v3243_v60 = vor.u32 %v3242_v63, %v3239_v44  ;;  %v3256_v15 = vshll.u32 %v20925_v42, 16  ;;  %v20742_v33 = vld [vmem:[#allocation3 + $0x30] sm:$0xff]  }
 0x1d9   : > { %v3276_v11 = vrot.slane %v3274_v49, 4  ;;  %v3285_v36 = vshrl.u32 %v3005_v46, 16  ;;  %v3235_v31 = vsel %vm21913_vm15, %v3230_v50, %v3234_v0  ;;  %v3267_v18 = vor.u32 %v3266_v13, %v3263_v9 }
 0x1da   : > { %v3288_v1 = vshll.u32 %v3005_v46, 16  ;;  %v3294_v3 = vshll.u32 %v20926_v30, 16  ;;  %19033 = vmatmul.mubr.msk.bf16.vlgmr.msra.gmra.mrb[0].mxu1 %vm1958_vm12, %v20740_v58  ;;  %v3225_v26 = vsel %vm21913_vm15, %v3220_v51, %v22520_v54  ;;  %v3254_v32 = vrot.slane %v3253_v29, 4  ;;  %v3011_v54 = vld [vmem:[#allocation3 + $0x9c] sm:$0xf] }
 0x1db   : > { %v3277_v28 = vor.u32 %v3276_v11, %v22541_v52  ;;  %v3280_v45 = vshll.u32 %v20927_v10, 16  ;;  %19065 = vmatpush3.bf16.msra.mxu1 %v22385_v56  ;;  %19036 = vmatprep.mubr.msk.bf16.mxu1 %vm1958_vm12, %v20741_v16  ;;  %v3287_v41 = vrot.slane %v3285_v36, 4  ;;  %v3298_v8 = vshrl.u32 %v20926_v30, 16  ;;  %v20743_v46 = vld [vmem:[#allocation3 + $0x3c] sm:$0xff]   ;;  %v20931_v16 = vld [vmem:[#allocation3 + $0x98] sm:$0x1] }
 0x1dc   : > { %v3290_v6 = vrot.slane %v3288_v1, 5  ;;  %v22556_v35 = vrot.slane %v3294_v3, 5  ;;  %v17084_v14 = vcombine.low %v3201_v2, %v3211_v61  ;;  %v17085_v5 = vcombine.low %v3225_v26, %v3235_v31  ;;  %19066 = vmatprep.subr.bf16.mxu1 %v20748_v37  ;;  %v20929_v2 = vld [vmem:[#allocation3 + $0x8c] sm:$0x1]  ;;  %v20930_v29 = vld [vmem:[#allocation3 + $0xa0] sm:$0xf] }
 0x1dd   : > { %v3244_v24 = vrot.slane %v3243_v60, 4  ;;  %v3258_v55 = vrot.slane %v3256_v15, 5  ;;  %v3268_v12 = vrot.slane %v3267_v18, 4  ;;  %v3300_v56 = vrot.slane %v3298_v8, 4  ;;  %v3014_v60 = vld [vmem:[#allocation3 + $0xa8] sm:$0xf] }
 0x1de   : > { %v3309_v53 = vshrl.u32 %v3008_v25, 16  ;;  %v3312_v4 = vshll.u32 %v3008_v25, 16  ;;  %v3278_v59 = vrot.slane %v3277_v28, 4  ;;  %v3282_v48 = vrot.slane %v3280_v45, 5  ;;  %v3017_v1 = vld [vmem:[#allocation3 + $0xb4] sm:$0xf] }
 0x1df   : > { %v3318_v21 = vshll.u32 %v20928_v39, 16  ;;  %v3322_v7 = vshrl.u32 %v20928_v39, 16  ;;  %18901 = vmatmul.mubr.msk.bf16.gmra.mrb[44].mxu0 %vm1958_vm12, %v17084_v14  ;;  %v3259_v38 = vsel %vm21913_vm15, %v3254_v32, %v3258_v55  ;;  %19067 = vmatpush3.bf16.msra.mxu1 %v20748_v37  ;;  %v3291_v44 = vor.u32 %v3290_v6, %v3287_v41  ;;  %v20744_v28 = vld [vmem:[#allocation3 + $0x48] sm:$0xff]  }
 0x1e0   : > { %v3301_v63 = vor.u32 %v3300_v56, %v22556_v35  ;;  %v3311_v43 = vrot.slane %v3309_v53, 4  ;;  %18904 = vmatprep.mubr.msk.bf16.mxu0 %vm1958_vm12, %v17085_v5  ;;  %v3304_v50 = vshll.u32 %v20929_v2, 16  ;;  %v3314_v62 = vrot.slane %v3312_v4, 5  ;;  %19100 = vmatprep.subr.bf16.mxu1 %v22561_v57  ;;  %v20932_v41 = vld [vmem:[#allocation3 + $0xac] sm:$0xf] }
 0x1e1   : > { %v22568_v47 = vrot.slane %v3318_v21, 5  ;;  %v3324_v34 = vrot.slane %v3322_v7, 4  ;;  %v3249_v51 = vsel %vm21913_vm15, %v3244_v24, %v22531_v20  ;;  %v3333_v9 = vshrl.u32 %v3011_v54, 16  ;;  %v20933_v21 = vld [vmem:[#allocation3 + $0xb8] sm:$0xf] }
 0x1e2   : > { %v3336_v13 = vshll.u32 %v3011_v54, 16  ;;  %19037 = vmatmul.mubr.msk.bf16.gmra.mrb[4].mxu1 %vm1958_vm12, %v20742_v33  ;;  %v17086_v49 = vcombine.low %v3249_v51, %v3259_v38  ;;  %v3283_v61 = vsel %vm21913_vm15, %v3278_v59, %v3282_v48  ;;  %v3302_v0 = vrot.slane %v3301_v63, 4 }
 0x1e3   : > { %v3342_v58 = vshll.u32 %v20930_v29, 16  ;;  %19040 = vmatprep.mubr.msk.bf16.mxu1 %vm1958_vm12, %v20743_v46  ;;  %v3292_v42 = vrot.slane %v3291_v44, 4  ;;  %v3315_v15 = vor.u32 %v3314_v62, %v3311_v43  ;;  %v3325_v11 = vor.u32 %v3324_v34, %v22568_v47  ;;  %v20934_v44 = vld [vmem:[#allocation3 + $0xa4] sm:$0x1]  ;;  %v20935_v62 = vld [vmem:[#allocation3 + $0xb0] sm:$0x1] }
 0x1e4   : > { %v3346_v37 = vshrl.u32 %v20930_v29, 16  ;;  %v3273_v20 = vsel %vm21913_vm15, %v3268_v12, %v22541_v52  ;;  %v3306_v36 = vrot.slane %v3304_v50, 5  ;;  %v3328_v31 = vshll.u32 %v20931_v16, 16  ;;  %v20745_v12 = vld [vmem:[#allocation3 + $0x54] sm:$0xff]   ;;  %v20746_v29 = vld [vmem:[#allocation3 + $0x60] sm:$0xff]  }
 0x1e5   : > { %v3335_v18 = vrot.slane %v3333_v9, 4  ;;  %v3338_v30 = vrot.slane %v3336_v13, 5  ;;  %v22582_v3 = vrot.slane %v3342_v58, 5  ;;  %v3357_v32 = vshrl.u32 %v3014_v60, 16  ;;  %v20747_v58 = vld [vmem:[#allocation3 + $0x6c] sm:$0xff]  }
 0x1e6   : > { %v3348_v26 = vrot.slane %v3346_v37, 4  ;;  %v17087_v10 = vcombine.low %v3273_v20, %v3283_v61  ;;  %v3307_v45 = vsel %vm21913_vm15, %v3302_v0, %v3306_v36  ;;  %v3360_v25 = vshll.u32 %v3014_v60, 16  ;;  %v5723_v20 = vld [vmem:[#allocation2 + $0xc] sm:$0xf] }
 0x1e7   : > { %v3366_v6 = vshll.u32 %v20932_v41, 16  ;;  %18905 = vmatmul.mubr.msk.bf16.gmra.mrb[48].mxu0 %vm1958_vm12, %v17086_v49  ;;  %v3297_v52 = vsel %vm21913_vm15, %v3292_v42, %v22556_v35  ;;  %v3316_v8 = vrot.slane %v3315_v15, 4  ;;  %v3326_v14 = vrot.slane %v3325_v11, 4 }
 0x1e8   : > { %18908 = vmatprep.mubr.msk.bf16.mxu0 %vm1958_vm12, %v17087_v10  ;;  %v3359_v5 = vrot.slane %v3357_v32, 4  ;;  %v3362_v24 = vrot.slane %v3360_v25, 5  ;;  %v3370_v54 = vshrl.u32 %v20932_v41, 16  ;;  %v17088_v56 = vcombine.low %v3297_v52, %v3307_v45  ;;  %v5724_v45 = vld [vmem:[#allocation2 + $0x10] sm:$0xf] }
 0x1e9   : > { %v3368_v55 = vrot.slane %v3366_v6, 5  ;;  %v3330_v53 = vrot.slane %v3328_v31, 5  ;;  %v3381_v4 = vshrl.u32 %v3017_v1, 16  ;;  %v3349_v59 = vor.u32 %v3348_v26, %v22582_v3  ;;  %v20936_v31 = vld [vmem:[#allocation3 + $0xbc] sm:$0x1] }
 0x1ea   : > { %19041 = vmatmul.mubr.msk.bf16.gmra.mrb[8].mxu1 %vm1958_vm12, %v20744_v28  ;;  %v3372_v48 = vrot.slane %v3370_v54, 4  ;;  %v3384_v39 = vshll.u32 %v3017_v1, 16  ;;  %v3390_v35 = vshll.u32 %v20933_v21, 16  ;;  %v3339_v38 = vor.u32 %v3338_v30, %v3335_v18  ;;  %v5726_v25 = vld [vmem:[#allocation2 + $0x18] sm:$0xf] }
 0x1eb   : > { %19044 = vmatprep.mubr.msk.bf16.mxu1 %vm1958_vm12, %v20745_v12  ;;  %v3331_v7 = vsel %vm21913_vm15, %v3326_v14, %v3330_v53  ;;  %v3352_v63 = vshll.u32 %v20934_v44, 16  ;;  %v3394_v43 = vshrl.u32 %v20933_v21, 16  ;;  %v3321_v33 = vsel %vm21913_vm15, %v3316_v8, %v22568_v47  ;;  %v5727_v6 = vld [vmem:[#allocation2 + $0x1c] sm:$0xf]  ;;  %v5729_v52 = vld [vmem:[#allocation2 + $0x24] sm:$0xf] }
 0x1ec   : > { %v3363_v2 = vor.u32 %v3362_v24, %v3359_v5  ;;  %v3373_v50 = vor.u32 %v3372_v48, %v3368_v55  ;;  %v3376_v34 = vshll.u32 %v20935_v62, 16  ;;  %v3383_v46 = vrot.slane %v3381_v4, 4  ;;  %v5730_v8 = vld [vmem:[#allocation2 + $0x28] sm:$0xf]  ;;  %v20749_v14 = vld [vmem:[#allocation3 + $0x78] sm:$0xff]  }
 0x1ed   : > { %v3386_v51 = vrot.slane %v3384_v39, 5  ;;  %v3392_v9 = vrot.slane %v3390_v35, 5  ;;  %v3396_v13 = vrot.slane %v3394_v43, 4  ;;  %v17089_v49 = vcombine.low %v3321_v33, %v3331_v7  ;;  %v5732_v24 = vld [vmem:[#allocation2 + $0x30] sm:$0xf] }
 0x1ee   : > { %v3350_v61 = vrot.slane %v3349_v59, 4  ;;  %v3374_v0 = vrot.slane %v3373_v50, 4  ;;  %v3340_v60 = vrot.slane %v3339_v38, 4  ;;  %v3354_v42 = vrot.slane %v3352_v63, 5  ;;  %v5733_v38 = vld [vmem:[#allocation2 + $0x34] sm:$0xf] }
 0x1ef   : > { %18909 = vmatmul.mubr.msk.bf16.gmra.mrb[52].mxu0 %vm1958_vm12, %v17088_v56  ;;  %v3364_v47 = vrot.slane %v3363_v2, 4  ;;  %v3378_v15 = vrot.slane %v3376_v34, 5  ;;  %v3387_v11 = vor.u32 %v3386_v51, %v3383_v46  ;;  %v3397_v37 = vor.u32 %v3396_v13, %v3392_v9  ;;  %v20750_v56 = vld [vmem:[#allocation3 + $0x84] sm:$0xff]  }
 0x1f0   : > { %18912 = vmatprep.mubr.msk.bf16.mxu0 %vm1958_vm12, %v17089_v49  ;;  %v3355_v36 = vsel %vm21913_vm15, %v3350_v61, %v3354_v42  ;;  %v3400_v18 = vshll.u32 %v20936_v31, 16  ;;  %v3345_v1 = vsel %vm21913_vm15, %v3340_v60, %v22582_v3  ;;  %v5772_v30 = vshrl.u32 %v5723_v20, 16  ;;  %v5725_v49 = vld [vmem:[#allocation2 + $0x14] sm:$0x1]  ;;  %v5728_v60 = vld [vmem:[#allocation2 + $0x20] sm:$0x1] }
 0x1f1   : > { %v3379_v16 = vsel %vm21913_vm15, %v3374_v0, %v3378_v15  ;;  %v17090_v26 = vcombine.low %v3345_v1, %v3355_v36  ;;  %v3369_v32 = vsel %vm21913_vm15, %v3364_v47, %v3368_v55  ;;  %v3388_v28 = vrot.slane %v3387_v11, 4  ;;  %v5735_v36 = vld [vmem:[#allocation2 + $0x3c] sm:$0xf] }
 0x1f2   : > { %19045 = vmatmul.mubr.msk.bf16.gmra.mrb[12].mxu1 %vm1958_vm12, %v20746_v29  ;;  %v3398_v10 = vrot.slane %v3397_v37, 4  ;;  %v17091_v41 = vcombine.low %v3369_v32, %v3379_v16  ;;  %v3402_v5 = vrot.slane %v3400_v18, 5  ;;  %v22614_v3 = vrot.slane %v5772_v30, 4  ;;  %v20751_v37 = vld [vmem:[#allocation3 + $0x90] sm:$0xff]   ;;  %v20752_v16 = vld [vmem:[#allocation3 + $0x9c] sm:$0xff]  }
 0x1f3   : > { %19048 = vmatprep.mubr.msk.bf16.mxu1 %vm1958_vm12, %v20747_v58  ;;  %v5775_v54 = vshll.u32 %v5723_v20, 16  ;;  %v5781_v12 = vshll.u32 %v5724_v45, 16  ;;  %v5785_v55 = vshrl.u32 %v5724_v45, 16  ;;  %v3393_v53 = vsel %vm21913_vm15, %v3388_v28, %v3392_v9  ;;  %v5731_v20 = vld [vmem:[#allocation2 + $0x2c] sm:$0x1] }
 0x1f4   : > { %v3403_v4 = vsel %vm21913_vm15, %v3398_v10, %v3402_v5  ;;  %v5796_v59 = vshrl.u32 %v5726_v25, 16  ;;  %v5799_v48 = vshll.u32 %v5726_v25, 16  ;;  %v5805_v39 = vshll.u32 %v5727_v6, 16  ;;  %v5734_v25 = vld [vmem:[#allocation2 + $0x38] sm:$0x1] }
 0x1f5   : > { %v5809_v21 = vshrl.u32 %v5727_v6, 16  ;;  %v5820_v35 = vshrl.u32 %v5729_v52, 16  ;;  %v5823_v7 = vshll.u32 %v5729_v52, 16  ;;  %v5829_v44 = vshll.u32 %v5730_v8, 16 }
 0x1f6   : > { %v5833_v63 = vshrl.u32 %v5730_v8, 16  ;;  %v5844_v43 = vshrl.u32 %v5732_v24, 16  ;;  %v5847_v33 = vshll.u32 %v5732_v24, 16  ;;  %v17092_v2 = vcombine.low %v3393_v53, %v3403_v4 }
 0x1f7   : > { %18913 = vmatmul.mubr.msk.bf16.gmra.mrb[56].mxu0 %vm1958_vm12, %v17090_v26  ;;  %v5777_v50 = vrot.slane %v5775_v54, 5  ;;  %v22622_v62 = vrot.slane %v5781_v12, 5  ;;  %v5787_v34 = vrot.slane %v5785_v55, 4  ;;  %v5798_v46 = vrot.slane %v5796_v59, 4  ;;  %v5736_v26 = vld [vmem:[#allocation2 + $0x40] sm:$0xf] }
 0x1f8   : > { %18916 = vmatprep.mubr.msk.bf16.mxu0 %vm1958_vm12, %v17091_v41  ;;  %v5801_v51 = vrot.slane %v5799_v48, 5  ;;  %v5853_v9 = vshll.u32 %v5733_v38, 16  ;;  %v5857_v13 = vshrl.u32 %v5733_v38, 16  ;;  %v22624_v61 = vrot.slane %v5805_v39, 5  ;;  %v5738_v39 = vld [vmem:[#allocation2 + $0x48] sm:$0xf] }
 0x1f9   : > { %v5811_v0 = vrot.slane %v5809_v21, 4  ;;  %v5822_v29 = vrot.slane %v5820_v35, 4  ;;  %v5825_v58 = vrot.slane %v5823_v7, 5  ;;  %v22627_v42 = vrot.slane %v5829_v44, 5  ;;  %v20753_v21 = vld [vmem:[#allocation3 + $0xa8] sm:$0xff]   ;;  %v20754_v35 = vld [vmem:[#allocation3 + $0xb4] sm:$0xff]  }
 0x1fa   : > { %19049 = vmatmul.mubr.msk.bf16.gmra.mrb[16].mxu1 %vm1958_vm12, %v20749_v14  ;;  %v5835_v47 = vrot.slane %v5833_v63, 4  ;;  %v5846_v15 = vrot.slane %v5844_v43, 4  ;;  %v5849_v11 = vrot.slane %v5847_v33, 5  ;;  %v5778_v31 = vor.u32 %v5777_v50, %v22614_v3  ;;  %v5737_v43 = vld [vmem:[#allocation2 + $0x44] sm:$0x1] }
 0x1fb   : > { %19052 = vmatprep.mubr.msk.bf16.mxu1 %vm1958_vm12, %v20750_v56  ;;  %v5791_v18 = vshll.u32 %v5725_v49, 16  ;;  %v22630_v1 = vrot.slane %v5853_v9, 5  ;;  %v5859_v30 = vrot.slane %v5857_v13, 4  ;;  %v5788_v32 = vor.u32 %v5787_v34, %v22622_v62  ;;  %v5739_v9 = vld [vmem:[#allocation2 + $0x4c] sm:$0xf] }
 0x1fc   : > { %v5802_v28 = vor.u32 %v5801_v51, %v5798_v46  ;;  %v5812_v10 = vor.u32 %v5811_v0, %v22624_v61  ;;  %v5815_v45 = vshll.u32 %v5728_v60, 16  ;;  %v5826_v41 = vor.u32 %v5825_v58, %v5822_v29 }
 0x1fd   : > { %v5836_v6 = vor.u32 %v5835_v47, %v22627_v42  ;;  %v5839_v52 = vshll.u32 %v5731_v20, 16  ;;  %v5850_v8 = vor.u32 %v5849_v11, %v5846_v15  ;;  %v5868_v14 = vshrl.u32 %v5735_v36, 16  ;;  %v5741_v11 = vld [vmem:[#allocation2 + $0x54] sm:$0xf] }
 0x1fe   : > { %v5871_v5 = vshll.u32 %v5735_v36, 16  ;;  %v5877_v24 = vshll.u32 %v5736_v26, 16  ;;  %v5881_v3 = vshrl.u32 %v5736_v26, 16  ;;  %v5779_v54 = vrot.slane %v5778_v31, 4 }
 0x1ff   : > { %18917 = vmatmul.mubr.msk.bf16.gmra.mrb[60].mxu0 %vm1958_vm12, %v17092_v2  ;;  %v5793_v12 = vrot.slane %v5791_v18, 5  ;;  %v5860_v55 = vor.u32 %v5859_v30, %v22630_v1  ;;  %v5863_v56 = vshll.u32 %v5734_v25, 16  ;;  %v5789_v53 = vrot.slane %v5788_v32, 4 }
 0x200   : > { %v5803_v4 = vrot.slane %v5802_v28, 4  ;;  %v5813_v59 = vrot.slane %v5812_v10, 4  ;;  %v5817_v48 = vrot.slane %v5815_v45, 5  ;;  %v5827_v7 = vrot.slane %v5826_v41, 4  ;;  %v20755_v45 = vld [vmem:[#allocation3 + $0xc0] sm:$0xff]  }
 0x201   : > { %v5837_v38 = vrot.slane %v5836_v6, 4  ;;  %v5841_v44 = vrot.slane %v5839_v52, 5  ;;  %v5851_v63 = vrot.slane %v5850_v8, 4  ;;  %v5870_v33 = vrot.slane %v5868_v14, 4  ;;  %v5744_v6 = vld [vmem:[#allocation2 + $0x60] sm:$0xf] }
 0x202   : > { %19053 = vmatmul.mubr.msk.bf16.gmra.mrb[20].mxu1 %vm1958_vm12, %v20751_v37  ;;  %v5873_v2 = vrot.slane %v5871_v5, 5  ;;  %v22638_v50 = vrot.slane %v5877_v24, 5  ;;  %v5883_v34 = vrot.slane %v5881_v3, 4  ;;  %v5861_v46 = vrot.slane %v5860_v55, 4  ;;  %v5742_v37 = vld [vmem:[#allocation2 + $0x58] sm:$0xf] }
 0x203   : > { %19056 = vmatprep.mubr.msk.bf16.mxu1 %vm1958_vm12, %v20752_v16  ;;  %v5865_v51 = vrot.slane %v5863_v56, 5  ;;  %v5892_v13 = vshrl.u32 %v5738_v39, 16  ;;  %v5895_v49 = vshll.u32 %v5738_v39, 16  ;;  %v5784_v0 = vsel %vm21913_vm15, %v5779_v54, %v22622_v62  ;;  %v5745_v5 = vld [vmem:[#allocation2 + $0x64] sm:$0xf] }
 0x204   : > { %v5794_v29 = vsel %vm21913_vm15, %v5789_v53, %v5793_v12  ;;  %v5808_v58 = vsel %vm21913_vm15, %v5803_v4, %v22624_v61  ;;  %v5818_v60 = vsel %vm21913_vm15, %v5813_v59, %v5817_v48  ;;  %v5832_v47 = vsel %vm21913_vm15, %v5827_v7, %v22627_v42  ;;  %v5747_v24 = vld [vmem:[#allocation2 + $0x6c] sm:$0xf]  ;;  %v5748_v56 = vld [vmem:[#allocation2 + $0x70] sm:$0xf] }
 0x205   : > { %v5842_v15 = vsel %vm21913_vm15, %v5837_v38, %v5841_v44  ;;  %v5887_v62 = vshll.u32 %v5737_v43, 16  ;;  %v5856_v20 = vsel %vm21913_vm15, %v5851_v63, %v22630_v1  ;;  %v5874_v61 = vor.u32 %v5873_v2, %v5870_v33  ;;  %v5740_v53 = vld [vmem:[#allocation2 + $0x50] sm:$0x1] }
 0x206   : > { %v5884_v36 = vor.u32 %v5883_v34, %v22638_v50  ;;  %v5901_v16 = vshll.u32 %v5739_v9, 16  ;;  %v5866_v31 = vsel %vm21913_vm15, %v5861_v46, %v5865_v51  ;;  %v5894_v18 = vrot.slane %v5892_v13, 4 }
 0x207   : > { %v5897_v30 = vrot.slane %v5895_v49, 5  ;;  %v5905_v42 = vshrl.u32 %v5739_v9, 16  ;;  %v5916_v26 = vshrl.u32 %v5741_v11, 16  ;;  %v5919_v32 = vshll.u32 %v5741_v11, 16 }
 0x208   : > { %v5925_v28 = vshll.u32 %v5742_v37, 16  ;;  %v5929_v10 = vshrl.u32 %v5742_v37, 16  ;;  %v17299_v25 = vcombine.low %v5784_v0, %v5794_v29  ;;  %v17300_v41 = vcombine.low %v5808_v58, %v5818_v60  ;;  %v5746_v58 = vld [vmem:[#allocation2 + $0x68] sm:$0x1]  ;;  %v5750_v60 = vld [vmem:[#allocation2 + $0x78] sm:$0xf] }
 0x209   : > { %v17301_v52 = vcombine.low %v5832_v47, %v5842_v15  ;;  %v22663_v1 = vcombine.low %v5856_v20, %v5866_v31  ;;  %v5875_v8 = vrot.slane %v5874_v61, 4  ;;  %v5889_v14 = vrot.slane %v5887_v62, 5 }
 0x20a   : > { %19057 = vmatmul.mubr.msk.bf16.gmra.mrb[24].mxu1 %vm1958_vm12, %v20753_v21  ;;  %v5885_v3 = vrot.slane %v5884_v36, 4  ;;  %v5898_v54 = vor.u32 %v5897_v30, %v5894_v18  ;;  %v22665_v12 = vrot.slane %v5901_v16, 5  ;;  %v5907_v55 = vrot.slane %v5905_v42, 4  ;;  %v5743_v21 = vld [vmem:[#allocation2 + $0x5c] sm:$0x1]  ;;  %v20757_v16 = vld [vmem:[%s26034_s4 + $0x48] sm:$0xff]  }
 0x20b   : > { %19060 = vmatprep.mubr.msk.bf16.mxu1 %vm1958_vm12, %v20754_v35  ;;  %v5918_v4 = vrot.slane %v5916_v26, 4  ;;  %v5921_v59 = vrot.slane %v5919_v32, 5  ;;  %v22668_v48 = vrot.slane %v5925_v28, 5  ;;  %v5931_v39 = vrot.slane %v5929_v10, 4  ;;  %v5751_v30 = vld [vmem:[#allocation2 + $0x7c] sm:$0xf] }
 0x20c   : > { %v5940_v35 = vshrl.u32 %v5744_v6, 16  ;;  %v5943_v7 = vshll.u32 %v5744_v6, 16  ;;  %v5949_v38 = vshll.u32 %v5745_v5, 16  ;;  %v5953_v44 = vshrl.u32 %v5745_v5, 16 }
 0x20d   : > { %v5964_v63 = vshrl.u32 %v5747_v24, 16  ;;  %v5967_v43 = vshll.u32 %v5747_v24, 16  ;;  %v5973_v33 = vshll.u32 %v5748_v56, 16  ;;  %v5977_v2 = vshrl.u32 %v5748_v56, 16 }
 0x20e   : > { %v5880_v34 = vsel %vm21913_vm15, %v5875_v8, %v22638_v50  ;;  %v5890_v46 = vsel %vm21913_vm15, %v5885_v3, %v5889_v14  ;;  %v5908_v51 = vor.u32 %v5907_v55, %v22665_v12  ;;  %v5911_v9 = vshll.u32 %v5740_v53, 16  ;;  %v5749_v50 = vld [vmem:[#allocation2 + $0x74] sm:$0x1] }
 0x20f   : > { %v22677_v13 = vrot.slane %v5898_v54, 4  ;;  %v5922_v49 = vor.u32 %v5921_v59, %v5918_v4  ;;  %v5932_v0 = vor.u32 %v5931_v39, %v22668_v48  ;;  %v5935_v29 = vshll.u32 %v5743_v21, 16  ;;  %v5753_v54 = vld [vmem:[#allocation2 + $0x84] sm:$0xf]  ;;  %v5754_v21 = vld [vmem:[#allocation2 + $0x88] sm:$0xf] }
 0x210   : > { %v5942_v47 = vrot.slane %v5940_v35, 4  ;;  %v5945_v15 = vrot.slane %v5943_v7, 5  ;;  %v22680_v62 = vrot.slane %v5949_v38, 5  ;;  %v5955_v11 = vrot.slane %v5953_v44, 4 }
 0x211   : > { %v5966_v37 = vrot.slane %v5964_v63, 4  ;;  %v5969_v20 = vrot.slane %v5967_v43, 5  ;;  %v22682_v61 = vrot.slane %v5973_v33, 5  ;;  %v5979_v36 = vrot.slane %v5977_v2, 4  ;;  %v5752_v2 = vld [vmem:[#allocation2 + $0x80] sm:$0x1] }
 0x212   : > { %19061 = vmatmul.mubr.msk.bf16.gmra.mrb[28].mxu1 %vm1958_vm12, %v20755_v45  ;;  %v5909_v31 = vrot.slane %v5908_v51, 4  ;;  %v5913_v18 = vrot.slane %v5911_v9, 5  ;;  %v5988_v42 = vshrl.u32 %v5750_v60, 16  ;;  %v5991_v26 = vshll.u32 %v5750_v60, 16  ;;  %v5756_v60 = vld [vmem:[#allocation2 + $0x90] sm:$0xf] }
 0x213   : > { %19068 = vmatprep.mubr.msk.bf16.mxu1 %vm1958_vm12, %v17299_v25  ;;  %v5923_v32 = vrot.slane %v5922_v49, 4  ;;  %v5933_v28 = vrot.slane %v5932_v0, 4  ;;  %v5937_v10 = vrot.slane %v5935_v29, 5  ;;  %v5959_v45 = vshll.u32 %v5746_v58, 16 }
 0x214   : > { %v17303_v25 = vcombine.low %v5880_v34, %v5890_v46  ;;  %v5946_v6 = vor.u32 %v5945_v15, %v5942_v47  ;;  %v5956_v8 = vor.u32 %v5955_v11, %v22680_v62  ;;  %v5970_v14 = vor.u32 %v5969_v20, %v5966_v37  ;;  %v5757_v47 = vld [vmem:[#allocation2 + $0x94] sm:$0xf]  ;;  %v5759_v37 = vld [vmem:[#allocation2 + $0x9c] sm:$0xf] }
 0x215   : > { %v5980_v5 = vor.u32 %v5979_v36, %v22682_v61  ;;  %v5983_v24 = vshll.u32 %v5749_v50, 16  ;;  %v5997_v3 = vshll.u32 %v5751_v30, 16  ;;  %v5993_v55 = vrot.slane %v5991_v26, 5  ;;  %v5755_v50 = vld [vmem:[#allocation2 + $0x8c] sm:$0x1] }
 0x216   : > { %v6001_v56 = vshrl.u32 %v5751_v30, 16  ;;  %v5914_v53 = vsel %vm21913_vm15, %v5909_v31, %v5913_v18  ;;  %v5928_v4 = vsel %vm21913_vm15, %v5923_v32, %v22668_v48  ;;  %v5938_v59 = vsel %vm21913_vm15, %v5933_v28, %v5937_v10  ;;  %v5760_v31 = vld [vmem:[#allocation2 + $0xa0] sm:$0xf] }
 0x217   : > { %v5961_v39 = vrot.slane %v5959_v45, 5  ;;  %v5947_v35 = vrot.slane %v5946_v6, 4  ;;  %v5957_v7 = vrot.slane %v5956_v8, 4  ;;  %v6012_v38 = vshrl.u32 %v5753_v54, 16 }
 0x218   : > { %v5971_v44 = vrot.slane %v5970_v14, 4  ;;  %v5981_v63 = vrot.slane %v5980_v5, 4  ;;  %v5985_v43 = vrot.slane %v5983_v24, 5  ;;  %v22708_v33 = vrot.slane %v5997_v3, 5 }
 0x219   : > { %v6003_v48 = vrot.slane %v6001_v56, 4  ;;  %v6021_v46 = vshll.u32 %v5754_v21, 16  ;;  %v6025_v51 = vshrl.u32 %v5754_v21, 16  ;;  %v1095_v9 = vrot.slane %v22425_v17, 4 }
 0x21a   : > { %19069 = vmatmul.mubr.msk.bf16.vlgmr.msra.gmra.mrb[0].mxu1 %vm1958_vm12, %v17300_v41  ;;  %v22695_v41 = vld [vmem:[%s26033_s3 + $0x50] sm:$0xff]   ;;  %v17305_v49 = vcombine.low %v5928_v4, %v5938_v59  ;;  %v5952_v0 = vsel %vm21913_vm15, %v5947_v35, %v22680_v62  ;;  %v6014_v29 = vrot.slane %v6012_v38, 4  ;;  %v5962_v15 = vsel %vm21913_vm15, %v5957_v7, %v5961_v39  ;;  %v1259_v39 = vld [vmem:[#allocation2 + $0xc8] sm:$0x1] }
 0x21b   : > { %19101 = vmatpush3.bf16.msra.mxu1 %v22561_v57  ;;  %19072 = vmatprep.mubr.msk.bf16.mxu1 %vm1958_vm12, %v17301_v52  ;;  %v5904_v57 = vsel %vm21913_vm15, %v22677_v13, %v22665_v12  ;;  %v5990_v52 = vrot.slane %v5988_v42, 4  ;;  %v6015_v12 = vshll.u32 %v5753_v54, 16  ;;  %v5976_v17 = vsel %vm21913_vm15, %v5971_v44, %v22682_v61  ;;  %v5758_v54 = vld [vmem:[#allocation2 + $0x98] sm:$0x1] }
 0x21c   : > { %19102 = vmatprep.subr.bf16.mxu1 %v20757_v16  ;;  %v17304_v13 = vcombine.low %v5904_v57, %v5914_v53  ;;  %v6007_v11 = vshll.u32 %v5752_v2, 16  ;;  %v6004_v62 = vor.u32 %v6003_v48, %v22708_v33  ;;  %v22728_v36 = vrot.slane %v6021_v46, 5  ;;  %v5761_v57 = vld [vmem:[#allocation2 + $0xa4] sm:$0x1] }
 0x21d   : > { %v5994_v34 = vor.u32 %v5993_v55, %v5990_v52  ;;  %v6017_v58 = vrot.slane %v6015_v12, 5  ;;  %v6036_v18 = vshrl.u32 %v5756_v60, 16  ;;  %v6039_v30 = vshll.u32 %v5756_v60, 16  ;;  %v5762_v52 = vld [vmem:[#allocation2 + $0xa8] sm:$0xf] }
 0x21e   : > { %v6045_v42 = vshll.u32 %v5757_v47, 16  ;;  %v6049_v26 = vshrl.u32 %v5757_v47, 16  ;;  %v6031_v61 = vshll.u32 %v5755_v50, 16  ;;  %v6060_v28 = vshrl.u32 %v5759_v37, 16  ;;  %v5763_v55 = vld [vmem:[#allocation2 + $0xac] sm:$0xf] }
 0x21f   : > { %19103 = vmatpush3.bf16.msra.mxu1 %v20757_v16  ;;  %v22725_v20 = vrot.slane %v5994_v34, 4  ;;  %v6027_v16 = vrot.slane %v6025_v51, 4  ;;  %v6018_v32 = vor.u32 %v6017_v58, %v6014_v29  ;;  %v6063_v10 = vshll.u32 %v5759_v37, 16  ;;  %v5765_v12 = vld [vmem:[#allocation2 + $0xb4] sm:$0xf] }
 0x220   : > { %19136 = vmatprep.subr.bf16.mxu1 %v22695_v41  ;;  %v17306_v45 = vcombine.low %v5952_v0, %v5962_v15  ;;  %v6069_v6 = vshll.u32 %v5760_v31, 16  ;;  %v6073_v8 = vshrl.u32 %v5760_v31, 16  ;;  %v22736_v24 = vrot.slane %v6004_v62, 4  ;;  %v5766_v34 = vld [vmem:[#allocation2 + $0xb8] sm:$0xf] }
 0x221   : > { %v6000_v5 = vsel %vm21913_vm15, %v22725_v20, %v22708_v33  ;;  %v6028_v3 = vor.u32 %v6027_v16, %v22728_v36  ;;  %v6038_v56 = vrot.slane %v6036_v18, 4  ;;  %v6041_v53 = vrot.slane %v6039_v30, 5  ;;  %v5764_v16 = vld [vmem:[#allocation2 + $0xb0] sm:$0x1] }
 0x222   : > { %19073 = vmatmul.mubr.msk.bf16.gmra.mrb[4].mxu1 %vm1958_vm12, %v22663_v1  ;;  %v5986_v1 = vsel %vm21913_vm15, %v5981_v63, %v5985_v43  ;;  %v22740_v4 = vrot.slane %v6045_v42, 5  ;;  %v6051_v59 = vrot.slane %v6049_v26, 4  ;;  %v6019_v21 = vrot.slane %v6018_v32, 4 }
 0x223   : > { %19076 = vmatprep.mubr.msk.bf16.mxu1 %vm1958_vm12, %v17303_v25  ;;  %v22730_v25 = vrot.slane %v6007_v11, 5  ;;  %v17307_v14 = vcombine.low %v5976_v17, %v5986_v1  ;;  %v6033_v35 = vrot.slane %v6031_v61, 5  ;;  %v6062_v7 = vrot.slane %v6060_v28, 4  ;;  %v5768_v61 = vld [vmem:[#allocation2 + $0xc0] sm:$0xf] }
 0x224   : > { %v6065_v38 = vrot.slane %v6063_v10, 5  ;;  %v22743_v44 = vrot.slane %v6069_v6, 5  ;;  %v6075_v63 = vrot.slane %v6073_v8, 4  ;;  %v6084_v43 = vshrl.u32 %v5762_v52, 16  ;;  %v5769_v6 = vld [vmem:[#allocation2 + $0xc4] sm:$0xf] }
 0x225   : > { %v6087_v2 = vshll.u32 %v5762_v52, 16  ;;  %v6029_v48 = vrot.slane %v6028_v3, 4  ;;  %v6093_v46 = vshll.u32 %v5763_v55, 16  ;;  %v6097_v51 = vshrl.u32 %v5763_v55, 16 }
 0x226   : > { %v6042_v0 = vor.u32 %v6041_v53, %v6038_v56  ;;  %v6055_v29 = vshll.u32 %v5758_v54, 16  ;;  %v6079_v58 = vshll.u32 %v5761_v57, 16  ;;  %v6108_v60 = vshrl.u32 %v5765_v12, 16 }
 0x227   : > { %v6111_v47 = vshll.u32 %v5765_v12, 16  ;;  %v6117_v15 = vshll.u32 %v5766_v34, 16  ;;  %v6121_v17 = vshrl.u32 %v5766_v34, 16  ;;  %v6066_v1 = vor.u32 %v6065_v38, %v6062_v7  ;;  %v6156_v34 = vld [vmem:[#allocation3 + $0x10] sm:$0xf] }
 0x228   : > { %v6076_v11 = vor.u32 %v6075_v63, %v22743_v44  ;;  %v6086_v50 = vrot.slane %v6084_v43, 4  ;;  %v6089_v37 = vrot.slane %v6087_v2, 5  ;;  %v6024_v62 = vsel %vm21913_vm15, %v6019_v21, %v22728_v36  ;;  %v6155_v21 = vld [vmem:[#allocation3 + $0xc] sm:$0xf] }
 0x229   : > { %v22756_v31 = vrot.slane %v6093_v46, 5  ;;  %v6099_v18 = vrot.slane %v6097_v51, 4  ;;  %v6034_v30 = vsel %vm21913_vm15, %v6029_v48, %v6033_v35  ;;  %v6043_v42 = vrot.slane %v6042_v0, 4 }
 0x22a   : > { %19077 = vmatmul.mubr.msk.bf16.gmra.mrb[8].mxu1 %vm1958_vm12, %v17304_v13  ;;  %v1260_v13 = vsel %vm21609_vm11, %v1095_v9, %v1259_v39  ;;  %v6010_v9 = vsel %vm21913_vm15, %v22736_v24, %v22730_v25  ;;  %v6057_v32 = vrot.slane %v6055_v29, 5  ;;  %v6110_v28 = vrot.slane %v6108_v60, 4  ;;  %v6157_v60 = vld [vmem:[#allocation3 + $0x14] sm:$0x1] }
 0x22b   : > { %19080 = vmatprep.mubr.msk.bf16.mxu1 %vm1958_vm12, %v17305_v49  ;;  %v6052_v49 = vor.u32 %v6051_v59, %v22740_v4  ;;  %1261 = vst [vmem:[#allocation2 + $0xc8] sm:$0x1] %v1260_v13  ;;  %v6113_v10 = vrot.slane %v6111_v47, 5  ;;  %v22762_v25 = vrot.slane %v6117_v15, 5  ;;  %v6123_v36 = vrot.slane %v6121_v17, 4 }
 0x22c   : > { %v6067_v8 = vrot.slane %v6066_v1, 4  ;;  %v6077_v24 = vrot.slane %v6076_v11, 4  ;;  %v6081_v3 = vrot.slane %v6079_v58, 5  ;;  %v6090_v54 = vor.u32 %v6089_v37, %v6086_v50 }
 0x22d   : > { %v6053_v26 = vrot.slane %v6052_v49, 4  ;;  %v17308_v57 = vcombine.low %v6000_v5, %v6010_v9  ;;  %v17309_v52 = vcombine.low %v6024_v62, %v6034_v30  ;;  %v6103_v55 = vshll.u32 %v5764_v16, 16 }
 0x22e   : > { %v6132_v56 = vshrl.u32 %v5768_v61, 16  ;;  %v6135_v53 = vshll.u32 %v5768_v61, 16  ;;  %v6141_v59 = vshll.u32 %v5769_v6, 16  ;;  %v6145_v39 = vshrl.u32 %v5769_v6, 16 }
 0x22f   : > { %v6048_v35 = vsel %vm21913_vm15, %v6043_v42, %v22740_v4  ;;  %v6114_v7 = vor.u32 %v6113_v10, %v6110_v28  ;;  %v6124_v38 = vor.u32 %v6123_v36, %v22762_v25  ;;  %v6058_v33 = vsel %vm21913_vm15, %v6053_v26, %v6057_v32  ;;  %v6158_v36 = vld [vmem:[#allocation3 + $0x18] sm:$0xf] }
 0x230   : > { %v6072_v20 = vsel %vm21913_vm15, %v6067_v8, %v22743_v44  ;;  %v6082_v5 = vsel %vm21913_vm15, %v6077_v24, %v6081_v3  ;;  %v6091_v63 = vrot.slane %v6090_v54, 4  ;;  %v6105_v2 = vrot.slane %v6103_v55, 5  ;;  %v6165_v24 = vld [vmem:[#allocation3 + $0x34] sm:$0xf] }
 0x231   : > { %v6204_v48 = vshrl.u32 %v6155_v21, 16  ;;  %v6207_v4 = vshll.u32 %v6155_v21, 16  ;;  %v6134_v46 = vrot.slane %v6132_v56, 4  ;;  %v6137_v51 = vrot.slane %v6135_v53, 5  ;;  %v6164_v53 = vld [vmem:[#allocation3 + $0x30] sm:$0xf] }
 0x232   : > { %19081 = vmatmul.mubr.msk.bf16.gmra.mrb[12].mxu1 %vm1958_vm12, %v17306_v45  ;;  %v5767_v45 = vld [vmem:[#allocation2 + $0xbc] sm:$0x1]  ;;  %v22782_v13 = vrot.slane %v6141_v59, 5  ;;  %v6147_v0 = vrot.slane %v6145_v39, 4  ;;  %v6115_v49 = vrot.slane %v6114_v7, 4  ;;  %v6125_v44 = vrot.slane %v6124_v38, 4 }
 0x233   : > { %19084 = vmatprep.mubr.msk.bf16.mxu1 %vm1958_vm12, %v17307_v14  ;;  %v6100_v14 = vor.u32 %v6099_v18, %v22756_v31  ;;  %v6127_v12 = vshll.u32 %v5767_v45, 16  ;;  %v5770_v58 = vld [vmem:[#allocation2 + $0xc8] sm:$0x1]  ;;  %v6213_v47 = vshll.u32 %v6156_v34, 16  ;;  %v6217_v15 = vshrl.u32 %v6156_v34, 16 }
 0x234   : > { %v17310_v17 = vcombine.low %v6048_v35, %v6058_v33  ;;  %v17311_v1 = vcombine.low %v6072_v20, %v6082_v5  ;;  %v6206_v11 = vrot.slane %v6204_v48, 4  ;;  %v6209_v50 = vrot.slane %v6207_v4, 5  ;;  %v6159_v18 = vld [vmem:[#allocation3 + $0x1c] sm:$0xf]  ;;  %v6160_v5 = vld [vmem:[#allocation3 + $0x20] sm:$0x1] }
 0x235   : > { %v6101_v43 = vrot.slane %v6100_v14, 4  ;;  %v6129_v29 = vrot.slane %v6127_v12, 5  ;;  %v6096_v37 = vsel %vm21913_vm15, %v6091_v63, %v22756_v31  ;;  %v6138_v62 = vor.u32 %v6137_v51, %v6134_v46  ;;  %v6162_v31 = vld [vmem:[#allocation3 + $0x28] sm:$0xf] }
 0x236   : > { %v6148_v16 = vor.u32 %v6147_v0, %v22782_v13  ;;  %v6120_v30 = vsel %vm21913_vm15, %v6115_v49, %v22762_v25  ;;  %v6151_v26 = vshll.u32 %v5770_v58, 16  ;;  %v6223_v32 = vshll.u32 %v6157_v60, 16 }
 0x237   : > { %v6106_v9 = vsel %vm21913_vm15, %v6101_v43, %v6105_v2  ;;  %v6130_v42 = vsel %vm21913_vm15, %v6125_v44, %v6129_v29  ;;  %v22796_v61 = vrot.slane %v6213_v47, 5  ;;  %v6219_v28 = vrot.slane %v6217_v15, 4  ;;  %v6167_v29 = vld [vmem:[#allocation3 + $0x3c] sm:$0xf]  ;;  %v22818_v15 = vld [vmem:[#allocation3 + $0x2c] sm:$0x1] }
 0x238   : > { %v6210_v10 = vor.u32 %v6209_v50, %v6206_v11  ;;  %v6237_v6 = vshll.u32 %v6159_v18, 16  ;;  %v6241_v8 = vshrl.u32 %v6159_v18, 16  ;;  %v17312_v3 = vcombine.low %v6096_v37, %v6106_v9  ;;  %v6166_v37 = vld [vmem:[#allocation3 + $0x38] sm:$0x1] }
 0x239   : > { %v17313_v54 = vcombine.low %v6120_v30, %v6130_v42  ;;  %v6139_v45 = vrot.slane %v6138_v62, 4  ;;  %v6149_v25 = vrot.slane %v6148_v16, 4  ;;  %v22800_v14 = vrot.slane %v6223_v32, 5  ;;  %v6171_v42 = vld [vmem:[#allocation3 + $0x4c] sm:$0xf] }
 0x23a   : > { %19085 = vmatmul.mubr.msk.bf16.gmra.mrb[16].mxu1 %vm1958_vm12, %v17308_v57  ;;  %v6161_v57 = vld [vmem:[#allocation3 + $0x24] sm:$0xf]  ;;  %v6261_v55 = vshll.u32 %v6162_v31, 16  ;;  %v6265_v56 = vshrl.u32 %v6162_v31, 16  ;;  %v6220_v59 = vor.u32 %v6219_v28, %v22796_v61  ;;  %v6228_v39 = vshrl.u32 %v6158_v36, 16 }
 0x23b   : > { %19088 = vmatprep.mubr.msk.bf16.mxu1 %vm1958_vm12, %v17309_v52  ;;  %v6153_v52 = vrot.slane %v6151_v26, 5  ;;  %v6285_v21 = vshll.u32 %v6165_v24, 16  ;;  %v6289_v35 = vshrl.u32 %v6165_v24, 16  ;;  %v6211_v7 = vrot.slane %v6210_v10, 4 }
 0x23c   : > { %v6231_v38 = vshll.u32 %v6158_v36, 16  ;;  %v22803_v12 = vrot.slane %v6237_v6, 5  ;;  %v6243_v33 = vrot.slane %v6241_v8, 4  ;;  %v6144_v20 = vsel %vm21913_vm15, %v6139_v45, %v22782_v13  ;;  %v6170_v8 = vld [vmem:[#allocation3 + $0x48] sm:$0xf] }
 0x23d   : > { %v6252_v63 = vshrl.u32 %v6161_v57, 16  ;;  %v6255_v43 = vshll.u32 %v6161_v57, 16  ;;  %v6276_v2 = vshrl.u32 %v6164_v53, 16  ;;  %v6154_v34 = vsel %vm21913_vm15, %v6149_v25, %v6153_v52 }
 0x23e   : > { %v22810_v48 = vrot.slane %v6261_v55, 5  ;;  %v6267_v4 = vrot.slane %v6265_v56, 4  ;;  %v6279_v46 = vshll.u32 %v6164_v53, 16  ;;  %v6221_v51 = vrot.slane %v6220_v59, 4 }
 0x23f   : > { %v6230_v0 = vrot.slane %v6228_v39, 4  ;;  %v22812_v49 = vrot.slane %v6285_v21, 5  ;;  %v6291_v44 = vrot.slane %v6289_v35, 4  ;;  %v6216_v13 = vsel %vm21913_vm15, %v6211_v7, %v22796_v61 }
 0x240   : > { %v6233_v58 = vrot.slane %v6231_v38, 5  ;;  %v6244_v60 = vor.u32 %v6243_v33, %v22803_v12  ;;  %v6247_v47 = vshll.u32 %v6160_v5, 16  ;;  %v6254_v11 = vrot.slane %v6252_v63, 4  ;;  %v6173_v33 = vld [vmem:[#allocation3 + $0x54] sm:$0xf] }
 0x241   : > { %v6257_v50 = vrot.slane %v6255_v43, 5  ;;  %v6278_v9 = vrot.slane %v6276_v2, 4  ;;  %v6268_v62 = vor.u32 %v6267_v4, %v22810_v48  ;;  %v6281_v16 = vrot.slane %v6279_v46, 5  ;;  %v22835_v2 = vld [vmem:[#allocation3 + $0x58] sm:$0xf] }
 0x242   : > { %19089 = vmatmul.mubr.msk.bf16.gmra.mrb[20].mxu1 %vm1958_vm12, %v17310_v17  ;;  %v6168_v17 = vld [vmem:[#allocation3 + $0x40] sm:$0xf]  ;;  %v6300_v18 = vshrl.u32 %v6167_v29, 16  ;;  %v6303_v30 = vshll.u32 %v6167_v29, 16  ;;  %v6226_v26 = vsel %vm21913_vm15, %v6221_v51, %v22800_v14  ;;  %v6292_v32 = vor.u32 %v6291_v44, %v22812_v49  ;;  %v22828_v14 = vld [vmem:[#allocation3 + $0x44] sm:$0x1] }
 0x243   : > { %19092 = vmatprep.mubr.msk.bf16.mxu1 %vm1958_vm12, %v17311_v1  ;;  %v17314_v1 = vcombine.low %v6144_v20, %v6154_v34  ;;  %v6309_v61 = vshll.u32 %v6168_v17, 16  ;;  %v6313_v28 = vshrl.u32 %v6168_v17, 16  ;;  %v6234_v31 = vor.u32 %v6233_v58, %v6230_v0  ;;  %v22846_v58 = vld [vmem:[#allocation3 + $0x50] sm:$0x1] }
 0x244   : > { %v6245_v10 = vrot.slane %v6244_v60, 4  ;;  %v6249_v36 = vrot.slane %v6247_v47, 5  ;;  %v6271_v6 = vshll.u32 %v22818_v15, 16  ;;  %v6258_v24 = vor.u32 %v6257_v50, %v6254_v11 }
 0x245   : > { %v6337_v45 = vshrl.u32 %v6171_v42, 16  ;;  %v6269_v25 = vrot.slane %v6268_v62, 4  ;;  %v6282_v57 = vor.u32 %v6281_v16, %v6278_v9  ;;  %v6302_v52 = vrot.slane %v6300_v18, 4 }
 0x246   : > { %v6305_v55 = vrot.slane %v6303_v30, 5  ;;  %v6293_v56 = vrot.slane %v6292_v32, 4  ;;  %v22830_v53 = vrot.slane %v6309_v61, 5  ;;  %v6315_v59 = vrot.slane %v6313_v28, 4 }
 0x247   : > { %v6324_v39 = vshrl.u32 %v6170_v8, 16  ;;  %v17337_v21 = vcombine.low %v6216_v13, %v6226_v26  ;;  %v6235_v35 = vrot.slane %v6234_v31, 4  ;;  %v6273_v7 = vrot.slane %v6271_v6, 5  ;;  %v22860_v26 = vld [vmem:[#allocation3 + $0x64] sm:$0xf] }
 0x248   : > { %v6327_v38 = vshll.u32 %v6170_v8, 16  ;;  %v6259_v20 = vrot.slane %v6258_v24, 4  ;;  %v6339_v43 = vrot.slane %v6337_v45, 4  ;;  %v6250_v34 = vsel %vm21913_vm15, %v6245_v10, %v6249_v36  ;;  %v20759_v31 = vld [vmem:[%s26033_s3 + $0x58] sm:$0xff]  }
 0x249   : > { %v6274_v4 = vsel %vm21913_vm15, %v6269_v25, %v6273_v7  ;;  %v6283_v46 = vrot.slane %v6282_v57, 4  ;;  %v6319_v51 = vshll.u32 %v22828_v14, 16  ;;  %v6306_v44 = vor.u32 %v6305_v55, %v6302_v52 }
 0x24a   : > { %19093 = vmatmul.mubr.msk.bf16.gmra.mrb[24].mxu1 %vm1958_vm12, %v17312_v3  ;;  %v6295_v3 = vshll.u32 %v6166_v37, 16  ;;  %v6316_v29 = vor.u32 %v6315_v59, %v22830_v53  ;;  %v6326_v13 = vrot.slane %v6324_v39, 4  ;;  %v6329_v60 = vrot.slane %v6327_v38, 5 }
 0x24b   : > { %19096 = vmatprep.mubr.msk.bf16.mxu1 %vm1958_vm12, %v17313_v54  ;;  %v6333_v54 = vshll.u32 %v6171_v42, 16  ;;  %v6348_v47 = vshrl.u32 %v6173_v33, 16  ;;  %v6351_v17 = vshll.u32 %v6173_v33, 16  ;;  %v6240_v11 = vsel %vm21913_vm15, %v6235_v35, %v22803_v12  ;;  %v6176_v42 = vld [vmem:[#allocation3 + $0x60] sm:$0xf] }
 0x24c   : > { %v6297_v5 = vrot.slane %v6295_v3, 5  ;;  %v6264_v50 = vsel %vm21913_vm15, %v6259_v20, %v22810_v48  ;;  %v6361_v9 = vshrl.u32 %v22835_v2, 16  ;;  %v17338_v62 = vcombine.low %v6240_v11, %v6250_v34  ;;  %v6179_v48 = vld [vmem:[#allocation3 + $0x6c] sm:$0xf]  ;;  %v22871_v3 = vld [vmem:[#allocation3 + $0x5c] sm:$0x1] }
 0x24d   : > { %v22833_v63 = vrot.slane %v6333_v54, 5  ;;  %v17339_v16 = vcombine.low %v6264_v50, %v6274_v4  ;;  %v6288_v18 = vsel %vm21913_vm15, %v6283_v46, %v22812_v49  ;;  %v6321_v30 = vrot.slane %v6319_v51, 5  ;;  %v22868_v49 = vld [vmem:[#allocation3 + $0x70] sm:$0xf]  ;;  %v22893_v46 = vld [vmem:[#allocation3 + $0x7c] sm:$0xf] }
 0x24e   : > { %v6298_v0 = vsel %vm21913_vm15, %v6293_v56, %v6297_v5  ;;  %v6307_v12 = vrot.slane %v6306_v44, 4  ;;  %v6317_v61 = vrot.slane %v6316_v29, 4  ;;  %v6343_v28 = vshll.u32 %v22846_v58, 16  ;;  %v6182_v5 = vld [vmem:[#allocation3 + $0x78] sm:$0xf] }
 0x24f   : > { %v6340_v37 = vor.u32 %v6339_v43, %v22833_v63  ;;  %v17340_v32 = vcombine.low %v6288_v18, %v6298_v0  ;;  %v6330_v10 = vor.u32 %v6329_v60, %v6326_v13  ;;  %v6350_v36 = vrot.slane %v6348_v47, 4  ;;  %v22897_v13 = vld [vmem:[#allocation3 + $0x68] sm:$0x1] }
 0x250   : > { %v6353_v6 = vrot.slane %v6351_v17, 5  ;;  %v6363_v54 = vrot.slane %v6361_v9, 4  ;;  %v6372_v45 = vshrl.u32 %v6176_v42, 16  ;;  %v6375_v25 = vshll.u32 %v6176_v42, 16 }
 0x251   : > { %v6341_v24 = vrot.slane %v6340_v37, 4  ;;  %v6381_v57 = vshll.u32 %v22860_v26, 16  ;;  %v6385_v52 = vshrl.u32 %v22860_v26, 16  ;;  %v6396_v55 = vshrl.u32 %v6179_v48, 16 }
 0x252   : > { %19097 = vmatmul.mubr.msk.bf16.gmra.mrb[28].mxu1 %vm1958_vm12, %v17314_v1  ;;  %v6357_v1 = vshll.u32 %v22835_v2, 16  ;;  %v6399_v56 = vshll.u32 %v6179_v48, 16  ;;  %v6312_v59 = vsel %vm21913_vm15, %v6307_v12, %v22830_v53  ;;  %v6345_v39 = vrot.slane %v6343_v28, 5  ;;  %v6185_v48 = vld [vmem:[#allocation3 + $0x84] sm:$0xf] }
 0x253   : > { %19104 = vmatprep.mubr.msk.bf16.mxu1 %vm1958_vm12, %v17337_v21  ;;  %v6405_v21 = vshll.u32 %v22868_v49, 16  ;;  %v6409_v35 = vshrl.u32 %v22868_v49, 16  ;;  %v6322_v7 = vsel %vm21913_vm15, %v6317_v61, %v6321_v30  ;;  %v6331_v38 = vrot.slane %v6330_v10, 4  ;;  %v22908_v30 = vld [vmem:[#allocation3 + $0x88] sm:$0xf] }
 0x254   : > { %v22866_v8 = vrot.slane %v6357_v1, 5  ;;  %v6354_v33 = vor.u32 %v6353_v6, %v6350_v36  ;;  %v6367_v20 = vshll.u32 %v22871_v3, 16  ;;  %v6346_v53 = vsel %vm21913_vm15, %v6341_v24, %v6345_v39  ;;  %v22916_v6 = vld [vmem:[#allocation3 + $0x80] sm:$0x1] }
 0x255   : > { %v6374_v34 = vrot.slane %v6372_v45, 4  ;;  %v6377_v4 = vrot.slane %v6375_v25, 5  ;;  %v22895_v51 = vrot.slane %v6381_v57, 5  ;;  %v6387_v0 = vrot.slane %v6385_v52, 4 }
 0x256   : > { %v6364_v43 = vor.u32 %v6363_v54, %v22866_v8  ;;  %v6398_v44 = vrot.slane %v6396_v55, 4  ;;  %v6401_v29 = vrot.slane %v6399_v56, 5  ;;  %v22899_v60 = vrot.slane %v6405_v21, 5 }
 0x257   : > { %v6411_v47 = vrot.slane %v6409_v35, 4  ;;  %v6420_v17 = vshrl.u32 %v6182_v5, 16  ;;  %v6423_v1 = vshll.u32 %v6182_v5, 16  ;;  %v17341_v11 = vcombine.low %v6312_v59, %v6322_v7  ;;  %v22929_v5 = vld [vmem:[#allocation3 + $0x94] sm:$0xf] }
 0x258   : > { %v6336_v50 = vsel %vm21913_vm15, %v6331_v38, %v22833_v63  ;;  %v6429_v37 = vshll.u32 %v22893_v46, 16  ;;  %v6433_v9 = vshrl.u32 %v22893_v46, 16  ;;  %v6369_v18 = vrot.slane %v6367_v20, 5  ;;  %v22913_v63 = vld [vmem:[#allocation3 + $0x74] sm:$0x1] }
 0x259   : > { %v6355_v42 = vrot.slane %v6354_v33, 4  ;;  %v6378_v12 = vor.u32 %v6377_v4, %v6374_v34  ;;  %v6388_v61 = vor.u32 %v6387_v0, %v22895_v51  ;;  %v6391_v28 = vshll.u32 %v22897_v13, 16 }
 0x25a   : > { %19105 = vmatmul.mubr.msk.bf16.vlgmr.msra.gmra.mrb[0].mxu1 %vm1958_vm12, %v17338_v62  ;;  %v17342_v62 = vcombine.low %v6336_v50, %v6346_v53  ;;  %v6412_v10 = vor.u32 %v6411_v47, %v22899_v60  ;;  %v6425_v36 = vrot.slane %v6423_v1, 5  ;;  %v22918_v24 = vrot.slane %v6429_v37, 5  ;;  %v22941_v1 = vld [vmem:[#allocation3 + $0x8c] sm:$0x1]  ;;  %v22945_v37 = vld [vmem:[#allocation3 + $0xa0] sm:$0xf] }
 0x25b   : > { %19137 = vmatpush3.bf16.msra.mxu1 %v22695_v41  ;;  %19108 = vmatprep.mubr.msk.bf16.mxu1 %vm1958_vm12, %v17339_v16  ;;  %v22885_v41 = vld [vmem:[%s26034_s4 + $0x50] sm:$0xff]   ;;  %v6365_v16 = vrot.slane %v6364_v43, 4  ;;  %v6435_v54 = vrot.slane %v6433_v9, 4  ;;  %v6453_v45 = vshll.u32 %v22908_v30, 16  ;;  %v6457_v25 = vshrl.u32 %v22908_v30, 16 }
 0x25c   : > { %19138 = vmatprep.subr.bf16.mxu1 %v20759_v31  ;;  %v6415_v52 = vshll.u32 %v22913_v63, 16  ;;  %v6444_v55 = vshrl.u32 %v6185_v48, 16  ;;  %v6447_v56 = vshll.u32 %v6185_v48, 16  ;;  %v6360_v59 = vsel %vm21913_vm15, %v6355_v42, %v22866_v8 }
 0x25d   : > { %v6370_v57 = vsel %vm21913_vm15, %v6365_v16, %v6369_v18  ;;  %v6379_v39 = vrot.slane %v6378_v12, 4  ;;  %v6389_v21 = vrot.slane %v6388_v61, 4  ;;  %v6393_v35 = vrot.slane %v6391_v28, 5  ;;  %v6191_v18 = vld [vmem:[#allocation3 + $0x9c] sm:$0xf] }
 0x25e   : > { %v6413_v38 = vrot.slane %v6412_v10, 4  ;;  %v6439_v20 = vshll.u32 %v22916_v6, 16  ;;  %v17343_v53 = vcombine.low %v6360_v59, %v6370_v57  ;;  %v6436_v43 = vor.u32 %v6435_v54, %v22918_v24 }
 0x25f   : > { %19139 = vmatpush3.bf16.msra.mxu1 %v20759_v31  ;;  %v6402_v31 = vor.u32 %v6401_v29, %v6398_v44  ;;  %v22932_v34 = vrot.slane %v6453_v45, 5  ;;  %v6459_v4 = vrot.slane %v6457_v25, 4  ;;  %v6417_v0 = vrot.slane %v6415_v52, 5  ;;  %v6188_v29 = vld [vmem:[#allocation3 + $0x90] sm:$0xf] }
 0x260   : > { %19172 = vmatprep.subr.bf16.mxu1 %v22885_v41  ;;  %v6446_v8 = vrot.slane %v6444_v55, 4  ;;  %v6449_v44 = vrot.slane %v6447_v56, 5  ;;  %v6384_v47 = vsel %vm21913_vm15, %v6379_v39, %v22895_v51  ;;  %v6481_v50 = vshrl.u32 %v22929_v5, 16  ;;  %v22958_v52 = vld [vmem:[#allocation3 + $0x98] sm:$0x1] }
 0x261   : > { %v6403_v7 = vrot.slane %v6402_v31, 4  ;;  %v6441_v51 = vrot.slane %v6439_v20, 5  ;;  %v6437_v42 = vrot.slane %v6436_v43, 4  ;;  %v6460_v12 = vor.u32 %v6459_v4, %v22932_v34  ;;  %v6194_v20 = vld [vmem:[#allocation3 + $0xa8] sm:$0xf] }
 0x262   : > { %19109 = vmatmul.mubr.msk.bf16.gmra.mrb[4].mxu1 %vm1958_vm12, %v17340_v32  ;;  %v6422_v32 = vrot.slane %v6420_v17, 4  ;;  %v6394_v17 = vsel %vm21913_vm15, %v6389_v21, %v6393_v35  ;;  %v6468_v61 = vshrl.u32 %v6188_v29, 16  ;;  %v6471_v28 = vshll.u32 %v6188_v29, 16  ;;  %v22962_v21 = vld [vmem:[#allocation3 + $0xac] sm:$0xf] }
 0x263   : > { %19112 = vmatprep.mubr.msk.bf16.mxu1 %vm1958_vm12, %v17341_v11  ;;  %v6477_v11 = vshll.u32 %v22929_v5, 16  ;;  %v6408_v9 = vsel %vm21913_vm15, %v6403_v7, %v22899_v60  ;;  %v6450_v48 = vor.u32 %v6449_v44, %v6446_v8  ;;  %v6463_v31 = vshll.u32 %v22941_v1, 16  ;;  %v22972_v8 = vld [vmem:[#allocation3 + $0xb8] sm:$0xf]  ;;  %v22974_v29 = vld [vmem:[#allocation3 + $0xa4] sm:$0x1] }
 0x264   : > { %v6426_v33 = vor.u32 %v6425_v36, %v6422_v32  ;;  %v6501_v10 = vshll.u32 %v22945_v37, 16  ;;  %v6505_v32 = vshrl.u32 %v22945_v37, 16  ;;  %v6483_v60 = vrot.slane %v6481_v50, 4 }
 0x265   : > { %v22956_v36 = vrot.slane %v6477_v11, 5  ;;  %v6492_v54 = vshrl.u32 %v6191_v18, 16  ;;  %v6495_v45 = vshll.u32 %v6191_v18, 16  ;;  %v17344_v25 = vcombine.low %v6384_v47, %v6394_v17 }
 0x266   : > { %v6427_v16 = vrot.slane %v6426_v33, 4  ;;  %v6442_v55 = vsel %vm21913_vm15, %v6437_v42, %v6441_v51  ;;  %v6461_v56 = vrot.slane %v6460_v12, 4  ;;  %v6470_v59 = vrot.slane %v6468_v61, 4 }
 0x267   : > { %v6473_v39 = vrot.slane %v6471_v28, 5  ;;  %v6465_v7 = vrot.slane %v6463_v31, 5  ;;  %v6507_v33 = vrot.slane %v6505_v32, 4  ;;  %v6484_v43 = vor.u32 %v6483_v60, %v22956_v36 }
 0x268   : > { %v6432_v35 = vsel %vm21913_vm15, %v6427_v16, %v22918_v24  ;;  %v6494_v4 = vrot.slane %v6492_v54, 4  ;;  %v6525_v47 = vshll.u32 %v22962_v21, 16  ;;  %v6529_v24 = vshrl.u32 %v22962_v21, 16 }
 0x269   : > { %v17346_v44 = vcombine.low %v6432_v35, %v6442_v55  ;;  %v6466_v17 = vsel %vm21913_vm15, %v6461_v56, %v6465_v7  ;;  %v6474_v11 = vor.u32 %v6473_v39, %v6470_v59  ;;  %v6487_v50 = vshll.u32 %v22958_v52, 16  ;;  %v22989_v35 = vld [vmem:[#allocation3 + $0xc4] sm:$0xf] }
 0x26a   : > { %19113 = vmatmul.mubr.msk.bf16.gmra.mrb[8].mxu1 %vm1958_vm12, %v17342_v62  ;;  %v6418_v62 = vsel %vm21913_vm15, %v6413_v38, %v6417_v0  ;;  %v22968_v38 = vrot.slane %v6501_v10, 5  ;;  %v6497_v0 = vrot.slane %v6495_v45, 5  ;;  %v6519_v51 = vshll.u32 %v6194_v20, 16 }
 0x26b   : > { %19116 = vmatprep.mubr.msk.bf16.mxu1 %vm1958_vm12, %v17343_v53  ;;  %v17345_v57 = vcombine.low %v6408_v9, %v6418_v62  ;;  %v6451_v53 = vrot.slane %v6450_v48, 4  ;;  %v6516_v9 = vshrl.u32 %v6194_v20, 16  ;;  %v6197_v62 = vld [vmem:[#allocation3 + $0xb4] sm:$0xf]  ;;  %v6549_v18 = vshll.u32 %v22972_v8, 16 }
 0x26c   : > { %v6508_v16 = vor.u32 %v6507_v33, %v22968_v38  ;;  %v6553_v42 = vshrl.u32 %v22972_v8, 16  ;;  %v6485_v61 = vrot.slane %v6484_v43, 4  ;;  %v6498_v28 = vor.u32 %v6497_v0, %v6494_v4  ;;  %v22994_v33 = vld [vmem:[#allocation3 + $0xb0] sm:$0x1]  ;;  %v6200_v0 = vld [vmem:[#allocation3 + $0xc0] sm:$0xf] }
 0x26d   : > { %v6456_v12 = vsel %vm21913_vm15, %v6451_v53, %v22932_v34  ;;  %v6511_v48 = vshll.u32 %v22974_v29, 16  ;;  %v6527_v31 = vrot.slane %v6525_v47, 5  ;;  %v6531_v10 = vrot.slane %v6529_v24, 4  ;;  %v22999_v47 = vld [vmem:[#allocation3 + $0xbc] sm:$0x1] }
 0x26e   : > { %v6540_v32 = vshrl.u32 %v6197_v62, 16  ;;  %v6543_v60 = vshll.u32 %v6197_v62, 16  ;;  %v17347_v54 = vcombine.low %v6456_v12, %v6466_v17  ;;  %v6475_v45 = vrot.slane %v6474_v11, 4 }
 0x26f   : > { %v6509_v55 = vrot.slane %v6508_v16, 4  ;;  %v6521_v56 = vrot.slane %v6519_v51, 5  ;;  %v6551_v59 = vrot.slane %v6549_v18, 5  ;;  %v6555_v39 = vrot.slane %v6553_v42, 4 }
 0x270   : > { %v6499_v7 = vrot.slane %v6498_v28, 4  ;;  %v6513_v20 = vrot.slane %v6511_v48, 5  ;;  %v6532_v53 = vor.u32 %v6531_v10, %v6527_v31  ;;  %v6542_v43 = vrot.slane %v6540_v32, 4 }
 0x271   : > { %v6545_v4 = vrot.slane %v6543_v60, 5  ;;  %v6573_v24 = vshll.u32 %v22989_v35, 16  ;;  %v6577_v17 = vshrl.u32 %v22989_v35, 16  ;;  %v6556_v62 = vor.u32 %v6555_v39, %v6551_v59  ;;  %v20937_v39 = vld [vmem:[#allocation2 + $0x10] sm:$0xf] }
 0x272   : > { %19117 = vmatmul.mubr.msk.bf16.gmra.mrb[12].mxu1 %vm1958_vm12, %v17344_v25  ;;  %v6489_v25 = vrot.slane %v6487_v50, 5  ;;  %v6514_v11 = vsel %vm21913_vm15, %v6509_v55, %v6513_v20  ;;  %v6564_v51 = vshrl.u32 %v6200_v0, 16  ;;  %v6567_v18 = vshll.u32 %v6200_v0, 16  ;;  %v7199_v20 = vld [vmem:[#allocation2 + $0xc] sm:$0xe] }
 0x273   : > { %19120 = vmatprep.mubr.msk.bf16.mxu1 %vm1958_vm12, %v17345_v57  ;;  %v6518_v57 = vrot.slane %v6516_v9, 4  ;;  %v6535_v9 = vshll.u32 %v22994_v33, 16  ;;  %v6533_v42 = vrot.slane %v6532_v53, 4  ;;  %v6546_v12 = vor.u32 %v6545_v4, %v6542_v43 }
 0x274   : > { %v6490_v34 = vsel %vm21913_vm15, %v6485_v61, %v6489_v25  ;;  %v6559_v61 = vshll.u32 %v22999_v47, 16  ;;  %v6575_v48 = vrot.slane %v6573_v24, 5  ;;  %v6579_v10 = vrot.slane %v6577_v17, 4 }
 0x275   : > { %v6522_v50 = vor.u32 %v6521_v56, %v6518_v57  ;;  %v6537_v60 = vrot.slane %v6535_v9, 5  ;;  %v6569_v25 = vrot.slane %v6567_v18, 5  ;;  %v23014_v56 = vld [vmem:[#allocation3 + $0xc8] sm:$0x1]  ;;  %v17371_v17 = vrot.slane %v7199_v20, 9 }
 0x276   : > { %v6561_v55 = vrot.slane %v6559_v61, 5  ;;  %v7200_v18 = vld [vmem:[#allocation2 + $0x18] sm:$0xe]  ;;  %v20940_v61 = vld [vmem:[#allocation2 + $0x28] sm:$0xf] }
 0x277   : > { %v6523_v32 = vrot.slane %v6522_v50, 4  ;;  %v6538_v57 = vsel %vm21913_vm15, %v6533_v42, %v6537_v60  ;;  %v20938_v50 = vld [vmem:[#allocation2 + $0x14] sm:$0x1]  ;;  %v17372_v60 = vrot.slane %v7200_v18, 9 }
 0x278   : > { %v7268_v9 = vrot.slane %v20938_v50, 5  ;;  %v7203_v50 = vld [vmem:[#allocation2 + $0x3c] sm:$0xe] }
 0x279   : > { %v6528_v53 = vsel %vm21913_vm15, %v6523_v32, %v6527_v31  ;;  %v7201_v32 = vld [vmem:[#allocation2 + $0x24] sm:$0xe] }
 0x27a   : > { %19121 = vmatmul.mubr.msk.bf16.gmra.mrb[16].mxu1 %vm1958_vm12, %v17346_v44  ;;  %v6480_v44 = vsel %vm21913_vm15, %v6475_v45, %v22956_v36  ;;  %v6504_v36 = vsel %vm21913_vm15, %v6499_v7, %v22968_v38  ;;  %v6566_v45 = vrot.slane %v6564_v51, 4  ;;  %v6547_v38 = vrot.slane %v6546_v12, 4 }
 0x27b   : > { %19124 = vmatprep.mubr.msk.bf16.mxu1 %vm1958_vm12, %v17347_v54  ;;  %v17348_v16 = vcombine.low %v6480_v44, %v6490_v34  ;;  %v17349_v28 = vcombine.low %v6504_v36, %v6514_v11  ;;  %v6557_v54 = vrot.slane %v6556_v62, 4  ;;  %v7265_v34 = vrot.slane %v20937_v39, 5  ;;  %v20939_v36 = vld [vmem:[#allocation2 + $0x1c] sm:$0xf] }
 0x27c   : > { %v6580_v7 = vor.u32 %v6579_v10, %v6575_v48  ;;  %v17350_v4 = vcombine.low %v6528_v53, %v6538_v57  ;;  %v6570_v0 = vor.u32 %v6569_v25, %v6566_v45  ;;  %v6583_v44 = vshll.u32 %v23014_v56, 16  ;;  %v20941_v57 = vld [vmem:[#allocation2 + $0x20] sm:$0x1] }
 0x27d   : > { %v6562_v43 = vsel %vm21913_vm15, %v6557_v54, %v6561_v55  ;;  %v6552_v24 = vsel %vm21913_vm15, %v6547_v38, %v6551_v59  ;;  %v7267_v11 = vrot.slane %v7265_v34, 4  ;;  %v7272_v42 = vrot.slane %v20939_v36, 5 }
 0x27e   : > { %v17351_v62 = vcombine.low %v6552_v24, %v6562_v43  ;;  %v6571_v31 = vrot.slane %v6570_v0, 4  ;;  %v6585_v51 = vrot.slane %v6583_v44, 5  ;;  %v7266_v12 = vsel %vm21573_vm8, %v17371_v17, %v7265_v34  ;;  %v7202_v24 = vld [vmem:[#allocation2 + $0x30] sm:$0xe]  ;;  %v20944_v17 = vld [vmem:[#allocation2 + $0x40] sm:$0xf] }
 0x27f   : > { %v7269_v59 = vsel %vm21573_vm8, %v7267_v11, %v7268_v9  ;;  %v7274_v25 = vrot.slane %v7272_v42, 4  ;;  %v7275_v38 = vrot.slane %v20941_v57, 5  ;;  %v17373_v39 = vrot.slane %v7201_v32, 9 }
 0x280   : > { %v6576_v54 = vsel %vm21913_vm15, %v6571_v31, %v6575_v48  ;;  %v17407_v45 = vcombine.low %v7266_v12, %v7269_v59  ;;  %v7273_v53 = vsel %vm21573_vm8, %v17372_v60, %v7272_v42  ;;  %v20943_v48 = vld [vmem:[#allocation2 + $0x34] sm:$0xf]  ;;  %v7293_v11 = vrot.slane %v20944_v17, 5  ;;  %v20946_v12 = vld [vmem:[#allocation2 + $0x44] sm:$0x1] }
 0x281   : > { %v7276_v43 = vsel %vm21573_vm8, %v7274_v25, %v7275_v38  ;;  %v17375_v36 = vrot.slane %v7203_v50, 9  ;;  %v7296_v59 = vrot.slane %v20946_v12, 5 }
 0x282   : > { %19125 = vmatmul.mubr.msk.bf16.gmra.mrb[20].mxu1 %vm1958_vm12, %v17348_v16  ;;  %v6581_v16 = vrot.slane %v6580_v7, 4  ;;  %v20942_v7 = vld [vmem:[#allocation2 + $0x2c] sm:$0x1]  ;;  %v17408_v9 = vcombine.low %v7273_v53, %v7276_v43  ;;  %v7295_v42 = vrot.slane %v7293_v11, 4 }
 0x283   : > { %19128 = vmatprep.mubr.msk.bf16.mxu1 %vm1958_vm12, %v17349_v28  ;;  %v7279_v28 = vrot.slane %v20940_v61, 5  ;;  %v7282_v20 = vrot.slane %v20942_v7, 5  ;;  %v20761_v61 = vld [vmem:[%s26034_s4 + $0x58] sm:$0xff]   ;;  %v7294_v25 = vsel %vm21573_vm8, %v17375_v36, %v7293_v11 }
 0x284   : > { %v6586_v10 = vsel %vm21913_vm15, %v6581_v16, %v6585_v51  ;;  %v17374_v16 = vrot.slane %v7202_v24, 9  ;;  %v20945_v51 = vld [vmem:[#allocation2 + $0x38] sm:$0x1]  ;;  %v7297_v57 = vsel %vm21573_vm8, %v7295_v42, %v7296_v59  ;;  %v20950_v11 = vld [vmem:[#allocation2 + $0x5c] sm:$0x1] }
 0x285   : > { %v17352_v55 = vcombine.low %v6576_v54, %v6586_v10  ;;  %v7281_v34 = vrot.slane %v7279_v28, 4  ;;  %v7280_v0 = vsel %vm21573_vm8, %v17373_v39, %v7279_v28  ;;  %v7289_v18 = vrot.slane %v20945_v51, 5  ;;  %v20947_v54 = vld [vmem:[#allocation2 + $0x4c] sm:$0xf]  ;;  %v20951_v51 = vld [vmem:[#allocation2 + $0x64] sm:$0xf] }
 0x286   : > { %v17411_v43 = vcombine.low %v7294_v25, %v7297_v57  ;;  %v7310_v50 = vrot.slane %v20950_v11, 5  ;;  %v7206_v59 = vld [vmem:[#allocation2 + $0x60] sm:$0xe] }
 0x287   : > { %v7283_v44 = vsel %vm21573_vm8, %v7281_v34, %v7282_v20  ;;  %v23066_v34 = vld [vmem:[%s26033_s3 + $0x60] sm:$0xff]   ;;  %v7205_v20 = vld [vmem:[#allocation2 + $0x54] sm:$0xe]  ;;  %v17378_v57 = vrot.slane %v7206_v59, 9 }
 0x288   : > { %v17377_v24 = vrot.slane %v7205_v20, 9  ;;  %v7209_v59 = vld [vmem:[#allocation2 + $0x84] sm:$0xe] }
 0x28a   : > { %19129 = vmatmul.mubr.msk.bf16.gmra.mrb[24].mxu1 %vm1958_vm12, %v17350_v4  ;;  %v7286_v4 = vrot.slane %v20943_v48, 5 }
 0x28b   : > { %19132 = vmatprep.mubr.msk.bf16.mxu1 %vm1958_vm12, %v17351_v62  ;;  %v17409_v62 = vcombine.low %v7280_v0, %v7283_v44  ;;  %v20949_v0 = vld [vmem:[#allocation2 + $0x50] sm:$0x1] }
 0x28c   : > { %v7288_v31 = vrot.slane %v7286_v4, 4  ;;  %v7287_v10 = vsel %vm21573_vm8, %v17374_v16, %v7286_v4  ;;  %v7303_v44 = vrot.slane %v20949_v0, 5  ;;  %v20955_v0 = vld [vmem:[#allocation2 + $0x7c] sm:$0xf] }
 0x28e   : > { %v7290_v32 = vsel %vm21573_vm8, %v7288_v31, %v7289_v18  ;;  %v7314_v18 = vrot.slane %v20951_v51, 5 }
 0x28f   : > { %v17410_v53 = vcombine.low %v7287_v10, %v7290_v32 }
 0x292   : > { %19133 = vmatmul.mubr.msk.bf16.gmra.mrb[28].mxu1 %vm1958_vm12, %v17352_v55  ;;  %v20948_v55 = vld [vmem:[#allocation2 + $0x58] sm:$0xf] }
 0x293   : > { %19140 = vmatprep.mubr.msk.bf16.mxu1 %vm1958_vm12, %v17407_v45  ;;  %v7300_v45 = vrot.slane %v20947_v54, 5  ;;  %v7307_v39 = vrot.slane %v20948_v55, 5  ;;  %v7207_v54 = vld [vmem:[#allocation2 + $0x6c] sm:$0xe]  ;;  %v20953_v55 = vld [vmem:[#allocation2 + $0x68] sm:$0x1] }
 0x294   : > { %v7317_v20 = vrot.slane %v20953_v55, 5  ;;  %v17381_v55 = vrot.slane %v7209_v59, 9 }
 0x295   : > { %v7302_v4 = vrot.slane %v7300_v45, 4  ;;  %v7309_v17 = vrot.slane %v7307_v39, 4  ;;  %v7308_v36 = vsel %vm21573_vm8, %v17377_v24, %v7307_v39  ;;  %v20954_v39 = vld [vmem:[#allocation2 + $0x74] sm:$0x1]  ;;  %v7315_v24 = vsel %vm21573_vm8, %v17378_v57, %v7314_v18 }
 0x297   : > { %v7304_v16 = vsel %vm21573_vm8, %v7302_v4, %v7303_v44  ;;  %v7311_v42 = vsel %vm21573_vm8, %v7309_v17, %v7310_v50  ;;  %v7328_v44 = vrot.slane %v20955_v0, 5  ;;  %v7208_v50 = vld [vmem:[#allocation2 + $0x78] sm:$0xe] }
 0x298   : > { %v17413_v25 = vcombine.low %v7308_v36, %v7311_v42 }
 0x29a   : > { %19141 = vmatmul.mubr.msk.bf16.vlgmr.msra.gmra.mrb[0].mxu1 %vm1958_vm12, %v17408_v9  ;;  %v23047_v28 = vpop.f32.mrb[32].mxu0 }
 0x29b   : > { %26129 = vst [vmem:[#allocation11_spill] sm:$0xff] %v23047_v28  ;;  %19173 = vmatpush3.bf16.msra.mxu1 %v22885_v41  ;;  %19144 = vmatprep.mubr.msk.bf16.mxu1 %vm1958_vm12, %v17409_v62  ;;  %v23055_v60 = vpop.f32.mrb[33].mxu0  ;;  %v7204_v41 = vld [vmem:[#allocation2 + $0x48] sm:$0xe] }
 0x29c   : > { %26130 = vst [vmem:[#allocation12_spill] sm:$0xff] %v23055_v60  ;;  %v23061_v38 = vpop.f32.mrb[34].mxu0  ;;  %19174 = vmatprep.subr.bf16.mxu1 %v20761_v61  ;;  %v17376_v48 = vrot.slane %v7204_v41, 9  ;;  %v7316_v41 = vrot.slane %v7314_v18, 4 }
 0x29d   : > { %26131 = vst [vmem:[#allocation13_spill] sm:$0xff] %v23061_v38  ;;  %v23068_v7 = vpop.f32.mrb[35].mxu0 }
 0x29e   : > { %26132 = vst [vmem:[#allocation14_spill] sm:$0xff] %v23068_v7  ;;  %v7301_v62 = vsel %vm21573_vm8, %v17376_v48, %v7300_v45  ;;  %v7324_v48 = vrot.slane %v20954_v39, 5  ;;  %v7318_v17 = vsel %vm21573_vm8, %v7316_v41, %v7317_v20  ;;  %v20958_v39 = vld [vmem:[#allocation2 + $0x8c] sm:$0x1] }
 0x29f   : > { %19175 = vmatpush3.bf16.msra.mxu1 %v20761_v61  ;;  %v20952_v61 = vld [vmem:[#allocation2 + $0x70] sm:$0xf]  ;;  %v17412_v45 = vcombine.low %v7301_v62, %v7304_v16  ;;  %v20956_v62 = vld [vmem:[#allocation2 + $0x88] sm:$0xf]  ;;  %v17414_v18 = vcombine.low %v7315_v24, %v7318_v17  ;;  %v7338_v0 = vrot.slane %v20958_v39, 5 }
 0x2a0   : > { %19208 = vmatprep.subr.bf16.mxu1 %v23066_v34  ;;  %v7321_v10 = vrot.slane %v20952_v61, 5  ;;  %v7335_v16 = vrot.slane %v20956_v62, 5  ;;  %v7390_v62 = vld [vmem:[#allocation3 + $0xc0] sm:$0xe] }
 0x2a2   : > { %19145 = vmatmul.mubr.msk.bf16.gmra.mrb[4].mxu1 %vm1958_vm12, %v17410_v53  ;;  %v23072_v9 = vpop.f32.mrb[36].mxu0  ;;  %v17379_v53 = vrot.slane %v7207_v54, 9  ;;  %v17380_v54 = vrot.slane %v7208_v50, 9  ;;  %v7337_v20 = vrot.slane %v7335_v16, 4  ;;  %v7336_v17 = vsel %vm21573_vm8, %v17381_v55, %v7335_v16  ;;  %v7210_v50 = vld [vmem:[#allocation2 + $0x90] sm:$0xe] }
 0x2a3   : > { %26133 = vst [vmem:[#allocation15_spill] sm:$0xff] %v23072_v9  ;;  %19148 = vmatprep.mubr.msk.bf16.mxu1 %vm1958_vm12, %v17411_v43  ;;  %v23079_v31 = vpop.f32.mrb[37].mxu0  ;;  %v7323_v43 = vrot.slane %v7321_v10, 4  ;;  %v17382_v40 = vrot.slane %v7210_v50, 9  ;;  %v20963_v50 = vld [vmem:[#allocation2 + $0xac] sm:$0xf] }
 0x2a4   : > { %26134 = vst [vmem:[#allocation16_spill] sm:$0xff] %v23079_v31  ;;  %v23085_v12 = vpop.f32.mrb[38].mxu0  ;;  %v7322_v51 = vsel %vm21573_vm8, %v17379_v53, %v7321_v10  ;;  %v7546_v10 = vrot.slane %v22989_v35, 5  ;;  %v7329_v53 = vsel %vm21573_vm8, %v17380_v54, %v7328_v44  ;;  %v7339_v35 = vsel %vm21573_vm8, %v7337_v20, %v7338_v0 }
 0x2a5   : > { %26135 = vst [vmem:[#allocation17_spill] sm:$0xff] %v23085_v12  ;;  %v23087_v32 = vpop.f32.mrb[39].mxu0  ;;  %v7325_v36 = vsel %vm21573_vm8, %v7323_v43, %v7324_v48  ;;  %v17402_v54 = vrot.slane %v7390_v62, 9  ;;  %v17417_v20 = vcombine.low %v7336_v17, %v7339_v35 }
 0x2a6   : > { %26136 = vst [vmem:[#allocation18_spill] sm:$0xff] %v23087_v32  ;;  %v17415_v41 = vcombine.low %v7322_v51, %v7325_v36  ;;  %v20959_v51 = vld [vmem:[#allocation2 + $0x94] sm:$0xf] }
 0x2a7   : > { %v7342_v36 = vrot.slane %v20959_v51, 5  ;;  %v23129_v16 = vsel %vm21573_vm8, %v17402_v54, %v7546_v10  ;;  %v20961_v51 = vld [vmem:[#allocation2 + $0x98] sm:$0x1]  ;;  %v7356_v54 = vrot.slane %v20963_v50, 5 }
 0x2a8   : > { %v7345_v62 = vrot.slane %v20961_v51, 5 }
 0x2a9   : > { %v7344_v0 = vrot.slane %v7342_v36, 4 }
 0x2aa   : > { %19149 = vmatmul.mubr.msk.bf16.gmra.mrb[8].mxu1 %vm1958_vm12, %v17412_v45  ;;  %v23090_v4 = vpop.f32.mrb[40].mxu0  ;;  %v7330_v45 = vrot.slane %v7328_v44, 4  ;;  %v20960_v44 = vld [vmem:[#allocation2 + $0xa0] sm:$0xf] }
 0x2ab   : > { %26137 = vst [vmem:[#allocation19_spill] sm:$0xff] %v23090_v4  ;;  %19152 = vmatprep.mubr.msk.bf16.mxu1 %vm1958_vm12, %v17413_v25  ;;  %v23097_v11 = vpop.f32.mrb[41].mxu0  ;;  %v20957_v25 = vld [vmem:[#allocation2 + $0x80] sm:$0x1]  ;;  %v7346_v17 = vsel %vm21573_vm8, %v7344_v0, %v7345_v62 }
 0x2ac   : > { %26138 = vst [vmem:[#allocation20_spill] sm:$0xff] %v23097_v11  ;;  %v23103_v42 = vpop.f32.mrb[42].mxu0  ;;  %v7331_v57 = vrot.slane %v20957_v25, 5  ;;  %v7548_v25 = vrot.slane %v7546_v10, 4  ;;  %v7343_v10 = vsel %vm21573_vm8, %v17382_v40, %v7342_v36  ;;  %v7213_v40 = vld [vmem:[#allocation2 + $0xb4] sm:$0xe] }
 0x2ad   : > { %26139 = vst [vmem:[#allocation21_spill] sm:$0xff] %v23103_v42  ;;  %v23105_v61 = vpop.f32.mrb[43].mxu0  ;;  %v17418_v36 = vcombine.low %v7343_v10, %v7346_v17  ;;  %v8917_v42 = vld [vmem:[#allocation2 + $0x48] sm:$0xf]  ;;  %v20796_v11 = vld [vmem:[#allocation3 + $0xa8] sm:$0xff]  }
 0x2ae   : > { %26140 = vst [vmem:[#allocation22_spill] sm:$0xff] %v23105_v61  ;;  %v7332_v48 = vsel %vm21573_vm8, %v7330_v45, %v7331_v57  ;;  %v7211_v57 = vld [vmem:[#allocation2 + $0x9c] sm:$0xe] }
 0x2af   : > { %v17416_v39 = vcombine.low %v7329_v53, %v7332_v48  ;;  %v7352_v53 = vrot.slane %v20962_v22, 5 }
 0x2b2   : > { %19153 = vmatmul.mubr.msk.bf16.gmra.mrb[12].mxu1 %vm1958_vm12, %v17414_v18  ;;  %v23111_v43 = vpop.f32.mrb[44].mxu0  ;;  %v7349_v18 = vrot.slane %v20960_v44, 5  ;;  %v17383_v44 = vrot.slane %v7211_v57, 9  ;;  %v7212_v57 = vld [vmem:[#allocation2 + $0xa8] sm:$0xe] }
 0x2b3   : > { %26141 = vst [vmem:[#allocation23_spill] sm:$0xff] %v23111_v43  ;;  %19156 = vmatprep.mubr.msk.bf16.mxu1 %vm1958_vm12, %v17415_v41  ;;  %v23116_v24 = vpop.f32.mrb[45].mxu0  ;;  %v7549_v41 = vrot.slane %v23014_v56, 5  ;;  %v17384_v62 = vrot.slane %v7212_v57, 9  ;;  %v7358_v56 = vrot.slane %v7356_v54, 4 }
 0x2b4   : > { %26142 = vst [vmem:[#allocation24_spill] sm:$0xff] %v23116_v24  ;;  %v23122_v59 = vpop.f32.mrb[46].mxu0  ;;  %v7351_v27 = vrot.slane %v7349_v18, 4  ;;  %v20795_v24 = vld [vmem:[#allocation3 + $0x9c] sm:$0xff]  }
 0x2b5   : > { %26143 = vst [vmem:[#allocation25_spill] sm:$0xff] %v23122_v59  ;;  %v23125_v45 = vpop.f32.mrb[47].mxu0  ;;  %v23133_v55 = vsel %vm21573_vm8, %v7548_v25, %v7549_v41  ;;  %v7350_v25 = vsel %vm21573_vm8, %v17383_v44, %v7349_v18  ;;  %v20966_v18 = vld [vmem:[#allocation2 + $0xbc] sm:$0x1] }
 0x2b6   : > { %26144 = vst [vmem:[#allocation26_spill] sm:$0xff] %v23125_v45  ;;  %v7353_v22 = vsel %vm21573_vm8, %v7351_v27, %v7352_v53  ;;  %v7366_v44 = vrot.slane %v20966_v18, 5  ;;  %v7357_v53 = vsel %vm21573_vm8, %v17384_v62, %v7356_v54  ;;  %v20968_v54 = vld [vmem:[#allocation3 + $0x10] sm:$0xf] }
 0x2b7   : > { %v17419_v0 = vcombine.low %v7350_v25, %v7353_v22  ;;  %v20967_v25 = vld [vmem:[#allocation2 + $0xc4] sm:$0xf]  ;;  %v7441_v62 = vrot.slane %v20968_v54, 5 }
 0x2ba   : > { %19157 = vmatmul.mubr.msk.bf16.gmra.mrb[16].mxu1 %vm1958_vm12, %v17416_v39  ;;  %v23138_v48 = vpop.f32.mrb[48].mxu0  ;;  %v20964_v39 = vld [vmem:[#allocation2 + $0xb8] sm:$0xf] }
 0x2bb   : > { %26145 = vst [vmem:[#allocation27_spill] sm:$0xff] %v23138_v48  ;;  %19160 = vmatprep.mubr.msk.bf16.mxu1 %vm1958_vm12, %v17417_v20  ;;  %v23145_v35 = vpop.f32.mrb[49].mxu0  ;;  %v7363_v20 = vrot.slane %v20964_v39, 5  ;;  %v17385_v48 = vrot.slane %v7213_v40, 9  ;;  %v7214_v40 = vld [vmem:[#allocation2 + $0xc0] sm:$0xe] }
 0x2bc   : > { %26146 = vst [vmem:[#allocation28_spill] sm:$0xff] %v23145_v35  ;;  %v23151_v41 = vpop.f32.mrb[50].mxu0  ;;  %v20965_v35 = vld [vmem:[#allocation2 + $0xb0] sm:$0x1] }
 0x2bd   : > { %26147 = vst [vmem:[#allocation29_spill] sm:$0xff] %v23151_v41  ;;  %v23153_v51 = vpop.f32.mrb[51].mxu0  ;;  %v7359_v50 = vrot.slane %v20965_v35, 5  ;;  %v7365_v45 = vrot.slane %v7363_v20, 4  ;;  %v7370_v35 = vrot.slane %v20967_v25, 5  ;;  %v7364_v22 = vsel %vm21573_vm8, %v17385_v48, %v7363_v20 }
 0x2be   : > { %26148 = vst [vmem:[#allocation30_spill] sm:$0xff] %v23153_v51  ;;  %v7443_v25 = vrot.slane %v7441_v62, 4  ;;  %v8912_v41 = vld [vmem:[#allocation2 + $0x34] sm:$0xf] }
 0x2bf   : > { %v7360_v10 = vsel %vm21573_vm8, %v7358_v56, %v7359_v50  ;;  %v7367_v57 = vsel %vm21573_vm8, %v7365_v45, %v7366_v44  ;;  %v17386_v56 = vrot.slane %v7214_v40, 9  ;;  %v7372_v50 = vrot.slane %v7370_v35, 4  ;;  %v7375_v44 = vld [vmem:[#allocation3 + $0xc] sm:$0xe] }
 0x2c0   : > { %v17421_v18 = vcombine.low %v7364_v22, %v7367_v57 }
 0x2c1   : > { %v7371_v45 = vsel %vm21573_vm8, %v17386_v56, %v7370_v35  ;;  %v20972_v35 = vld [vmem:[#allocation3 + $0x28] sm:$0xf] }
 0x2c2   : > { %19161 = vmatmul.mubr.msk.bf16.gmra.mrb[20].mxu1 %vm1958_vm12, %v17418_v36  ;;  %v23156_v27 = vpop.f32.mrb[52].mxu0  ;;  %v7455_v56 = vrot.slane %v20972_v35, 5 }
 0x2c3   : > { %26149 = vst [vmem:[#allocation31_spill] sm:$0xff] %v23156_v27  ;;  %19164 = vmatprep.mubr.msk.bf16.mxu1 %vm1958_vm12, %v17419_v0  ;;  %v23163_v17 = vpop.f32.mrb[53].mxu0  ;;  %v17420_v0 = vcombine.low %v7357_v53, %v7360_v10  ;;  %v20970_v10 = vld [vmem:[#allocation3 + $0x14] sm:$0x1] }
 0x2c4   : > { %26150 = vst [vmem:[#allocation32_spill] sm:$0xff] %v23163_v17  ;;  %v23169_v39 = vpop.f32.mrb[54].mxu0  ;;  %v20969_v17 = vld [vmem:[#allocation2 + $0xc8] sm:$0x1]  ;;  %v7444_v22 = vrot.slane %v20970_v10, 5 }
 0x2c5   : > { %26151 = vst [vmem:[#allocation33_spill] sm:$0xff] %v23169_v39  ;;  %v23171_v36 = vpop.f32.mrb[55].mxu0  ;;  %v7373_v27 = vrot.slane %v20969_v17, 5  ;;  %v20971_v17 = vld [vmem:[#allocation3 + $0x1c] sm:$0xf] }
 0x2c6   : > { %26152 = vst [vmem:[#allocation34_spill] sm:$0xff] %v23171_v36  ;;  %v7448_v40 = vrot.slane %v20971_v17, 5  ;;  %v16966_v10 = vld [vmem:[%s26035_s5] ss:$0 sm:$0xff]  ;;  %v7376_v17 = vld [vmem:[#allocation3 + $0x18] sm:$0xe] }
 0x2c7   : > { %v7374_v20 = vsel %vm21573_vm8, %v7372_v50, %v7373_v27  ;;  %v20974_v36 = vld [vmem:[#allocation3 + $0x34] sm:$0xf] }
 0x2c8   : > { %v17422_v54 = vcombine.low %v7371_v45, %v7374_v20  ;;  %v20973_v20 = vld [vmem:[#allocation3 + $0x20] sm:$0x1]  ;;  %v7462_v39 = vrot.slane %v20974_v36, 5  ;;  %v20763_v36 = vld [vmem:[%s26033_s3 + $0x68] sm:$0xff]  }
 0x2ca   : > { %19165 = vmatmul.mubr.msk.bf16.gmra.mrb[24].mxu1 %vm1958_vm12, %v17420_v0  ;;  %v23174_v48 = vpop.f32.mrb[56].mxu0 }
 0x2cb   : > { %26153 = vst [vmem:[#allocation35_spill] sm:$0xff] %v23174_v48  ;;  %19168 = vmatprep.mubr.msk.bf16.mxu1 %vm1958_vm12, %v17421_v18  ;;  %v23181_v53 = vpop.f32.mrb[57].mxu0  ;;  %v17387_v48 = vrot.slane %v7375_v44, 9  ;;  %v7445_v18 = vsel %vm21573_vm8, %v7443_v25, %v7444_v22  ;;  %v7451_v25 = vrot.slane %v20973_v20, 5  ;;  %v7377_v44 = vld [vmem:[#allocation3 + $0x24] sm:$0xe] }
 0x2cc   : > { %26154 = vst [vmem:[#allocation36_spill] sm:$0xff] %v23181_v53  ;;  %v23183_v57 = vpop.f32.mrb[58].mxu0  ;;  %v7450_v53 = vrot.slane %v7448_v40, 4  ;;  %v17389_v51 = vrot.slane %v7377_v44, 9  ;;  %v7464_v44 = vrot.slane %v7462_v39, 4 }
 0x2cd   : > { %26155 = vst [vmem:[#allocation37_spill] sm:$0xff] %v23183_v57  ;;  %v23185_v0 = vpop.f32.mrb[59].mxu0  ;;  %v7442_v27 = vsel %vm21573_vm8, %v17387_v48, %v7441_v62  ;;  %v7458_v62 = vrot.slane %v22818_v15, 5 }
 0x2ce   : > { %26156 = vst [vmem:[#allocation38_spill] sm:$0xff] %v23185_v0  ;;  %v17445_v50 = vcombine.low %v7442_v27, %v7445_v18  ;;  %v7457_v0 = vrot.slane %v7455_v56, 4  ;;  %v17388_v27 = vrot.slane %v7376_v17, 9 }
 0x2d2   : > { %19169 = vmatmul.mubr.msk.bf16.gmra.mrb[28].mxu1 %vm1958_vm12, %v17422_v54  ;;  %v18918_v45 = vpop.f32.mrb[60].mxu0  ;;  %v7452_v54 = vsel %vm21573_vm8, %v7450_v53, %v7451_v25  ;;  %v7456_v53 = vsel %vm21573_vm8, %v17389_v51, %v7455_v56  ;;  %v23223_v51 = vld [vmem:[%s26034_s4 + $0x60] sm:$0xff]  }
 0x2d3   : > { %19176 = vmatprep.mubr.msk.bf16.mxu1 %vm1958_vm12, %v17445_v50  ;;  %v23196_v22 = vadd.f32 %v18918_v45, %v16966_v10  ;;  %v3969_v35 = vpop.f32.mrb[61].mxu0  ;;  %v7459_v45 = vsel %vm21573_vm8, %v7457_v0, %v7458_v62  ;;  %v7378_v0 = vld [vmem:[#allocation3 + $0x30] sm:$0xe]  ;;  %v7379_v62 = vld [vmem:[#allocation3 + $0x3c] sm:$0xe] }
 0x2d4   : > { %v23199_v48 = vadd.f32 %v16966_v10, %v3969_v35  ;;  %v18919_v18 = vpop.f32.mrb[62].mxu0  ;;  %v7449_v35 = vsel %vm21573_vm8, %v17388_v27, %v7448_v40  ;;  %v17447_v25 = vcombine.low %v7456_v53, %v7459_v45  ;;  %v17390_v56 = vrot.slane %v7378_v0, 9  ;;  %v7380_v0 = vld [vmem:[#allocation3 + $0x48] sm:$0xe] }
 0x2d5   : > { %26157 = vst [vmem:[#allocation39_spill] sm:$0xff] %v23196_v22  ;;  %v23203_v57 = vadd.f32 %v18919_v18, %v16966_v10  ;;  %v3972_v50 = vpop.f32.mrb[63].mxu0  ;;  %v20975_v22 = vld [vmem:[#allocation3 + $0x40] sm:$0xf]  ;;  %v17446_v17 = vcombine.low %v7449_v35, %v7452_v54  ;;  %v7472_v18 = vrot.slane %v22828_v14, 5  ;;  %v7483_v35 = vrot.slane %v22835_v2, 5 }
 0x2d6   : > { %26158 = vst [vmem:[#allocation40_spill] sm:$0xff] %v23199_v48  ;;  %v23207_v20 = vadd.f32 %v16966_v10, %v3972_v50  ;;  %v7469_v15 = vrot.slane %v20975_v22, 5  ;;  %v20976_v22 = vld [vmem:[#allocation3 + $0x38] sm:$0x1]  ;;  %v20977_v54 = vld [vmem:[#allocation3 + $0x4c] sm:$0xf]  ;;  %v7463_v14 = vsel %vm21573_vm8, %v17390_v56, %v7462_v39 }
 0x2d7   : > { %26159 = vst [vmem:[#allocation41_spill] sm:$0xff] %v23203_v57  ;;  %v7465_v40 = vrot.slane %v20976_v22, 5  ;;  %v7476_v50 = vrot.slane %v20977_v54, 5  ;;  %v7485_v22 = vrot.slane %v7483_v35, 4  ;;  %v7479_v2 = vrot.slane %v22846_v58, 5 }
 0x2d8   : > { %26160 = vst [vmem:[#allocation42_spill] sm:$0xff] %v23207_v20  ;;  %v7471_v10 = vrot.slane %v7469_v15, 4  ;;  %v7486_v39 = vrot.slane %v22871_v3, 5  ;;  %v7497_v56 = vrot.slane %v22868_v49, 5  ;;  %v7500_v49 = vrot.slane %v22913_v63, 5  ;;  %v20764_v20 = vld [vmem:[#allocation2 + $0x18] sm:$0xff]  }
 0x2d9   : > { %v7466_v27 = vsel %vm21573_vm8, %v7464_v44, %v7465_v40  ;;  %v7478_v44 = vrot.slane %v7476_v50, 4  ;;  %v7384_v63 = vld [vmem:[#allocation3 + $0x78] sm:$0xe]  ;;  %v9381_v57 = vld [vmem:[#allocation3 + $0xc8] sm:$0x1] }
 0x2da   : > { %19177 = vmatmul.mubr.msk.bf16.vlgmr.msra.gmra.mrb[0].mxu1 %vm1958_vm12, %v17446_v17  ;;  %v7473_v45 = vsel %vm21573_vm8, %v7471_v10, %v7472_v18  ;;  %v17448_v17 = vcombine.low %v7463_v14, %v7466_v27  ;;  %v7381_v10 = vld [vmem:[#allocation3 + $0x54] sm:$0xe]  ;;  %v7487_v18 = vsel %vm21573_vm8, %v7485_v22, %v7486_v39  ;;  %v7383_v14 = vld [vmem:[#allocation3 + $0x6c] sm:$0xe]  ;;  %v7525_v39 = vrot.slane %v22945_v37, 5 }
 0x2db   : > { %19209 = vmatpush3.bf16.msra.mxu1 %v23066_v34  ;;  %19180 = vmatprep.mubr.msk.bf16.mxu1 %vm1958_vm12, %v17447_v25  ;;  %v17391_v34 = vrot.slane %v7379_v62, 9  ;;  %v7480_v40 = vsel %vm21573_vm8, %v7478_v44, %v7479_v2  ;;  %v17393_v62 = vrot.slane %v7381_v10, 9  ;;  %v7514_v37 = vrot.slane %v22941_v1, 5 }
 0x2dc   : > { %19210 = vmatprep.subr.bf16.mxu1 %v20763_v36 }
 0x2dd   : > { %v7470_v53 = vsel %vm21573_vm8, %v17391_v34, %v7469_v15  ;;  %v7490_v15 = vrot.slane %v22860_v26, 5  ;;  %v7484_v58 = vsel %vm21573_vm8, %v17393_v62, %v7483_v35  ;;  %v7499_v26 = vrot.slane %v7497_v56, 4  ;;  %v7385_v62 = vld [vmem:[#allocation3 + $0x84] sm:$0xe] }
 0x2de   : > { %v17449_v25 = vcombine.low %v7470_v53, %v7473_v45  ;;  %v17451_v3 = vcombine.low %v7484_v58, %v7487_v18  ;;  %v7382_v45 = vld [vmem:[#allocation3 + $0x60] sm:$0xe]  ;;  %v7504_v53 = vrot.slane %v22893_v46, 5  ;;  %v17395_v35 = vrot.slane %v7383_v14, 9  ;;  %v7387_v58 = vld [vmem:[#allocation3 + $0x9c] sm:$0xe] }
 0x2df   : > { %19211 = vmatpush3.bf16.msra.mxu1 %v20763_v36  ;;  %v17392_v36 = vrot.slane %v7380_v0, 9  ;;  %v7492_v34 = vrot.slane %v7490_v15, 4  ;;  %v7501_v44 = vsel %vm21573_vm8, %v7499_v26, %v7500_v49  ;;  %v7511_v0 = vrot.slane %v22908_v30, 5  ;;  %v7388_v14 = vld [vmem:[#allocation3 + $0xa8] sm:$0xe] }
 0x2e0   : > { %19244 = vmatprep.subr.bf16.mxu1 %v23223_v51  ;;  %v7506_v10 = vrot.slane %v7504_v53, 4  ;;  %v7518_v46 = vrot.slane %v22929_v5, 5  ;;  %v7532_v18 = vrot.slane %v22962_v21, 5  ;;  %v7521_v21 = vrot.slane %v22958_v52, 5 }
 0x2e1   : > { %v7477_v27 = vsel %vm21573_vm8, %v17392_v36, %v7476_v50  ;;  %v17394_v50 = vrot.slane %v7382_v45, 9  ;;  %v7513_v30 = vrot.slane %v7511_v0, 4  ;;  %v7528_v45 = vrot.slane %v22974_v29, 5 }
 0x2e2   : > { %19181 = vmatmul.mubr.msk.bf16.gmra.mrb[4].mxu1 %vm1958_vm12, %v17448_v17  ;;  %v17450_v54 = vcombine.low %v7477_v27, %v7480_v40  ;;  %v7493_v17 = vrot.slane %v22897_v13, 5  ;;  %v7498_v13 = vsel %vm21573_vm8, %v17395_v35, %v7497_v56  ;;  %v7507_v40 = vrot.slane %v22916_v6, 5  ;;  %v7386_v27 = vld [vmem:[#allocation3 + $0x90] sm:$0xe]  ;;  %v7389_v35 = vld [vmem:[#allocation3 + $0xb4] sm:$0xe] }
 0x2e3   : > { %19184 = vmatprep.mubr.msk.bf16.mxu1 %vm1958_vm12, %v17449_v25  ;;  %v7491_v22 = vsel %vm21573_vm8, %v17394_v50, %v7490_v15  ;;  %v17453_v36 = vcombine.low %v7498_v13, %v7501_v44  ;;  %v7539_v15 = vrot.slane %v22972_v8, 5  ;;  %v17396_v56 = vrot.slane %v7384_v63, 9  ;;  %v9344_v44 = vld [vmem:[#allocation3 + $0x34] sm:$0xf] }
 0x2e4   : > { %v7494_v25 = vsel %vm21573_vm8, %v7492_v34, %v7493_v17  ;;  %v7508_v5 = vsel %vm21573_vm8, %v7506_v10, %v7507_v40  ;;  %v17397_v34 = vrot.slane %v7385_v62, 9  ;;  %v7515_v8 = vsel %vm21573_vm8, %v7513_v30, %v7514_v37  ;;  %v9345_v10 = vld [vmem:[#allocation3 + $0x38] sm:$0x1]  ;;  %v9350_v37 = vld [vmem:[#allocation3 + $0x4c] sm:$0xf] }
 0x2e5   : > { %v17452_v2 = vcombine.low %v7491_v22, %v7494_v25  ;;  %v7505_v6 = vsel %vm21573_vm8, %v17396_v56, %v7504_v53  ;;  %v7534_v26 = vrot.slane %v7532_v18, 4  ;;  %v7541_v17 = vrot.slane %v7539_v15, 4 }
 0x2e6   : > { %v17454_v49 = vcombine.low %v7505_v6, %v7508_v5  ;;  %v7512_v1 = vsel %vm21573_vm8, %v17397_v34, %v7511_v0  ;;  %v17398_v50 = vrot.slane %v7386_v27, 9  ;;  %v17399_v25 = vrot.slane %v7387_v58, 9  ;;  %v9348_v5 = vld [vmem:[#allocation3 + $0x44] sm:$0x1] }
 0x2e7   : > { %v7535_v29 = vrot.slane %v22994_v33, 5  ;;  %v7542_v22 = vrot.slane %v22999_v47, 5  ;;  %v17455_v13 = vcombine.low %v7512_v1, %v7515_v8  ;;  %v17400_v63 = vrot.slane %v7388_v14, 9  ;;  %v9347_v47 = vld [vmem:[#allocation3 + $0x40] sm:$0xf] }
 0x2e8   : > { %v7526_v0 = vsel %vm21573_vm8, %v17399_v25, %v7525_v39  ;;  %v17401_v62 = vrot.slane %v7389_v35, 9  ;;  %v10637_v30 = vrot.slane %v9344_v44, 5  ;;  %v9353_v14 = vld [vmem:[#allocation3 + $0x58] sm:$0xf]  ;;  %v10651_v25 = vrot.slane %v9350_v37, 5 }
 0x2e9   : > { %v23296_v40 = vsel %vm21573_vm8, %v7534_v26, %v7535_v29  ;;  %v23300_v33 = vsel %vm21573_vm8, %v7541_v17, %v7542_v22  ;;  %v23306_v27 = vsel %vm21573_vm8, %v17400_v63, %v7532_v18  ;;  %v9356_v18 = vld [vmem:[#allocation3 + $0x64] sm:$0xf]  ;;  %v10644_v17 = vrot.slane %v9347_v47, 5  ;;  %v10562_v35 = vld [vmem:[#allocation3 + $0x54] sm:$0xe] }
 0x2ea   : > { %19185 = vmatmul.mubr.msk.bf16.gmra.mrb[8].mxu1 %vm1958_vm12, %v17450_v54  ;;  %v7520_v54 = vrot.slane %v7518_v46, 4  ;;  %v23310_v58 = vsel %vm21573_vm8, %v17401_v62, %v7539_v15  ;;  %v10639_v34 = vrot.slane %v10637_v30, 4  ;;  %v17458_v8 = vcombine.low %v23306_v27, %v23296_v40  ;;  %v9357_v44 = vld [vmem:[#allocation3 + $0x68] sm:$0x1]  ;;  %v10564_v37 = vld [vmem:[#allocation3 + $0x6c] sm:$0xe] }
 0x2eb   : > { %19188 = vmatprep.mubr.msk.bf16.mxu1 %vm1958_vm12, %v17451_v3  ;;  %v7527_v3 = vrot.slane %v7525_v39, 4  ;;  %v10646_v29 = vrot.slane %v10644_v17, 4  ;;  %v10647_v22 = vrot.slane %v9348_v5, 5  ;;  %v10653_v63 = vrot.slane %v10651_v25, 4  ;;  %v9362_v5 = vld [vmem:[#allocation3 + $0x7c] sm:$0xf] }
 0x2ec   : > { %v7522_v53 = vsel %vm21573_vm8, %v7520_v54, %v7521_v21  ;;  %v10561_v54 = vld [vmem:[#allocation3 + $0x48] sm:$0xe]  ;;  %v10640_v21 = vrot.slane %v9345_v10, 5  ;;  %v17652_v47 = vrot.slane %v10562_v35, 9 }
 0x2ed   : > { %v23285_v52 = vsel %vm21573_vm8, %v7527_v3, %v7528_v45  ;;  %v9351_v3 = vld [vmem:[#allocation3 + $0x50] sm:$0x1]  ;;  %v17459_v45 = vcombine.low %v23310_v58, %v23300_v33  ;;  %v23336_v62 = vsel %vm21573_vm8, %v10646_v29, %v10647_v22  ;;  %v17654_v29 = vrot.slane %v10564_v37, 9 }
 0x2ee   : > { %v17457_v56 = vcombine.low %v7526_v0, %v23285_v52  ;;  %v23322_v15 = vsel %vm21573_vm8, %v10639_v34, %v10640_v21  ;;  %v10654_v10 = vrot.slane %v9351_v3, 5  ;;  %v10565_v21 = vld [vmem:[#allocation3 + $0x78] sm:$0xe] }
 0x2f2   : > { %19189 = vmatmul.mubr.msk.bf16.gmra.mrb[12].mxu1 %vm1958_vm12, %v17452_v2  ;;  %v7519_v2 = vsel %vm21573_vm8, %v17398_v50, %v7518_v46  ;;  %v10560_v46 = vld [vmem:[#allocation3 + $0x3c] sm:$0xe]  ;;  %v17651_v50 = vrot.slane %v10561_v54, 9 }
 0x2f3   : > { %19192 = vmatprep.mubr.msk.bf16.mxu1 %vm1958_vm12, %v17453_v36  ;;  %v10559_v36 = vld [vmem:[#allocation3 + $0x30] sm:$0xe]  ;;  %v17456_v39 = vcombine.low %v7519_v2, %v7522_v53  ;;  %v17650_v26 = vrot.slane %v10560_v46, 9  ;;  %v10665_v46 = vrot.slane %v9356_v18, 5  ;;  %v9374_v53 = vld [vmem:[#allocation3 + $0xac] sm:$0xf] }
 0x2f4   : > { %v17649_v6 = vrot.slane %v10559_v36, 9  ;;  %v9359_v2 = vld [vmem:[#allocation3 + $0x70] sm:$0xf]  ;;  %v23332_v0 = vsel %vm21573_vm8, %v17651_v50, %v10651_v25  ;;  %v10658_v36 = vrot.slane %v9353_v14, 5  ;;  %v9360_v14 = vld [vmem:[#allocation3 + $0x74] sm:$0x1] }
 0x2f5   : > { %v23328_v52 = vsel %vm21573_vm8, %v17650_v26, %v10644_v17  ;;  %v9363_v26 = vld [vmem:[#allocation3 + $0x80] sm:$0x1]  ;;  %v10667_v17 = vrot.slane %v10665_v46, 4  ;;  %v9365_v50 = vld [vmem:[#allocation3 + $0x88] sm:$0xf]  ;;  %v10672_v22 = vrot.slane %v9359_v2, 5 }
 0x2f6   : > { %v23318_v1 = vsel %vm21573_vm8, %v17649_v6, %v10637_v30  ;;  %v23343_v6 = vsel %vm21573_vm8, %v10653_v63, %v10654_v10  ;;  %v10660_v3 = vrot.slane %v10658_v36, 4  ;;  %v9368_v25 = vld [vmem:[#allocation3 + $0x94] sm:$0xf]  ;;  %v10675_v2 = vrot.slane %v9360_v14, 5 }
 0x2f7   : > { %v10674_v37 = vrot.slane %v10672_v22, 4 }
 0x2f9   : > { %v23378_v18 = vsel %vm21573_vm8, %v10674_v37, %v10675_v2  ;;  %v10569_v37 = vld [vmem:[#allocation3 + $0xa8] sm:$0xe]  ;;  %v9375_v2 = vld [vmem:[#allocation3 + $0xb0] sm:$0x1] }
 0x2fa   : > { %19193 = vmatmul.mubr.msk.bf16.gmra.mrb[16].mxu1 %vm1958_vm12, %v17454_v49  ;;  %v9354_v49 = vld [vmem:[#allocation3 + $0x5c] sm:$0x1] }
 0x2fb   : > { %19196 = vmatprep.mubr.msk.bf16.mxu1 %vm1958_vm12, %v17455_v13  ;;  %v10563_v13 = vld [vmem:[#allocation3 + $0x60] sm:$0xe]  ;;  %v10661_v30 = vrot.slane %v9354_v49, 5  ;;  %v10668_v49 = vrot.slane %v9357_v44, 5  ;;  %v17655_v44 = vrot.slane %v10565_v21, 9  ;;  %v10686_v21 = vrot.slane %v9365_v50, 5 }
 0x2fc   : > { %v17653_v34 = vrot.slane %v10563_v13, 9  ;;  %v9366_v13 = vld [vmem:[#allocation3 + $0x8c] sm:$0x1]  ;;  %v9372_v50 = vld [vmem:[#allocation3 + $0xa4] sm:$0x1] }
 0x2fd   : > { %v23354_v35 = vsel %vm21573_vm8, %v10660_v3, %v10661_v30  ;;  %v23364_v10 = vsel %vm21573_vm8, %v10667_v17, %v10668_v49  ;;  %v10567_v3 = vld [vmem:[#allocation3 + $0x90] sm:$0xe]  ;;  %v10682_v49 = vrot.slane %v9363_v26, 5  ;;  %v10689_v54 = vrot.slane %v9366_v13, 5  ;;  %v10568_v26 = vld [vmem:[#allocation3 + $0x9c] sm:$0xe] }
 0x302   : > { %19197 = vmatmul.mubr.msk.bf16.gmra.mrb[20].mxu1 %vm1958_vm12, %v17456_v39  ;;  %v23350_v39 = vsel %vm21573_vm8, %v17652_v47, %v10658_v36  ;;  %v10679_v36 = vrot.slane %v9362_v5, 5  ;;  %v10566_v47 = vld [vmem:[#allocation3 + $0x84] sm:$0xe]  ;;  %v9371_v5 = vld [vmem:[#allocation3 + $0xa0] sm:$0xf] }
 0x303   : > { %19200 = vmatprep.mubr.msk.bf16.mxu1 %vm1958_vm12, %v17457_v56  ;;  %v23358_v56 = vsel %vm21573_vm8, %v17653_v34, %v10665_v46  ;;  %v23370_v46 = vsel %vm21573_vm8, %v17654_v29, %v10672_v22  ;;  %v9369_v34 = vld [vmem:[#allocation3 + $0x98] sm:$0x1]  ;;  %v17656_v30 = vrot.slane %v10566_v47, 9  ;;  %v10693_v29 = vrot.slane %v9368_v25, 5 }
 0x304   : > { %v23374_v63 = vsel %vm21573_vm8, %v17655_v44, %v10679_v36  ;;  %v10681_v17 = vrot.slane %v10679_v36, 4  ;;  %v10688_v44 = vrot.slane %v10686_v21, 4  ;;  %v17657_v36 = vrot.slane %v10567_v3, 9  ;;  %v9377_v3 = vld [vmem:[#allocation3 + $0xb8] sm:$0xf] }
 0x305   : > { %v10695_v13 = vrot.slane %v10693_v29, 4  ;;  %v10696_v47 = vrot.slane %v9369_v34, 5  ;;  %v9380_v34 = vld [vmem:[#allocation3 + $0xc4] sm:$0xf]  ;;  %v17659_v25 = vrot.slane %v10569_v37, 9  ;;  %v10714_v14 = vrot.slane %v9377_v3, 5 }
 0x306   : > { %v23384_v22 = vsel %vm21573_vm8, %v10681_v17, %v10682_v49  ;;  %v23398_v17 = vsel %vm21573_vm8, %v17656_v30, %v10686_v21  ;;  %v23402_v40 = vsel %vm21573_vm8, %v10688_v44, %v10689_v54  ;;  %v23406_v27 = vsel %vm21573_vm8, %v17657_v36, %v10693_v29  ;;  %v9378_v49 = vld [vmem:[#allocation3 + $0xbc] sm:$0x1] }
 0x307   : > { %26161 = vst [vmem:[#allocation43_spill] sm:$0xff] %v23402_v40  ;;  %26162 = vst [vmem:[#allocation44_spill] sm:$0xff] %v23406_v27  ;;  %v23412_v58 = vsel %vm21573_vm8, %v10695_v13, %v10696_v47  ;;  %v10707_v30 = vrot.slane %v9374_v53, 5  ;;  %v10703_v44 = vrot.slane %v9372_v50, 5  ;;  %v10710_v36 = vrot.slane %v9375_v2, 5 }
 0x308   : > { %26163 = vst [vmem:[#allocation45_spill] sm:$0xff] %v23412_v58  ;;  %v10721_v50 = vrot.slane %v9380_v34, 5  ;;  %v10716_v37 = vrot.slane %v10714_v14, 4  ;;  %v10717_v2 = vrot.slane %v9378_v49, 5  ;;  %v10571_v34 = vld [vmem:[#allocation3 + $0xc0] sm:$0xe] }
 0x309   : > { %v10709_v29 = vrot.slane %v10707_v30, 4  ;;  %v8911_v13 = vld [vmem:[#allocation2 + $0x30] sm:$0xf]  ;;  %v23698_v27 = vld [vmem:[#allocation2 + $0xd4] sm:$0x1] }
 0x30a   : > { %19201 = vmatmul.mubr.msk.bf16.gmra.mrb[24].mxu1 %vm1958_vm12, %v17458_v8  ;;  %v10700_v8 = vrot.slane %v9371_v5, 5  ;;  %v10570_v5 = vld [vmem:[#allocation3 + $0xb4] sm:$0xe]  ;;  %v9005_v61 = vshll.u32 %v8911_v13, 16 }
 0x30b   : > { %19204 = vmatprep.mubr.msk.bf16.mxu1 %vm1958_vm12, %v17459_v45  ;;  %v17658_v45 = vrot.slane %v10568_v26, 9  ;;  %v23426_v26 = vsel %vm21573_vm8, %v17659_v25, %v10707_v30  ;;  %v23432_v47 = vsel %vm21573_vm8, %v10709_v29, %v10710_v36  ;;  %v23442_v25 = vsel %vm21573_vm8, %v10716_v37, %v10717_v2  ;;  %v20766_v29 = vld [vmem:[#allocation2 + $0x24] sm:$0xff]   ;;  %v20767_v36 = vld [vmem:[#allocation2 + $0x30] sm:$0xff]  }
 0x30c   : > { %v10702_v21 = vrot.slane %v10700_v8, 4  ;;  %26166 = vst [vmem:[#allocation48_spill] sm:$0xff] %v23426_v26  ;;  %26167 = vst [vmem:[#allocation49_spill] sm:$0xff] %v23432_v47  ;;  %v10724_v30 = vrot.slane %v9381_v57, 5  ;;  %v20774_v57 = vld [vmem:[%s26034_s4 + $0x68] sm:$0xff]   ;;  %v20770_v2 = vld [vmem:[#allocation2 + $0x54] sm:$0xff]  }
 0x30d   : > { %v23418_v33 = vsel %vm21573_vm8, %v17658_v45, %v10700_v8  ;;  %v17660_v8 = vrot.slane %v10570_v5, 9  ;;  %v10723_v45 = vrot.slane %v10721_v50, 4  ;;  %26169 = vst [vmem:[#allocation50_spill] sm:$0xff] %v23442_v25  ;;  %v20769_v37 = vld [vmem:[#allocation2 + $0x48] sm:$0xff]   ;;  %v9007_v38 = vrot.slane %v9005_v61, 5 }
 0x30e   : > { %26164 = vst [vmem:[#allocation46_spill] sm:$0xff] %v23418_v33  ;;  %v23422_v53 = vsel %vm21573_vm8, %v10702_v21, %v10703_v44  ;;  %v26168_v21 = vcombine.low %v23129_v16, %v23133_v55  ;;  %v17661_v55 = vrot.slane %v10571_v34, 9  ;;  %v20776_v34 = vld [vmem:[#allocation2 + $0x90] sm:$0xff]  }
 0x30f   : > { %26165 = vst [vmem:[#allocation47_spill] sm:$0xff] %v23422_v53  ;;  %v23447_v49 = vsel %vm21573_vm8, %v17660_v8, %v10714_v14  ;;  %v23453_v16 = vsel %vm21573_vm8, %v10723_v45, %v10724_v30  ;;  %v20783_v14 = vld [vmem:[%s26033_s3 + $0x70] sm:$0xff]   ;;  %v20771_v8 = vld [vmem:[#allocation2 + $0x60] sm:$0xff]   ;;  %v20773_v45 = vld [vmem:[#allocation2 + $0x78] sm:$0xff]  }
 0x310   : > { %26170 = vst [vmem:[#allocation51_spill] sm:$0xff] %v23447_v49  ;;  %26171 = vst [vmem:[#allocation52_spill] sm:$0xff] %v23453_v16  ;;  %v23457_v5 = vsel %vm21573_vm8, %v17661_v55, %v10721_v50  ;;  %v20768_v50 = vld [vmem:[#allocation2 + $0x3c] sm:$0xff]   ;;  %v20778_v55 = vld [vmem:[#allocation2 + $0xa8] sm:$0xff]  }
 0x311   : > { %26172 = vst [vmem:[#allocation53_spill] sm:$0xff] %v23457_v5  ;;  %v20777_v30 = vld [vmem:[#allocation2 + $0x9c] sm:$0xff]   ;;  %v8916_v5 = vld [vmem:[#allocation2 + $0x44] sm:$0x1]  ;;  %v20797_v61 = vld [vmem:[#allocation3 + $0xb4] sm:$0xff]  }
 0x312   : > { %19205 = vmatmul.mubr.msk.bf16.gmra.mrb[28].mxu1 %vm1958_vm12, %v26168_v21  ;;  %v20775_v21 = vld [vmem:[#allocation2 + $0x84] sm:$0xff]  }
 0x313   : > { %19212 = vmatprep.mubr.msk.bf16.mxu1 %vm1958_vm12, %v20764_v20  ;;  %v8909_v20 = vld [vmem:[#allocation2 + $0x28] sm:$0xf] }
 0x314   : > { %v8991_v59 = vshrl.u32 %v8909_v20, 16 }
 0x316   : > { %v8993_v31 = vrot.slane %v8991_v59, 4 }
 0x31a   : > { %19213 = vmatmul.mubr.msk.bf16.vlgmr.msra.gmra.mrb[0].mxu1 %vm1958_vm12, %v20766_v29  ;;  %v20779_v29 = vld [vmem:[#allocation2 + $0xb4] sm:$0xff]  }
 0x31b   : > { %19245 = vmatpush3.bf16.msra.mxu1 %v23223_v51  ;;  %19216 = vmatprep.mubr.msk.bf16.mxu1 %vm1958_vm12, %v20767_v36  ;;  %v20772_v51 = vld [vmem:[#allocation2 + $0x6c] sm:$0xff]   ;;  %v20780_v36 = vld [vmem:[#allocation2 + $0xc0] sm:$0xff]  }
 0x31c   : > { %19246 = vmatprep.subr.bf16.mxu1 %v20774_v57 }
 0x31f   : > { %19247 = vmatpush3.bf16.msra.mxu1 %v20774_v57  ;;  %v20781_v57 = vld [vmem:[#allocation2 + $0xcc] sm:$0xff]  }
 0x320   : > { %19280 = vmatprep.subr.bf16.mxu1 %v20783_v14 }
 0x322   : > { %19217 = vmatmul.mubr.msk.bf16.gmra.mrb[4].mxu1 %vm1958_vm12, %v20768_v50  ;;  %v20782_v50 = vld [vmem:[#allocation3 + $0x18] sm:$0xff]  }
 0x323   : > { %19220 = vmatprep.mubr.msk.bf16.mxu1 %vm1958_vm12, %v20769_v37  ;;  %v20784_v37 = vld [vmem:[#allocation3 + $0x24] sm:$0xff]  }
 0x32a   : > { %19221 = vmatmul.mubr.msk.bf16.gmra.mrb[8].mxu1 %vm1958_vm12, %v20770_v2  ;;  %v20792_v2 = vld [vmem:[%s26033_s3 + $0x78] sm:$0xff]  }
 0x32b   : > { %19224 = vmatprep.mubr.msk.bf16.mxu1 %vm1958_vm12, %v20771_v8  ;;  %v20785_v8 = vld [vmem:[#allocation3 + $0x30] sm:$0xff]  }
 0x332   : > { %19225 = vmatmul.mubr.msk.bf16.gmra.mrb[12].mxu1 %vm1958_vm12, %v20772_v51  ;;  %v23492_v51 = vld [vmem:[%s26034_s4 + $0x70] sm:$0xff]  }
 0x333   : > { %19228 = vmatprep.mubr.msk.bf16.mxu1 %vm1958_vm12, %v20773_v45  ;;  %v20786_v45 = vld [vmem:[#allocation3 + $0x3c] sm:$0xff]  }
 0x33a   : > { %19229 = vmatmul.mubr.msk.bf16.gmra.mrb[16].mxu1 %vm1958_vm12, %v20775_v21  ;;  %v20787_v21 = vld [vmem:[#allocation3 + $0x48] sm:$0xff]  }
 0x33b   : > { %19232 = vmatprep.mubr.msk.bf16.mxu1 %vm1958_vm12, %v20776_v34  ;;  %v20788_v34 = vld [vmem:[#allocation3 + $0x54] sm:$0xff]  }
 0x342   : > { %19233 = vmatmul.mubr.msk.bf16.gmra.mrb[20].mxu1 %vm1958_vm12, %v20777_v30  ;;  %v20789_v30 = vld [vmem:[#allocation3 + $0x60] sm:$0xff]  }
 0x343   : > { %19236 = vmatprep.mubr.msk.bf16.mxu1 %vm1958_vm12, %v20778_v55  ;;  %v20791_v55 = vld [vmem:[#allocation3 + $0x78] sm:$0xff]  }
 0x34a   : > { %19237 = vmatmul.mubr.msk.bf16.gmra.mrb[24].mxu1 %vm1958_vm12, %v20779_v29  ;;  %v8905_v29 = vld [vmem:[#allocation2 + $0x18] sm:$0xf] }
 0x34b   : > { %19240 = vmatprep.mubr.msk.bf16.mxu1 %vm1958_vm12, %v20780_v36  ;;  %v8906_v36 = vld [vmem:[#allocation2 + $0x1c] sm:$0xf] }
 0x352   : > { %19241 = vmatmul.mubr.msk.bf16.gmra.mrb[28].mxu1 %vm1958_vm12, %v20781_v57  ;;  %v20793_v57 = vld [vmem:[#allocation3 + $0x84] sm:$0xff]  }
 0x353   : > { %19248 = vmatprep.mubr.msk.bf16.mxu1 %vm1958_vm12, %v20782_v50  ;;  %v8907_v50 = vld [vmem:[#allocation2 + $0x20] sm:$0x1] }
 0x35a   : > { %19249 = vmatmul.mubr.msk.bf16.vlgmr.msra.gmra.mrb[0].mxu1 %vm1958_vm12, %v20784_v37  ;;  %v8954_v37 = vshrl.u32 %v8905_v29, 16 }
 0x35b   : > { %19281 = vmatpush3.bf16.msra.mxu1 %v20783_v14  ;;  %19252 = vmatprep.mubr.msk.bf16.mxu1 %vm1958_vm12, %v20785_v8  ;;  %v20790_v14 = vld [vmem:[#allocation3 + $0x6c] sm:$0xff]   ;;  %v8963_v8 = vshll.u32 %v8906_v36, 16 }
 0x35c   : > { %19282 = vmatprep.subr.bf16.mxu1 %v20792_v2  ;;  %v8956_v44 = vrot.slane %v8954_v37, 4 }
 0x35d   : > { %v23503_v3 = vrot.slane %v8963_v8, 5  ;;  %v9015_v8 = vshrl.u32 %v8912_v41, 16 }
 0x35f   : > { %19283 = vmatpush3.bf16.msra.mxu1 %v20792_v2  ;;  %v8957_v2 = vshll.u32 %v8905_v29, 16  ;;  %v8987_v29 = vshll.u32 %v8909_v20, 16  ;;  %v8910_v20 = vld [vmem:[#allocation2 + $0x2c] sm:$0x1] }
 0x360   : > { %19316 = vmatprep.subr.bf16.mxu1 %v23492_v51  ;;  %v8997_v60 = vshll.u32 %v8910_v20, 16 }
 0x362   : > { %19253 = vmatmul.mubr.msk.bf16.gmra.mrb[4].mxu1 %vm1958_vm12, %v20786_v45  ;;  %v8967_v45 = vshrl.u32 %v8906_v36, 16  ;;  %v8914_v36 = vld [vmem:[#allocation2 + $0x3c] sm:$0xf] }
 0x363   : > { %19256 = vmatprep.mubr.msk.bf16.mxu1 %vm1958_vm12, %v20787_v21  ;;  %v20794_v21 = vld [vmem:[#allocation3 + $0x90] sm:$0xff]   ;;  %v9026_v32 = vshrl.u32 %v8914_v36, 16  ;;  %v9029_v12 = vshll.u32 %v8914_v36, 16 }
 0x365   : > { %v9028_v28 = vrot.slane %v9026_v32, 4  ;;  %v8919_v32 = vld [vmem:[#allocation2 + $0x50] sm:$0x1] }
 0x36a   : > { %19257 = vmatmul.mubr.msk.bf16.gmra.mrb[8].mxu1 %vm1958_vm12, %v20788_v34  ;;  %v8908_v34 = vld [vmem:[#allocation2 + $0x24] sm:$0xf] }
 0x36b   : > { %19260 = vmatprep.mubr.msk.bf16.mxu1 %vm1958_vm12, %v20789_v30  ;;  %v8973_v30 = vshll.u32 %v8907_v50, 16  ;;  %v8978_v54 = vshrl.u32 %v8908_v34, 16  ;;  %v8981_v48 = vshll.u32 %v8908_v34, 16 }
 0x36d   : > { %v23505_v43 = vrot.slane %v8973_v30, 5  ;;  %v8980_v4 = vrot.slane %v8978_v54, 4  ;;  %v8983_v34 = vrot.slane %v8981_v48, 5  ;;  %v23509_v30 = vrot.slane %v8987_v29, 5 }
 0x36e   : > { %v9017_v48 = vrot.slane %v9015_v8, 4  ;;  %v9031_v29 = vrot.slane %v9029_v12, 5  ;;  %v20798_v12 = vld [vmem:[#allocation3 + $0xc0] sm:$0xff]  }
 0x36f   : > { %v8984_v36 = vor.u32 %v8983_v34, %v8980_v4  ;;  %v9045_v34 = vshll.u32 %v8916_v5, 16  ;;  %v8920_v5 = vld [vmem:[#allocation2 + $0x54] sm:$0xf] }
 0x372   : > { %19261 = vmatmul.mubr.msk.bf16.gmra.mrb[12].mxu1 %vm1958_vm12, %v20790_v14  ;;  %v8959_v14 = vrot.slane %v8957_v2, 5  ;;  %v9011_v2 = vshll.u32 %v8912_v41, 16 }
 0x373   : > { %19264 = vmatprep.mubr.msk.bf16.mxu1 %vm1958_vm12, %v20791_v55  ;;  %v8969_v55 = vrot.slane %v8967_v45, 4  ;;  %v8918_v45 = vld [vmem:[#allocation2 + $0x4c] sm:$0xf] }
 0x374   : > { %v8960_v50 = vor.u32 %v8959_v14, %v8956_v44  ;;  %v9050_v44 = vshrl.u32 %v8917_v42, 16  ;;  %v9053_v14 = vshll.u32 %v8917_v42, 16  ;;  %v9059_v41 = vshll.u32 %v8918_v45, 16 }
 0x375   : > { %v8970_v37 = vor.u32 %v8969_v55, %v23503_v3  ;;  %v9063_v55 = vshrl.u32 %v8918_v45, 16  ;;  %v23512_v54 = vrot.slane %v9011_v2, 5  ;;  %v8994_v2 = vor.u32 %v8993_v31, %v23509_v30 }
 0x376   : > { %v8961_v16 = vrot.slane %v8960_v50, 4  ;;  %v9052_v25 = vrot.slane %v9050_v44, 4  ;;  %v9055_v42 = vrot.slane %v9053_v14, 5  ;;  %v23516_v49 = vrot.slane %v9059_v41, 5  ;;  %v8921_v44 = vld [vmem:[#allocation2 + $0x58] sm:$0xf] }
 0x377   : > { %v8971_v59 = vrot.slane %v8970_v37, 4  ;;  %v9018_v4 = vor.u32 %v9017_v48, %v23512_v54  ;;  %v23520_v50 = vrot.slane %v8984_v36, 4  ;;  %v9032_v37 = vor.u32 %v9031_v29, %v9028_v28 }
 0x378   : > { %v9056_v20 = vor.u32 %v9055_v42, %v9052_v25  ;;  %v9069_v28 = vshll.u32 %v8919_v32, 16  ;;  %v8995_v14 = vrot.slane %v8994_v2, 4  ;;  %v9047_v36 = vrot.slane %v9045_v34, 5  ;;  %v20799_v25 = vld [vmem:[#allocation3 + $0xcc] sm:$0xff]  }
 0x379   : > { %v8976_v31 = vsel %vm21913_vm15, %v8971_v59, %v23505_v43  ;;  %v8990_v43 = vsel %vm21913_vm15, %v23520_v50, %v23509_v30  ;;  %v9074_v59 = vshrl.u32 %v8920_v5, 16  ;;  %v9083_v42 = vshll.u32 %v8921_v44, 16 }
 0x37a   : > { %19265 = vmatmul.mubr.msk.bf16.gmra.mrb[16].mxu1 %vm1958_vm12, %v20793_v57  ;;  %v9002_v57 = vshrl.u32 %v8911_v13, 16  ;;  %v9071_v2 = vrot.slane %v9069_v28, 5  ;;  %v8927_v28 = vld [vmem:[#allocation2 + $0x70] sm:$0xf] }
 0x37b   : > { %19268 = vmatprep.mubr.msk.bf16.mxu1 %vm1958_vm12, %v20794_v21  ;;  %v8915_v21 = vld [vmem:[#allocation2 + $0x40] sm:$0xf] }
 0x37c   : > { %v9035_v13 = vshll.u32 %v8915_v21, 16  ;;  %v9039_v9 = vshrl.u32 %v8915_v21, 16  ;;  %v9004_v7 = vrot.slane %v9002_v57, 4  ;;  %v9065_v57 = vrot.slane %v9063_v55, 4 }
 0x37d   : > { %v9019_v55 = vrot.slane %v9018_v4, 4 }
 0x37e   : > { %v23514_v21 = vrot.slane %v9035_v13, 5  ;;  %v9008_v8 = vor.u32 %v9007_v38, %v9004_v7  ;;  %v8999_v7 = vrot.slane %v8997_v60, 5  ;;  %v9066_v13 = vor.u32 %v9065_v57, %v23516_v49  ;;  %v8924_v60 = vld [vmem:[#allocation2 + $0x64] sm:$0xf] }
 0x37f   : > { %v9057_v57 = vrot.slane %v9056_v20, 4  ;;  %v9107_v30 = vshll.u32 %v8924_v60, 16 }
 0x380   : > { %v9009_v41 = vrot.slane %v9008_v8, 4  ;;  %v9087_v8 = vshrl.u32 %v8921_v44, 16  ;;  %v9000_v4 = vsel %vm21913_vm15, %v8995_v14, %v8999_v7  ;;  %v9076_v7 = vrot.slane %v9074_v59, 4  ;;  %v23557_v14 = vld [vmem:[#allocation3 + $0x18] sm:$0xf] }
 0x382   : > { %19269 = vmatmul.mubr.msk.bf16.gmra.mrb[20].mxu1 %vm1958_vm12, %v20795_v24  ;;  %v8913_v24 = vld [vmem:[#allocation2 + $0x38] sm:$0x1]  ;;  %v9014_v50 = vsel %vm21913_vm15, %v9009_v41, %v23512_v54  ;;  %v9062_v54 = vsel %vm21913_vm15, %v9057_v57, %v23516_v49 }
 0x383   : > { %19272 = vmatprep.mubr.msk.bf16.mxu1 %vm1958_vm12, %v20796_v11  ;;  %v9041_v11 = vrot.slane %v9039_v9, 4  ;;  %v9021_v45 = vshll.u32 %v8913_v24, 16  ;;  %v8966_v9 = vsel %vm21913_vm15, %v8961_v16, %v23503_v3  ;;  %v9033_v16 = vrot.slane %v9032_v37, 4  ;;  %v8923_v24 = vld [vmem:[#allocation2 + $0x60] sm:$0xf] }
 0x384   : > { %v17559_v3 = vcombine.low %v8966_v9, %v8976_v31  ;;  %v9098_v32 = vshrl.u32 %v8923_v24, 16  ;;  %v9111_v9 = vshrl.u32 %v8924_v60, 16  ;;  %v8926_v31 = vld [vmem:[#allocation2 + $0x6c] sm:$0xf] }
 0x385   : > { %v9042_v38 = vor.u32 %v9041_v11, %v23514_v21  ;;  %v9023_v48 = vrot.slane %v9021_v45, 5  ;;  %v9077_v11 = vshll.u32 %v8920_v5, 16  ;;  %v8922_v45 = vld [vmem:[#allocation2 + $0x5c] sm:$0x1]  ;;  %v9038_v34 = vsel %vm21913_vm15, %v9033_v16, %v23514_v21 }
 0x386   : > { %v9089_v5 = vrot.slane %v9087_v8, 4  ;;  %v9093_v44 = vshll.u32 %v8922_v45, 16  ;;  %v9100_v41 = vrot.slane %v9098_v32, 4  ;;  %v9122_v16 = vshrl.u32 %v8926_v31, 16  ;;  %v8929_v8 = vld [vmem:[#allocation2 + $0x78] sm:$0xf] }
 0x387   : > { %v9043_v29 = vrot.slane %v9042_v38, 4  ;;  %v9024_v37 = vsel %vm21913_vm15, %v9019_v55, %v9023_v48  ;;  %v9079_v20 = vrot.slane %v9077_v11, 5  ;;  %v23559_v48 = vrot.slane %v9107_v30, 5  ;;  %v8930_v45 = vld [vmem:[#allocation2 + $0x7c] sm:$0xf] }
 0x388   : > { %v9125_v60 = vshll.u32 %v8926_v31, 16  ;;  %v17561_v59 = vcombine.low %v9014_v50, %v9024_v37 }
 0x389   : > { %v9048_v38 = vsel %vm21913_vm15, %v9043_v29, %v9047_v36  ;;  %v8925_v36 = vld [vmem:[#allocation2 + $0x68] sm:$0x1]  ;;  %v17560_v29 = vcombine.low %v8990_v43, %v9000_v4  ;;  %v9080_v57 = vor.u32 %v9079_v20, %v9076_v7  ;;  %v20801_v43 = vld [vmem:[%s26034_s4 + $0x78] sm:$0xff]   ;;  %v8932_v4 = vld [vmem:[#allocation2 + $0x84] sm:$0xf]  ;;  %v9146_v20 = vshrl.u32 %v8929_v8, 16 }
 0x38a   : > { %19273 = vmatmul.mubr.msk.bf16.gmra.mrb[24].mxu1 %vm1958_vm12, %v20797_v61  ;;  %v9067_v61 = vrot.slane %v9066_v13, 4  ;;  %v23549_v13 = vrot.slane %v9083_v42, 5  ;;  %v17562_v42 = vcombine.low %v9038_v34, %v9048_v38  ;;  %v9117_v30 = vshll.u32 %v8925_v36, 16  ;;  %v8933_v38 = vld [vmem:[#allocation2 + $0x88] sm:$0xf] }
 0x38b   : > { %19276 = vmatprep.mubr.msk.bf16.mxu1 %vm1958_vm12, %v20798_v12  ;;  %v9101_v12 = vshll.u32 %v8923_v24, 16  ;;  %v9113_v24 = vrot.slane %v9111_v9, 4  ;;  %v9124_v9 = vrot.slane %v9122_v16, 4  ;;  %v9127_v37 = vrot.slane %v9125_v60, 5  ;;  %v8928_v7 = vld [vmem:[#allocation2 + $0x74] sm:$0x1] }
 0x38c   : > { %v9072_v21 = vsel %vm21913_vm15, %v9067_v61, %v9071_v2  ;;  %v9090_v61 = vor.u32 %v9089_v5, %v23549_v13  ;;  %v23564_v2 = vrot.slane %v9093_v44, 5  ;;  %v9081_v5 = vrot.slane %v9080_v57, 4  ;;  %v8931_v57 = vld [vmem:[#allocation2 + $0x80] sm:$0x1] }
 0x38d   : > { %v9103_v55 = vrot.slane %v9101_v12, 5  ;;  %v17563_v32 = vcombine.low %v9062_v54, %v9072_v21  ;;  %v9114_v50 = vor.u32 %v9113_v24, %v23559_v48  ;;  %v9155_v54 = vshll.u32 %v8930_v45, 16 }
 0x38e   : > { %v9159_v21 = vshrl.u32 %v8930_v45, 16  ;;  %v9091_v44 = vrot.slane %v9090_v61, 4  ;;  %v9119_v36 = vrot.slane %v9117_v30, 5  ;;  %v9179_v24 = vshll.u32 %v8933_v38, 16 }
 0x38f   : > { %v9104_v12 = vor.u32 %v9103_v55, %v9100_v41  ;;  %v9170_v41 = vshrl.u32 %v8932_v4, 16  ;;  %v9173_v55 = vshll.u32 %v8932_v4, 16  ;;  %v9183_v60 = vshrl.u32 %v8933_v38, 16 }
 0x390   : > { %v9148_v61 = vrot.slane %v9146_v20, 4  ;;  %v23581_v4 = vrot.slane %v9155_v54, 5  ;;  %v9086_v30 = vsel %vm21913_vm15, %v9081_v5, %v23549_v13  ;;  %v9096_v38 = vsel %vm21913_vm15, %v9091_v44, %v23564_v2 }
 0x391   : > { %v9105_v16 = vrot.slane %v9104_v12, 4  ;;  %v9161_v12 = vrot.slane %v9159_v21, 4  ;;  %v9185_v20 = vrot.slane %v9183_v60, 4  ;;  %v9165_v44 = vshll.u32 %v8931_v57, 16 }
 0x392   : > { %19277 = vmatmul.mubr.msk.bf16.gmra.mrb[28].mxu1 %vm1958_vm12, %v20799_v25  ;;  %v9135_v25 = vshrl.u32 %v8927_v28, 16  ;;  %v17564_v49 = vcombine.low %v9086_v30, %v9096_v38 }
 0x393   : > { %19284 = vmatprep.mubr.msk.bf16.mxu1 %vm1958_vm12, %v17559_v3  ;;  %v9131_v3 = vshll.u32 %v8927_v28, 16  ;;  %v9149_v28 = vshll.u32 %v8929_v8, 16  ;;  %v9141_v8 = vshll.u32 %v8928_v7, 16  ;;  %v23591_v7 = vrot.slane %v9179_v24, 5 }
 0x394   : > { %v9137_v31 = vrot.slane %v9135_v25, 4  ;;  %v9115_v25 = vrot.slane %v9114_v50, 4  ;;  %v8934_v50 = vld [vmem:[#allocation2 + $0x8c] sm:$0x1]  ;;  %v9110_v13 = vsel %vm21913_vm15, %v9105_v16, %v23559_v48  ;;  %v9162_v24 = vor.u32 %v9161_v12, %v23581_v4 }
 0x395   : > { %v23570_v34 = vrot.slane %v9131_v3, 5  ;;  %v23578_v3 = vld [vmem:[%s26033_s3 + $0x80] sm:$0xff]   ;;  %v9151_v45 = vrot.slane %v9149_v28, 5  ;;  %v8936_v28 = vld [vmem:[#allocation2 + $0x94] sm:$0xf]  ;;  %v9143_v2 = vrot.slane %v9141_v8, 5 }
 0x396   : > { %v9189_v60 = vshll.u32 %v8934_v50, 16  ;;  %v9207_v11 = vshrl.u32 %v8936_v28, 16  ;;  %v9163_v12 = vrot.slane %v9162_v24, 4  ;;  %v8939_v50 = vld [vmem:[#allocation2 + $0xa0] sm:$0xf] }
 0x398   : > { %v9209_v30 = vrot.slane %v9207_v11, 4 }
 0x39a   : > { %19285 = vmatmul.mubr.msk.bf16.vlgmr.msra.gmra.mrb[0].mxu1 %vm1958_vm12, %v17560_v29  ;;  %v9128_v29 = vor.u32 %v9127_v37, %v9124_v9  ;;  %v9172_v9 = vrot.slane %v9170_v41, 4  ;;  %v9175_v37 = vrot.slane %v9173_v55, 5  ;;  %v9152_v55 = vor.u32 %v9151_v45, %v9148_v61 }
 0x39b   : > { %19317 = vmatpush3.bf16.msra.mxu1 %v23492_v51  ;;  %19288 = vmatprep.mubr.msk.bf16.mxu1 %vm1958_vm12, %v17561_v59  ;;  %v9138_v51 = vor.u32 %v9137_v31, %v23570_v34  ;;  %v8935_v59 = vld [vmem:[#allocation2 + $0x90] sm:$0xf]  ;;  %v23589_v31 = vld [vmem:[#allocation3 + $0x1c] sm:$0xf] }
 0x39c   : > { %19318 = vmatprep.subr.bf16.mxu1 %v20801_v43  ;;  %v9194_v54 = vshrl.u32 %v8935_v59, 16  ;;  %v9197_v21 = vshll.u32 %v8935_v59, 16  ;;  %v23597_v5 = vrot.slane %v9128_v29, 4  ;;  %v9203_v59 = vshll.u32 %v8936_v28, 16  ;;  %v8942_v28 = vld [vmem:[#allocation2 + $0xac] sm:$0xf] }
 0x39d   : > { %v9139_v41 = vrot.slane %v9138_v51, 4  ;;  %v9395_v48 = vshll.u32 %v23589_v31, 16  ;;  %v9176_v16 = vor.u32 %v9175_v37, %v9172_v9  ;;  %v9186_v29 = vor.u32 %v9185_v20, %v23591_v7  ;;  %v8941_v9 = vld [vmem:[#allocation2 + $0xa8] sm:$0xf] }
 0x39e   : > { %v9196_v8 = vrot.slane %v9194_v54, 4  ;;  %v9199_v57 = vrot.slane %v9197_v21, 5  ;;  %v9153_v45 = vrot.slane %v9152_v55, 4  ;;  %v23616_v37 = vrot.slane %v9203_v59, 5 }
 0x39f   : > { %19319 = vmatpush3.bf16.msra.mxu1 %v20801_v43  ;;  %v9120_v43 = vsel %vm21913_vm15, %v9115_v25, %v9119_v36  ;;  %v9167_v36 = vrot.slane %v9165_v44, 5  ;;  %v26173_v25 = vshrl.u32 %v23557_v14, 16  ;;  %v9144_v61 = vsel %vm21913_vm15, %v9139_v41, %v9143_v2  ;;  %v8937_v44 = vld [vmem:[#allocation2 + $0x98] sm:$0x1] }
 0x3a0   : > { %19352 = vmatprep.subr.bf16.mxu1 %v23578_v3  ;;  %v17565_v47 = vcombine.low %v9110_v13, %v9120_v43  ;;  %v9177_v54 = vrot.slane %v9176_v16, 4  ;;  %v9187_v21 = vrot.slane %v9186_v29, 4  ;;  %v9191_v13 = vrot.slane %v9189_v60, 5 }
 0x3a1   : > { %v23608_v51 = vrot.slane %v26173_v25, 4  ;;  %v9200_v43 = vor.u32 %v9199_v57, %v9196_v8  ;;  %v9227_v25 = vshll.u32 %v8939_v50, 16  ;;  %v9245_v26 = vshll.u32 %v8941_v9, 16  ;;  %v8940_v8 = vld [vmem:[#allocation2 + $0xa4] sm:$0x1] }
 0x3a2   : > { %19289 = vmatmul.mubr.msk.bf16.gmra.mrb[4].mxu1 %vm1958_vm12, %v17562_v42  ;;  %v8938_v42 = vld [vmem:[#allocation2 + $0x9c] sm:$0xf]  ;;  %v9158_v2 = vsel %vm21913_vm15, %v9153_v45, %v23581_v4  ;;  %v9168_v11 = vsel %vm21913_vm15, %v9163_v12, %v9167_v36  ;;  %v9251_v41 = vshll.u32 %v8942_v28, 16  ;;  %v9255_v55 = vshrl.u32 %v8942_v28, 16  ;;  %v8944_v28 = vld [vmem:[#allocation2 + $0xb4] sm:$0xf] }
 0x3a3   : > { %19292 = vmatprep.mubr.msk.bf16.mxu1 %vm1958_vm12, %v17563_v32  ;;  %v9134_v32 = vsel %vm21913_vm15, %v23597_v5, %v23570_v34  ;;  %v9218_v38 = vshrl.u32 %v8938_v42, 16  ;;  %v9221_v20 = vshll.u32 %v8938_v42, 16  ;;  %v9231_v34 = vshrl.u32 %v8939_v50, 16  ;;  %v23637_v50 = vld [vmem:[#allocation3 + $0x20] sm:$0x1] }
 0x3a4   : > { %v9242_v5 = vshrl.u32 %v8941_v9, 16  ;;  %v9210_v24 = vor.u32 %v9209_v30, %v23616_v37  ;;  %v9213_v60 = vshll.u32 %v8937_v44, 16  ;;  %v9192_v29 = vsel %vm21913_vm15, %v9187_v21, %v9191_v13  ;;  %v8945_v44 = vld [vmem:[#allocation2 + $0xb8] sm:$0xf] }
 0x3a5   : > { %v9220_v59 = vrot.slane %v9218_v38, 4  ;;  %v9223_v16 = vrot.slane %v9221_v20, 5  ;;  %v9201_v4 = vrot.slane %v9200_v43, 4  ;;  %v26174_v57 = vshll.u32 %v23557_v14, 16  ;;  %v8943_v38 = vld [vmem:[#allocation2 + $0xb0] sm:$0x1] }
 0x3a6   : > { %v23635_v36 = vrot.slane %v9227_v25, 5  ;;  %v9244_v45 = vrot.slane %v9242_v5, 4  ;;  %v9247_v12 = vrot.slane %v9245_v26, 5  ;;  %v17566_v9 = vcombine.low %v9134_v32, %v9144_v61 }
 0x3a7   : > { %v23633_v42 = vrot.slane %v26174_v57, 5  ;;  %v17567_v30 = vcombine.low %v9158_v2, %v9168_v11  ;;  %v9257_v20 = vrot.slane %v9255_v55, 4  ;;  %v9215_v21 = vrot.slane %v9213_v60, 5  ;;  %v8947_v11 = vld [vmem:[#allocation2 + $0xc0] sm:$0xf] }
 0x3a8   : > { %v9224_v13 = vor.u32 %v9223_v16, %v9220_v59  ;;  %v9237_v14 = vshll.u32 %v8940_v8, 16  ;;  %v23641_v25 = vrot.slane %v9395_v48, 5  ;;  %v9405_v26 = vshll.u32 %v23637_v50, 16 }
 0x3a9   : > { %v9248_v61 = vor.u32 %v9247_v12, %v9244_v45  ;;  %v9261_v5 = vshll.u32 %v8943_v38, 16  ;;  %v9266_v2 = vshrl.u32 %v8944_v28, 16  ;;  %v9275_v60 = vshll.u32 %v8945_v44, 16  ;;  %v9340_v45 = vld [vmem:[#allocation3 + $0x24] sm:$0xf] }
 0x3aa   : > { %19293 = vmatmul.mubr.msk.bf16.gmra.mrb[8].mxu1 %vm1958_vm12, %v17564_v49  ;;  %v9182_v49 = vsel %vm21913_vm15, %v9177_v54, %v23591_v7  ;;  %v23639_v7 = vrot.slane %v9251_v41, 5  ;;  %v9211_v54 = vrot.slane %v9210_v24, 4  ;;  %v23646_v41 = vld [vmem:[#allocation2 + $0xc4] sm:$0xf]  ;;  %v9269_v24 = vshll.u32 %v8944_v28, 16 }
 0x3ab   : > { %19296 = vmatprep.mubr.msk.bf16.mxu1 %vm1958_vm12, %v17565_v47  ;;  %v9233_v47 = vrot.slane %v9231_v34, 4  ;;  %v17568_v43 = vcombine.low %v9182_v49, %v9192_v29  ;;  %v9399_v34 = vshrl.u32 %v23589_v31, 16  ;;  %v9279_v48 = vshrl.u32 %v8945_v44, 16 }
 0x3ac   : > { %v9258_v55 = vor.u32 %v9257_v20, %v23639_v7  ;;  %v9206_v31 = vsel %vm21913_vm15, %v9201_v4, %v23616_v37  ;;  %v9216_v59 = vsel %vm21913_vm15, %v9211_v54, %v9215_v21  ;;  %v9225_v16 = vrot.slane %v9224_v13, 4  ;;  %v23658_v20 = vld [vmem:[#allocation2 + $0xbc] sm:$0x1]  ;;  %v8950_v21 = vld [vmem:[#allocation2 + $0xcc] sm:$0xf] }
 0x3ad   : > { %v9234_v32 = vor.u32 %v9233_v47, %v23635_v36  ;;  %v9239_v49 = vrot.slane %v9237_v14, 5  ;;  %v9290_v29 = vshrl.u32 %v8947_v11, 16  ;;  %v9293_v8 = vshll.u32 %v8947_v11, 16 }
 0x3ae   : > { %v9299_v57 = vshll.u32 %v23646_v41, 16  ;;  %v9303_v47 = vshrl.u32 %v23646_v41, 16  ;;  %v9249_v50 = vrot.slane %v9248_v61, 4  ;;  %v9259_v38 = vrot.slane %v9258_v55, 4 }
 0x3af   : > { %v9235_v12 = vrot.slane %v9234_v32, 4  ;;  %v9271_v37 = vrot.slane %v9269_v24, 5  ;;  %v23660_v4 = vrot.slane %v9275_v60, 5  ;;  %v9281_v28 = vrot.slane %v9279_v48, 4  ;;  %v23676_v48 = vld [vmem:[#allocation2 + $0xc8] sm:$0x1] }
 0x3b0   : > { %v17569_v54 = vcombine.low %v9206_v31, %v9216_v59  ;;  %v23664_v14 = vrot.slane %v9399_v34, 4  ;;  %v9410_v44 = vshrl.u32 %v9340_v45, 16  ;;  %v9292_v11 = vrot.slane %v9290_v29, 4 }
 0x3b1   : > { %v9295_v32 = vrot.slane %v9293_v8, 5  ;;  %v23666_v61 = vrot.slane %v9299_v57, 5  ;;  %v9230_v55 = vsel %vm21913_vm15, %v9225_v16, %v23635_v36  ;;  %v9240_v24 = vsel %vm21913_vm15, %v9235_v12, %v9239_v49  ;;  %v23685_v16 = vld [vmem:[#allocation3 + $0x28] sm:$0xf] }
 0x3b2   : > { %19297 = vmatmul.mubr.msk.bf16.gmra.mrb[12].mxu1 %vm1958_vm12, %v17566_v9  ;;  %v9263_v9 = vrot.slane %v9261_v5, 5  ;;  %v9305_v5 = vrot.slane %v9303_v47, 4  ;;  %v9285_v60 = vshll.u32 %v23658_v20, 16  ;;  %v9413_v34 = vshll.u32 %v9340_v45, 16 }
 0x3b3   : > { %19300 = vmatprep.mubr.msk.bf16.mxu1 %vm1958_vm12, %v17567_v30  ;;  %v9268_v30 = vrot.slane %v9266_v2, 4  ;;  %v23668_v2 = vld [vmem:[#allocation2 + $0xd0] sm:$0xf]  ;;  %v9254_v31 = vsel %vm21913_vm15, %v9249_v50, %v23639_v7  ;;  %v9282_v36 = vor.u32 %v9281_v28, %v23660_v4  ;;  %v9314_v49 = vshrl.u32 %v8950_v21, 16 }
 0x3b4   : > { %v9264_v59 = vsel %vm21913_vm15, %v9259_v38, %v9263_v9  ;;  %v9317_v8 = vshll.u32 %v8950_v21, 16  ;;  %v9323_v57 = vshll.u32 %v23668_v2, 16  ;;  %v9296_v47 = vor.u32 %v9295_v32, %v9292_v11  ;;  %v9343_v32 = vld [vmem:[#allocation3 + $0x30] sm:$0xf] }
 0x3b5   : > { %v9272_v29 = vor.u32 %v9271_v37, %v9268_v30  ;;  %v9306_v45 = vor.u32 %v9305_v5, %v23666_v61  ;;  %v9309_v7 = vshll.u32 %v23676_v48, 16  ;;  %v23692_v12 = vrot.slane %v9405_v26, 5 }
 0x3b6   : > { %v17570_v50 = vcombine.low %v9230_v55, %v9240_v24  ;;  %v9412_v9 = vrot.slane %v9410_v44, 4  ;;  %v9419_v30 = vshll.u32 %v23685_v16, 16  ;;  %v9423_v38 = vshrl.u32 %v23685_v16, 16  ;;  %v23702_v55 = vld [vmem:[#allocation3 + $0x2c] sm:$0x1] }
 0x3b7   : > { %v17571_v37 = vcombine.low %v9254_v31, %v9264_v59  ;;  %v9273_v28 = vrot.slane %v9272_v29, 4  ;;  %v9287_v21 = vrot.slane %v9285_v60, 5  ;;  %v9316_v13 = vrot.slane %v9314_v49, 4  ;;  %v20978_v60 = vld [vmem:[#allocation3 + $0x34] sm:$0xf] }
 0x3b8   : > { %v9319_v53 = vrot.slane %v9317_v8, 5  ;;  %v23696_v33 = vrot.slane %v9323_v57, 5  ;;  %v9297_v5 = vrot.slane %v9296_v47, 4  ;;  %v9307_v58 = vrot.slane %v9306_v45, 4 }
 0x3b9   : > { %v9311_v26 = vrot.slane %v9309_v7, 5  ;;  %v9402_v44 = vor.u32 %v23664_v14, %v23641_v25  ;;  %v9415_v24 = vrot.slane %v9413_v34, 5  ;;  %v23704_v31 = vrot.slane %v9419_v30, 5 }
 0x3ba   : > { %19301 = vmatmul.mubr.msk.bf16.gmra.mrb[16].mxu1 %vm1958_vm12, %v17568_v43  ;;  %v9327_v43 = vshrl.u32 %v23668_v2, 16  ;;  %v9443_v59 = vshll.u32 %v20978_v60, 16  ;;  %v9447_v29 = vshrl.u32 %v20978_v60, 16  ;;  %v9425_v49 = vrot.slane %v9423_v38, 4 }
 0x3bb   : > { %19304 = vmatprep.mubr.msk.bf16.mxu1 %vm1958_vm12, %v17569_v54  ;;  %v9283_v54 = vrot.slane %v9282_v36, 4  ;;  %v9278_v36 = vsel %vm21913_vm15, %v9273_v28, %v23660_v4  ;;  %v9434_v8 = vshrl.u32 %v9343_v32, 16  ;;  %v9437_v57 = vshll.u32 %v9343_v32, 16  ;;  %v9346_v28 = vld [vmem:[#allocation3 + $0x3c] sm:$0xf] }
 0x3bc   : > { %v9329_v11 = vrot.slane %v9327_v43, 4  ;;  %v9320_v34 = vor.u32 %v9319_v53, %v9316_v13  ;;  %v9333_v47 = vshll.u32 %v23698_v27, 16  ;;  %v9302_v45 = vsel %vm21913_vm15, %v9297_v5, %v23666_v61 }
 0x3bd   : > { %v9288_v14 = vsel %vm21913_vm15, %v9283_v54, %v9287_v21  ;;  %v9312_v4 = vsel %vm21913_vm15, %v9307_v58, %v9311_v26  ;;  %v26175_v7 = vor.u32 %v23633_v42, %v23608_v51  ;;  %v9429_v30 = vshll.u32 %v23702_v55, 16  ;;  %v20979_v42 = vld [vmem:[#allocation3 + $0x40] sm:$0xf] }
 0x3be   : > { %v9330_v43 = vor.u32 %v9329_v11, %v23696_v33  ;;  %v9403_v38 = vrot.slane %v9402_v44, 4  ;;  %v23724_v53 = vrot.slane %v9443_v59, 5  ;;  %v9449_v13 = vrot.slane %v9447_v29, 4 }
 0x3bf   : > { %v17572_v54 = vcombine.low %v9278_v36, %v9288_v14  ;;  %v9426_v21 = vor.u32 %v9425_v49, %v23704_v31  ;;  %v9436_v11 = vrot.slane %v9434_v8, 4  ;;  %v9439_v61 = vrot.slane %v9437_v57, 5  ;;  %v9349_v49 = vld [vmem:[#allocation3 + $0x48] sm:$0xf]  ;;  %v20980_v8 = vld [vmem:[#allocation3 + $0x4c] sm:$0xf] }
 0x3c0   : > { %v17573_v32 = vcombine.low %v9302_v45, %v9312_v4  ;;  %v9321_v5 = vrot.slane %v9320_v34, 4  ;;  %v9331_v58 = vrot.slane %v9330_v43, 4  ;;  %v9335_v26 = vrot.slane %v9333_v47, 5  ;;  %v20981_v43 = vld [vmem:[#allocation3 + $0x38] sm:$0x1] }
 0x3c1   : > { %v9458_v60 = vshrl.u32 %v9346_v28, 16  ;;  %v9461_v51 = vshll.u32 %v9346_v28, 16  ;;  %v9471_v40 = vshrl.u32 %v20979_v42, 16  ;;  %v9408_v44 = vsel %vm21913_vm15, %v9403_v38, %v23692_v12  ;;  %v9352_v38 = vld [vmem:[#allocation3 + $0x54] sm:$0xf] }
 0x3c2   : > { %19305 = vmatmul.mubr.msk.bf16.gmra.mrb[20].mxu1 %vm1958_vm12, %v17570_v50  ;;  %v9393_v50 = vrot.slane %v26175_v7, 4  ;;  %v9467_v7 = vshll.u32 %v20979_v42, 16  ;;  %v9450_v59 = vor.u32 %v9449_v13, %v23724_v53  ;;  %v9427_v36 = vrot.slane %v9426_v21, 4  ;;  %v20982_v28 = vld [vmem:[#allocation3 + $0x58] sm:$0xf] }
 0x3c3   : > { %19308 = vmatprep.mubr.msk.bf16.mxu1 %vm1958_vm12, %v17571_v37  ;;  %v9416_v37 = vor.u32 %v9415_v24, %v9412_v9  ;;  %v9431_v24 = vrot.slane %v9429_v30, 5  ;;  %v9491_v57 = vshll.u32 %v20980_v8, 16  ;;  %v9495_v14 = vshrl.u32 %v20980_v8, 16  ;;  %v9355_v8 = vld [vmem:[#allocation3 + $0x60] sm:$0xf] }
 0x3c4   : > { %v9398_v9 = vsel %vm21913_vm15, %v9393_v50, %v23641_v25  ;;  %v9326_v25 = vsel %vm21913_vm15, %v9321_v5, %v23696_v33  ;;  %v9336_v12 = vsel %vm21913_vm15, %v9331_v58, %v9335_v26  ;;  %v9440_v34 = vor.u32 %v9439_v61, %v9436_v11 }
 0x3c5   : > { %v9417_v29 = vrot.slane %v9416_v37, 4  ;;  %v9453_v47 = vshll.u32 %v20981_v43, 16  ;;  %v9460_v45 = vrot.slane %v9458_v60, 4  ;;  %v9463_v4 = vrot.slane %v9461_v51, 5 }
 0x3c6   : > { %v23741_v50 = vrot.slane %v9467_v7, 5  ;;  %v9473_v30 = vrot.slane %v9471_v40, 4  ;;  %v9451_v37 = vrot.slane %v9450_v59, 4  ;;  %v9482_v13 = vshrl.u32 %v9349_v49, 16  ;;  %v20983_v7 = vld [vmem:[#allocation3 + $0x44] sm:$0x1] }
 0x3c7   : > { %v9519_v21 = vshrl.u32 %v20982_v28, 16  ;;  %v9485_v42 = vshll.u32 %v9349_v49, 16  ;;  %v23743_v33 = vrot.slane %v9491_v57, 5  ;;  %v9497_v5 = vrot.slane %v9495_v14, 4 }
 0x3c8   : > { %v17597_v58 = vcombine.low %v9398_v9, %v9408_v44  ;;  %v9422_v11 = vsel %vm21913_vm15, %v9417_v29, %v23704_v31  ;;  %v9506_v61 = vshrl.u32 %v9352_v38, 16  ;;  %v9509_v26 = vshll.u32 %v9352_v38, 16 }
 0x3c9   : > { %v9432_v40 = vsel %vm21913_vm15, %v9427_v36, %v9431_v24  ;;  %v9441_v60 = vrot.slane %v9440_v34, 4  ;;  %v9455_v51 = vrot.slane %v9453_v47, 5  ;;  %v9477_v59 = vshll.u32 %v20983_v7, 16  ;;  %v20984_v36 = vld [vmem:[#allocation3 + $0x50] sm:$0x1] }
 0x3ca   : > { %19309 = vmatmul.mubr.msk.bf16.gmra.mrb[24].mxu1 %vm1958_vm12, %v17572_v54  ;;  %v9515_v54 = vshll.u32 %v20982_v28, 16  ;;  %v9474_v49 = vor.u32 %v9473_v30, %v23741_v50  ;;  %v9521_v9 = vrot.slane %v9519_v21, 4  ;;  %v9484_v44 = vrot.slane %v9482_v13, 4  ;;  %v9358_v21 = vld [vmem:[#allocation3 + $0x6c] sm:$0xf] }
 0x3cb   : > { %19312 = vmatprep.mubr.msk.bf16.mxu1 %vm1958_vm12, %v17573_v32  ;;  %v17574_v32 = vcombine.low %v9326_v25, %v9336_v12  ;;  %v9464_v25 = vor.u32 %v9463_v4, %v9460_v45  ;;  %v9456_v31 = vsel %vm21913_vm15, %v9451_v37, %v9455_v51  ;;  %v9487_v29 = vrot.slane %v9485_v42, 5  ;;  %v20985_v4 = vld [vmem:[#allocation3 + $0x64] sm:$0xf] }
 0x3cc   : > { %v23751_v57 = vrot.slane %v9515_v54, 5  ;;  %v9498_v24 = vor.u32 %v9497_v5, %v23743_v33  ;;  %v9501_v14 = vshll.u32 %v20984_v36, 16  ;;  %v9508_v12 = vrot.slane %v9506_v61, 4 }
 0x3cd   : > { %v9511_v34 = vrot.slane %v9509_v26, 5  ;;  %v9530_v43 = vshrl.u32 %v9355_v8, 16  ;;  %v17598_v47 = vcombine.low %v9422_v11, %v9432_v40  ;;  %v9533_v45 = vshll.u32 %v9355_v8, 16  ;;  %v20986_v11 = vld [vmem:[#allocation3 + $0x5c] sm:$0x1] }
 0x3ce   : > { %v9539_v30 = vshll.u32 %v20985_v4, 16  ;;  %v9543_v38 = vshrl.u32 %v20985_v4, 16  ;;  %v9446_v37 = vsel %vm21913_vm15, %v9441_v60, %v23724_v53  ;;  %v9465_v13 = vrot.slane %v9464_v25, 4  ;;  %v20803_v53 = vld [vmem:[%s26033_s3 + $0x88] sm:$0xff]  }
 0x3cf   : > { %v9475_v28 = vrot.slane %v9474_v49, 4  ;;  %v9522_v54 = vor.u32 %v9521_v9, %v23751_v57  ;;  %v9479_v42 = vrot.slane %v9477_v59, 5  ;;  %v9488_v5 = vor.u32 %v9487_v29, %v9484_v44  ;;  %v20987_v44 = vld [vmem:[#allocation3 + $0x70] sm:$0xf] }
 0x3d0   : > { %v9503_v61 = vrot.slane %v9501_v14, 5  ;;  %v9512_v26 = vor.u32 %v9511_v34, %v9508_v12  ;;  %v9525_v40 = vshll.u32 %v20986_v11, 16  ;;  %v9532_v51 = vrot.slane %v9530_v43, 4  ;;  %v9361_v14 = vld [vmem:[#allocation3 + $0x78] sm:$0xf] }
 0x3d1   : > { %v9535_v7 = vrot.slane %v9533_v45, 5  ;;  %v23762_v8 = vrot.slane %v9539_v30, 5  ;;  %v9545_v36 = vrot.slane %v9543_v38, 4  ;;  %v9554_v4 = vshrl.u32 %v9358_v21, 16  ;;  %v20988_v34 = vld [vmem:[#allocation3 + $0x7c] sm:$0xf] }
 0x3d2   : > { %19313 = vmatmul.mubr.msk.bf16.gmra.mrb[28].mxu1 %vm1958_vm12, %v17574_v32  ;;  %v17599_v32 = vcombine.low %v9446_v37, %v9456_v31  ;;  %v9470_v60 = vsel %vm21913_vm15, %v9465_v13, %v23741_v50  ;;  %v9480_v59 = vsel %vm21913_vm15, %v9475_v28, %v9479_v42  ;;  %v9523_v25 = vrot.slane %v9522_v54, 4  ;;  %v20989_v38 = vld [vmem:[#allocation3 + $0x68] sm:$0x1] }
 0x3d3   : > { %19320 = vmatprep.mubr.msk.bf16.mxu1 %vm1958_vm12, %v17597_v58  ;;  %v9499_v58 = vrot.slane %v9498_v24, 4  ;;  %v9557_v49 = vshll.u32 %v9358_v21, 16  ;;  %v9489_v9 = vrot.slane %v9488_v5, 4  ;;  %v9563_v29 = vshll.u32 %v20987_v44, 16  ;;  %v23781_v28 = vld [vmem:[%s26034_s4 + $0x80] sm:$0xff]  }
 0x3d4   : > { %v9567_v24 = vshrl.u32 %v20987_v44, 16  ;;  %v9513_v50 = vrot.slane %v9512_v26, 4  ;;  %v9527_v12 = vrot.slane %v9525_v40, 5  ;;  %v9587_v43 = vshll.u32 %v20988_v34, 16 }
 0x3d5   : > { %v9504_v31 = vsel %vm21913_vm15, %v9499_v58, %v9503_v61  ;;  %v9591_v45 = vshrl.u32 %v20988_v34, 16  ;;  %v9536_v30 = vor.u32 %v9535_v7, %v9532_v51  ;;  %v9549_v37 = vshll.u32 %v20989_v38, 16  ;;  %v9364_v7 = vld [vmem:[#allocation3 + $0x84] sm:$0xf] }
 0x3d6   : > { %v9556_v13 = vrot.slane %v9554_v4, 4  ;;  %v9559_v54 = vrot.slane %v9557_v49, 5  ;;  %v9578_v21 = vshrl.u32 %v9361_v14, 16  ;;  %v17600_v42 = vcombine.low %v9470_v60, %v9480_v59  ;;  %v20990_v49 = vld [vmem:[#allocation3 + $0x74] sm:$0x1] }
 0x3d7   : > { %v9494_v5 = vsel %vm21913_vm15, %v9489_v9, %v23743_v33  ;;  %v23788_v58 = vrot.slane %v9563_v29, 5  ;;  %v9569_v61 = vrot.slane %v9567_v24, 4  ;;  %v9518_v11 = vsel %vm21913_vm15, %v9513_v50, %v23751_v57 }
 0x3d8   : > { %v17601_v26 = vcombine.low %v9494_v5, %v9504_v31  ;;  %v23793_v40 = vrot.slane %v9587_v43, 5  ;;  %v9593_v51 = vrot.slane %v9591_v45, 4  ;;  %v9537_v4 = vrot.slane %v9536_v30, 4 }
 0x3d9   : > { %v9551_v59 = vrot.slane %v9549_v37, 5  ;;  %v9560_v33 = vor.u32 %v9559_v54, %v9556_v13  ;;  %v9573_v9 = vshll.u32 %v20990_v49, 16  ;;  %v9580_v31 = vrot.slane %v9578_v21, 4  ;;  %v20993_v21 = vld [vmem:[#allocation3 + $0x80] sm:$0x1] }
 0x3da   : > { %19321 = vmatmul.mubr.msk.bf16.vlgmr.msra.gmra.mrb[0].mxu1 %vm1958_vm12, %v17598_v47  ;;  %v9546_v47 = vor.u32 %v9545_v36, %v23762_v8  ;;  %v9570_v57 = vor.u32 %v9569_v61, %v23788_v58  ;;  %v9602_v29 = vshrl.u32 %v9364_v7, 16  ;;  %v9605_v24 = vshll.u32 %v9364_v7, 16 }
 0x3db   : > { %19353 = vmatpush3.bf16.msra.mxu1 %v23578_v3  ;;  %19324 = vmatprep.mubr.msk.bf16.mxu1 %vm1958_vm12, %v17599_v32  ;;  %v9528_v3 = vsel %vm21913_vm15, %v9523_v25, %v9527_v12  ;;  %v9581_v32 = vshll.u32 %v9361_v14, 16  ;;  %v9367_v25 = vld [vmem:[#allocation3 + $0x90] sm:$0xf]  ;;  %v20991_v14 = vld [vmem:[#allocation3 + $0x88] sm:$0xf]  ;;  %v9594_v50 = vor.u32 %v9593_v51, %v23793_v40  ;;  %v9542_v45 = vsel %vm21913_vm15, %v9537_v4, %v23762_v8 }
 0x3dc   : > { %19354 = vmatprep.subr.bf16.mxu1 %v20803_v53  ;;  %v17602_v36 = vcombine.low %v9518_v11, %v9528_v3  ;;  %v9547_v60 = vrot.slane %v9546_v47, 4  ;;  %v9615_v12 = vshrl.u32 %v20991_v14, 16  ;;  %v9626_v34 = vshrl.u32 %v9367_v25, 16  ;;  %v20992_v47 = vld [vmem:[#allocation3 + $0x94] sm:$0xf] }
 0x3dd   : > { %v9583_v44 = vrot.slane %v9581_v32, 5  ;;  %v9629_v43 = vshll.u32 %v9367_v25, 16  ;;  %v9635_v38 = vshll.u32 %v20992_v47, 16  ;;  %v9639_v37 = vshrl.u32 %v20992_v47, 16 }
 0x3de   : > { %v9552_v30 = vsel %vm21913_vm15, %v9547_v60, %v9551_v59  ;;  %v9561_v13 = vrot.slane %v9560_v33, 4  ;;  %v9575_v3 = vrot.slane %v9573_v9, 5  ;;  %v9597_v32 = vshll.u32 %v20993_v21, 16  ;;  %v20996_v21 = vld [vmem:[#allocation3 + $0x98] sm:$0x1] }
 0x3df   : > { %19355 = vmatpush3.bf16.msra.mxu1 %v20803_v53  ;;  %v9611_v53 = vshll.u32 %v20991_v14, 16  ;;  %v9584_v54 = vor.u32 %v9583_v44, %v9580_v31  ;;  %v9571_v5 = vrot.slane %v9570_v57, 4  ;;  %v9604_v61 = vrot.slane %v9602_v29, 4  ;;  %v20994_v31 = vld [vmem:[#allocation3 + $0xa0] sm:$0xf] }
 0x3e0   : > { %19388 = vmatprep.subr.bf16.mxu1 %v23781_v28  ;;  %v9595_v51 = vrot.slane %v9594_v50, 4  ;;  %v9617_v7 = vrot.slane %v9615_v12, 4  ;;  %v9628_v8 = vrot.slane %v9626_v34, 4  ;;  %v9631_v4 = vrot.slane %v9629_v43, 5 }
 0x3e1   : > { %v23805_v11 = vrot.slane %v9611_v53, 5  ;;  %v23807_v25 = vrot.slane %v9635_v38, 5  ;;  %v9641_v60 = vrot.slane %v9639_v37, 4  ;;  %v17603_v33 = vcombine.low %v9542_v45, %v9552_v30 }
 0x3e2   : > { %19325 = vmatmul.mubr.msk.bf16.gmra.mrb[4].mxu1 %vm1958_vm12, %v17600_v42  ;;  %v9370_v42 = vld [vmem:[#allocation3 + $0x9c] sm:$0xf]  ;;  %v9599_v9 = vrot.slane %v9597_v32, 5  ;;  %v9659_v44 = vshll.u32 %v20994_v31, 16  ;;  %v9663_v14 = vshrl.u32 %v20994_v31, 16  ;;  %v9566_v57 = vsel %vm21913_vm15, %v9561_v13, %v23788_v58 }
 0x3e3   : > { %19328 = vmatprep.mubr.msk.bf16.mxu1 %vm1958_vm12, %v17601_v26  ;;  %v9607_v26 = vrot.slane %v9605_v24, 5  ;;  %v9650_v59 = vshrl.u32 %v9370_v42, 16  ;;  %v9653_v49 = vshll.u32 %v9370_v42, 16  ;;  %v9585_v29 = vrot.slane %v9584_v54, 4  ;;  %v9373_v24 = vld [vmem:[#allocation3 + $0xa8] sm:$0xf] }
 0x3e4   : > { %v9576_v53 = vsel %vm21913_vm15, %v9571_v5, %v9575_v3  ;;  %v9600_v50 = vsel %vm21913_vm15, %v9595_v51, %v9599_v9  ;;  %v9618_v34 = vor.u32 %v9617_v7, %v23805_v11  ;;  %v9632_v43 = vor.u32 %v9631_v4, %v9628_v8  ;;  %v20995_v13 = vld [vmem:[#allocation3 + $0x8c] sm:$0x1] }
 0x3e5   : > { %v9608_v12 = vor.u32 %v9607_v26, %v9604_v61  ;;  %v9652_v45 = vrot.slane %v9650_v59, 4  ;;  %v9655_v30 = vrot.slane %v9653_v49, 5  ;;  %v23820_v47 = vrot.slane %v9659_v44, 5  ;;  %v20997_v32 = vld [vmem:[#allocation3 + $0xac] sm:$0xf] }
 0x3e6   : > { %v9665_v58 = vrot.slane %v9663_v14, 4  ;;  %v9674_v38 = vshrl.u32 %v9373_v24, 16  ;;  %v9677_v37 = vshll.u32 %v9373_v24, 16  ;;  %v9621_v54 = vshll.u32 %v20995_v13, 16  ;;  %v9376_v24 = vld [vmem:[#allocation3 + $0xb4] sm:$0xf] }
 0x3e7   : > { %v9645_v3 = vshll.u32 %v20996_v21, 16  ;;  %v9683_v42 = vshll.u32 %v20997_v32, 16  ;;  %v9687_v5 = vshrl.u32 %v20997_v32, 16  ;;  %v17604_v61 = vcombine.low %v9566_v57, %v9576_v53  ;;  %v21000_v21 = vld [vmem:[#allocation3 + $0xc4] sm:$0xf] }
 0x3e8   : > { %v9590_v26 = vsel %vm21913_vm15, %v9585_v29, %v23793_v40  ;;  %v9609_v51 = vrot.slane %v9608_v12, 4  ;;  %v9619_v8 = vrot.slane %v9618_v34, 4  ;;  %v9633_v4 = vrot.slane %v9632_v43, 4  ;;  %v20998_v29 = vld [vmem:[#allocation3 + $0xa4] sm:$0x1] }
 0x3e9   : > { %v17605_v7 = vcombine.low %v9590_v26, %v9600_v50  ;;  %v9656_v59 = vor.u32 %v9655_v30, %v9652_v45  ;;  %v9666_v49 = vor.u32 %v9665_v58, %v23820_v47  ;;  %v9679_v9 = vrot.slane %v9677_v37, 5  ;;  %v20999_v50 = vld [vmem:[#allocation3 + $0xb8] sm:$0xf]  ;;  %v9379_v30 = vld [vmem:[#allocation3 + $0xc0] sm:$0xf] }
 0x3ea   : > { %19329 = vmatmul.mubr.msk.bf16.gmra.mrb[8].mxu1 %vm1958_vm12, %v17602_v36  ;;  %v9642_v36 = vor.u32 %v9641_v60, %v23807_v25  ;;  %v9623_v31 = vrot.slane %v9621_v54, 5  ;;  %v9647_v44 = vrot.slane %v9645_v3, 5  ;;  %v23827_v14 = vrot.slane %v9683_v42, 5 }
 0x3eb   : > { %19332 = vmatprep.mubr.msk.bf16.mxu1 %vm1958_vm12, %v17603_v33  ;;  %v9676_v33 = vrot.slane %v9674_v38, 4  ;;  %v9689_v57 = vrot.slane %v9687_v5, 4  ;;  %v9614_v40 = vsel %vm21913_vm15, %v9609_v51, %v23805_v11  ;;  %v9669_v53 = vshll.u32 %v20998_v29, 16  ;;  %v21001_v5 = vld [vmem:[#allocation3 + $0xb0] sm:$0x1] }
 0x3ec   : > { %v9643_v60 = vrot.slane %v9642_v36, 4  ;;  %v9707_v12 = vshll.u32 %v20999_v50, 16  ;;  %v9624_v34 = vsel %vm21913_vm15, %v9619_v8, %v9623_v31  ;;  %v9638_v43 = vsel %vm21913_vm15, %v9633_v4, %v23807_v25 }
 0x3ed   : > { %v9711_v45 = vshrl.u32 %v20999_v50, 16  ;;  %v9657_v58 = vrot.slane %v9656_v59, 4  ;;  %v9667_v38 = vrot.slane %v9666_v49, 4  ;;  %v9680_v37 = vor.u32 %v9679_v9, %v9676_v33  ;;  %v23841_v59 = vld [vmem:[#allocation3 + $0xd0] sm:$0xf] }
 0x3ee   : > { %v9648_v36 = vsel %vm21913_vm15, %v9643_v60, %v9647_v44  ;;  %v9698_v11 = vshrl.u32 %v9376_v24, 16  ;;  %v9690_v13 = vor.u32 %v9689_v57, %v23827_v14  ;;  %v9701_v54 = vshll.u32 %v9376_v24, 16  ;;  %v9382_v60 = vld [vmem:[#allocation3 + $0xcc] sm:$0xf] }
 0x3ef   : > { %v9731_v3 = vshll.u32 %v21000_v21, 16  ;;  %v9735_v32 = vshrl.u32 %v21000_v21, 16  ;;  %v9671_v42 = vrot.slane %v9669_v53, 5  ;;  %v9709_v26 = vrot.slane %v9707_v12, 5 }
 0x3f0   : > { %v9722_v25 = vshrl.u32 %v9379_v30, 16  ;;  %v17606_v51 = vcombine.low %v9614_v40, %v9624_v34  ;;  %v9713_v8 = vrot.slane %v9711_v45, 4  ;;  %v9725_v4 = vshll.u32 %v9379_v30, 16 }
 0x3f1   : > { %v9662_v49 = vsel %vm21913_vm15, %v9657_v58, %v23820_v47  ;;  %v9672_v33 = vsel %vm21913_vm15, %v9667_v38, %v9671_v42  ;;  %v9681_v9 = vrot.slane %v9680_v37, 4  ;;  %v9700_v31 = vrot.slane %v9698_v11, 4  ;;  %v21002_v38 = vld [vmem:[#allocation3 + $0xbc] sm:$0x1] }
 0x3f2   : > { %19333 = vmatmul.mubr.msk.bf16.gmra.mrb[12].mxu1 %vm1958_vm12, %v17604_v61  ;;  %v9693_v61 = vshll.u32 %v21001_v5, 16  ;;  %v9691_v44 = vrot.slane %v9690_v13, 4  ;;  %v9703_v57 = vrot.slane %v9701_v54, 5  ;;  %v9733_v24 = vrot.slane %v9731_v3, 5 }
 0x3f3   : > { %19336 = vmatprep.mubr.msk.bf16.mxu1 %vm1958_vm12, %v17605_v7  ;;  %v17607_v7 = vcombine.low %v9638_v43, %v9648_v36  ;;  %v9737_v40 = vrot.slane %v9735_v32, 4  ;;  %v9746_v29 = vshrl.u32 %v9382_v60, 16  ;;  %v9749_v53 = vshll.u32 %v9382_v60, 16 }
 0x3f4   : > { %v9755_v50 = vshll.u32 %v23841_v59, 16  ;;  %v9759_v12 = vshrl.u32 %v23841_v59, 16  ;;  %v9695_v47 = vrot.slane %v9693_v61, 5  ;;  %v9714_v34 = vor.u32 %v9713_v8, %v9709_v26  ;;  %v21003_v61 = vld [vmem:[#allocation3 + $0xc8] sm:$0x1] }
 0x3f5   : > { %v9724_v43 = vrot.slane %v9722_v25, 4  ;;  %v9727_v36 = vrot.slane %v9725_v4, 5  ;;  %v17608_v45 = vcombine.low %v9662_v49, %v9672_v33  ;;  %v9704_v58 = vor.u32 %v9703_v57, %v9700_v31  ;;  %v21004_v57 = vld [vmem:[#allocation2 + $0x1c] sm:$0xf] }
 0x3f6   : > { %v9696_v30 = vsel %vm21913_vm15, %v9691_v44, %v9695_v47  ;;  %v9717_v37 = vshll.u32 %v21002_v38, 16  ;;  %v9738_v11 = vor.u32 %v9737_v40, %v9733_v24  ;;  %v9748_v13 = vrot.slane %v9746_v29, 4  ;;  %v10381_v29 = vld [vmem:[#allocation2 + $0x18] sm:$0xe] }
 0x3f7   : > { %v9751_v54 = vrot.slane %v9749_v53, 5  ;;  %v9757_v21 = vrot.slane %v9755_v50, 5  ;;  %v9761_v3 = vrot.slane %v9759_v12, 4  ;;  %v9686_v32 = vsel %vm21913_vm15, %v9681_v9, %v23827_v14 }
 0x3f8   : > { %v9715_v42 = vrot.slane %v9714_v34, 4  ;;  %v9728_v5 = vor.u32 %v9727_v36, %v9724_v43  ;;  %v9741_v25 = vshll.u32 %v21003_v61, 16  ;;  %v9705_v8 = vrot.slane %v9704_v58, 4  ;;  %v21005_v58 = vld [vmem:[#allocation2 + $0x20] sm:$0x1] }
 0x3f9   : > { %v9719_v4 = vrot.slane %v9717_v37, 5  ;;  %v9739_v60 = vrot.slane %v9738_v11, 4  ;;  %v9752_v49 = vor.u32 %v9751_v54, %v9748_v13  ;;  %v9762_v33 = vor.u32 %v9761_v3, %v9757_v21  ;;  %v21006_v13 = vld [vmem:[#allocation2 + $0x28] sm:$0xf]  ;;  %v10383_v61 = vld [vmem:[#allocation2 + $0x30] sm:$0xe] }
 0x3fa   : > { %19337 = vmatmul.mubr.msk.bf16.gmra.mrb[16].mxu1 %vm1958_vm12, %v17606_v51  ;;  %v23857_v51 = vld [vmem:[#allocation3 + $0xd4] sm:$0x1]  ;;  %v9729_v9 = vrot.slane %v9728_v5, 4  ;;  %v9743_v44 = vrot.slane %v9741_v25, 5  ;;  %v10447_v40 = vrot.slane %v21004_v57, 5  ;;  %v9710_v53 = vsel %vm21913_vm15, %v9705_v8, %v9709_v26 }
 0x3fb   : > { %19340 = vmatprep.mubr.msk.bf16.mxu1 %vm1958_vm12, %v17607_v7  ;;  %v17609_v7 = vcombine.low %v9686_v32, %v9696_v30  ;;  %v9765_v31 = vshll.u32 %v23857_v51, 16  ;;  %v9720_v14 = vsel %vm21913_vm15, %v9715_v42, %v9719_v4  ;;  %v9753_v47 = vrot.slane %v9752_v49, 4  ;;  %v10382_v32 = vld [vmem:[#allocation2 + $0x24] sm:$0xe]  ;;  %v21007_v42 = vld [vmem:[#allocation2 + $0x34] sm:$0xf] }
 0x3fc   : > { %v9744_v50 = vsel %vm21913_vm15, %v9739_v60, %v9743_v44  ;;  %v17610_v12 = vcombine.low %v9710_v53, %v9720_v14  ;;  %v9763_v34 = vrot.slane %v9762_v33, 4  ;;  %v9734_v36 = vsel %vm21913_vm15, %v9729_v9, %v9733_v24  ;;  %v20806_v9 = vld [vmem:[%s26036_s6] sm:$0xff]   ;;  %v20807_v44 = vld [vmem:[%s26036_s6 + $0x8] sm:$0xff]  }
 0x3fd   : > { %v9767_v43 = vrot.slane %v9765_v31, 5  ;;  %v10449_v30 = vrot.slane %v10447_v40, 4  ;;  %v10450_v38 = vrot.slane %v21005_v58, 5  ;;  %v17611_v37 = vcombine.low %v9734_v36, %v9744_v50  ;;  %v21009_v31 = vld [vmem:[#allocation2 + $0x38] sm:$0x1]  ;;  %19424 = vmatprep.subr.bf16.mxu0 %v20806_v9 }
 0x3fe   : > { %v9758_v26 = vsel %vm21913_vm15, %v9753_v47, %v9757_v21  ;;  %v10454_v54 = vrot.slane %v21006_v13, 5  ;;  %v10461_v5 = vrot.slane %v21007_v42, 5  ;;  %v17632_v8 = vrot.slane %v10382_v32, 9  ;;  %v21008_v21 = vld [vmem:[#allocation2 + $0x2c] sm:$0x1]  ;;  %19425 = vmatpush3.bf16.msra.mxu0 %v20806_v9 }
 0x3ff   : > { %v9768_v11 = vsel %vm21913_vm15, %v9763_v34, %v9767_v43  ;;  %v10451_v3 = vsel %vm21573_vm8, %v10449_v30, %v10450_v38  ;;  %v10457_v60 = vrot.slane %v21008_v21, 5  ;;  %v17633_v49 = vrot.slane %v10383_v61, 9  ;;  %v10384_v47 = vld [vmem:[#allocation2 + $0x3c] sm:$0xe]  ;;  %v21011_v34 = vld [vmem:[#allocation2 + $0x4c] sm:$0xf]  ;;  %19426 = vmatprep.subr.bf16.mxu0 %v20807_v44 }
 0x400   : > { %v17612_v25 = vcombine.low %v9758_v26, %v9768_v11  ;;  %v10456_v4 = vrot.slane %v10454_v54, 4  ;;  %v10463_v33 = vrot.slane %v10461_v5, 4  ;;  %v10464_v14 = vrot.slane %v21009_v31, 5  ;;  %v10385_v36 = vld [vmem:[#allocation2 + $0x48] sm:$0xe] }
 0x401   : > { %v10455_v57 = vsel %vm21573_vm8, %v17632_v8, %v10454_v54  ;;  %v10462_v50 = vsel %vm21573_vm8, %v17633_v49, %v10461_v5  ;;  %v10475_v43 = vrot.slane %v21011_v34, 5  ;;  %v17634_v58 = vrot.slane %v10384_v47, 9  ;;  %v21013_v54 = vld [vmem:[#allocation2 + $0x50] sm:$0x1]  ;;  %v21014_v5 = vld [vmem:[#allocation2 + $0x58] sm:$0xf] }
 0x402   : > { %19341 = vmatmul.mubr.msk.bf16.gmra.mrb[20].mxu1 %vm1958_vm12, %v17608_v45  ;;  %v17631_v45 = vrot.slane %v10381_v29, 9  ;;  %v21010_v29 = vld [vmem:[#allocation2 + $0x40] sm:$0xf]  ;;  %v17635_v11 = vrot.slane %v10385_v36, 9  ;;  %19427 = vmatpush3.bf16.msra.mxu0 %v20807_v44  ;;  %v10482_v61 = vrot.slane %v21014_v5, 5 }
 0x403   : > { %19344 = vmatprep.mubr.msk.bf16.mxu1 %vm1958_vm12, %v17609_v7  ;;  %v10468_v53 = vrot.slane %v21010_v29, 5  ;;  %v10477_v13 = vrot.slane %v10475_v43, 4  ;;  %v10386_v8 = vld [vmem:[#allocation2 + $0x54] sm:$0xe]  ;;  %v10388_v36 = vld [vmem:[#allocation2 + $0x6c] sm:$0xe] }
 0x404   : > { %v10448_v24 = vsel %vm21573_vm8, %v17631_v45, %v10447_v40  ;;  %v10458_v40 = vsel %vm21573_vm8, %v10456_v4, %v10457_v60  ;;  %v21015_v4 = vld [vmem:[#allocation2 + $0x64] sm:$0xf]  ;;  %v10484_v31 = vrot.slane %v10482_v61, 4 }
 0x405   : > { %v17667_v7 = vcombine.low %v10448_v24, %v10451_v3  ;;  %v17668_v45 = vcombine.low %v10455_v57, %v10458_v40  ;;  %v10470_v38 = vrot.slane %v10468_v53, 4  ;;  %v10478_v24 = vrot.slane %v21013_v54, 5  ;;  %v20805_v3 = vld [vmem:[%s26034_s4 + $0x88] sm:$0xff]  }
 0x406   : > { %v10469_v32 = vsel %vm21573_vm8, %v17634_v58, %v10468_v53  ;;  %v10489_v21 = vrot.slane %v21015_v4, 5  ;;  %v21017_v40 = vld [vmem:[#allocation2 + $0x68] sm:$0x1]  ;;  %v10389_v58 = vld [vmem:[#allocation2 + $0x78] sm:$0xe] }
 0x407   : > { %v10492_v29 = vrot.slane %v21017_v40, 5 }
 0x408   : > { %v10491_v57 = vrot.slane %v10489_v21, 4 }
 0x40a   : > { %19345 = vmatmul.mubr.msk.bf16.gmra.mrb[24].mxu1 %vm1958_vm12, %v17610_v12  ;;  %v10465_v12 = vsel %vm21573_vm8, %v10463_v33, %v10464_v14  ;;  %v17636_v33 = vrot.slane %v10386_v8, 9  ;;  %v21016_v14 = vld [vmem:[#allocation2 + $0x5c] sm:$0x1] }
 0x40b   : > { %19348 = vmatprep.mubr.msk.bf16.mxu1 %vm1958_vm12, %v17611_v37  ;;  %v17669_v30 = vcombine.low %v10462_v50, %v10465_v12  ;;  %v21012_v37 = vld [vmem:[#allocation2 + $0x44] sm:$0x1]  ;;  %v10485_v9 = vrot.slane %v21016_v14, 5  ;;  %v21018_v12 = vld [vmem:[#allocation2 + $0x70] sm:$0xf] }
 0x40c   : > { %v10471_v26 = vrot.slane %v21012_v37, 5  ;;  %v10483_v53 = vsel %vm21573_vm8, %v17636_v33, %v10482_v61  ;;  %v10496_v47 = vrot.slane %v21018_v12, 5 }
 0x40d   : > { %v10486_v50 = vsel %vm21573_vm8, %v10484_v31, %v10485_v9 }
 0x40e   : > { %v10472_v42 = vsel %vm21573_vm8, %v10470_v38, %v10471_v26  ;;  %v17672_v38 = vcombine.low %v10483_v53, %v10486_v50  ;;  %v17638_v26 = vrot.slane %v10388_v36, 9  ;;  %v21025_v53 = vld [vmem:[#allocation2 + $0x98] sm:$0x1] }
 0x40f   : > { %v17670_v60 = vcombine.low %v10469_v32, %v10472_v42  ;;  %v21021_v32 = vld [vmem:[#allocation2 + $0x80] sm:$0x1]  ;;  %v10520_v50 = vrot.slane %v21025_v53, 5  ;;  %v10548_v53 = vrot.slane %v23676_v48, 5 }
 0x410   : > { %v10506_v42 = vrot.slane %v21021_v32, 5  ;;  %v10497_v5 = vsel %vm21573_vm8, %v17638_v26, %v10496_v47 }
 0x412   : > { %19349 = vmatmul.mubr.msk.bf16.gmra.mrb[28].mxu1 %vm1958_vm12, %v17612_v25  ;;  %v10476_v25 = vsel %vm21573_vm8, %v17635_v11, %v10475_v43  ;;  %v10493_v43 = vsel %vm21573_vm8, %v10491_v57, %v10492_v29  ;;  %v10498_v11 = vrot.slane %v10496_v47, 4 }
 0x413   : > { %19356 = vmatprep.mubr.msk.bf16.mxu1 %vm1958_vm12, %v17667_v7  ;;  %v10479_v7 = vsel %vm21573_vm8, %v10477_v13, %v10478_v24  ;;  %v21020_v13 = vld [vmem:[#allocation2 + $0x74] sm:$0x1]  ;;  %v17639_v24 = vrot.slane %v10389_v58, 9  ;;  %v21027_v58 = vld [vmem:[#allocation2 + $0xac] sm:$0xf] }
 0x414   : > { %v17671_v49 = vcombine.low %v10476_v25, %v10479_v7  ;;  %v10499_v54 = vrot.slane %v21020_v13, 5  ;;  %v21022_v25 = vld [vmem:[#allocation2 + $0x88] sm:$0xf] }
 0x415   : > { %v10510_v7 = vrot.slane %v21022_v25, 5 }
 0x416   : > { %v10500_v61 = vsel %vm21573_vm8, %v10498_v11, %v10499_v54 }
 0x417   : > { %v17674_v33 = vcombine.low %v10497_v5, %v10500_v61  ;;  %v10512_v9 = vrot.slane %v10510_v7, 4  ;;  %v21029_v5 = vld [vmem:[#allocation2 + $0xb0] sm:$0x1] }
 0x418   : > { %v10534_v61 = vrot.slane %v21029_v5, 5 }
 0x41a   : > { %19357 = vmatmul.mubr.msk.bf16.vlgmr.msra.gmra.mrb[0].mxu1 %vm1958_vm12, %v17668_v45  ;;  %v21019_v45 = vld [vmem:[#allocation2 + $0x7c] sm:$0xf] }
 0x41b   : > { %19389 = vmatpush3.bf16.msra.mxu1 %v23781_v28  ;;  %19360 = vmatprep.mubr.msk.bf16.mxu1 %vm1958_vm12, %v17669_v30  ;;  %v10387_v28 = vld [vmem:[#allocation2 + $0x60] sm:$0xe]  ;;  %v10503_v30 = vrot.slane %v21019_v45, 5 }
 0x41c   : > { %19390 = vmatprep.subr.bf16.mxu1 %v20805_v3  ;;  %v17637_v44 = vrot.slane %v10387_v28, 9  ;;  %v21023_v28 = vld [vmem:[#allocation2 + $0x94] sm:$0xf] }
 0x41d   : > { %v10504_v8 = vsel %vm21573_vm8, %v17639_v24, %v10503_v30  ;;  %v21028_v24 = vld [vmem:[#allocation2 + $0xa4] sm:$0x1] }
 0x41e   : > { %v10490_v34 = vsel %vm21573_vm8, %v17637_v44, %v10489_v21  ;;  %v10390_v21 = vld [vmem:[#allocation2 + $0x84] sm:$0xe]  ;;  %v21024_v44 = vld [vmem:[#allocation2 + $0x8c] sm:$0x1] }
 0x41f   : > { %19391 = vmatpush3.bf16.msra.mxu1 %v20805_v3  ;;  %v17673_v37 = vcombine.low %v10490_v34, %v10493_v43  ;;  %v10505_v3 = vrot.slane %v10503_v30, 4  ;;  %v17640_v14 = vrot.slane %v10390_v21, 9  ;;  %v10513_v57 = vrot.slane %v21024_v44, 5  ;;  %v21026_v34 = vld [vmem:[#allocation2 + $0xa0] sm:$0xf] }
 0x420   : > { %v10524_v43 = vrot.slane %v21026_v34, 5  ;;  %v10392_v30 = vld [vmem:[#allocation2 + $0x9c] sm:$0xe]  ;;  %v10396_v34 = vld [vmem:[#allocation2 + $0xcc] sm:$0xe] }
 0x421   : > { %v10507_v4 = vsel %vm21573_vm8, %v10505_v3, %v10506_v42  ;;  %v10511_v12 = vsel %vm21573_vm8, %v17640_v14, %v10510_v7  ;;  %v10514_v47 = vsel %vm21573_vm8, %v10512_v9, %v10513_v57  ;;  %v17642_v13 = vrot.slane %v10392_v30, 9 }
 0x422   : > { %19361 = vmatmul.mubr.msk.bf16.gmra.mrb[4].mxu1 %vm1958_vm12, %v17670_v60  ;;  %v10517_v60 = vrot.slane %v21023_v28, 5  ;;  %v17675_v31 = vcombine.low %v10504_v8, %v10507_v4  ;;  %v17676_v26 = vcombine.low %v10511_v12, %v10514_v47  ;;  %v10526_v54 = vrot.slane %v10524_v43, 4  ;;  %v21030_v8 = vld [vmem:[#allocation2 + $0xb8] sm:$0xf] }
 0x423   : > { %19364 = vmatprep.mubr.msk.bf16.mxu1 %vm1958_vm12, %v17671_v49  ;;  %v10391_v49 = vld [vmem:[#allocation2 + $0x90] sm:$0xe]  ;;  %v10527_v3 = vrot.slane %v21028_v24, 5  ;;  %v10525_v25 = vsel %vm21573_vm8, %v17642_v13, %v10524_v43  ;;  %v10538_v4 = vrot.slane %v21030_v8, 5  ;;  %v10541_v57 = vrot.slane %v23658_v20, 5 }
 0x424   : > { %v17641_v40 = vrot.slane %v10391_v49, 9  ;;  %v10519_v29 = vrot.slane %v10517_v60, 4  ;;  %v10545_v49 = vrot.slane %v23646_v41, 5  ;;  %v10552_v12 = vrot.slane %v23668_v2, 5  ;;  %v21031_v43 = vld [vmem:[#allocation3 + $0x1c] sm:$0xf] }
 0x425   : > { %v10528_v7 = vsel %vm21573_vm8, %v10526_v54, %v10527_v3  ;;  %v10540_v44 = vrot.slane %v10538_v4, 4  ;;  %v17646_v30 = vrot.slane %v10396_v34, 9  ;;  %v21032_v13 = vld [vmem:[#allocation3 + $0x20] sm:$0x1]  ;;  %v10630_v24 = vrot.slane %v23685_v16, 5  ;;  %v26200_v34 = vld [vmem:[#allocation11_spill] sm:$0xff] }
 0x426   : > { %v10518_v36 = vsel %vm21573_vm8, %v17641_v40, %v10517_v60  ;;  %v10521_v45 = vsel %vm21573_vm8, %v10519_v29, %v10520_v50  ;;  %v10394_v60 = vld [vmem:[#allocation2 + $0xb4] sm:$0xe]  ;;  %v10547_v29 = vrot.slane %v10545_v49, 4  ;;  %v10626_v54 = vrot.slane %v21032_v13, 5 }
 0x427   : > { %v17677_v11 = vcombine.low %v10518_v36, %v10521_v45  ;;  %v17644_v9 = vrot.slane %v10394_v60, 9  ;;  %v10542_v41 = vsel %vm21573_vm8, %v10540_v44, %v10541_v57  ;;  %v10623_v36 = vrot.slane %v21031_v43, 5  ;;  %v26194_v44 = vld [vmem:[#allocation51_spill] sm:$0xff]  ;;  %v26195_v57 = vld [vmem:[#allocation50_spill] sm:$0xff]  ;;  %v26201_v43 = vld [vmem:[#allocation12_spill] sm:$0xff] }
 0x428   : > { %v10549_v20 = vsel %vm21573_vm8, %v10547_v29, %v10548_v53  ;;  %v10553_v2 = vsel %vm21573_vm8, %v17646_v30, %v10552_v12  ;;  %v26177_v60 = vcombine.low %v23328_v52, %v23336_v62  ;;  %v26182_v52 = vcombine.low %v23374_v63, %v23384_v22  ;;  %v26197_v29 = vld [vmem:[#allocation53_spill] sm:$0xff]  ;;  %v26198_v53 = vld [vmem:[#allocation52_spill] sm:$0xff] }
 0x429   : > { %v10539_v50 = vsel %vm21573_vm8, %v17644_v9, %v10538_v4  ;;  %v10728_v22 = vrot.slane %v23841_v59, 5  ;;  %v10731_v9 = vrot.slane %v23857_v51, 5  ;;  %v20808_v51 = vld [vmem:[#allocation4] sm:$0xff]  }
 0x42a   : > { %19365 = vmatmul.mubr.msk.bf16.gmra.mrb[8].mxu1 %vm1958_vm12, %v17672_v38  ;;  %v10531_v38 = vrot.slane %v21027_v58, 5  ;;  %v17680_v48 = vcombine.low %v10539_v50, %v10542_v41  ;;  %v10554_v58 = vrot.slane %v10552_v12, 4  ;;  %v26199_v50 = vcombine.low %v26197_v29, %v26198_v53  ;;  %19428 = vmatprep.mubr.msk.bf16.mxu0 %vm1958_vm12, %v20808_v51  ;;  %v26206_v13 = vld [vmem:[#allocation17_spill] sm:$0xff] }
 0x42b   : > { %19368 = vmatprep.mubr.msk.bf16.mxu1 %vm1958_vm12, %v17673_v37  ;;  %v10393_v37 = vld [vmem:[#allocation2 + $0xa8] sm:$0xe] }
 0x42c   : > { %v17643_v32 = vrot.slane %v10393_v37, 9  ;;  %v10533_v42 = vrot.slane %v10531_v38, 4  ;;  %v10625_v37 = vrot.slane %v10623_v36, 4 }
 0x42e   : > { %v10532_v21 = vsel %vm21573_vm8, %v17643_v32, %v10531_v38  ;;  %v10535_v28 = vsel %vm21573_vm8, %v10533_v42, %v10534_v61  ;;  %v10555_v38 = vrot.slane %v23698_v27, 5  ;;  %v10627_v27 = vsel %vm21573_vm8, %v10625_v37, %v10626_v54  ;;  %v26204_v37 = vld [vmem:[#allocation15_spill] sm:$0xff] }
 0x42f   : > { %v17679_v14 = vcombine.low %v10532_v21, %v10535_v28  ;;  %v10632_v61 = vrot.slane %v10630_v24, 4  ;;  %v26176_v28 = vcombine.low %v23318_v1, %v23322_v15  ;;  %v26180_v1 = vcombine.low %v23358_v56, %v23364_v10  ;;  %v26188_v56 = vld [vmem:[#allocation46_spill] sm:$0xff]  ;;  %v26189_v10 = vld [vmem:[#allocation47_spill] sm:$0xff] }
 0x430   : > { %v26181_v15 = vcombine.low %v23370_v46, %v23378_v18  ;;  %v26190_v18 = vcombine.low %v26188_v56, %v26189_v10  ;;  %v26191_v46 = vld [vmem:[#allocation48_spill] sm:$0xff] }
 0x431   : > { %v26217_v56 = vld [vmem:[#allocation28_spill] sm:$0xff] }
 0x432   : > { %19369 = vmatmul.mubr.msk.bf16.gmra.mrb[12].mxu1 %vm1958_vm12, %v17674_v33  ;;  %v10395_v33 = vld [vmem:[#allocation2 + $0xc0] sm:$0xe] }
 0x433   : > { %19372 = vmatprep.mubr.msk.bf16.mxu1 %vm1958_vm12, %v17675_v31  ;;  %v17678_v31 = vcombine.low %v10525_v25, %v10528_v7  ;;  %v17645_v40 = vrot.slane %v10395_v33, 9  ;;  %v10558_v25 = vld [vmem:[#allocation3 + $0x24] sm:$0xe]  ;;  %v10633_v7 = vrot.slane %v23702_v55, 5  ;;  %v26178_v55 = vcombine.low %v23332_v0, %v23343_v6  ;;  %v26183_v0 = vld [vmem:[#allocation43_spill] sm:$0xff]  ;;  %v26185_v6 = vld [vmem:[#allocation44_spill] sm:$0xff] }
 0x434   : > { %v17648_v8 = vrot.slane %v10558_v25, 9  ;;  %v26184_v62 = vcombine.low %v23398_v17, %v26183_v0  ;;  %v26192_v33 = vld [vmem:[#allocation49_spill] sm:$0xff]  ;;  %v10572_v17 = vld [vmem:[#allocation3 + $0xcc] sm:$0xe] }
 0x435   : > { %v10546_v47 = vsel %vm21573_vm8, %v17645_v40, %v10545_v49  ;;  %v10634_v16 = vsel %vm21573_vm8, %v10632_v61, %v10633_v7  ;;  %v26179_v49 = vcombine.low %v23350_v39, %v23354_v35  ;;  %v26186_v39 = vld [vmem:[#allocation45_spill] sm:$0xff]  ;;  %v26193_v63 = vcombine.low %v26191_v46, %v26192_v33  ;;  %v26219_v33 = vld [vmem:[#allocation30_spill] sm:$0xff] }
 0x436   : > { %v17681_v45 = vcombine.low %v10546_v47, %v10549_v20  ;;  %v10631_v4 = vsel %vm21573_vm8, %v17648_v8, %v10630_v24  ;;  %v26187_v35 = vcombine.low %v26185_v6, %v26186_v39  ;;  %v26196_v40 = vcombine.low %v26194_v44, %v26195_v57  ;;  %v24046_v47 = vld [vmem:[%s26036_s6 + $0x10] sm:$0xff]   ;;  %v21033_v20 = vld [vmem:[%s26035_s5] ss:$0 sm:$0xff]  ;;  %v26211_v8 = vld [vmem:[#allocation22_spill] sm:$0xff] }
 0x437   : > { %v17706_v21 = vcombine.low %v10631_v4, %v10634_v16  ;;  %19460 = vmatprep.subr.bf16.mxu0 %v24046_v47  ;;  %v24062_v54 = vadd.f32 %v21033_v20, %v26206_v13  ;;  %v12336_v24 = vld [vmem:[#allocation4] sm:$0xf]  ;;  %v24077_v16 = vadd.f32 %v21033_v20, %v26211_v8  ;;  %v26212_v4 = vld [vmem:[#allocation23_spill] sm:$0xff]  ;;  %v12338_v6 = vld [vmem:[#allocation4 + $0x8] sm:$0x1]  ;;  %v24095_v10 = vadd.f32 %v21033_v20, %v26217_v56 }
 0x438   : > { %v26210_v25 = vld [vmem:[#allocation21_spill] sm:$0xff]  ;;  %v12385_v39 = vshrl.u32 %v12336_v24, 16  ;;  %v26224_v13 = vld [vmem:[#allocation35_spill] sm:$0xff]  ;;  %v26227_v8 = vld [vmem:[#allocation38_spill] sm:$0xff] }
 0x439   : > { %v24074_v7 = vadd.f32 %v21033_v20, %v26210_v25  ;;  %v26222_v44 = vld [vmem:[#allocation33_spill] sm:$0xff] }
 0x43a   : > { %19373 = vmatmul.mubr.msk.bf16.gmra.mrb[16].mxu1 %vm1958_vm12, %v17676_v26  ;;  %v10556_v26 = vsel %vm21573_vm8, %v10554_v58, %v10555_v38  ;;  %v26203_v58 = vld [vmem:[#allocation14_spill] sm:$0xff]  ;;  %v24110_v57 = vadd.f32 %v21033_v20, %v26222_v44 }
 0x43b   : > { %19376 = vmatprep.mubr.msk.bf16.mxu1 %vm1958_vm12, %v17677_v11  ;;  %v10557_v11 = vld [vmem:[#allocation3 + $0x18] sm:$0xe]  ;;  %v17682_v3 = vcombine.low %v10553_v2, %v10556_v26  ;;  %v19754_v38 = vadd.f32 %v21033_v20, %v26203_v58  ;;  %v19756_v2 = vadd.f32 %v21033_v20, %v26204_v37  ;;  %v26205_v26 = vld [vmem:[#allocation16_spill] sm:$0xff]  ;;  %v24115_v37 = vrot.slane %v12385_v39, 4 }
 0x43c   : > { %v17647_v32 = vrot.slane %v10557_v11, 9  ;;  %v24059_v11 = vadd.f32 %v21033_v20, %v26205_v26 }
 0x43e   : > { %v10624_v42 = vsel %vm21573_vm8, %v17647_v32, %v10623_v36  ;;  %v19750_v36 = vadd.f32 %v21033_v20, %v26201_v43 }
 0x43f   : > { %v17705_v5 = vcombine.low %v10624_v42, %v10627_v27  ;;  %v26208_v27 = vld [vmem:[#allocation19_spill] sm:$0xff] }
 0x440   : > { %v24068_v42 = vadd.f32 %v21033_v20, %v26208_v27 }
 0x442   : > { %19377 = vmatmul.mubr.msk.bf16.gmra.mrb[20].mxu1 %vm1958_vm12, %v17678_v31  ;;  %v17662_v31 = vrot.slane %v10572_v17, 9 }
 0x443   : > { %19380 = vmatprep.mubr.msk.bf16.mxu1 %vm1958_vm12, %v17679_v14  ;;  %v10730_v14 = vrot.slane %v10728_v22, 4 }
 0x444   : > { %v10729_v41 = vsel %vm21573_vm8, %v17662_v31, %v10728_v22  ;;  %v26220_v22 = vld [vmem:[#allocation31_spill] sm:$0xff] }
 0x445   : > { %v10732_v59 = vsel %vm21573_vm8, %v10730_v14, %v10731_v9  ;;  %v24104_v17 = vadd.f32 %v21033_v20, %v26220_v22  ;;  %v26221_v14 = vld [vmem:[#allocation32_spill] sm:$0xff] }
 0x446   : > { %v17720_v12 = vcombine.low %v10729_v41, %v10732_v59  ;;  %v24107_v9 = vadd.f32 %v21033_v20, %v26221_v14 }
 0x44a   : > { %19381 = vmatmul.mubr.msk.bf16.gmra.mrb[24].mxu1 %vm1958_vm12, %v17680_v48  ;;  %v19748_v48 = vadd.f32 %v21033_v20, %v26200_v34  ;;  %v12404_v34 = vshll.u32 %v12338_v6, 16 }
 0x44b   : > { %19384 = vmatprep.mubr.msk.bf16.mxu1 %vm1958_vm12, %v17681_v45  ;;  %v26202_v45 = vld [vmem:[#allocation13_spill] sm:$0xff] }
 0x44c   : > { %v19752_v30 = vadd.f32 %v21033_v20, %v26202_v45 }
 0x452   : > { %19385 = vmatmul.mubr.msk.bf16.gmra.mrb[28].mxu1 %vm1958_vm12, %v17682_v3  ;;  %v26207_v3 = vld [vmem:[#allocation18_spill] sm:$0xff] }
 0x453   : > { %19392 = vmatprep.mubr.msk.bf16.mxu1 %vm1958_vm12, %v17705_v5  ;;  %v24065_v32 = vadd.f32 %v21033_v20, %v26207_v3  ;;  %v26209_v5 = vld [vmem:[#allocation20_spill] sm:$0xff] }
 0x454   : > { %v24071_v61 = vadd.f32 %v21033_v20, %v26209_v5  ;;  %v26225_v3 = vld [vmem:[#allocation36_spill] sm:$0xff] }
 0x455   : > { %v24123_v27 = vadd.f32 %v21033_v20, %v26225_v3 }
 0x45a   : > { %19393 = vmatmul.mubr.msk.bf16.vlgmr.msra.gmra.mrb[0].mxu1 %vm1958_vm12, %v17706_v21  ;;  %v24080_v21 = vadd.f32 %v21033_v20, %v26212_v4  ;;  %v24129_v4 = vadd.f32 %v21033_v20, %v26227_v8 }
 0x45b   : > { %19396 = vmatprep.mubr.msk.bf16.mxu1 %vm1958_vm12, %v26176_v28  ;;  %v26213_v28 = vld [vmem:[#allocation24_spill] sm:$0xff] }
 0x462   : > { %19397 = vmatmul.mubr.msk.bf16.gmra.mrb[4].mxu1 %vm1958_vm12, %v26177_v60  ;;  %v24083_v60 = vadd.f32 %v21033_v20, %v26213_v28 }
 0x463   : > { %19400 = vmatprep.mubr.msk.bf16.mxu1 %vm1958_vm12, %v26178_v55  ;;  %v26214_v55 = vld [vmem:[#allocation25_spill] sm:$0xff] }
 0x46a   : > { %19401 = vmatmul.mubr.msk.bf16.gmra.mrb[8].mxu1 %vm1958_vm12, %v26179_v49  ;;  %v24086_v49 = vadd.f32 %v21033_v20, %v26214_v55 }
 0x46b   : > { %19404 = vmatprep.mubr.msk.bf16.mxu1 %vm1958_vm12, %v26180_v1  ;;  %v26215_v1 = vld [vmem:[#allocation26_spill] sm:$0xff] }
 0x472   : > { %19405 = vmatmul.mubr.msk.bf16.gmra.mrb[12].mxu1 %vm1958_vm12, %v26181_v15  ;;  %v24089_v15 = vadd.f32 %v21033_v20, %v26215_v1 }
 0x473   : > { %19408 = vmatprep.mubr.msk.bf16.mxu1 %vm1958_vm12, %v26182_v52  ;;  %v26216_v52 = vld [vmem:[#allocation27_spill] sm:$0xff] }
 0x474   : > { %v24092_v0 = vadd.f32 %v21033_v20, %v26216_v52 }
 0x47a   : > { %19409 = vmatmul.mubr.msk.bf16.gmra.mrb[16].mxu1 %vm1958_vm12, %v26184_v62  ;;  %v12337_v62 = vld [vmem:[#allocation4 + $0x4] sm:$0xf] }
 0x47b   : > { %19412 = vmatprep.mubr.msk.bf16.mxu1 %vm1958_vm12, %v26187_v35  ;;  %v12388_v35 = vshll.u32 %v12336_v24, 16  ;;  %v12398_v51 = vshrl.u32 %v12337_v62, 16  ;;  %v24120_v24 = vadd.f32 %v21033_v20, %v26224_v13 }
 0x47d   : > { %v24117_v26 = vrot.slane %v12388_v35, 5 }
 0x47f   : > { %v12391_v35 = vor.u32 %v24117_v26, %v24115_v37 }
 0x482   : > { %19413 = vmatmul.mubr.msk.bf16.gmra.mrb[20].mxu1 %vm1958_vm12, %v26190_v18  ;;  %v26218_v18 = vld [vmem:[#allocation29_spill] sm:$0xff] }
 0x483   : > { %19416 = vmatprep.mubr.msk.bf16.mxu1 %vm1958_vm12, %v26193_v63  ;;  %v24098_v46 = vadd.f32 %v21033_v20, %v26218_v18  ;;  %v24101_v63 = vadd.f32 %v21033_v20, %v26219_v33 }
 0x48a   : > { %19417 = vmatmul.mubr.msk.bf16.gmra.mrb[24].mxu1 %vm1958_vm12, %v26196_v40  ;;  %v26223_v40 = vld [vmem:[#allocation34_spill] sm:$0xff] }
 0x48b   : > { %19420 = vmatprep.mubr.msk.bf16.mxu1 %vm1958_vm12, %v26199_v50  ;;  %v24113_v29 = vadd.f32 %v21033_v20, %v26223_v40 }
 0x492   : > { %19421 = vmatmul.mubr.msk.bf16.gmra.mrb[28].mxu1 %vm1958_vm12, %v17720_v12  ;;  %v12394_v12 = vshll.u32 %v12337_v62, 16  ;;  %v24133_v62 = vrot.slane %v12398_v51, 4 }
 0x494   : > { %v24131_v52 = vrot.slane %v12394_v12, 5 }
 0x52d   : > { %v19394_v31 = vpop.f32.mrb[0].mxu1 }
 0x52e   : > { %v19749_v53 = vadd.f32 %v19748_v48, %v19394_v31  ;;  %v11186_v50 = vpop.f32.mrb[1].mxu1 }
 0x52f   : > { %v19751_v41 = vadd.f32 %v19750_v36, %v11186_v50  ;;  %v19395_v59 = vpop.f32.mrb[2].mxu1  ;;  %v26226_v36 = vld [vmem:[#allocation37_spill] sm:$0xff]  ;;  %v11855_v50 = vld [vmem:[#allocation4 + $0x18] sm:$0xf] }
 0x530   : > { %v11347_v43 = vmax.f32 %v19749_v53, 0.0  ;;  %v19753_v45 = vadd.f32 %v19752_v30, %v19395_v59  ;;  %v11189_v58 = vpop.f32.mrb[3].mxu1  ;;  %v24126_v25 = vadd.f32 %v21033_v20, %v26226_v36 }
 0x531   : > { %v11345_v48 = vmax.f32 %v19751_v41, 0.0  ;;  %v19755_v5 = vadd.f32 %v19754_v38, %v11189_v58  ;;  %v24137_v38 = vrot.slane %v12404_v34, 5  ;;  %v11848_v58 = vld [vmem:[#allocation4 + $0xc] sm:$0xf] }
 0x532   : > { %v18199_v30 = vpack.c.bf16 %v11347_v43, %v11347_v43  ;;  %v11348_v28 = vmax.f32 %v19753_v45, 0.0 }
 0x533   : > { %v18197_v55 = vpack.c.bf16 %v11345_v48, %v11345_v48  ;;  %v11346_v1 = vmax.f32 %v19755_v5, 0.0  ;;  %v11859_v5 = vld [vmem:[#allocation4 + $0x20] sm:$0x1] }
 0x534   : > { %v11545_v6 = vshrl.u32 %v18199_v30, 16  ;;  %v18200_v39 = vpack.c.bf16 %v11348_v28, %v11348_v28  ;;  %v11548_v56 = vshll.u32 %v18199_v30, 16 }
 0x535   : > { %v11528_v18 = vshrl.u32 %v18197_v55, 16  ;;  %v11531_v33 = vshll.u32 %v18197_v55, 16  ;;  %v18198_v20 = vpack.c.bf16 %v11346_v1, %v11346_v1  ;;  %v19398_v22 = vpop.f32.mrb[4].mxu1  ;;  %v11852_v1 = vld [vmem:[#allocation4 + $0x14] sm:$0x1] }
 0x536   : > { %v11547_v31 = vrot.slane %v11545_v6, 7  ;;  %v11553_v14 = vshrl.u32 %v18200_v39, 16  ;;  %v11556_v44 = vshll.u32 %v18200_v39, 16  ;;  %v19757_v40 = vadd.f32 %v19756_v2, %v19398_v22  ;;  %v11202_v53 = vpop.f32.mrb[5].mxu1 }
 0x537   : > { %v11530_v41 = vrot.slane %v11528_v18, 7  ;;  %v11536_v59 = vshrl.u32 %v18198_v20, 16  ;;  %v11539_v12 = vshll.u32 %v18198_v20, 16  ;;  %v19759_v51 = vadd.f32 %v24059_v11, %v11202_v53  ;;  %v19399_v43 = vpop.f32.mrb[6].mxu1 }
 0x538   : > { %v11550_v45 = vor.u32 %v11548_v56, %v11547_v31  ;;  %v11551_v34 = vrot.slane %v11547_v31, 4  ;;  %v11555_v37 = vrot.slane %v11553_v14, 7  ;;  %v11351_v26 = vmax.f32 %v19757_v40, 0.0  ;;  %v11205_v13 = vpop.f32.mrb[7].mxu1 }
 0x539   : > { %v11533_v3 = vor.u32 %v11531_v33, %v11530_v41  ;;  %v11534_v48 = vrot.slane %v11530_v41, 4  ;;  %v11538_v36 = vrot.slane %v11536_v59, 7  ;;  %v11349_v8 = vmax.f32 %v19759_v51, 0.0 }
 0x53a   : > { %v11856_v30 = vsel %vm21581_vm9, %v11550_v45, %v11855_v50  ;;  %v11558_v28 = vor.u32 %v11556_v44, %v11555_v37  ;;  %v11560_v55 = vrot.slane %v11555_v37, 4  ;;  %v18203_v6 = vpack.c.bf16 %v11351_v26, %v11351_v26  ;;  %v11869_v37 = vld [vmem:[#allocation4 + $0x30] sm:$0xf] }
 0x53b   : > { %11857 = vst [vmem:[#allocation4 + $0x18] sm:$0xf] %v11856_v30  ;;  %v11849_v11 = vsel %vm21581_vm9, %v11533_v3, %v11848_v58  ;;  %v11541_v39 = vor.u32 %v11539_v12, %v11538_v36  ;;  %v11543_v56 = vrot.slane %v11538_v36, 4  ;;  %v18201_v18 = vpack.c.bf16 %v11349_v8, %v11349_v8 }
 0x53c   : > { %11850 = vst [vmem:[#allocation4 + $0xc] sm:$0xf] %v11849_v11  ;;  %v11559_v20 = vsel %vm21590_vm10, %v11551_v34, %v11558_v28  ;;  %v11860_v31 = vsel %vm21609_vm11, %v11560_v55, %v11859_v5  ;;  %v11579_v14 = vshrl.u32 %v18203_v6, 16  ;;  %v12401_v44 = vor.u32 %v24133_v62, %v24131_v52  ;;  %v11862_v28 = vld [vmem:[#allocation4 + $0x24] sm:$0xf] }
 0x53d   : > { %11858 = vst.msk [vmem:[#allocation4 + $0x1c] sm:$0xf] %vm679_vm1, %v11559_v20  ;;  %11861 = vst [vmem:[#allocation4 + $0x20] sm:$0x1] %v11860_v31  ;;  %v11542_v40 = vsel %vm21590_vm10, %v11534_v48, %v11541_v39  ;;  %v11853_v53 = vsel %vm21609_vm11, %v11543_v56, %v11852_v1  ;;  %v11582_v50 = vshll.u32 %v18203_v6, 16  ;;  %v11562_v41 = vshrl.u32 %v18201_v18, 16 }
 0x53e   : > { %v19402_v59 = vpop.f32.mrb[8].mxu1  ;;  %11851 = vst.msk [vmem:[#allocation4 + $0x10] sm:$0xf] %vm679_vm1, %v11542_v40  ;;  %11854 = vst [vmem:[#allocation4 + $0x14] sm:$0x1] %v11853_v53  ;;  %v24156_v12 = vrot.slane %v11579_v14, 7  ;;  %v19761_v51 = vadd.f32 %v24062_v54, %v19399_v43  ;;  %v19763_v45 = vadd.f32 %v24065_v32, %v11205_v13 }
 0x53f   : > { %v19765_v34 = vadd.f32 %v24068_v42, %v19402_v59  ;;  %v11218_v58 = vpop.f32.mrb[9].mxu1  ;;  %v24161_v26 = vrot.slane %v11562_v41, 7  ;;  %v11565_v3 = vshll.u32 %v18201_v18, 16  ;;  %v24164_v36 = vrot.slane %v12391_v35, 4  ;;  %v20818_v31 = vld [vmem:[%s26036_s6 + $0x18] sm:$0xff]  }
 0x540   : > { %v19767_v48 = vadd.f32 %v24071_v61, %v11218_v58  ;;  %v19403_v5 = vpop.f32.mrb[10].mxu1  ;;  %v11584_v8 = vor.u32 %v11582_v50, %v24156_v12  ;;  %v11585_v30 = vrot.slane %v24156_v12, 4  ;;  %v11352_v54 = vmax.f32 %v19761_v51, 0.0  ;;  %v11873_v41 = vld [vmem:[#allocation4 + $0x38] sm:$0x1] }
 0x541   : > { %v11350_v43 = vmax.f32 %v19763_v45, 0.0  ;;  %v11221_v32 = vpop.f32.mrb[11].mxu1  ;;  %v11567_v42 = vor.u32 %v11565_v3, %v24161_v26  ;;  %v11568_v13 = vrot.slane %v24161_v26, 4  ;;  %v11355_v55 = vmax.f32 %v19765_v34, 0.0  ;;  %v11866_v59 = vld [vmem:[#allocation4 + $0x2c] sm:$0x1] }
 0x542   : > { %v11353_v1 = vmax.f32 %v19767_v48, 0.0  ;;  %v11870_v61 = vsel %vm21581_vm9, %v11584_v8, %v11869_v37  ;;  %v18204_v6 = vpack.c.bf16 %v11352_v54, %v11352_v54  ;;  %v19769_v11 = vadd.f32 %v24074_v7, %v19403_v5 }
 0x543   : > { %v18202_v35 = vpack.c.bf16 %v11350_v43, %v11350_v43  ;;  %11871 = vst [vmem:[#allocation4 + $0x30] sm:$0xf] %v11870_v61  ;;  %v11863_v39 = vsel %vm21581_vm9, %v11567_v42, %v11862_v28  ;;  %v18207_v56 = vpack.c.bf16 %v11355_v55, %v11355_v55  ;;  %v19771_v20 = vadd.f32 %v24077_v16, %v11221_v32  ;;  %v11883_v16 = vld [vmem:[#allocation4 + $0x48] sm:$0xf] }
 0x544   : > { %v18205_v18 = vpack.c.bf16 %v11353_v1, %v11353_v1  ;;  %11864 = vst [vmem:[#allocation4 + $0x24] sm:$0xf] %v11863_v39  ;;  %v11587_v14 = vshrl.u32 %v18204_v6, 16  ;;  %v11590_v40 = vshll.u32 %v18204_v6, 16  ;;  %v11356_v3 = vmax.f32 %v19769_v11, 0.0  ;;  %v20811_v8 = vld [vmem:[#allocation4 + $0x18] sm:$0xff]  }
 0x545   : > { %v11570_v53 = vshrl.u32 %v18202_v35, 16  ;;  %v11573_v50 = vshll.u32 %v18202_v35, 16  ;;  %v11613_v7 = vshrl.u32 %v18207_v56, 16  ;;  %v11616_v12 = vshll.u32 %v18207_v56, 16  ;;  %v19406_v34 = vpop.f32.mrb[12].mxu1  ;;  %v20810_v58 = vld [vmem:[#allocation4 + $0xc] sm:$0xff]  }
 0x546   : > { %v11596_v51 = vshrl.u32 %v18205_v18, 16  ;;  %v11599_v45 = vshll.u32 %v18205_v18, 16  ;;  %v11589_v37 = vrot.slane %v11587_v14, 7  ;;  %v11354_v48 = vmax.f32 %v19771_v20, 0.0  ;;  %v11234_v5 = vpop.f32.mrb[13].mxu1  ;;  %19429 = vmatmul.mubr.msk.bf16.vlgmr.msra.gmra.mrb[64].mxu0 %vm1958_vm12, %v20810_v58  ;;  %v24195_v18 = vld [vmem:[%s26036_s6 + $0x20] sm:$0xff]  }
 0x547   : > { %v11572_v26 = vrot.slane %v11570_v53, 7  ;;  %v24179_v28 = vrot.slane %v11613_v7, 7  ;;  %v19773_v43 = vadd.f32 %v24080_v21, %v19406_v34  ;;  %v19775_v32 = vadd.f32 %v24083_v60, %v11234_v5  ;;  %v19407_v42 = vpop.f32.mrb[14].mxu1  ;;  %v11876_v35 = vld [vmem:[#allocation4 + $0x3c] sm:$0xf]  ;;  %19461 = vmatpush3.bf16.msra.mxu0 %v24046_v47  ;;  %19432 = vmatprep.mubr.msk.bf16.mxu0 %vm1958_vm12, %v20811_v8 }
 0x548   : > { %v24181_v54 = vrot.slane %v11596_v51, 7  ;;  %v11592_v55 = vor.u32 %v11590_v40, %v11589_v37  ;;  %v11594_v1 = vrot.slane %v11589_v37, 4  ;;  %v11237_v11 = vpop.f32.mrb[15].mxu1  ;;  %19462 = vmatprep.subr.bf16.mxu0 %v20818_v31 }
 0x549   : > { %v11575_v61 = vor.u32 %v11573_v50, %v11572_v26  ;;  %v11577_v6 = vrot.slane %v11572_v26, 4  ;;  %v11618_v39 = vor.u32 %v11616_v12, %v24179_v28  ;;  %v11619_v56 = vrot.slane %v24179_v28, 4  ;;  %v11887_v26 = vld [vmem:[#allocation4 + $0x50] sm:$0x1] }
 0x54a   : > { %v11601_v21 = vor.u32 %v11599_v45, %v24181_v54  ;;  %v11602_v60 = vrot.slane %v24181_v54, 4  ;;  %v11593_v20 = vsel %vm21590_vm10, %v11585_v30, %v11592_v55  ;;  %v11874_v47 = vsel %vm21609_vm11, %v11594_v1, %v11873_v41 }
 0x54b   : > { %v11576_v14 = vsel %vm21590_vm10, %v11568_v13, %v11575_v61  ;;  %v11867_v40 = vsel %vm21609_vm11, %v11577_v6, %v11866_v59  ;;  %11872 = vst.msk [vmem:[#allocation4 + $0x34] sm:$0xf] %vm679_vm1, %v11593_v20  ;;  %11875 = vst [vmem:[#allocation4 + $0x38] sm:$0x1] %v11874_v47  ;;  %v11884_v53 = vsel %vm21581_vm9, %v11618_v39, %v11883_v16  ;;  %v11359_v13 = vmax.f32 %v19773_v43, 0.0 }
 0x54c   : > { %11865 = vst.msk [vmem:[#allocation4 + $0x28] sm:$0xf] %vm679_vm1, %v11576_v14  ;;  %11868 = vst [vmem:[#allocation4 + $0x2c] sm:$0x1] %v11867_v40  ;;  %v11877_v30 = vsel %vm21581_vm9, %v11601_v21, %v11876_v35  ;;  %v18208_v50 = vpack.c.bf16 %v11356_v3, %v11356_v3  ;;  %v18206_v41 = vpack.c.bf16 %v11354_v48, %v11354_v48  ;;  %v11357_v7 = vmax.f32 %v19775_v32, 0.0 }
 0x54d   : > { %11885 = vst [vmem:[#allocation4 + $0x48] sm:$0xf] %v11884_v53  ;;  %11878 = vst [vmem:[#allocation4 + $0x3c] sm:$0xf] %v11877_v30  ;;  %v19777_v59 = vadd.f32 %v24086_v49, %v19407_v42  ;;  %v19779_v12 = vadd.f32 %v24089_v15, %v11237_v11  ;;  %19463 = vmatpush3.bf16.msra.mxu0 %v20818_v31  ;;  %v19410_v37 = vpop.f32.mrb[16].mxu1  ;;  %v18211_v3 = vpack.c.bf16 %v11359_v13, %v11359_v13 }
 0x54e   : > { %v11621_v51 = vshrl.u32 %v18208_v50, 16  ;;  %v11624_v45 = vshll.u32 %v18208_v50, 16  ;;  %v11604_v34 = vshrl.u32 %v18206_v41, 16  ;;  %v11607_v58 = vshll.u32 %v18206_v41, 16  ;;  %19496 = vmatprep.subr.bf16.mxu0 %v24195_v18  ;;  %v11880_v16 = vld [vmem:[#allocation4 + $0x44] sm:$0x1] }
 0x54f   : > { %v18209_v48 = vpack.c.bf16 %v11357_v7, %v11357_v7  ;;  %v11360_v5 = vmax.f32 %v19777_v59, 0.0  ;;  %v11358_v8 = vmax.f32 %v19779_v12, 0.0  ;;  %v11250_v28 = vpop.f32.mrb[17].mxu1  ;;  %v19781_v49 = vadd.f32 %v24092_v0, %v19410_v37  ;;  %v11897_v21 = vld [vmem:[#allocation4 + $0x60] sm:$0xf] }
 0x550   : > { %v11623_v54 = vrot.slane %v11621_v51, 7  ;;  %v11606_v43 = vrot.slane %v11604_v34, 7  ;;  %v19783_v15 = vadd.f32 %v24095_v10, %v11250_v28  ;;  %v19411_v31 = vpop.f32.mrb[18].mxu1  ;;  %v11647_v32 = vshrl.u32 %v18211_v3, 16  ;;  %v11890_v20 = vld [vmem:[#allocation4 + $0x54] sm:$0xf] }
 0x551   : > { %v11650_v42 = vshll.u32 %v18211_v3, 16  ;;  %v11630_v55 = vshrl.u32 %v18209_v48, 16  ;;  %v11633_v1 = vshll.u32 %v18209_v48, 16  ;;  %v11253_v61 = vpop.f32.mrb[19].mxu1  ;;  %v18212_v40 = vpack.c.bf16 %v11360_v5, %v11360_v5 }
 0x552   : > { %v11626_v6 = vor.u32 %v11624_v45, %v11623_v54  ;;  %v11628_v35 = vrot.slane %v11623_v54, 4  ;;  %v11609_v11 = vor.u32 %v11607_v58, %v11606_v43  ;;  %v11611_v39 = vrot.slane %v11606_v43, 4  ;;  %v20813_v0 = vld [vmem:[#allocation4 + $0x30] sm:$0xff]  }
 0x553   : > { %v11649_v47 = vrot.slane %v11647_v32, 7  ;;  %v11632_v14 = vrot.slane %v11630_v55, 7  ;;  %v18210_v53 = vpack.c.bf16 %v11358_v8, %v11358_v8  ;;  %v20812_v30 = vld [vmem:[#allocation4 + $0x24] sm:$0xff]   ;;  %v11658_v45 = vshll.u32 %v18212_v40, 16 }
 0x554   : > { %v11627_v10 = vsel %vm21590_vm10, %v11619_v56, %v11626_v6  ;;  %v11888_v50 = vsel %vm21609_vm11, %v11628_v35, %v11887_v26  ;;  %v11610_v41 = vsel %vm21590_vm10, %v11602_v60, %v11609_v11  ;;  %v11881_v13 = vsel %vm21609_vm11, %v11611_v39, %v11880_v16  ;;  %19433 = vmatmul.mubr.msk.bf16.gmra.mrb[68].mxu0 %vm1958_vm12, %v20812_v30  ;;  %v11901_v32 = vld [vmem:[#allocation4 + $0x68] sm:$0x1] }
 0x555   : > { %11886 = vst.msk [vmem:[#allocation4 + $0x4c] sm:$0xf] %vm679_vm1, %v11627_v10  ;;  %11889 = vst [vmem:[#allocation4 + $0x50] sm:$0x1] %v11888_v50  ;;  %v11652_v7 = vor.u32 %v11650_v42, %v11649_v47  ;;  %v11653_v59 = vrot.slane %v11649_v47, 4  ;;  %v11635_v12 = vor.u32 %v11633_v1, %v11632_v14  ;;  %v11636_v51 = vrot.slane %v11632_v14, 4  ;;  %19436 = vmatprep.mubr.msk.bf16.mxu0 %vm1958_vm12, %v20813_v0 }
 0x556   : > { %11879 = vst.msk [vmem:[#allocation4 + $0x40] sm:$0xf] %vm679_vm1, %v11610_v41  ;;  %11882 = vst [vmem:[#allocation4 + $0x44] sm:$0x1] %v11881_v13  ;;  %v11655_v56 = vshrl.u32 %v18212_v40, 16  ;;  %v11638_v34 = vshrl.u32 %v18210_v53, 16  ;;  %v19785_v28 = vadd.f32 %v24098_v46, %v19411_v31  ;;  %v19787_v54 = vadd.f32 %v24101_v63, %v11253_v61 }
 0x557   : > { %v11641_v58 = vshll.u32 %v18210_v53, 16  ;;  %v19414_v60 = vpop.f32.mrb[20].mxu1  ;;  %v11898_v37 = vsel %vm21581_vm9, %v11652_v7, %v11897_v21  ;;  %v11891_v26 = vsel %vm21581_vm9, %v11635_v12, %v11890_v20  ;;  %v11363_v16 = vmax.f32 %v19781_v49, 0.0  ;;  %v11894_v42 = vld [vmem:[#allocation4 + $0x5c] sm:$0x1] }
 0x558   : > { %v11361_v3 = vmax.f32 %v19783_v15, 0.0  ;;  %v11266_v48 = vpop.f32.mrb[21].mxu1  ;;  %11899 = vst [vmem:[#allocation4 + $0x60] sm:$0xf] %v11898_v37  ;;  %11892 = vst [vmem:[#allocation4 + $0x54] sm:$0xf] %v11891_v26  ;;  %v19789_v6 = vadd.f32 %v24104_v17, %v19414_v60 }
 0x559   : > { %v11657_v5 = vrot.slane %v11655_v56, 7  ;;  %v11640_v8 = vrot.slane %v11638_v34, 7  ;;  %v19415_v43 = vpop.f32.mrb[22].mxu1  ;;  %v18215_v55 = vpack.c.bf16 %v11363_v16, %v11363_v16  ;;  %v19791_v35 = vadd.f32 %v24107_v9, %v11266_v48  ;;  %v11911_v61 = vld [vmem:[#allocation4 + $0x78] sm:$0xf] }
 0x55a   : > { %v18213_v1 = vpack.c.bf16 %v11361_v3, %v11361_v3  ;;  %v11269_v49 = vpop.f32.mrb[23].mxu1  ;;  %v11364_v0 = vmax.f32 %v19785_v28, 0.0  ;;  %v11362_v10 = vmax.f32 %v19787_v54, 0.0  ;;  %v11904_v41 = vld [vmem:[#allocation4 + $0x6c] sm:$0xf]  ;;  %v11367_v13 = vmax.f32 %v19789_v6, 0.0 }
 0x55b   : > { %v11660_v15 = vor.u32 %v11658_v45, %v11657_v5  ;;  %v11662_v11 = vrot.slane %v11657_v5, 4  ;;  %v11643_v39 = vor.u32 %v11641_v58, %v11640_v8  ;;  %v11645_v21 = vrot.slane %v11640_v8, 4 }
 0x55c   : > { %v11681_v20 = vshrl.u32 %v18215_v55, 16  ;;  %v11684_v47 = vshll.u32 %v18215_v55, 16  ;;  %v11664_v14 = vshrl.u32 %v18213_v1, 16  ;;  %v11667_v46 = vshll.u32 %v18213_v1, 16  ;;  %v20815_v50 = vld [vmem:[#allocation4 + $0x48] sm:$0xff]  }
 0x55d   : > { %v11661_v63 = vsel %vm21590_vm10, %v11653_v59, %v11660_v15  ;;  %v11902_v31 = vsel %vm21609_vm11, %v11662_v11, %v11901_v32  ;;  %v11644_v17 = vsel %vm21590_vm10, %v11636_v51, %v11643_v39  ;;  %v11895_v9 = vsel %vm21609_vm11, %v11645_v21, %v11894_v42  ;;  %v20814_v40 = vld [vmem:[#allocation4 + $0x3c] sm:$0xff]   ;;  %v19418_v51 = vpop.f32.mrb[24].mxu1  ;;  %v11908_v1 = vld [vmem:[#allocation4 + $0x74] sm:$0x1]  ;;  %v11925_v21 = vld [vmem:[#allocation4 + $0x90] sm:$0xf] }
 0x55e   : > { %11900 = vst.msk [vmem:[#allocation4 + $0x64] sm:$0xf] %vm679_vm1, %v11661_v63  ;;  %11903 = vst [vmem:[#allocation4 + $0x68] sm:$0x1] %v11902_v31  ;;  %v24246_v53 = vrot.slane %v11681_v20, 7  ;;  %v24248_v30 = vrot.slane %v11664_v14, 7  ;;  %v19793_v59 = vadd.f32 %v24110_v57, %v19415_v43  ;;  %v19795_v12 = vadd.f32 %v24113_v29, %v11269_v49  ;;  %19437 = vmatmul.mubr.msk.bf16.gmra.mrb[72].mxu0 %vm1958_vm12, %v20814_v40 }
 0x55f   : > { %11893 = vst.msk [vmem:[#allocation4 + $0x58] sm:$0xf] %vm679_vm1, %v11644_v17  ;;  %11896 = vst [vmem:[#allocation4 + $0x5c] sm:$0x1] %v11895_v9  ;;  %v11365_v7 = vmax.f32 %v19791_v35, 0.0  ;;  %19440 = vmatprep.mubr.msk.bf16.mxu0 %vm1958_vm12, %v20815_v50  ;;  %v11282_v60 = vpop.f32.mrb[25].mxu1  ;;  %v18216_v37 = vpack.c.bf16 %v11364_v0, %v11364_v0  ;;  %v18214_v26 = vpack.c.bf16 %v11362_v10, %v11362_v10 }
 0x560   : > { %v11686_v56 = vor.u32 %v11684_v47, %v24246_v53  ;;  %v11687_v45 = vrot.slane %v24246_v53, 4  ;;  %v11669_v34 = vor.u32 %v11667_v46, %v24248_v30  ;;  %v11670_v58 = vrot.slane %v24248_v30, 4  ;;  %v24258_v3 = vpop.f32.mrb[26].mxu1  ;;  %v11915_v55 = vld [vmem:[#allocation4 + $0x80] sm:$0x1] }
 0x561   : > { %v18219_v16 = vpack.c.bf16 %v11367_v13, %v11367_v13  ;;  %v18217_v57 = vpack.c.bf16 %v11365_v7, %v11365_v7  ;;  %v11368_v5 = vmax.f32 %v19793_v59, 0.0  ;;  %v11366_v8 = vmax.f32 %v19795_v12, 0.0  ;;  %v11285_v28 = vpop.f32.mrb[27].mxu1  ;;  %v11918_v0 = vld [vmem:[#allocation4 + $0x84] sm:$0xf] }
 0x562   : > { %v11912_v29 = vsel %vm21581_vm9, %v11686_v56, %v11911_v61  ;;  %v11905_v48 = vsel %vm21581_vm9, %v11669_v34, %v11904_v41  ;;  %v11689_v54 = vshrl.u32 %v18216_v37, 16  ;;  %v11692_v43 = vshll.u32 %v18216_v37, 16 }
 0x563   : > { %11913 = vst [vmem:[#allocation4 + $0x78] sm:$0xf] %v11912_v29  ;;  %11906 = vst [vmem:[#allocation4 + $0x6c] sm:$0xf] %v11905_v48  ;;  %v11672_v32 = vshrl.u32 %v18214_v26, 16  ;;  %v11675_v42 = vshll.u32 %v18214_v26, 16  ;;  %v18220_v20 = vpack.c.bf16 %v11368_v5, %v11368_v5  ;;  %v18218_v47 = vpack.c.bf16 %v11366_v8, %v11366_v8 }
 0x564   : > { %v11715_v6 = vshrl.u32 %v18219_v16, 16  ;;  %v11718_v35 = vshll.u32 %v18219_v16, 16  ;;  %v11698_v49 = vshrl.u32 %v18217_v57, 16  ;;  %v11701_v15 = vshll.u32 %v18217_v57, 16 }
 0x565   : > { %v11691_v11 = vrot.slane %v11689_v54, 7  ;;  %v11674_v39 = vrot.slane %v11672_v32, 7  ;;  %v19797_v31 = vadd.f32 %v24120_v24, %v19418_v51  ;;  %v19799_v17 = vadd.f32 %v24123_v27, %v11282_v60  ;;  %v20817_v9 = vld [vmem:[#allocation4 + $0x60] sm:$0xff]   ;;  %v19422_v10 = vpop.f32.mrb[28].mxu1  ;;  %v26231_v54 = vld [vmem:[#allocation39_spill] sm:$0xff] }
 0x566   : > { %v20816_v14 = vld [vmem:[#allocation4 + $0x54] sm:$0xff]   ;;  %v11717_v46 = vrot.slane %v11715_v6, 7  ;;  %v24264_v63 = vrot.slane %v11698_v49, 7  ;;  %v11298_v24 = vpop.f32.mrb[29].mxu1  ;;  %v11723_v60 = vshrl.u32 %v18220_v20, 16  ;;  %v11726_v37 = vshll.u32 %v18220_v20, 16 }
 0x567   : > { %v11694_v61 = vor.u32 %v11692_v43, %v11691_v11  ;;  %v11696_v40 = vrot.slane %v11691_v11, 4  ;;  %v11677_v53 = vor.u32 %v11675_v42, %v11674_v39  ;;  %v11679_v30 = vrot.slane %v11674_v39, 4  ;;  %19441 = vmatmul.mubr.msk.bf16.gmra.mrb[76].mxu0 %vm1958_vm12, %v20816_v14  ;;  %v24280_v56 = vpop.f32.mrb[30].mxu1  ;;  %v11929_v32 = vld [vmem:[#allocation4 + $0x98] sm:$0x1] }
 0x568   : > { %v11720_v50 = vor.u32 %v11718_v35, %v11717_v46  ;;  %v11721_v41 = vrot.slane %v11717_v46, 4  ;;  %v11703_v13 = vor.u32 %v11701_v15, %v24264_v63  ;;  %v11704_v7 = vrot.slane %v24264_v63, 4  ;;  %19444 = vmatprep.mubr.msk.bf16.mxu0 %vm1958_vm12, %v20817_v9  ;;  %v26232_v6 = vld [vmem:[#allocation40_spill] sm:$0xff]  ;;  %v11922_v11 = vld [vmem:[#allocation4 + $0x8c] sm:$0x1] }
 0x569   : > { %v11695_v27 = vsel %vm21590_vm10, %v11687_v45, %v11694_v61  ;;  %v11916_v59 = vsel %vm21609_vm11, %v11696_v40, %v11915_v55  ;;  %v11678_v12 = vsel %vm21590_vm10, %v11670_v58, %v11677_v53  ;;  %v11909_v51 = vsel %vm21609_vm11, %v11679_v30, %v11908_v1  ;;  %v24288_v58 = vpop.f32.mrb[31].mxu1  ;;  %v11932_v61 = vld [vmem:[#allocation4 + $0x9c] sm:$0xf] }
 0x56a   : > { %11914 = vst.msk [vmem:[#allocation4 + $0x7c] sm:$0xf] %vm679_vm1, %v11695_v27  ;;  %11917 = vst [vmem:[#allocation4 + $0x80] sm:$0x1] %v11916_v59  ;;  %v11926_v45 = vsel %vm21581_vm9, %v11720_v50, %v11925_v21  ;;  %v11919_v34 = vsel %vm21581_vm9, %v11703_v13, %v11918_v0  ;;  %v11706_v26 = vshrl.u32 %v18218_v47, 16  ;;  %v11709_v16 = vshll.u32 %v18218_v47, 16 }
 0x56b   : > { %11907 = vst.msk [vmem:[#allocation4 + $0x70] sm:$0xf] %vm679_vm1, %v11678_v12  ;;  %11910 = vst [vmem:[#allocation4 + $0x74] sm:$0x1] %v11909_v51  ;;  %v11371_v57 = vmax.f32 %v19797_v31, 0.0  ;;  %v11369_v29 = vmax.f32 %v19799_v17, 0.0  ;;  %v19801_v5 = vadd.f32 %v24126_v25, %v24258_v3  ;;  %v19803_v8 = vadd.f32 %v24129_v4, %v11285_v28 }
 0x56c   : > { %11927 = vst [vmem:[#allocation4 + $0x90] sm:$0xf] %v11926_v45  ;;  %11920 = vst [vmem:[#allocation4 + $0x84] sm:$0xf] %v11919_v34  ;;  %v11725_v48 = vrot.slane %v11723_v60, 7  ;;  %v19805_v43 = vadd.f32 %v26231_v54, %v19422_v10  ;;  %v11708_v42 = vrot.slane %v11706_v26, 7  ;;  %v19807_v35 = vadd.f32 %v26232_v6, %v11298_v24 }
 0x56d   : > { %v18223_v55 = vpack.c.bf16 %v11371_v57, %v11371_v57  ;;  %v18221_v1 = vpack.c.bf16 %v11369_v29, %v11369_v29  ;;  %v11372_v39 = vmax.f32 %v19801_v5, 0.0  ;;  %v11370_v21 = vmax.f32 %v19803_v8, 0.0  ;;  %v11939_v3 = vld [vmem:[#allocation4 + $0xa8] sm:$0xf]  ;;  %v11943_v57 = vld [vmem:[#allocation4 + $0xb0] sm:$0x1] }
 0x56e   : > { %v11728_v49 = vor.u32 %v11726_v37, %v11725_v48  ;;  %v11730_v15 = vrot.slane %v11725_v48, 4  ;;  %v11711_v20 = vor.u32 %v11709_v16, %v11708_v42  ;;  %v11713_v47 = vrot.slane %v11708_v42, 4  ;;  %v11936_v48 = vld [vmem:[#allocation4 + $0xa4] sm:$0x1]  ;;  %v26234_v54 = vld [vmem:[#allocation42_spill] sm:$0xff] }
 0x56f   : > { %v11749_v14 = vshrl.u32 %v18223_v55, 16  ;;  %v11752_v46 = vshll.u32 %v18223_v55, 16  ;;  %v11732_v28 = vshrl.u32 %v18221_v1, 16  ;;  %v11735_v63 = vshll.u32 %v18221_v1, 16  ;;  %v26233_v5 = vld [vmem:[#allocation41_spill] sm:$0xff] }
 0x570   : > { %v11729_v25 = vsel %vm21590_vm10, %v11721_v41, %v11728_v49  ;;  %v11930_v4 = vsel %vm21609_vm11, %v11730_v15, %v11929_v32  ;;  %v11712_v31 = vsel %vm21590_vm10, %v11704_v7, %v11711_v20  ;;  %v11923_v17 = vsel %vm21609_vm11, %v11713_v47, %v11922_v11  ;;  %v12339_v6 = vld [vmem:[#allocation4 + $0xc] sm:$0xf] }
 0x571   : > { %11928 = vst.msk [vmem:[#allocation4 + $0x94] sm:$0xf] %vm679_vm1, %v11729_v25  ;;  %11931 = vst [vmem:[#allocation4 + $0x98] sm:$0x1] %v11930_v4  ;;  %v11751_v9 = vrot.slane %v11749_v14, 7  ;;  %v18224_v40 = vpack.c.bf16 %v11372_v39, %v11372_v39  ;;  %v11734_v30 = vrot.slane %v11732_v28, 7  ;;  %v18222_v0 = vpack.c.bf16 %v11370_v21, %v11370_v21 }
 0x572   : > { %v20819_v53 = vld [vmem:[#allocation4 + $0x6c] sm:$0xff]   ;;  %11921 = vst.msk [vmem:[#allocation4 + $0x88] sm:$0xf] %vm679_vm1, %v11712_v31  ;;  %11924 = vst [vmem:[#allocation4 + $0x8c] sm:$0x1] %v11923_v17  ;;  %v11375_v10 = vmax.f32 %v19805_v43, 0.0  ;;  %v19809_v8 = vadd.f32 %v26233_v5, %v24280_v56  ;;  %v19811_v43 = vadd.f32 %v26234_v54, %v24288_v58 }
 0x573   : > { %v11373_v50 = vmax.f32 %v19807_v35, 0.0  ;;  %v20820_v41 = vld [vmem:[#allocation4 + $0x78] sm:$0xff]   ;;  %v11754_v13 = vor.u32 %v11752_v46, %v11751_v9  ;;  %v11755_v24 = vrot.slane %v11751_v9, 4  ;;  %v11757_v27 = vshrl.u32 %v18224_v40, 16  ;;  %19445 = vmatmul.mubr.msk.bf16.gmra.mrb[80].mxu0 %vm1958_vm12, %v20819_v53  ;;  %v11953_v46 = vld [vmem:[#allocation4 + $0xc0] sm:$0xf] }
 0x574   : > { %v11760_v59 = vshll.u32 %v18224_v40, 16  ;;  %v11737_v7 = vor.u32 %v11735_v63, %v11734_v30  ;;  %v11738_v12 = vrot.slane %v11734_v30, 4  ;;  %v11740_v51 = vshrl.u32 %v18222_v0, 16  ;;  %19448 = vmatprep.mubr.msk.bf16.mxu0 %vm1958_vm12, %v20820_v41  ;;  %v11946_v63 = vld [vmem:[#allocation4 + $0xb4] sm:$0xf] }
 0x575   : > { %v11743_v45 = vshll.u32 %v18222_v0, 16  ;;  %v11940_v34 = vsel %vm21581_vm9, %v11754_v13, %v11939_v3  ;;  %v11759_v60 = vrot.slane %v11757_v27, 7  ;;  %v18227_v37 = vpack.c.bf16 %v11375_v10, %v11375_v10  ;;  %v24336_v0 = vld [vmem:[#allocation4 + $0x10] sm:$0xf]  ;;  %v24338_v10 = vld [vmem:[#allocation4 + $0x14] sm:$0x1] }
 0x576   : > { %v18225_v26 = vpack.c.bf16 %v11373_v50, %v11373_v50  ;;  %11941 = vst [vmem:[#allocation4 + $0xa8] sm:$0xf] %v11940_v34  ;;  %v11933_v16 = vsel %vm21581_vm9, %v11737_v7, %v11932_v61  ;;  %v11742_v29 = vrot.slane %v11740_v51, 7  ;;  %v11376_v20 = vmax.f32 %v19809_v8, 0.0  ;;  %v12342_v61 = vld [vmem:[#allocation4 + $0x18] sm:$0xf] }
 0x577   : > { %11934 = vst [vmem:[#allocation4 + $0x9c] sm:$0xf] %v11933_v16  ;;  %v11762_v32 = vor.u32 %v11760_v59, %v11759_v60  ;;  %v11764_v42 = vrot.slane %v11759_v60, 4  ;;  %v11783_v55 = vshrl.u32 %v18227_v37, 16  ;;  %v11786_v1 = vshll.u32 %v18227_v37, 16 }
 0x578   : > { %v11745_v35 = vor.u32 %v11743_v45, %v11742_v29  ;;  %v11747_v49 = vrot.slane %v11742_v29, 4  ;;  %v11766_v15 = vshrl.u32 %v18225_v26, 16  ;;  %v11769_v11 = vshll.u32 %v18225_v26, 16  ;;  %v20822_v3 = vld [vmem:[#allocation4 + $0x90] sm:$0xff]   ;;  %v11957_v27 = vld [vmem:[#allocation4 + $0xc8] sm:$0x1] }
 0x579   : > { %v11763_v39 = vsel %vm21590_vm10, %v11755_v24, %v11762_v32  ;;  %v11944_v21 = vsel %vm21609_vm11, %v11764_v42, %v11943_v57  ;;  %v11785_v56 = vrot.slane %v11783_v55, 7  ;;  %v20821_v47 = vld [vmem:[#allocation4 + $0x84] sm:$0xff]   ;;  %v11374_v4 = vmax.f32 %v19811_v43, 0.0  ;;  %v11950_v51 = vld [vmem:[#allocation4 + $0xbc] sm:$0x1] }
 0x57a   : > { %11942 = vst.msk [vmem:[#allocation4 + $0xac] sm:$0xf] %vm679_vm1, %v11763_v39  ;;  %11945 = vst [vmem:[#allocation4 + $0xb0] sm:$0x1] %v11944_v21  ;;  %v11746_v58 = vsel %vm21590_vm10, %v11738_v12, %v11745_v35  ;;  %v11937_v14 = vsel %vm21609_vm11, %v11747_v49, %v11936_v48  ;;  %v11768_v25 = vrot.slane %v11766_v15, 7  ;;  %v18228_v31 = vpack.c.bf16 %v11376_v20, %v11376_v20 }
 0x57b   : > { %11935 = vst.msk [vmem:[#allocation4 + $0xa0] sm:$0xf] %vm679_vm1, %v11746_v58  ;;  %11938 = vst [vmem:[#allocation4 + $0xa4] sm:$0x1] %v11937_v14  ;;  %v11788_v28 = vor.u32 %v11786_v1, %v11785_v56  ;;  %19449 = vmatmul.mubr.msk.bf16.gmra.mrb[84].mxu0 %vm1958_vm12, %v20821_v47  ;;  %v24329_v17 = vrot.slane %v12401_v44, 4  ;;  %v12409_v9 = vshrl.u32 %v12339_v6, 16  ;;  %v18226_v53 = vpack.c.bf16 %v11374_v4, %v11374_v4 }
 0x57c   : > { %v11771_v40 = vor.u32 %v11769_v11, %v11768_v25  ;;  %19452 = vmatprep.mubr.msk.bf16.mxu0 %vm1958_vm12, %v20822_v3  ;;  %v12397_v30 = vsel %vm21913_vm15, %v24164_v36, %v24131_v52  ;;  %v12412_v50 = vshll.u32 %v12339_v6, 16  ;;  %v11789_v41 = vrot.slane %v11785_v56, 4  ;;  %v24347_v26 = vld [vmem:[#allocation4 + $0x1c] sm:$0xf]  ;;  %v12345_v15 = vld [vmem:[#allocation4 + $0x24] sm:$0xf] }
 0x57d   : > { %v11954_v62 = vsel %vm21581_vm9, %v11788_v28, %v11953_v46  ;;  %v11791_v44 = vshrl.u32 %v18228_v31, 16  ;;  %v11794_v13 = vshll.u32 %v18228_v31, 16  ;;  %v11774_v59 = vshrl.u32 %v18226_v53, 16  ;;  %v24353_v11 = vld [vmem:[#allocation4 + $0x28] sm:$0xf] }
 0x57e   : > { %11955 = vst [vmem:[#allocation4 + $0xc0] sm:$0xf] %v11954_v62  ;;  %v11947_v24 = vsel %vm21581_vm9, %v11771_v40, %v11946_v63  ;;  %v12411_v7 = vrot.slane %v12409_v9, 4  ;;  %v12414_v12 = vrot.slane %v12412_v50, 5  ;;  %v11777_v36 = vshll.u32 %v18226_v53, 16 }
 0x57f   : > { %11948 = vst [vmem:[#allocation4 + $0xb4] sm:$0xf] %v11947_v24  ;;  %v11793_v52 = vrot.slane %v11791_v44, 7  ;;  %v12418_v45 = vshll.u32 %v24336_v0, 16  ;;  %v12422_v34 = vshrl.u32 %v24336_v0, 16  ;;  %v11776_v60 = vrot.slane %v11774_v59, 7 }
 0x580   : > { %v12428_v37 = vshll.u32 %v24338_v10, 16  ;;  %v12433_v16 = vshrl.u32 %v12342_v61, 16  ;;  %v12436_v2 = vshll.u32 %v12342_v61, 16  ;;  %v11772_v8 = vrot.slane %v11768_v25, 4  ;;  %v24365_v20 = vld [vmem:[#allocation4 + $0x20] sm:$0x1] }
 0x581   : > { %v11796_v57 = vor.u32 %v11794_v13, %v11793_v52  ;;  %v11798_v29 = vrot.slane %v11793_v52, 4  ;;  %v12420_v48 = vrot.slane %v12418_v45, 5  ;;  %v12424_v5 = vrot.slane %v12422_v34, 4  ;;  %v20824_v6 = vld [vmem:[#allocation4 + $0xa8] sm:$0xff]   ;;  %v12348_v46 = vld [vmem:[#allocation4 + $0x30] sm:$0xf] }
 0x582   : > { %v11779_v54 = vor.u32 %v11777_v36, %v11776_v60  ;;  %v11781_v43 = vrot.slane %v11776_v60, 4  ;;  %v20823_v32 = vld [vmem:[#allocation4 + $0x9c] sm:$0xff]   ;;  %v12415_v42 = vor.u32 %v12414_v12, %v12411_v7  ;;  %v12435_v49 = vrot.slane %v12433_v16, 4  ;;  %v24372_v9 = vld [vmem:[#allocation4 + $0x2c] sm:$0x1] }
 0x583   : > { %v11797_v55 = vsel %vm21590_vm10, %v11789_v41, %v11796_v57  ;;  %v11958_v1 = vsel %vm21609_vm11, %v11798_v29, %v11957_v27  ;;  %v12425_v35 = vor.u32 %v12424_v5, %v12420_v48  ;;  %19453 = vmatmul.mubr.msk.bf16.gmra.mrb[88].mxu0 %vm1958_vm12, %v20823_v32  ;;  %v12407_v56 = vsel %vm21913_vm15, %v24329_v17, %v24137_v38  ;;  %v24377_v41 = vld [vmem:[#allocation4 + $0x34] sm:$0xf]  ;;  %v12351_v12 = vld [vmem:[#allocation4 + $0x3c] sm:$0xf]  ;;  %v24386_v5 = vld [vmem:[#allocation4 + $0x38] sm:$0x1] }
 0x584   : > { %11956 = vst.msk [vmem:[#allocation4 + $0xc4] sm:$0xf] %vm679_vm1, %v11797_v55  ;;  %11959 = vst [vmem:[#allocation4 + $0xc8] sm:$0x1] %v11958_v1  ;;  %v11780_v39 = vsel %vm21590_vm10, %v11772_v8, %v11779_v54  ;;  %v11951_v21 = vsel %vm21609_vm11, %v11781_v43, %v11950_v51  ;;  %v12438_v47 = vrot.slane %v12436_v2, 5  ;;  %19456 = vmatprep.mubr.msk.bf16.mxu0 %vm1958_vm12, %v20824_v6  ;;  %v12430_v58 = vrot.slane %v12428_v37, 5 }
 0x585   : > { %11949 = vst.msk [vmem:[#allocation4 + $0xb8] sm:$0xf] %vm679_vm1, %v11780_v39  ;;  %11952 = vst [vmem:[#allocation4 + $0xbc] sm:$0x1] %v11951_v21  ;;  %v12426_v33 = vrot.slane %v12425_v35, 4  ;;  %v12442_v22 = vshll.u32 %v24347_v26, 16  ;;  %v17810_v28 = vcombine.low %v12397_v30, %v12407_v56 }
 0x586   : > { %v12446_v14 = vshrl.u32 %v24347_v26, 16  ;;  %v12439_v25 = vor.u32 %v12438_v47, %v12435_v49  ;;  %v12457_v4 = vshrl.u32 %v12345_v15, 16  ;;  %v12460_v3 = vshll.u32 %v12345_v15, 16  ;;  %v24396_v1 = vld [vmem:[#allocation4 + $0x44] sm:$0x1] }
 0x587   : > { %v12466_v38 = vshll.u32 %v24353_v11, 16  ;;  %v12416_v63 = vrot.slane %v12415_v42, 4  ;;  %v12444_v31 = vrot.slane %v12442_v22, 5  ;;  %v12431_v61 = vsel %vm21913_vm15, %v12426_v33, %v12430_v58  ;;  %v12354_v6 = vld [vmem:[#allocation4 + $0x48] sm:$0xf] }
 0x588   : > { %v12448_v17 = vrot.slane %v12446_v14, 4  ;;  %v12452_v40 = vshll.u32 %v24365_v20, 16  ;;  %v12459_v53 = vrot.slane %v12457_v4, 4  ;;  %v12462_v50 = vrot.slane %v12460_v3, 5  ;;  %v24399_v21 = vld [vmem:[#allocation4 + $0x4c] sm:$0xf] }
 0x589   : > { %v12440_v62 = vrot.slane %v12439_v25, 4  ;;  %v12468_v13 = vrot.slane %v12466_v38, 5  ;;  %v12470_v24 = vshrl.u32 %v24353_v11, 16  ;;  %v12476_v27 = vshll.u32 %v24372_v9, 16 }
 0x58a   : > { %v12449_v44 = vor.u32 %v12448_v17, %v12444_v31  ;;  %v12463_v30 = vor.u32 %v12462_v50, %v12459_v53  ;;  %v12481_v59 = vshrl.u32 %v12348_v46, 16  ;;  %v12484_v7 = vshll.u32 %v12348_v46, 16 }
 0x58b   : > { %v12421_v52 = vsel %vm21913_vm15, %v12416_v63, %v12420_v48  ;;  %v12472_v51 = vrot.slane %v12470_v24, 4  ;;  %v12490_v45 = vshll.u32 %v24377_v41, 16  ;;  %v12454_v37 = vrot.slane %v12452_v40, 5  ;;  %v24391_v48 = vld [vmem:[#allocation4 + $0x40] sm:$0xf] }
 0x58c   : > { %v12450_v36 = vrot.slane %v12449_v44, 4  ;;  %v20825_v34 = vld [vmem:[#allocation4 + $0xb4] sm:$0xff]   ;;  %v17811_v60 = vcombine.low %v12421_v52, %v12431_v61  ;;  %v12483_v16 = vrot.slane %v12481_v59, 4  ;;  %v12486_v2 = vrot.slane %v12484_v7, 5  ;;  %v24411_v63 = vld [vmem:[#allocation4 + $0x50] sm:$0x1] }
 0x58d   : > { %v12445_v57 = vsel %vm21913_vm15, %v12440_v62, %v12444_v31  ;;  %v12473_v29 = vor.u32 %v12472_v51, %v12468_v13  ;;  %v24388_v8 = vrot.slane %v12490_v45, 5  ;;  %v12494_v54 = vshrl.u32 %v24377_v41, 16  ;;  %19457 = vmatmul.mubr.msk.bf16.gmra.mrb[92].mxu0 %vm1958_vm12, %v20825_v34  ;;  %v12357_v31 = vld [vmem:[#allocation4 + $0x54] sm:$0xf]  ;;  %v24426_v34 = vld [vmem:[#allocation4 + $0x5c] sm:$0x1] }
 0x58e   : > { %v12455_v43 = vsel %vm21913_vm15, %v12450_v36, %v12454_v37  ;;  %v12464_v32 = vrot.slane %v12463_v30, 4  ;;  %v12478_v42 = vrot.slane %v12476_v27, 5  ;;  %v12487_v55 = vor.u32 %v12486_v2, %v12483_v16  ;;  %19464 = vmatprep.mubr.msk.bf16.mxu0 %vm1958_vm12, %v17810_v28  ;;  %v12360_v37 = vld [vmem:[#allocation4 + $0x60] sm:$0xf] }
 0x58f   : > { %v12474_v35 = vrot.slane %v12473_v29, 4  ;;  %v12496_v49 = vrot.slane %v12494_v54, 4  ;;  %v12505_v15 = vshrl.u32 %v12351_v12, 16  ;;  %v12508_v39 = vshll.u32 %v12351_v12, 16  ;;  %v24423_v12 = vld [vmem:[#allocation4 + $0x58] sm:$0xf] }
 0x590   : > { %v24401_v56 = vrot.slane %v12487_v55, 4  ;;  %v12500_v47 = vshll.u32 %v24386_v5, 16  ;;  %v12514_v33 = vshll.u32 %v24391_v48, 16  ;;  %v12518_v58 = vshrl.u32 %v24391_v48, 16  ;;  %v24431_v16 = vld [vmem:[%s26036_s6 + $0x30] sm:$0xff]  }
 0x591   : > { %v17812_v22 = vcombine.low %v12445_v57, %v12455_v43  ;;  %v12497_v14 = vor.u32 %v12496_v49, %v24388_v8  ;;  %v12507_v46 = vrot.slane %v12505_v15, 4  ;;  %v12510_v25 = vrot.slane %v12508_v39, 5 }
 0x592   : > { %v12469_v4 = vsel %vm21913_vm15, %v12464_v32, %v12468_v13  ;;  %v12479_v3 = vsel %vm21913_vm15, %v12474_v35, %v12478_v42  ;;  %v12516_v38 = vrot.slane %v12514_v33, 5  ;;  %v12520_v28 = vrot.slane %v12518_v58, 4  ;;  %v20827_v13 = vld [vmem:[%s26036_s6 + $0x28] sm:$0xff]   ;;  %v12363_v33 = vld [vmem:[#allocation4 + $0x6c] sm:$0xf] }
 0x593   : > { %v12498_v17 = vrot.slane %v12497_v14, 4  ;;  %v12511_v61 = vor.u32 %v12510_v25, %v12507_v46  ;;  %v12524_v40 = vshll.u32 %v24396_v1, 16  ;;  %v12529_v53 = vshrl.u32 %v12354_v6, 16 }
 0x594   : > { %v12521_v50 = vor.u32 %v12520_v28, %v12516_v38  ;;  %v12532_v62 = vshll.u32 %v12354_v6, 16  ;;  %v12538_v44 = vshll.u32 %v24399_v21, 16  ;;  %v12542_v24 = vshrl.u32 %v24399_v21, 16 }
 0x595   : > { %v17813_v30 = vcombine.low %v12469_v4, %v12479_v3  ;;  %v12493_v27 = vsel %vm21913_vm15, %v24401_v56, %v24388_v8  ;;  %v12502_v59 = vrot.slane %v12500_v47, 5  ;;  %v12531_v7 = vrot.slane %v12529_v53, 4  ;;  %19465 = vmatmul.mubr.msk.bf16.vlgmr.msra.gmra.mrb[64].mxu0 %vm1958_vm12, %v17811_v60  ;;  %v24436_v8 = vld [vmem:[#allocation4 + $0x64] sm:$0xf]  ;;  %v24446_v47 = vld [vmem:[#allocation4 + $0x68] sm:$0x1] }
 0x596   : > { %v12512_v52 = vrot.slane %v12511_v61, 4  ;;  %v12522_v36 = vrot.slane %v12521_v50, 4  ;;  %v12534_v51 = vrot.slane %v12532_v62, 5  ;;  %v12540_v45 = vrot.slane %v12538_v44, 5  ;;  %19497 = vmatpush3.bf16.msra.mxu0 %v24195_v18  ;;  %19468 = vmatprep.mubr.msk.bf16.mxu0 %vm1958_vm12, %v17812_v22  ;;  %v24453_v53 = vld [vmem:[#allocation4 + $0x70] sm:$0xf] }
 0x597   : > { %v12526_v2 = vrot.slane %v12524_v40, 5  ;;  %v12544_v57 = vrot.slane %v12542_v24, 4  ;;  %v12548_v60 = vshll.u32 %v24411_v63, 16  ;;  %v12553_v29 = vshrl.u32 %v12357_v31, 16  ;;  %19498 = vmatprep.subr.bf16.mxu0 %v20827_v13  ;;  %v24459_v24 = vld [vmem:[#allocation4 + $0x74] sm:$0x1] }
 0x598   : > { %v12503_v54 = vsel %vm21913_vm15, %v12498_v17, %v12502_v59  ;;  %v12535_v43 = vor.u32 %v12534_v51, %v12531_v7  ;;  %v12556_v32 = vshll.u32 %v12357_v31, 16  ;;  %v12562_v42 = vshll.u32 %v24423_v12, 16 }
 0x599   : > { %v12527_v18 = vsel %vm21913_vm15, %v12522_v36, %v12526_v2  ;;  %v12545_v55 = vor.u32 %v12544_v57, %v12540_v45  ;;  %v12550_v6 = vrot.slane %v12548_v60, 5  ;;  %v12555_v35 = vrot.slane %v12553_v29, 4  ;;  %v24467_v2 = vld [vmem:[#allocation4 + $0x7c] sm:$0xf] }
 0x59a   : > { %v12536_v49 = vrot.slane %v12535_v43, 4  ;;  %v12558_v15 = vrot.slane %v12556_v32, 5  ;;  %v24443_v39 = vrot.slane %v12562_v42, 5  ;;  %v12566_v56 = vshrl.u32 %v24423_v12, 16  ;;  %19499 = vmatpush3.bf16.msra.mxu0 %v20827_v13 }
 0x59b   : > { %v12546_v58 = vrot.slane %v12545_v55, 4  ;;  %v12572_v22 = vshll.u32 %v24426_v34, 16  ;;  %v12577_v14 = vshrl.u32 %v12360_v37, 16  ;;  %v12580_v46 = vshll.u32 %v12360_v37, 16  ;;  %19532 = vmatprep.subr.bf16.mxu0 %v24431_v16  ;;  %v24470_v55 = vld [vmem:[#allocation4 + $0x80] sm:$0x1] }
 0x59c   : > { %v12517_v25 = vsel %vm21913_vm15, %v12512_v52, %v12516_v38  ;;  %v12559_v4 = vor.u32 %v12558_v15, %v12555_v35  ;;  %v12568_v3 = vrot.slane %v12566_v56, 4  ;;  %v12586_v28 = vshll.u32 %v24436_v8, 16  ;;  %v12366_v52 = vld [vmem:[#allocation4 + $0x78] sm:$0xf] }
 0x59d   : > { %v17814_v31 = vcombine.low %v12493_v27, %v12503_v54  ;;  %v17815_v17 = vcombine.low %v12517_v25, %v12527_v18  ;;  %v12579_v61 = vrot.slane %v12577_v14, 4  ;;  %v12582_v40 = vrot.slane %v12580_v46, 5  ;;  %19469 = vmatmul.mubr.msk.bf16.gmra.mrb[68].mxu0 %vm1958_vm12, %v17813_v30 }
 0x59e   : > { %v12551_v50 = vsel %vm21913_vm15, %v12546_v58, %v12550_v6  ;;  %v12560_v62 = vrot.slane %v12559_v4, 4  ;;  %v12569_v38 = vor.u32 %v12568_v3, %v24443_v39  ;;  %v12588_v44 = vrot.slane %v12586_v28, 5  ;;  %v24480_v3 = vld [vmem:[#allocation4 + $0x88] sm:$0xf] }
 0x59f   : > { %19472 = vmatprep.mubr.msk.bf16.mxu0 %vm1958_vm12, %v17814_v31  ;;  %v12583_v13 = vor.u32 %v12582_v40, %v12579_v61  ;;  %v12590_v27 = vshrl.u32 %v24436_v8, 16  ;;  %v12596_v59 = vshll.u32 %v24446_v47, 16  ;;  %v12601_v7 = vshrl.u32 %v12363_v33, 16 }
 0x5a0   : > { %v12541_v30 = vsel %vm21913_vm15, %v12536_v49, %v12540_v45  ;;  %v12574_v36 = vrot.slane %v12572_v22, 5  ;;  %v12604_v51 = vshll.u32 %v12363_v33, 16  ;;  %v12610_v37 = vshll.u32 %v24453_v53, 16  ;;  %v12369_v22 = vld [vmem:[#allocation4 + $0x84] sm:$0xf] }
 0x5a1   : > { %v17816_v57 = vcombine.low %v12541_v30, %v12551_v50  ;;  %v12570_v60 = vrot.slane %v12569_v38, 4  ;;  %v12592_v29 = vrot.slane %v12590_v27, 4  ;;  %v12603_v54 = vrot.slane %v12601_v7, 4  ;;  %v12372_v7 = vld [vmem:[#allocation4 + $0x90] sm:$0xf] }
 0x5a2   : > { %v12584_v43 = vrot.slane %v12583_v13, 4  ;;  %v12606_v32 = vrot.slane %v12604_v51, 5  ;;  %v12612_v42 = vrot.slane %v12610_v37, 5  ;;  %v12614_v18 = vshrl.u32 %v24453_v53, 16 }
 0x5a3   : > { %v12565_v45 = vsel %vm21913_vm15, %v12560_v62, %v24443_v39  ;;  %v12593_v6 = vor.u32 %v12592_v29, %v12588_v44  ;;  %v12598_v35 = vrot.slane %v12596_v59, 5  ;;  %v12620_v49 = vshll.u32 %v24459_v24, 16 }
 0x5a4   : > { %v12607_v15 = vor.u32 %v12606_v32, %v12603_v54  ;;  %v12616_v56 = vrot.slane %v12614_v18, 4  ;;  %v12625_v33 = vshrl.u32 %v12366_v52, 16  ;;  %v12628_v58 = vshll.u32 %v12366_v52, 16 }
 0x5a5   : > { %v12575_v14 = vsel %vm21913_vm15, %v12570_v60, %v12574_v36  ;;  %v12594_v46 = vrot.slane %v12593_v6, 4  ;;  %v12634_v25 = vshll.u32 %v24467_v2, 16  ;;  %v12638_v4 = vshrl.u32 %v24467_v2, 16  ;;  %19473 = vmatmul.mubr.msk.bf16.gmra.mrb[72].mxu0 %vm1958_vm12, %v17815_v17  ;;  %v24491_v36 = vld [vmem:[#allocation4 + $0x8c] sm:$0x1] }
 0x5a6   : > { %v12608_v39 = vrot.slane %v12607_v15, 4  ;;  %v12617_v28 = vor.u32 %v12616_v56, %v12612_v42  ;;  %v12627_v31 = vrot.slane %v12625_v33, 4  ;;  %v12630_v61 = vrot.slane %v12628_v58, 5  ;;  %19476 = vmatprep.mubr.msk.bf16.mxu0 %vm1958_vm12, %v17816_v57  ;;  %v24502_v6 = vld [vmem:[#allocation4 + $0x98] sm:$0x1] }
 0x5a7   : > { %v12599_v40 = vsel %vm21913_vm15, %v12594_v46, %v12598_v35  ;;  %v24486_v50 = vrot.slane %v12634_v25, 5  ;;  %v12640_v62 = vrot.slane %v12638_v4, 4  ;;  %v12644_v38 = vshll.u32 %v24470_v55, 16  ;;  %v12375_v35 = vld [vmem:[#allocation4 + $0x9c] sm:$0xf] }
 0x5a8   : > { %v12589_v13 = vsel %vm21913_vm15, %v12584_v43, %v12588_v44  ;;  %v12618_v27 = vrot.slane %v12617_v28, 4  ;;  %v12622_v59 = vrot.slane %v12620_v49, 5  ;;  %v12631_v17 = vor.u32 %v12630_v61, %v12627_v31  ;;  %v24498_v44 = vld [vmem:[#allocation4 + $0x94] sm:$0xf]  ;;  %v24505_v25 = vld [vmem:[#allocation4 + $0xa0] sm:$0xf] }
 0x5a9   : > { %v17817_v52 = vcombine.low %v12565_v45, %v12575_v14  ;;  %v17818_v30 = vcombine.low %v12589_v13, %v12599_v40  ;;  %v12649_v51 = vshrl.u32 %v12369_v22, 16  ;;  %v12652_v37 = vshll.u32 %v12369_v22, 16  ;;  %v12378_v13 = vld [vmem:[#allocation4 + $0xa8] sm:$0xf] }
 0x5aa   : > { %v12623_v57 = vsel %vm21913_vm15, %v12618_v27, %v12622_v59  ;;  %v12641_v60 = vor.u32 %v12640_v62, %v24486_v50  ;;  %v12658_v29 = vshll.u32 %v24480_v3, 16  ;;  %v12662_v54 = vshrl.u32 %v24480_v3, 16 }
 0x5ab   : > { %v12613_v43 = vsel %vm21913_vm15, %v12608_v39, %v12612_v42  ;;  %v12646_v32 = vrot.slane %v12644_v38, 5  ;;  %v12651_v18 = vrot.slane %v12649_v51, 4  ;;  %v12654_v45 = vrot.slane %v12652_v37, 5  ;;  %v24511_v38 = vld [vmem:[#allocation4 + $0xa4] sm:$0x1] }
 0x5ac   : > { %v12632_v49 = vrot.slane %v12631_v17, 4  ;;  %v12660_v15 = vrot.slane %v12658_v29, 5  ;;  %v12664_v56 = vrot.slane %v12662_v54, 4  ;;  %v12668_v33 = vshll.u32 %v24491_v36, 16 }
 0x5ad   : > { %v17819_v58 = vcombine.low %v12613_v43, %v12623_v57  ;;  %v12655_v22 = vor.u32 %v12654_v45, %v12651_v18  ;;  %v12673_v14 = vshrl.u32 %v12372_v7, 16  ;;  %v12676_v46 = vshll.u32 %v12372_v7, 16  ;;  %19477 = vmatmul.mubr.msk.bf16.gmra.mrb[76].mxu0 %vm1958_vm12, %v17817_v52  ;;  %v24517_v57 = vld [vmem:[#allocation4 + $0xac] sm:$0xf] }
 0x5ae   : > { %v12642_v42 = vrot.slane %v12641_v60, 4  ;;  %v12665_v4 = vor.u32 %v12664_v56, %v12660_v15  ;;  %v12670_v39 = vrot.slane %v12668_v33, 5  ;;  %v12682_v28 = vshll.u32 %v24498_v44, 16  ;;  %19480 = vmatprep.mubr.msk.bf16.mxu0 %vm1958_vm12, %v17818_v30 }
 0x5af   : > { %v12656_v31 = vrot.slane %v12655_v22, 4  ;;  %v12675_v61 = vrot.slane %v12673_v14, 4  ;;  %v12678_v40 = vrot.slane %v12676_v46, 5  ;;  %v12686_v62 = vshrl.u32 %v24498_v44, 16 }
 0x5b0   : > { %v12666_v27 = vrot.slane %v12665_v4, 4  ;;  %v12684_v59 = vrot.slane %v12682_v28, 5  ;;  %v12692_v17 = vshll.u32 %v24502_v6, 16  ;;  %v12697_v7 = vshrl.u32 %v12375_v35, 16 }
 0x5b1   : > { %v12637_v52 = vsel %vm21913_vm15, %v12632_v49, %v24486_v50  ;;  %v12679_v51 = vor.u32 %v12678_v40, %v12675_v61  ;;  %v12688_v37 = vrot.slane %v12686_v62, 4  ;;  %v12700_v30 = vshll.u32 %v12375_v35, 16  ;;  %v24526_v49 = vld [vmem:[#allocation4 + $0xb0] sm:$0x1]  ;;  %v12381_v62 = vld [vmem:[#allocation4 + $0xb4] sm:$0xf] }
 0x5b2   : > { %v12647_v60 = vsel %vm21913_vm15, %v12642_v42, %v12646_v32  ;;  %v12694_v29 = vrot.slane %v12692_v17, 5  ;;  %v12699_v54 = vrot.slane %v12697_v7, 4  ;;  %v12706_v43 = vshll.u32 %v24505_v25, 16 }
 0x5b3   : > { %v12671_v18 = vsel %vm21913_vm15, %v12666_v27, %v12670_v39  ;;  %v12680_v45 = vrot.slane %v12679_v51, 4  ;;  %v12689_v56 = vor.u32 %v12688_v37, %v12684_v59  ;;  %v12702_v33 = vrot.slane %v12700_v30, 5 }
 0x5b4   : > { %v12708_v22 = vrot.slane %v12706_v43, 5  ;;  %v12710_v50 = vshrl.u32 %v24505_v25, 16  ;;  %v12716_v35 = vshll.u32 %v24511_v38, 16  ;;  %v12721_v14 = vshrl.u32 %v12378_v13, 16 }
 0x5b5   : > { %v17820_v46 = vcombine.low %v12637_v52, %v12647_v60  ;;  %v12661_v32 = vsel %vm21913_vm15, %v12656_v31, %v12660_v15  ;;  %v12690_v42 = vrot.slane %v12689_v56, 4  ;;  %v12724_v4 = vshll.u32 %v12378_v13, 16  ;;  %19481 = vmatmul.mubr.msk.bf16.gmra.mrb[80].mxu0 %vm1958_vm12, %v17819_v58  ;;  %v24536_v15 = vld [vmem:[#allocation4 + $0xb8] sm:$0xf] }
 0x5b6   : > { %v12703_v39 = vor.u32 %v12702_v33, %v12699_v54  ;;  %v12712_v28 = vrot.slane %v12710_v50, 4  ;;  %v12723_v61 = vrot.slane %v12721_v14, 4  ;;  %v12730_v40 = vshll.u32 %v24517_v57, 16  ;;  %v24541_v54 = vld [vmem:[#allocation4 + $0xbc] sm:$0x1] }
 0x5b7   : > { %19484 = vmatprep.mubr.msk.bf16.mxu0 %vm1958_vm12, %v17820_v46  ;;  %v17821_v27 = vcombine.low %v12661_v32, %v12671_v18  ;;  %v12685_v17 = vsel %vm21913_vm15, %v12680_v45, %v12684_v59  ;;  %v12726_v7 = vrot.slane %v12724_v4, 5  ;;  %v12734_v52 = vshrl.u32 %v24517_v57, 16  ;;  %v13074_v46 = vld [vmem:[#allocation4] sm:$0xe] }
 0x5b8   : > { %v12695_v58 = vsel %vm21913_vm15, %v12690_v42, %v12694_v29  ;;  %v12713_v31 = vor.u32 %v12712_v28, %v12708_v22  ;;  %v12718_v13 = vrot.slane %v12716_v35, 5  ;;  %v12732_v51 = vrot.slane %v12730_v40, 5 }
 0x5b9   : > { %v12727_v37 = vor.u32 %v12726_v7, %v12723_v61  ;;  %v12736_v30 = vrot.slane %v12734_v52, 4  ;;  %v12740_v60 = vshll.u32 %v24526_v49, 16  ;;  %v12745_v43 = vshrl.u32 %v12381_v62, 16 }
 0x5ba   : > { %v12704_v18 = vrot.slane %v12703_v39, 4  ;;  %v12714_v59 = vrot.slane %v12713_v31, 4  ;;  %v12748_v45 = vshll.u32 %v12381_v62, 16  ;;  %v12754_v56 = vshll.u32 %v24536_v15, 16  ;;  %v21034_v31 = vld [vmem:[#allocation4 + $0x4] sm:$0xf] }
 0x5bb   : > { %v12728_v33 = vrot.slane %v12727_v37, 4  ;;  %v12737_v50 = vor.u32 %v12736_v30, %v12732_v51  ;;  %v12747_v14 = vrot.slane %v12745_v43, 4  ;;  %v12758_v29 = vshrl.u32 %v24536_v15, 16  ;;  %v13075_v30 = vld [vmem:[#allocation4 + $0xc] sm:$0xe] }
 0x5bc   : > { %v12719_v35 = vsel %vm21913_vm15, %v12714_v59, %v12718_v13  ;;  %v12750_v32 = vrot.slane %v12748_v45, 5  ;;  %v12756_v42 = vrot.slane %v12754_v56, 5  ;;  %v12764_v4 = vshll.u32 %v24541_v54, 16 }
 0x5bd   : > { %v17822_v28 = vcombine.low %v12685_v17, %v12695_v58  ;;  %v12738_v61 = vrot.slane %v12737_v50, 4  ;;  %v12742_v39 = vrot.slane %v12740_v60, 5  ;;  %v12760_v40 = vrot.slane %v12758_v29, 4  ;;  %19485 = vmatmul.mubr.msk.bf16.gmra.mrb[84].mxu0 %vm1958_vm12, %v17821_v27  ;;  %v21035_v58 = vld [vmem:[#allocation4 + $0x8] sm:$0x1] }
 0x5be   : > { %v12709_v62 = vsel %vm21913_vm15, %v12704_v18, %v12708_v22  ;;  %v12751_v7 = vor.u32 %v12750_v32, %v12747_v14  ;;  %v17844_v52 = vrot.slane %v13074_v46, 9  ;;  %v13140_v37 = vrot.slane %v21034_v31, 5  ;;  %v13076_v18 = vld [vmem:[#allocation4 + $0x18] sm:$0xe] }
 0x5bf   : > { %19488 = vmatprep.mubr.msk.bf16.mxu0 %vm1958_vm12, %v17822_v28  ;;  %v17823_v13 = vcombine.low %v12709_v62, %v12719_v35  ;;  %v12743_v43 = vsel %vm21913_vm15, %v12738_v61, %v12742_v39  ;;  %v12761_v17 = vor.u32 %v12760_v40, %v12756_v42  ;;  %v13143_v60 = vrot.slane %v21035_v58, 5 }
 0x5c0   : > { %v12733_v27 = vsel %vm21913_vm15, %v12728_v33, %v12732_v51  ;;  %v12752_v59 = vrot.slane %v12751_v7, 4  ;;  %v12766_v45 = vrot.slane %v12764_v4, 5  ;;  %v13142_v22 = vrot.slane %v13140_v37, 4  ;;  %v13077_v33 = vld [vmem:[#allocation4 + $0x24] sm:$0xe] }
 0x5c1   : > { %v12762_v56 = vrot.slane %v12761_v17, 4  ;;  %v24558_v50 = vsel %vm21573_vm8, %v17844_v52, %v13140_v37  ;;  %v17845_v14 = vrot.slane %v13075_v30, 9  ;;  %v13147_v29 = vrot.slane %v24336_v0, 5  ;;  %v13079_v37 = vld [vmem:[#allocation4 + $0x3c] sm:$0xe] }
 0x5c2   : > { %v17824_v46 = vcombine.low %v12733_v27, %v12743_v43  ;;  %v24563_v35 = vsel %vm21573_vm8, %v13142_v22, %v13143_v60  ;;  %v13150_v32 = vrot.slane %v24338_v10, 5  ;;  %v13154_v51 = vrot.slane %v24347_v26, 5  ;;  %v13078_v26 = vld [vmem:[#allocation4 + $0x30] sm:$0xe]  ;;  %v13080_v27 = vld [vmem:[#allocation4 + $0x48] sm:$0xe] }
 0x5c3   : > { %v12757_v4 = vsel %vm21913_vm15, %v12752_v59, %v12756_v42  ;;  %v12767_v28 = vsel %vm21913_vm15, %v12762_v56, %v12766_v45  ;;  %v13149_v61 = vrot.slane %v13147_v29, 4  ;;  %v17846_v39 = vrot.slane %v13076_v18, 9 }
 0x5c4   : > { %v17864_v0 = vcombine.low %v24558_v50, %v24563_v35  ;;  %v24575_v40 = vsel %vm21573_vm8, %v17845_v14, %v13147_v29  ;;  %v13156_v62 = vrot.slane %v13154_v51, 4  ;;  %v13157_v10 = vrot.slane %v24365_v20, 5  ;;  %v13081_v50 = vld [vmem:[#allocation4 + $0x54] sm:$0xe] }
 0x5c5   : > { %v17825_v7 = vcombine.low %v12757_v4, %v12767_v28  ;;  %v24580_v42 = vsel %vm21573_vm8, %v17846_v39, %v13154_v51  ;;  %v17847_v52 = vrot.slane %v13077_v33, 9  ;;  %v13161_v31 = vrot.slane %v24353_v11, 5  ;;  %19489 = vmatmul.mubr.msk.bf16.gmra.mrb[88].mxu0 %vm1958_vm12, %v17823_v13  ;;  %v13082_v51 = vld [vmem:[#allocation4 + $0x60] sm:$0xe]  ;;  %v13083_v39 = vld [vmem:[#allocation4 + $0x6c] sm:$0xe] }
 0x5c6   : > { %v24586_v30 = vsel %vm21573_vm8, %v13149_v61, %v13150_v32  ;;  %v24590_v43 = vsel %vm21573_vm8, %v13156_v62, %v13157_v10  ;;  %v13164_v20 = vrot.slane %v24372_v9, 5  ;;  %v13168_v17 = vrot.slane %v24377_v41, 5  ;;  %19492 = vmatprep.mubr.msk.bf16.mxu0 %vm1958_vm12, %v17824_v46 }
 0x5c7   : > { %v17866_v11 = vcombine.low %v24580_v42, %v24590_v43  ;;  %v13163_v58 = vrot.slane %v13161_v31, 4  ;;  %v17848_v60 = vrot.slane %v13078_v26, 9  ;;  %v13171_v13 = vrot.slane %v24386_v5, 5  ;;  %v20831_v42 = vld [vmem:[%s26036_s6 + $0x40] sm:$0xff]  }
 0x5c8   : > { %v24600_v59 = vsel %vm21573_vm8, %v17847_v52, %v13161_v31  ;;  %v13170_v45 = vrot.slane %v13168_v17, 4  ;;  %v17849_v22 = vrot.slane %v13079_v37, 9  ;;  %v13175_v9 = vrot.slane %v24391_v48, 5 }
 0x5c9   : > { %v24605_v41 = vsel %vm21573_vm8, %v13163_v58, %v13164_v20  ;;  %v24609_v18 = vsel %vm21573_vm8, %v17848_v60, %v13168_v17  ;;  %v13178_v56 = vrot.slane %v24396_v1, 5  ;;  %v13182_v5 = vrot.slane %v24399_v21, 5  ;;  %v13084_v20 = vld [vmem:[#allocation4 + $0x78] sm:$0xe] }
 0x5ca   : > { %v17867_v14 = vcombine.low %v24600_v59, %v24605_v41  ;;  %v24617_v29 = vsel %vm21573_vm8, %v13170_v45, %v13171_v13  ;;  %v13177_v48 = vrot.slane %v13175_v9, 4  ;;  %v17850_v46 = vrot.slane %v13080_v27, 9  ;;  %v20832_v59 = vld [vmem:[#allocation4 + $0x18] sm:$0xff]  }
 0x5cb   : > { %v17868_v35 = vcombine.low %v24609_v18, %v24617_v29  ;;  %v24623_v32 = vsel %vm21573_vm8, %v17849_v22, %v13175_v9  ;;  %v13184_v1 = vrot.slane %v13182_v5, 4  ;;  %v13185_v21 = vrot.slane %v24411_v63, 5  ;;  %v13085_v22 = vld [vmem:[#allocation4 + $0x84] sm:$0xe]  ;;  %v20840_v41 = vld [vmem:[%s26036_s6 + $0x48] sm:$0xff]  }
 0x5cc   : > { %v24628_v33 = vsel %vm21573_vm8, %v13177_v48, %v13178_v56  ;;  %v24632_v4 = vsel %vm21573_vm8, %v17850_v46, %v13182_v5  ;;  %v17851_v28 = vrot.slane %v13081_v50, 9  ;;  %v13189_v61 = vrot.slane %v24423_v12, 5  ;;  %v20833_v18 = vld [vmem:[#allocation4 + $0x24] sm:$0xff]   ;;  %v13926_v29 = vld [vmem:[#allocation4 + $0xc] sm:$0xf] }
 0x5cd   : > { %v17869_v62 = vcombine.low %v24623_v32, %v24628_v33  ;;  %v24639_v10 = vsel %vm21573_vm8, %v13184_v1, %v13185_v21  ;;  %v13192_v63 = vrot.slane %v24426_v34, 5  ;;  %v13196_v26 = vrot.slane %v24436_v8, 5  ;;  %19493 = vmatmul.mubr.msk.bf16.gmra.mrb[92].mxu0 %vm1958_vm12, %v17825_v7  ;;  %v20835_v32 = vld [vmem:[#allocation4 + $0x3c] sm:$0xff]  }
 0x5ce   : > { %v17870_v52 = vcombine.low %v24632_v4, %v24639_v10  ;;  %v13191_v31 = vrot.slane %v13189_v61, 4  ;;  %v17852_v37 = vrot.slane %v13082_v51, 9  ;;  %v13199_v12 = vrot.slane %v24446_v47, 5  ;;  %19500 = vmatprep.mubr.msk.bf16.mxu0 %vm1958_vm12, %v17864_v0  ;;  %v24766_v4 = vld [vmem:[#allocation4 + $0x10] sm:$0xf] }
 0x5cf   : > { %v24650_v17 = vsel %vm21573_vm8, %v17851_v28, %v13189_v61  ;;  %v13198_v58 = vrot.slane %v13196_v26, 4  ;;  %v17853_v34 = vrot.slane %v13083_v39, 9  ;;  %v13203_v8 = vrot.slane %v24453_v53, 5  ;;  %v13087_v28 = vld [vmem:[#allocation4 + $0x9c] sm:$0xe]  ;;  %26235 = vst [vmem:[#allocation43_spill] sm:$0xff] %v24766_v4 }
 0x5d0   : > { %v24655_v7 = vsel %vm21573_vm8, %v13191_v31, %v13192_v63  ;;  %v24659_v60 = vsel %vm21573_vm8, %v17852_v37, %v13196_v26  ;;  %v13206_v47 = vrot.slane %v24459_v24, 5  ;;  %v13210_v0 = vrot.slane %v24467_v2, 5  ;;  %v13086_v2 = vld [vmem:[#allocation4 + $0x90] sm:$0xe]  ;;  %v24768_v10 = vld [vmem:[#allocation4 + $0x28] sm:$0xf] }
 0x5d1   : > { %v17871_v13 = vcombine.low %v24650_v17, %v24655_v7  ;;  %v24667_v27 = vsel %vm21573_vm8, %v13198_v58, %v13199_v12  ;;  %v13205_v53 = vrot.slane %v13203_v8, 4  ;;  %v17854_v45 = vrot.slane %v13084_v20, 9  ;;  %v13088_v20 = vld [vmem:[#allocation4 + $0xa8] sm:$0xe]  ;;  %v24772_v17 = vld [vmem:[#allocation4 + $0x2c] sm:$0x1] }
 0x5d2   : > { %v17865_v9 = vcombine.low %v24575_v40, %v24586_v30  ;;  %v17872_v56 = vcombine.low %v24659_v60, %v24667_v27  ;;  %v13212_v5 = vrot.slane %v13210_v0, 4  ;;  %v13213_v24 = vrot.slane %v24470_v55, 5  ;;  %v20829_v40 = vld [vmem:[%s26036_s6 + $0x38] sm:$0xff]   ;;  %v24774_v7 = vld [vmem:[#allocation4 + $0x34] sm:$0xf] }
 0x5d3   : > { %v13204_v50 = vsel %vm21573_vm8, %v17853_v34, %v13203_v8  ;;  %v13207_v48 = vsel %vm21573_vm8, %v13205_v53, %v13206_v47  ;;  %v13211_v46 = vsel %vm21573_vm8, %v17854_v45, %v13210_v0  ;;  %v13217_v1 = vrot.slane %v24480_v3, 5  ;;  %v13089_v0 = vld [vmem:[#allocation4 + $0xb4] sm:$0xe] }
 0x5d4   : > { %v17873_v30 = vcombine.low %v13204_v50, %v13207_v48  ;;  %v13214_v55 = vsel %vm21573_vm8, %v13212_v5, %v13213_v24  ;;  %v17855_v21 = vrot.slane %v13085_v22, 9  ;;  %v13224_v51 = vrot.slane %v24498_v44, 5  ;;  %v20836_v48 = vld [vmem:[#allocation4 + $0x48] sm:$0xff]  }
 0x5d5   : > { %v17874_v61 = vcombine.low %v13211_v46, %v13214_v55  ;;  %v13219_v39 = vrot.slane %v13217_v1, 4  ;;  %v13220_v63 = vrot.slane %v24491_v36, 5  ;;  %v17856_v26 = vrot.slane %v13086_v2, 9  ;;  %19501 = vmatmul.mubr.msk.bf16.vlgmr.msra.gmra.mrb[64].mxu0 %vm1958_vm12, %v17865_v9  ;;  %v20837_v55 = vld [vmem:[#allocation4 + $0x54] sm:$0xff]  }
 0x5d6   : > { %v13218_v3 = vsel %vm21573_vm8, %v17855_v21, %v13217_v1  ;;  %v13226_v31 = vrot.slane %v13224_v51, 4  ;;  %v13227_v37 = vrot.slane %v24502_v6, 5  ;;  %v13231_v12 = vrot.slane %v24505_v25, 5  ;;  %19533 = vmatpush3.bf16.msra.mxu0 %v24431_v16  ;;  %19504 = vmatprep.mubr.msk.bf16.mxu0 %vm1958_vm12, %v17866_v11 }
 0x5d7   : > { %v13221_v36 = vsel %vm21573_vm8, %v13219_v39, %v13220_v63  ;;  %v13225_v44 = vsel %vm21573_vm8, %v17856_v26, %v13224_v51  ;;  %v17857_v58 = vrot.slane %v13087_v28, 9  ;;  %v13238_v34 = vrot.slane %v24517_v57, 5  ;;  %19534 = vmatprep.subr.bf16.mxu0 %v20829_v40  ;;  %v24785_v28 = vld [vmem:[#allocation4 + $0x40] sm:$0xf] }
 0x5d8   : > { %v17875_v6 = vcombine.low %v13218_v3, %v13221_v36  ;;  %v13228_v25 = vsel %vm21573_vm8, %v13226_v31, %v13227_v37  ;;  %v13233_v16 = vrot.slane %v13231_v12, 4  ;;  %v13234_v8 = vrot.slane %v24511_v38, 5  ;;  %v14668_v31 = vld [vmem:[#allocation4 + $0x3c] sm:$0xe]  ;;  %v14669_v36 = vld [vmem:[#allocation4 + $0x48] sm:$0xe] }
 0x5d9   : > { %v17876_v43 = vcombine.low %v13225_v44, %v13228_v25  ;;  %v17858_v11 = vrot.slane %v13088_v20, 9  ;;  %v13240_v60 = vrot.slane %v13238_v34, 4  ;;  %v13241_v47 = vrot.slane %v24526_v49, 5  ;;  %v24795_v44 = vld [vmem:[#allocation4 + $0x50] sm:$0x1] }
 0x5da   : > { %v13232_v57 = vsel %vm21573_vm8, %v17857_v58, %v13231_v12  ;;  %v13235_v27 = vsel %vm21573_vm8, %v13233_v16, %v13234_v8  ;;  %v13245_v53 = vrot.slane %v24536_v15, 5  ;;  %19535 = vmatpush3.bf16.msra.mxu0 %v20829_v40  ;;  %v17859_v5 = vrot.slane %v13089_v0, 9  ;;  %v24792_v12 = vld [vmem:[#allocation4 + $0x4c] sm:$0xf]  ;;  %v24797_v58 = vld [vmem:[#allocation4 + $0x58] sm:$0xf] }
 0x5db   : > { %v17877_v38 = vcombine.low %v13232_v57, %v13235_v27  ;;  %v13239_v45 = vsel %vm21573_vm8, %v17858_v11, %v13238_v34  ;;  %v13242_v22 = vsel %vm21573_vm8, %v13240_v60, %v13241_v47  ;;  %v13248_v24 = vrot.slane %v24541_v54, 5  ;;  %19568 = vmatprep.subr.bf16.mxu0 %v20831_v42  ;;  %v20830_v54 = vld [vmem:[#allocation4 + $0xc] sm:$0xff]   ;;  %v24809_v8 = vld [vmem:[#allocation4 + $0x5c] sm:$0x1]  ;;  %v14670_v47 = vld [vmem:[#allocation4 + $0x54] sm:$0xe] }
 0x5dc   : > { %v17878_v9 = vcombine.low %v13239_v45, %v13242_v22  ;;  %v13247_v49 = vrot.slane %v13245_v53, 4  ;;  %v13246_v15 = vsel %vm21573_vm8, %v17859_v5, %v13245_v53  ;;  %v13975_v33 = vshrl.u32 %v13926_v29, 16  ;;  %v24818_v0 = vld [vmem:[#allocation4 + $0x64] sm:$0xf] }
 0x5dd   : > { %19505 = vmatmul.mubr.msk.bf16.gmra.mrb[68].mxu0 %vm1958_vm12, %v17867_v14  ;;  %v24761_v14 = vld [vmem:[%s26036_s6 + $0x50] sm:$0xff]   ;;  %v13984_v1 = vshll.u32 %v24766_v4, 16  ;;  %v14744_v40 = vrot.slane %v24768_v10, 5  ;;  %v13988_v51 = vshrl.u32 %v24766_v4, 16  ;;  %v14747_v26 = vrot.slane %v24772_v17, 5 }
 0x5de   : > { %v13249_v2 = vsel %vm21573_vm8, %v13247_v49, %v13248_v24  ;;  %19508 = vmatprep.mubr.msk.bf16.mxu0 %vm1958_vm12, %v17868_v35  ;;  %v20834_v35 = vld [vmem:[#allocation4 + $0x30] sm:$0xff]   ;;  %v24778_v46 = vrot.slane %v13975_v33, 4  ;;  %v14751_v3 = vrot.slane %v24774_v7, 5  ;;  %v17978_v11 = vrot.slane %v14668_v31, 9  ;;  %v14671_v49 = vld [vmem:[#allocation4 + $0x60] sm:$0xe] }
 0x5df   : > { %v17879_v50 = vcombine.low %v13246_v15, %v13249_v2  ;;  %v14746_v63 = vrot.slane %v14744_v40, 4  ;;  %v14758_v60 = vrot.slane %v24785_v28, 5  ;;  %v17979_v53 = vrot.slane %v14669_v36, 9  ;;  %v13929_v24 = vld [vmem:[#allocation4 + $0x18] sm:$0xf]  ;;  %v20838_v33 = vld [vmem:[#allocation4 + $0x60] sm:$0xff]  }
 0x5e0   : > { %v14753_v25 = vrot.slane %v14751_v3, 4  ;;  %v14772_v5 = vrot.slane %v24797_v58, 5  ;;  %v24830_v15 = vld [vmem:[#allocation4 + $0x68] sm:$0x1]  ;;  %v13999_v36 = vshrl.u32 %v13929_v24, 16  ;;  %v14032_v45 = vshll.u32 %v24768_v10, 16 }
 0x5e1   : > { %v14760_v22 = vrot.slane %v14758_v60, 4  ;;  %v24834_v2 = vsel %vm21573_vm8, %v17978_v11, %v14758_v60  ;;  %v14672_v11 = vld [vmem:[#allocation4 + $0x6c] sm:$0xe] }
 0x5e2   : > { %26241 = vst [vmem:[#allocation49_spill] sm:$0xff] %v24834_v2 }
 0x5e5   : > { %19509 = vmatmul.mubr.msk.bf16.gmra.mrb[72].mxu0 %vm1958_vm12, %v17869_v62  ;;  %v13978_v62 = vshll.u32 %v13926_v29, 16  ;;  %v14774_v29 = vrot.slane %v14772_v5, 4 }
 0x5e6   : > { %19512 = vmatprep.mubr.msk.bf16.mxu0 %vm1958_vm12, %v17870_v52  ;;  %v24770_v52 = vld [vmem:[#allocation4 + $0x14] sm:$0x1] }
 0x5e7   : > { %26236 = vst [vmem:[#allocation44_spill] sm:$0xff] %v24770_v52  ;;  %v24782_v21 = vrot.slane %v13978_v62, 5  ;;  %v13994_v37 = vshll.u32 %v24770_v52, 16  ;;  %v20839_v62 = vld [vmem:[#allocation4 + $0x6c] sm:$0xff]  }
 0x5ed   : > { %19513 = vmatmul.mubr.msk.bf16.gmra.mrb[76].mxu0 %vm1958_vm12, %v17871_v13  ;;  %v24776_v13 = vld [vmem:[#allocation4 + $0x38] sm:$0x1] }
 0x5ee   : > { %19516 = vmatprep.mubr.msk.bf16.mxu0 %vm1958_vm12, %v17872_v56  ;;  %v14666_v56 = vld [vmem:[#allocation4 + $0x24] sm:$0xe]  ;;  %v14754_v16 = vrot.slane %v24776_v13, 5 }
 0x5ef   : > { %v17976_v39 = vrot.slane %v14666_v56, 9  ;;  %v24848_v56 = vld [vmem:[#allocation4 + $0x7c] sm:$0xf] }
 0x5f0   : > { %v24822_v57 = vsel %vm21573_vm8, %v14753_v25, %v14754_v16  ;;  %v24872_v25 = vld [vmem:[#allocation4 + $0x80] sm:$0x1]  ;;  %v14674_v16 = vld [vmem:[#allocation4 + $0x84] sm:$0xe] }
 0x5f1   : > { %v24801_v34 = vsel %vm21573_vm8, %v17976_v39, %v14744_v40  ;;  %26240 = vst [vmem:[#allocation48_spill] sm:$0xff] %v24822_v57  ;;  %v24860_v39 = vld [vmem:[#allocation4 + $0x1c] sm:$0xf] }
 0x5f2   : > { %26237 = vst [vmem:[#allocation45_spill] sm:$0xff] %v24801_v34  ;;  %26246 = vst [vmem:[#allocation11_spill] sm:$0xff] %v24860_v39  ;;  %v13941_v34 = vld [vmem:[#allocation4 + $0x48] sm:$0xf] }
 0x5f5   : > { %19517 = vmatmul.mubr.msk.bf16.gmra.mrb[80].mxu0 %vm1958_vm12, %v17873_v30  ;;  %v14667_v30 = vld [vmem:[#allocation4 + $0x30] sm:$0xe] }
 0x5f6   : > { %19520 = vmatprep.mubr.msk.bf16.mxu0 %vm1958_vm12, %v17874_v61  ;;  %v24787_v61 = vld [vmem:[#allocation4 + $0x44] sm:$0x1]  ;;  %v17977_v20 = vrot.slane %v14667_v30, 9 }
 0x5f7   : > { %v14761_v27 = vrot.slane %v24787_v61, 5 }
 0x5fd   : > { %19521 = vmatmul.mubr.msk.bf16.gmra.mrb[84].mxu0 %vm1958_vm12, %v17875_v6  ;;  %v24805_v6 = vsel %vm21573_vm8, %v14746_v63, %v14747_v26  ;;  %v24862_v63 = vld [vmem:[#allocation4 + $0x74] sm:$0x1] }
 0x5fe   : > { %19524 = vmatprep.mubr.msk.bf16.mxu0 %vm1958_vm12, %v17876_v43  ;;  %26238 = vst [vmem:[#allocation46_spill] sm:$0xff] %v24805_v6  ;;  %v24815_v43 = vsel %vm21573_vm8, %v17977_v20, %v14751_v3  ;;  %v14782_v20 = vrot.slane %v24830_v15, 5  ;;  %v25038_v6 = vld [vmem:[#allocation4 + $0xc4] sm:$0xf] }
 0x5ff   : > { %26239 = vst [vmem:[#allocation47_spill] sm:$0xff] %v24815_v43  ;;  %v25020_v43 = vld [vmem:[#allocation4 + $0xb8] sm:$0xf] }
 0x605   : > { %19525 = vmatmul.mubr.msk.bf16.gmra.mrb[88].mxu0 %vm1958_vm12, %v17877_v38  ;;  %v14765_v38 = vrot.slane %v24792_v12, 5 }
 0x606   : > { %19528 = vmatprep.mubr.msk.bf16.mxu0 %vm1958_vm12, %v17878_v9  ;;  %v14768_v9 = vrot.slane %v24795_v44, 5 }
 0x60d   : > { %19529 = vmatmul.mubr.msk.bf16.gmra.mrb[92].mxu0 %vm1958_vm12, %v17879_v50  ;;  %v24838_v50 = vsel %vm21573_vm8, %v17979_v53, %v14765_v38 }
 0x60e   : > { %19536 = vmatprep.mubr.msk.bf16.mxu0 %vm1958_vm12, %v20830_v54  ;;  %26242 = vst [vmem:[#allocation51_spill] sm:$0xff] %v24838_v50  ;;  %v14767_v54 = vrot.slane %v14765_v38, 4  ;;  %v14673_v38 = vld [vmem:[#allocation4 + $0x78] sm:$0xe] }
 0x610   : > { %v24854_v40 = vsel %vm21573_vm8, %v14767_v54, %v14768_v9  ;;  %v14789_v54 = vrot.slane %v24862_v63, 5 }
 0x611   : > { %26244 = vst [vmem:[#allocation53_spill] sm:$0xff] %v24854_v40 }
 0x615   : > { %19537 = vmatmul.mubr.msk.bf16.vlgmr.msra.gmra.mrb[64].mxu0 %vm1958_vm12, %v20832_v59  ;;  %v17980_v59 = vrot.slane %v14670_v47, 9  ;;  %v14002_v47 = vshll.u32 %v13929_v24, 16  ;;  %v14008_v24 = vshll.u32 %v24860_v39, 16 }
 0x616   : > { %19569 = vmatpush3.bf16.msra.mxu0 %v20831_v42  ;;  %19540 = vmatprep.mubr.msk.bf16.mxu0 %vm1958_vm12, %v20833_v18  ;;  %v24844_v18 = vsel %vm21573_vm8, %v14760_v22, %v14761_v27  ;;  %v14793_v22 = vrot.slane %v24848_v56, 5 }
 0x617   : > { %19570 = vmatprep.subr.bf16.mxu0 %v20840_v41  ;;  %26243 = vst [vmem:[#allocation50_spill] sm:$0xff] %v24844_v18  ;;  %v24858_v30 = vsel %vm21573_vm8, %v17980_v59, %v14772_v5  ;;  %v17982_v5 = vrot.slane %v14672_v11, 9  ;;  %v17983_v59 = vrot.slane %v14673_v38, 9  ;;  %v24908_v11 = vld [vmem:[#allocation4 + $0x20] sm:$0x1]  ;;  %v24932_v9 = vrot.slane %v14002_v47, 5 }
 0x618   : > { %26245 = vst [vmem:[#allocation52_spill] sm:$0xff] %v24858_v30  ;;  %26252 = vst [vmem:[#allocation17_spill] sm:$0xff] %v24908_v11  ;;  %v24910_v38 = vld [vmem:[#allocation4 + $0x88] sm:$0xf]  ;;  %v24978_v30 = vld [vmem:[#allocation4 + $0xac] sm:$0xf] }
 0x619   : > { %v14800_v26 = vrot.slane %v24910_v38, 5 }
 0x61a   : > { %19571 = vmatpush3.bf16.msra.mxu0 %v20840_v41  ;;  %v24840_v41 = vld [vmem:[#allocation4 + $0x70] sm:$0xf] }
 0x61b   : > { %19604 = vmatprep.subr.bf16.mxu0 %v24761_v14  ;;  %v14786_v60 = vrot.slane %v24840_v41, 5  ;;  %v14802_v42 = vrot.slane %v14800_v26, 4 }
 0x61d   : > { %19541 = vmatmul.mubr.msk.bf16.gmra.mrb[68].mxu0 %vm1958_vm12, %v20834_v35  ;;  %v14775_v35 = vrot.slane %v24809_v8, 5 }
 0x61e   : > { %19544 = vmatprep.mubr.msk.bf16.mxu0 %vm1958_vm12, %v20835_v32  ;;  %v14779_v32 = vrot.slane %v24818_v0, 5 }
 0x61f   : > { %v24868_v3 = vsel %vm21573_vm8, %v14774_v29, %v14775_v35  ;;  %v14795_v29 = vrot.slane %v14793_v22, 4  ;;  %v14796_v35 = vrot.slane %v24872_v25, 5 }
 0x620   : > { %26247 = vst [vmem:[#allocation12_spill] sm:$0xff] %v24868_v3  ;;  %v14781_v31 = vrot.slane %v14779_v32, 4  ;;  %v24961_v3 = vld [vmem:[#allocation4 + $0xa0] sm:$0xf] }
 0x622   : > { %v24884_v53 = vsel %vm21573_vm8, %v14781_v31, %v14782_v20  ;;  %v20841_v31 = vld [vmem:[#allocation4 + $0x78] sm:$0xff]   ;;  %v13990_v20 = vrot.slane %v13988_v51, 4  ;;  %v13932_v51 = vld [vmem:[#allocation4 + $0x24] sm:$0xf] }
 0x623   : > { %26249 = vst [vmem:[#allocation14_spill] sm:$0xff] %v24884_v53  ;;  %v14026_v53 = vshll.u32 %v13932_v51, 16 }
 0x625   : > { %19545 = vmatmul.mubr.msk.bf16.gmra.mrb[72].mxu0 %vm1958_vm12, %v20836_v48 }
 0x626   : > { %19548 = vmatprep.mubr.msk.bf16.mxu0 %vm1958_vm12, %v20837_v55  ;;  %v17981_v55 = vrot.slane %v14671_v49, 9  ;;  %v14788_v49 = vrot.slane %v14786_v60, 4 }
 0x628   : > { %v24880_v27 = vsel %vm21573_vm8, %v17981_v55, %v14779_v32  ;;  %v13981_v32 = vor.u32 %v24782_v21, %v24778_v46  ;;  %v24904_v55 = vsel %vm21573_vm8, %v14788_v49, %v14789_v54  ;;  %v24920_v21 = vsel %vm21573_vm8, %v14795_v29, %v14796_v35  ;;  %v24926_v49 = vld [vmem:[#allocation4 + $0x94] sm:$0xf]  ;;  %v24937_v29 = vld [vmem:[#allocation4 + $0x8c] sm:$0x1]  ;;  %v24942_v35 = vld [vmem:[#allocation4 + $0x98] sm:$0x1] }
 0x629   : > { %26248 = vst [vmem:[#allocation13_spill] sm:$0xff] %v24880_v27  ;;  %26251 = vst [vmem:[#allocation16_spill] sm:$0xff] %v24904_v55  ;;  %v24930_v46 = vrot.slane %v13999_v36, 4  ;;  %v14675_v54 = vld [vmem:[#allocation4 + $0x90] sm:$0xe]  ;;  %v14807_v48 = vrot.slane %v24926_v49, 5 }
 0x62a   : > { %26254 = vst [vmem:[#allocation19_spill] sm:$0xff] %v24920_v21  ;;  %v14803_v21 = vrot.slane %v24937_v29, 5  ;;  %v17985_v55 = vrot.slane %v14675_v54, 9 }
 0x62c   : > { %v24959_v27 = vsel %vm21573_vm8, %v14802_v42, %v14803_v21  ;;  %v24967_v54 = vsel %vm21573_vm8, %v17985_v55, %v14807_v48  ;;  %v14056_v21 = vshll.u32 %v24774_v7, 16  ;;  %v24984_v55 = vrot.slane %v14032_v45, 5 }
 0x62d   : > { %19549 = vmatmul.mubr.msk.bf16.gmra.mrb[76].mxu0 %vm1958_vm12, %v20838_v33  ;;  %v24896_v33 = vrot.slane %v13984_v1, 5  ;;  %v24916_v1 = vsel %vm21573_vm8, %v17983_v59, %v14793_v22  ;;  %v24934_v22 = vrot.slane %v14008_v24, 5  ;;  %v14012_v59 = vshrl.u32 %v24860_v39, 16  ;;  %26256 = vst [vmem:[#allocation21_spill] sm:$0xff] %v24959_v27  ;;  %26257 = vst [vmem:[#allocation22_spill] sm:$0xff] %v24967_v54 }
 0x62e   : > { %19552 = vmatprep.mubr.msk.bf16.mxu0 %vm1958_vm12, %v20839_v62  ;;  %v24900_v62 = vsel %vm21573_vm8, %v17982_v5, %v14786_v60  ;;  %26253 = vst [vmem:[#allocation18_spill] sm:$0xff] %v24916_v1  ;;  %v20842_v60 = vld [vmem:[#allocation4 + $0x84] sm:$0xff]   ;;  %v24924_v5 = vrot.slane %v13994_v37, 5  ;;  %v24940_v37 = vrot.slane %v13981_v32, 4  ;;  %v14023_v24 = vshrl.u32 %v13932_v51, 16 }
 0x62f   : > { %26250 = vst [vmem:[#allocation15_spill] sm:$0xff] %v24900_v62  ;;  %v13991_v36 = vor.u32 %v13990_v20, %v24896_v33  ;;  %v17984_v32 = vrot.slane %v14674_v16, 9  ;;  %v14036_v1 = vshrl.u32 %v24768_v10, 16  ;;  %v14809_v62 = vrot.slane %v14807_v48, 4  ;;  %v24987_v27 = vld [vmem:[#allocation4 + $0xa4] sm:$0x1] }
 0x630   : > { %v14014_v20 = vrot.slane %v14012_v59, 4  ;;  %v20844_v59 = vld [vmem:[#allocation4 + $0x9c] sm:$0xff]   ;;  %v24982_v48 = vrot.slane %v14023_v24, 4  ;;  %v24995_v10 = vld [vmem:[#allocation4 + $0xb0] sm:$0x1]  ;;  %v14814_v45 = vrot.slane %v24961_v3, 5 }
 0x631   : > { %v24955_v47 = vsel %vm21573_vm8, %v17984_v32, %v14800_v26  ;;  %v20843_v26 = vld [vmem:[#allocation4 + $0x90] sm:$0xff]   ;;  %v24973_v32 = vrot.slane %v13991_v36, 4  ;;  %v14676_v24 = vld [vmem:[#allocation4 + $0x9c] sm:$0xe]  ;;  %v14821_v54 = vrot.slane %v24978_v30, 5  ;;  %v25005_v36 = vrot.slane %v14056_v21, 5 }
 0x632   : > { %26255 = vst [vmem:[#allocation20_spill] sm:$0xff] %v24955_v47  ;;  %v14015_v42 = vor.u32 %v14014_v20, %v24934_v22  ;;  %v13938_v20 = vld [vmem:[#allocation4 + $0x3c] sm:$0xf]  ;;  %v14816_v40 = vrot.slane %v14814_v45, 4  ;;  %v14817_v50 = vrot.slane %v24987_v27, 5 }
 0x633   : > { %v14823_v57 = vrot.slane %v14821_v54, 4 }
 0x634   : > { %v25018_v21 = vsel %vm21573_vm8, %v14816_v40, %v14817_v50  ;;  %v26263_v50 = vshll.u32 %v24908_v11, 16 }
 0x635   : > { %19553 = vmatmul.mubr.msk.bf16.gmra.mrb[80].mxu0 %vm1958_vm12, %v20841_v31  ;;  %v13935_v31 = vld [vmem:[#allocation4 + $0x30] sm:$0xf]  ;;  %26260 = vst [vmem:[#allocation25_spill] sm:$0xff] %v25018_v21  ;;  %v20846_v21 = vld [vmem:[#allocation4 + $0xb4] sm:$0xff]  }
 0x636   : > { %19556 = vmatprep.mubr.msk.bf16.mxu0 %vm1958_vm12, %v20842_v60  ;;  %v14810_v60 = vrot.slane %v24942_v35, 5  ;;  %v14047_v16 = vshrl.u32 %v13935_v31, 16  ;;  %v14050_v47 = vshll.u32 %v13935_v31, 16  ;;  %v17986_v31 = vrot.slane %v14676_v24, 9 }
 0x637   : > { %v14071_v24 = vshrl.u32 %v13938_v20, 16  ;;  %v25036_v40 = vrot.slane %v26263_v50, 5 }
 0x638   : > { %v24971_v51 = vsel %vm21573_vm8, %v14809_v62, %v14810_v60  ;;  %v14038_v62 = vrot.slane %v14036_v1, 4  ;;  %v14060_v60 = vshrl.u32 %v24774_v7, 16  ;;  %v24999_v7 = vrot.slane %v14026_v53, 5 }
 0x639   : > { %26258 = vst [vmem:[#allocation23_spill] sm:$0xff] %v24971_v51  ;;  %v14042_v1 = vshll.u32 %v24772_v17, 16  ;;  %v14677_v51 = vld [vmem:[#allocation4 + $0xa8] sm:$0xe]  ;;  %v14824_v53 = vrot.slane %v24995_v10, 5  ;;  %v25010_v17 = vrot.slane %v14050_v47, 5 }
 0x63a   : > { %v14062_v18 = vrot.slane %v14060_v60, 4  ;;  %v17987_v2 = vrot.slane %v14677_v51, 9  ;;  %v14029_v50 = vor.u32 %v24999_v7, %v24982_v48  ;;  %v25057_v51 = vld [vmem:[#allocation4 + $0xc8] sm:$0x1] }
 0x63b   : > { %v25030_v47 = vsel %vm21573_vm8, %v14823_v57, %v14824_v53  ;;  %v14066_v57 = vshll.u32 %v24776_v13, 16  ;;  %v25047_v53 = vld [vmem:[#allocation4 + $0xbc] sm:$0x1]  ;;  %v14828_v13 = vrot.slane %v25020_v43, 5  ;;  %v14838_v4 = vrot.slane %v25057_v51, 5 }
 0x63c   : > { %v25026_v60 = vsel %vm21573_vm8, %v17987_v2, %v14821_v54  ;;  %26262 = vst [vmem:[#allocation27_spill] sm:$0xff] %v25030_v47  ;;  %v25042_v2 = vrot.slane %v14042_v1, 5  ;;  %v14063_v54 = vor.u32 %v14062_v18, %v25005_v36  ;;  %v14084_v1 = vshrl.u32 %v24785_v28, 16  ;;  %v14678_v18 = vld [vmem:[#allocation4 + $0xb4] sm:$0xe] }
 0x63d   : > { %19557 = vmatmul.mubr.msk.bf16.gmra.mrb[84].mxu0 %vm1958_vm12, %v20843_v26  ;;  %v25002_v26 = vrot.slane %v14047_v16, 4  ;;  %v25014_v16 = vsel %vm21573_vm8, %v17986_v31, %v14814_v45  ;;  %26261 = vst [vmem:[#allocation26_spill] sm:$0xff] %v25026_v60  ;;  %v25032_v45 = vrot.slane %v14015_v42, 4  ;;  %v14074_v31 = vshll.u32 %v13938_v20, 16 }
 0x63e   : > { %19560 = vmatprep.mubr.msk.bf16.mxu0 %vm1958_vm12, %v20844_v59  ;;  %v14039_v59 = vor.u32 %v14038_v62, %v24984_v55  ;;  %26259 = vst [vmem:[#allocation24_spill] sm:$0xff] %v25014_v16  ;;  %v20845_v62 = vld [vmem:[#allocation4 + $0xa8] sm:$0xff]   ;;  %v14080_v42 = vshll.u32 %v24785_v28, 16  ;;  %v13997_v20 = vsel %vm21913_vm15, %v24973_v32, %v24924_v5  ;;  %v14073_v60 = vrot.slane %v14071_v24, 4  ;;  %v14679_v16 = vld [vmem:[#allocation4 + $0xc0] sm:$0xe] }
 0x63f   : > { %v14835_v5 = vrot.slane %v25038_v6, 5  ;;  %v14076_v32 = vrot.slane %v14074_v31, 5  ;;  %v17988_v48 = vrot.slane %v14678_v18, 9  ;;  %v14830_v7 = vrot.slane %v14828_v13, 4 }
 0x640   : > { %v14040_v47 = vrot.slane %v14039_v59, 4  ;;  %v14831_v28 = vrot.slane %v25047_v53, 5  ;;  %v14064_v11 = vrot.slane %v14063_v54, 4  ;;  %v17989_v39 = vrot.slane %v14679_v16, 9 }
 0x641   : > { %v14837_v52 = vrot.slane %v14835_v5, 4  ;;  %v14086_v59 = vrot.slane %v14084_v1, 4  ;;  %v14095_v24 = vshrl.u32 %v13941_v34, 16  ;;  %v14098_v1 = vshll.u32 %v13941_v34, 16 }
 0x642   : > { %v25080_v16 = vsel %vm21573_vm8, %v17989_v39, %v14835_v5  ;;  %v14104_v18 = vshll.u32 %v24792_v12, 16  ;;  %v26265_v5 = vor.u32 %v24932_v9, %v24930_v46  ;;  %v14030_v34 = vrot.slane %v14029_v50, 4 }
 0x643   : > { %v25084_v54 = vsel %vm21573_vm8, %v14837_v52, %v14838_v4  ;;  %v14068_v52 = vrot.slane %v14066_v57, 5  ;;  %v14090_v57 = vshll.u32 %v24787_v61, 16 }
 0x644   : > { %v14006_v4 = vrot.slane %v26265_v5, 4 }
 0x645   : > { %19561 = vmatmul.mubr.msk.bf16.gmra.mrb[88].mxu0 %vm1958_vm12, %v20845_v62  ;;  %v14053_v62 = vor.u32 %v25010_v17, %v25002_v26  ;;  %v25070_v26 = vsel %vm21573_vm8, %v17988_v48, %v14828_v13  ;;  %v25074_v17 = vsel %vm21573_vm8, %v14830_v7, %v14831_v28  ;;  %v14108_v13 = vshrl.u32 %v24792_v12, 16 }
 0x646   : > { %19564 = vmatprep.mubr.msk.bf16.mxu0 %vm1958_vm12, %v20846_v21  ;;  %v25066_v21 = vrot.slane %v14080_v42, 5  ;;  %v20847_v42 = vld [vmem:[#allocation4 + $0xc0] sm:$0xff]   ;;  %v26264_v7 = vsel %vm21913_vm15, %v24940_v37, %v24896_v33  ;;  %v14021_v12 = vsel %vm21913_vm15, %v25032_v45, %v25036_v40  ;;  %v14045_v28 = vsel %vm21913_vm15, %v14040_v47, %v25042_v2  ;;  %v13944_v33 = vld [vmem:[#allocation4 + $0x54] sm:$0xf] }
 0x647   : > { %v17940_v39 = vcombine.low %v26264_v7, %v13997_v20  ;;  %v14077_v48 = vor.u32 %v14076_v32, %v14073_v60  ;;  %v14054_v37 = vrot.slane %v14053_v62, 4  ;;  %v14069_v9 = vsel %vm21913_vm15, %v14064_v11, %v14068_v52 }
 0x648   : > { %v14087_v46 = vor.u32 %v14086_v59, %v25066_v21  ;;  %v14097_v20 = vrot.slane %v14095_v24, 4  ;;  %v25111_v45 = vrot.slane %v14104_v18, 5  ;;  %v14110_v40 = vrot.slane %v14108_v13, 4 }
 0x649   : > { %v14119_v50 = vshrl.u32 %v13944_v33, 16  ;;  %v14122_v7 = vshll.u32 %v13944_v33, 16  ;;  %v14128_v60 = vshll.u32 %v24797_v58, 16  ;;  %v14132_v47 = vshrl.u32 %v24797_v58, 16 }
 0x64a   : > { %v14011_v2 = vsel %vm21913_vm15, %v14006_v4, %v24934_v22  ;;  %v14035_v11 = vsel %vm21913_vm15, %v14030_v34, %v24984_v55  ;;  %v14078_v61 = vrot.slane %v14077_v48, 4  ;;  %v14059_v59 = vsel %vm21913_vm15, %v14054_v37, %v25005_v36  ;;  %v20849_v22 = vld [vmem:[%s26036_s6 + $0x58] sm:$0xff]  }
 0x64b   : > { %v17941_v62 = vcombine.low %v14011_v2, %v14021_v12  ;;  %v17942_v32 = vcombine.low %v14035_v11, %v14045_v28  ;;  %v14092_v24 = vrot.slane %v14090_v57, 5  ;;  %v17943_v18 = vcombine.low %v14059_v59, %v14069_v9  ;;  %v13950_v28 = vld [vmem:[#allocation4 + $0x6c] sm:$0xf] }
 0x64c   : > { %v14088_v13 = vrot.slane %v14087_v46, 4  ;;  %v14121_v5 = vrot.slane %v14119_v50, 4  ;;  %v14124_v55 = vrot.slane %v14122_v7, 5  ;;  %v25128_v48 = vrot.slane %v14128_v60, 5  ;;  %v13953_v7 = vld [vmem:[#allocation4 + $0x78] sm:$0xf] }
 0x64d   : > { %19565 = vmatmul.mubr.msk.bf16.gmra.mrb[92].mxu0 %vm1958_vm12, %v20847_v42  ;;  %v14100_v42 = vrot.slane %v14098_v1, 5  ;;  %v13947_v1 = vld [vmem:[#allocation4 + $0x60] sm:$0xf]  ;;  %v14134_v4 = vrot.slane %v14132_v47, 4  ;;  %v14083_v36 = vsel %vm21913_vm15, %v14078_v61, %v25066_v21  ;;  %v14114_v52 = vshll.u32 %v24795_v44, 16 }
 0x64e   : > { %19572 = vmatprep.mubr.msk.bf16.mxu0 %vm1958_vm12, %v17940_v39  ;;  %v14111_v39 = vor.u32 %v14110_v40, %v25111_v45  ;;  %v14143_v12 = vshrl.u32 %v13947_v1, 16  ;;  %v14146_v34 = vshll.u32 %v13947_v1, 16  ;;  %v14152_v33 = vshll.u32 %v24818_v0, 16 }
 0x64f   : > { %v14101_v58 = vor.u32 %v14100_v42, %v14097_v20  ;;  %v14156_v37 = vshrl.u32 %v24818_v0, 16  ;;  %v14176_v9 = vshll.u32 %v24840_v41, 16  ;;  %v14180_v46 = vshrl.u32 %v24840_v41, 16 }
 0x650   : > { %v14093_v21 = vsel %vm21913_vm15, %v14088_v13, %v14092_v24  ;;  %v14112_v44 = vrot.slane %v14111_v39, 4  ;;  %v14138_v20 = vshll.u32 %v24809_v8, 16  ;;  %v14125_v42 = vor.u32 %v14124_v55, %v14121_v5 }
 0x651   : > { %v14102_v57 = vrot.slane %v14101_v58, 4  ;;  %v14135_v0 = vor.u32 %v14134_v4, %v25128_v48  ;;  %v14167_v40 = vshrl.u32 %v13950_v28, 16  ;;  %v14170_v50 = vshll.u32 %v13950_v28, 16 }
 0x652   : > { %v14145_v41 = vrot.slane %v14143_v12, 4  ;;  %v14148_v60 = vrot.slane %v14146_v34, 5  ;;  %v14200_v47 = vshll.u32 %v24848_v56, 16  ;;  %v14204_v2 = vshrl.u32 %v24848_v56, 16  ;;  %v13956_v34 = vld [vmem:[#allocation4 + $0x84] sm:$0xf] }
 0x653   : > { %v25152_v11 = vrot.slane %v14152_v33, 5  ;;  %v14158_v8 = vrot.slane %v14156_v37, 4  ;;  %v25154_v61 = vrot.slane %v14176_v9, 5  ;;  %v14116_v59 = vrot.slane %v14114_v52, 5 }
 0x654   : > { %v14191_v24 = vshrl.u32 %v13953_v7, 16  ;;  %v14194_v1 = vshll.u32 %v13953_v7, 16  ;;  %v14107_v13 = vsel %vm21913_vm15, %v14102_v57, %v25111_v45  ;;  %v14136_v58 = vrot.slane %v14135_v0, 4 }
 0x655   : > { %19573 = vmatmul.mubr.msk.bf16.vlgmr.msra.gmra.mrb[64].mxu0 %vm1958_vm12, %v17941_v62  ;;  %v14182_v62 = vrot.slane %v14180_v46, 4  ;;  %v14169_v39 = vrot.slane %v14167_v40, 4  ;;  %v14172_v56 = vrot.slane %v14170_v50, 5  ;;  %v14117_v5 = vsel %vm21913_vm15, %v14112_v44, %v14116_v59 }
 0x656   : > { %19605 = vmatpush3.bf16.msra.mxu0 %v24761_v14  ;;  %19576 = vmatprep.mubr.msk.bf16.mxu0 %vm1958_vm12, %v17942_v32  ;;  %v25147_v14 = vld [vmem:[%s26036_s6 + $0x60] sm:$0xff]   ;;  %v17944_v32 = vcombine.low %v14083_v36, %v14093_v21  ;;  %v14140_v55 = vrot.slane %v14138_v20, 5  ;;  %v14206_v4 = vrot.slane %v14204_v2, 4  ;;  %v14126_v36 = vrot.slane %v14125_v42, 4 }
 0x657   : > { %19606 = vmatprep.subr.bf16.mxu0 %v20849_v22  ;;  %v14149_v52 = vor.u32 %v14148_v60, %v14145_v41  ;;  %v14159_v12 = vor.u32 %v14158_v8, %v25152_v11  ;;  %v14183_v45 = vor.u32 %v14182_v62, %v25154_v61  ;;  %v14193_v28 = vrot.slane %v14191_v24, 4  ;;  %v13959_v2 = vld [vmem:[#allocation4 + $0x90] sm:$0xf] }
 0x658   : > { %v14196_v33 = vrot.slane %v14194_v1, 5  ;;  %v14228_v37 = vshrl.u32 %v24910_v38, 16  ;;  %v17945_v9 = vcombine.low %v14107_v13, %v14117_v5  ;;  %v14141_v46 = vsel %vm21913_vm15, %v14136_v58, %v14140_v55 }
 0x659   : > { %v14162_v21 = vshll.u32 %v24830_v15, 16  ;;  %v14173_v57 = vor.u32 %v14172_v56, %v14169_v39  ;;  %v14186_v44 = vshll.u32 %v24862_v63, 16  ;;  %v14215_v42 = vshrl.u32 %v13956_v34, 16 }
 0x65a   : > { %19607 = vmatpush3.bf16.msra.mxu0 %v20849_v22  ;;  %v25163_v22 = vrot.slane %v14200_v47, 5  ;;  %v14218_v0 = vshll.u32 %v13956_v34, 16  ;;  %v14131_v40 = vsel %vm21913_vm15, %v14126_v36, %v25128_v48  ;;  %v14150_v50 = vrot.slane %v14149_v52, 4 }
 0x65b   : > { %19640 = vmatprep.subr.bf16.mxu0 %v25147_v14  ;;  %v14160_v7 = vrot.slane %v14159_v12, 4  ;;  %v14197_v41 = vor.u32 %v14196_v33, %v14193_v28  ;;  %v14210_v60 = vshll.u32 %v24872_v25, 16  ;;  %v14230_v15 = vrot.slane %v14228_v37, 4  ;;  %v13962_v12 = vld [vmem:[#allocation4 + $0x9c] sm:$0xf] }
 0x65c   : > { %v14207_v20 = vor.u32 %v14206_v4, %v25163_v22  ;;  %v17946_v8 = vcombine.low %v14131_v40, %v14141_v46  ;;  %v14164_v63 = vrot.slane %v14162_v21, 5  ;;  %v14174_v62 = vrot.slane %v14173_v57, 4 }
 0x65d   : > { %19577 = vmatmul.mubr.msk.bf16.gmra.mrb[68].mxu0 %vm1958_vm12, %v17943_v18  ;;  %v14224_v18 = vshll.u32 %v24910_v38, 16  ;;  %v14184_v38 = vrot.slane %v14183_v45, 4  ;;  %v14217_v24 = vrot.slane %v14215_v42, 4  ;;  %v14220_v1 = vrot.slane %v14218_v0, 5 }
 0x65e   : > { %19580 = vmatprep.mubr.msk.bf16.mxu0 %vm1958_vm12, %v17944_v32  ;;  %v14188_v32 = vrot.slane %v14186_v44, 5  ;;  %v14208_v59 = vrot.slane %v14207_v20, 4  ;;  %v14155_v48 = vsel %vm21913_vm15, %v14150_v50, %v25152_v11  ;;  %v14165_v25 = vsel %vm21913_vm15, %v14160_v7, %v14164_v63  ;;  %v25206_v44 = vld [vmem:[#allocation4 + $0x20] sm:$0x1] }
 0x65f   : > { %v25179_v47 = vrot.slane %v14224_v18, 5  ;;  %v14239_v13 = vshrl.u32 %v13959_v2, 16  ;;  %v14242_v58 = vshll.u32 %v13959_v2, 16  ;;  %v14198_v56 = vrot.slane %v14197_v41, 4 }
 0x660   : > { %v14189_v39 = vsel %vm21913_vm15, %v14184_v38, %v14188_v32  ;;  %v14212_v5 = vrot.slane %v14210_v60, 5  ;;  %v14179_v4 = vsel %vm21913_vm15, %v14174_v62, %v25154_v61  ;;  %v14234_v36 = vshll.u32 %v24937_v29, 16  ;;  %v25201_v61 = vld [vmem:[#allocation4 + $0x1c] sm:$0xf]  ;;  %v13965_v32 = vld [vmem:[#allocation4 + $0xa8] sm:$0xf] }
 0x661   : > { %v14231_v55 = vor.u32 %v14230_v15, %v25179_v47  ;;  %v14248_v11 = vshll.u32 %v24926_v49, 16  ;;  %v14252_v52 = vshrl.u32 %v24926_v49, 16  ;;  %v14221_v34 = vor.u32 %v14220_v1, %v14217_v24 }
 0x662   : > { %v14213_v45 = vsel %vm21913_vm15, %v14208_v59, %v14212_v5  ;;  %v14272_v28 = vshll.u32 %v24961_v3, 16  ;;  %v14276_v33 = vshrl.u32 %v24961_v3, 16  ;;  %v17947_v18 = vcombine.low %v14155_v48, %v14165_v25  ;;  %v16255_v3 = vld [vmem:[#allocation4 + $0x18] sm:$0xe]  ;;  %v13968_v25 = vld [vmem:[#allocation4 + $0xb4] sm:$0xf] }
 0x663   : > { %v17948_v37 = vcombine.low %v14179_v4, %v14189_v39  ;;  %v14244_v46 = vrot.slane %v14242_v58, 5  ;;  %v14203_v29 = vsel %vm21913_vm15, %v14198_v56, %v25163_v22  ;;  %v14232_v49 = vrot.slane %v14231_v55, 4  ;;  %v25481_v4 = vld [vmem:[#allocation4 + $0xa4] sm:$0x1] }
 0x664   : > { %v14263_v21 = vshrl.u32 %v13962_v12, 16  ;;  %v14266_v57 = vshll.u32 %v13962_v12, 16  ;;  %v17949_v20 = vcombine.low %v14203_v29, %v14213_v45  ;;  %v25208_v42 = vrot.slane %v14248_v11, 5 }
 0x665   : > { %19581 = vmatmul.mubr.msk.bf16.gmra.mrb[72].mxu0 %vm1958_vm12, %v17945_v9  ;;  %v14241_v9 = vrot.slane %v14239_v13, 4  ;;  %v14254_v0 = vrot.slane %v14252_v52, 4  ;;  %v16321_v40 = vrot.slane %v25201_v61, 5  ;;  %v14222_v50 = vrot.slane %v14221_v34, 4 }
 0x666   : > { %19584 = vmatprep.mubr.msk.bf16.mxu0 %vm1958_vm12, %v17946_v8  ;;  %v14236_v7 = vrot.slane %v14234_v36, 5  ;;  %v25212_v38 = vrot.slane %v14272_v28, 5  ;;  %v14278_v41 = vrot.slane %v14276_v33, 4  ;;  %v14258_v60 = vshll.u32 %v24942_v35, 16 }
 0x667   : > { %v14245_v22 = vor.u32 %v14244_v46, %v14241_v9  ;;  %v16323_v15 = vrot.slane %v16321_v40, 4  ;;  %v16324_v2 = vrot.slane %v25206_v44, 5  ;;  %v14265_v63 = vrot.slane %v14263_v21, 4 }
 0x668   : > { %v14237_v8 = vsel %vm21913_vm15, %v14232_v49, %v14236_v7  ;;  %v14268_v62 = vrot.slane %v14266_v57, 5  ;;  %v18104_v59 = vrot.slane %v16255_v3, 9  ;;  %v14255_v24 = vor.u32 %v14254_v0, %v25208_v42  ;;  %v13971_v0 = vld [vmem:[#allocation4 + $0xc0] sm:$0xf] }
 0x669   : > { %v14296_v1 = vshll.u32 %v24978_v30, 16  ;;  %v14300_v48 = vshrl.u32 %v24978_v30, 16  ;;  %v25224_v35 = vsel %vm21573_vm8, %v16323_v15, %v16324_v2  ;;  %v14279_v13 = vor.u32 %v14278_v41, %v25212_v38 }
 0x66a   : > { %26266 = vst [vmem:[#allocation28_spill] sm:$0xff] %v25224_v35  ;;  %v14320_v58 = vshll.u32 %v25020_v43, 16  ;;  %v14324_v39 = vshrl.u32 %v25020_v43, 16  ;;  %v25231_v56 = vsel %vm21573_vm8, %v18104_v59, %v16321_v40  ;;  %v14227_v5 = vsel %vm21913_vm15, %v14222_v50, %v25179_v47 }
 0x66b   : > { %26267 = vst [vmem:[#allocation29_spill] sm:$0xff] %v25231_v56  ;;  %v14287_v30 = vshrl.u32 %v13965_v32, 16  ;;  %v14290_v55 = vshll.u32 %v13965_v32, 16  ;;  %v14269_v36 = vor.u32 %v14268_v62, %v14265_v63  ;;  %v14282_v11 = vshll.u32 %v24987_v27, 16  ;;  %v20869_v56 = vld [vmem:[#allocation4 + $0xcc] sm:$0xff]  }
 0x66c   : > { %v14311_v52 = vshrl.u32 %v13968_v25, 16  ;;  %v14314_v12 = vshll.u32 %v13968_v25, 16  ;;  %v17950_v45 = vcombine.low %v14227_v5, %v14237_v8  ;;  %v14256_v43 = vrot.slane %v14255_v24, 4 }
 0x66d   : > { %19585 = vmatmul.mubr.msk.bf16.gmra.mrb[76].mxu0 %vm1958_vm12, %v17947_v18  ;;  %v14298_v34 = vrot.slane %v14296_v1, 5  ;;  %v14302_v28 = vrot.slane %v14300_v48, 4  ;;  %v14246_v33 = vrot.slane %v14245_v22, 4  ;;  %v14280_v18 = vrot.slane %v14279_v13, 4 }
 0x66e   : > { %19588 = vmatprep.mubr.msk.bf16.mxu0 %vm1958_vm12, %v17948_v37  ;;  %v14322_v37 = vrot.slane %v14320_v58, 5  ;;  %v14326_v47 = vrot.slane %v14324_v39, 4  ;;  %v14260_v9 = vrot.slane %v14258_v60, 5  ;;  %v14289_v46 = vrot.slane %v14287_v30, 4 }
 0x66f   : > { %v14292_v29 = vrot.slane %v14290_v55, 5  ;;  %v14270_v49 = vrot.slane %v14269_v36, 4  ;;  %v14284_v21 = vrot.slane %v14282_v11, 5  ;;  %v14313_v27 = vrot.slane %v14311_v52, 4  ;;  %v26268_v55 = vld [vmem:[#allocation43_spill] sm:$0xff] }
 0x670   : > { %v14316_v57 = vrot.slane %v14314_v12, 5  ;;  %v14261_v3 = vsel %vm21913_vm15, %v14256_v43, %v14260_v9  ;;  %v14303_v40 = vor.u32 %v14302_v28, %v14298_v34  ;;  %v14348_v50 = vshrl.u32 %v25038_v6, 16 }
 0x671   : > { %v14251_v7 = vsel %vm21913_vm15, %v14246_v33, %v25208_v42  ;;  %v14285_v41 = vsel %vm21913_vm15, %v14280_v18, %v14284_v21  ;;  %v14327_v22 = vor.u32 %v14326_v47, %v14322_v37  ;;  %v14293_v60 = vor.u32 %v14292_v29, %v14289_v46  ;;  %v14664_v46 = vld [vmem:[#allocation4 + $0xc] sm:$0xe]  ;;  %v26269_v29 = vld [vmem:[#allocation44_spill] sm:$0xff] }
 0x672   : > { %v14306_v15 = vshll.u32 %v24995_v10, 16  ;;  %v14335_v2 = vshrl.u32 %v13971_v0, 16  ;;  %v14338_v8 = vshll.u32 %v13971_v0, 16  ;;  %v17951_v63 = vcombine.low %v14251_v7, %v14261_v3  ;;  %v26271_v7 = vld [vmem:[#allocation17_spill] sm:$0xff] }
 0x673   : > { %v14275_v62 = vsel %vm21913_vm15, %v14270_v49, %v25212_v38  ;;  %v14317_v32 = vor.u32 %v14316_v57, %v14313_v27  ;;  %v14304_v24 = vrot.slane %v14303_v40, 4  ;;  %v14350_v1 = vrot.slane %v14348_v50, 4  ;;  %v14665_v50 = vld [vmem:[#allocation4 + $0x18] sm:$0xe] }
 0x674   : > { %v17952_v59 = vcombine.low %v14275_v62, %v14285_v41  ;;  %v14328_v48 = vrot.slane %v14327_v22, 4  ;;  %v14294_v10 = vrot.slane %v14293_v60, 4  ;;  %v14308_v25 = vrot.slane %v14306_v15, 5  ;;  %v26273_v62 = vld [vmem:[#allocation46_spill] sm:$0xff] }
 0x675   : > { %19589 = vmatmul.mubr.msk.bf16.gmra.mrb[80].mxu0 %vm1958_vm12, %v17949_v20  ;;  %v14344_v20 = vshll.u32 %v25038_v6, 16  ;;  %v14330_v6 = vshll.u32 %v25047_v53, 16  ;;  %v14337_v13 = vrot.slane %v14335_v2, 4  ;;  %v14340_v58 = vrot.slane %v14338_v8, 5  ;;  %v20851_v8 = vld [vmem:[%s26036_s6 + $0x68] sm:$0xff]  }
 0x676   : > { %19592 = vmatprep.mubr.msk.bf16.mxu0 %vm1958_vm12, %v17950_v45  ;;  %v14318_v39 = vrot.slane %v14317_v32, 4  ;;  %v14309_v38 = vsel %vm21913_vm15, %v14304_v24, %v14308_v25  ;;  %v14730_v36 = vrot.slane %v26268_v55, 5  ;;  %v14299_v11 = vsel %vm21913_vm15, %v14294_v10, %v14298_v34  ;;  %v26276_v24 = vld [vmem:[#allocation48_spill] sm:$0xff]  ;;  %v26281_v10 = vld [vmem:[#allocation51_spill] sm:$0xff]  ;;  %v26282_v25 = vld [vmem:[#allocation53_spill] sm:$0xff] }
 0x677   : > { %v14346_v42 = vrot.slane %v14344_v20, 5  ;;  %v14332_v5 = vrot.slane %v14330_v6, 5  ;;  %v14341_v52 = vor.u32 %v14340_v58, %v14337_v13  ;;  %v14354_v12 = vshll.u32 %v25057_v51, 16  ;;  %v26270_v51 = vld [vmem:[#allocation11_spill] sm:$0xff]  ;;  %v25298_v6 = vld [vmem:[%s26036_s6 + $0x70] sm:$0xff]   ;;  %v26284_v58 = vld [vmem:[#allocation52_spill] sm:$0xff] }
 0x678   : > { %v17953_v45 = vcombine.low %v14299_v11, %v14309_v38  ;;  %v14323_v43 = vsel %vm21913_vm15, %v14318_v39, %v14322_v37  ;;  %v14732_v18 = vrot.slane %v14730_v36, 4  ;;  %v14733_v49 = vrot.slane %v26269_v29, 5  ;;  %v26285_v39 = vld [vmem:[#allocation12_spill] sm:$0xff]  ;;  %v25317_v38 = vld [vmem:[#allocation4 + $0x28] sm:$0xf] }
 0x679   : > { %v14351_v30 = vor.u32 %v14350_v1, %v14346_v42  ;;  %v14333_v53 = vsel %vm21913_vm15, %v14328_v48, %v14332_v5  ;;  %v14342_v47 = vrot.slane %v14341_v52, 4  ;;  %v14356_v9 = vrot.slane %v14354_v12, 5  ;;  %v26279_v1 = vld [vmem:[#allocation50_spill] sm:$0xff]  ;;  %v16256_v55 = vld [vmem:[#allocation4 + $0x24] sm:$0xe] }
 0x67a   : > { %v17954_v28 = vcombine.low %v14323_v43, %v14333_v53  ;;  %v14737_v21 = vrot.slane %v26270_v51, 5  ;;  %v17974_v27 = vrot.slane %v14664_v46, 9  ;;  %v14734_v37 = vsel %vm21573_vm8, %v14732_v18, %v14733_v49  ;;  %v25321_v53 = vld [vmem:[#allocation4 + $0x34] sm:$0xf]  ;;  %v26288_v11 = vld [vmem:[#allocation14_spill] sm:$0xff] }
 0x67b   : > { %v14352_v33 = vrot.slane %v14351_v30, 4  ;;  %v14347_v57 = vsel %vm21913_vm15, %v14342_v47, %v14346_v42  ;;  %v14740_v41 = vrot.slane %v26271_v7, 5  ;;  %v17975_v22 = vrot.slane %v14665_v50, 9  ;;  %v25319_v30 = vld [vmem:[#allocation4 + $0x2c] sm:$0x1]  ;;  %v26290_v43 = vld [vmem:[#allocation15_spill] sm:$0xff] }
 0x67c   : > { %v14731_v3 = vsel %vm21573_vm8, %v17974_v27, %v14730_v36  ;;  %v14739_v20 = vrot.slane %v14737_v21, 4  ;;  %v26283_v13 = vcombine.low %v26281_v10, %v26282_v25  ;;  %v26286_v5 = vcombine.low %v26284_v58, %v26285_v39  ;;  %v26287_v36 = vld [vmem:[#allocation13_spill] sm:$0xff]  ;;  %v25332_v18 = vld [vmem:[#allocation4 + $0x38] sm:$0x1]  ;;  %v25376_v10 = vld [vmem:[#allocation4 + $0x5c] sm:$0x1] }
 0x67d   : > { %19593 = vmatmul.mubr.msk.bf16.gmra.mrb[84].mxu0 %vm1958_vm12, %v17951_v63  ;;  %v14357_v34 = vsel %vm21913_vm15, %v14352_v33, %v14356_v9  ;;  %v17994_v40 = vcombine.low %v14731_v3, %v14734_v37  ;;  %v14738_v15 = vsel %vm21573_vm8, %v17975_v22, %v14737_v21  ;;  %v26272_v63 = vld [vmem:[#allocation45_spill] sm:$0xff]  ;;  %v26289_v52 = vcombine.low %v26287_v36, %v26288_v11  ;;  %v16258_v21 = vld [vmem:[#allocation4 + $0x3c] sm:$0xe]  ;;  %v25358_v22 = vld [vmem:[#allocation4 + $0x58] sm:$0xf] }
 0x67e   : > { %19596 = vmatprep.mubr.msk.bf16.mxu0 %vm1958_vm12, %v17952_v59  ;;  %v17955_v0 = vcombine.low %v14347_v57, %v14357_v34  ;;  %v14741_v60 = vsel %vm21573_vm8, %v14739_v20, %v14740_v41  ;;  %v26274_v32 = vcombine.low %v26272_v63, %v26273_v62  ;;  %v26275_v59 = vld [vmem:[#allocation47_spill] sm:$0xff]  ;;  %v16328_v12 = vrot.slane %v25317_v38, 5  ;;  %v25334_v47 = vld [vmem:[#allocation4 + $0x40] sm:$0xf]  ;;  %v25338_v34 = vld [vmem:[#allocation4 + $0x4c] sm:$0xf] }
 0x67f   : > { %v17995_v2 = vcombine.low %v14738_v15, %v14741_v60  ;;  %v26277_v42 = vcombine.low %v26275_v59, %v26276_v24  ;;  %v18105_v9 = vrot.slane %v16256_v55, 9  ;;  %v16331_v29 = vrot.slane %v25319_v30, 5  ;;  %v25340_v27 = vld [vmem:[#allocation4 + $0x44] sm:$0x1]  ;;  %v25351_v20 = vld [vmem:[#allocation4 + $0x50] sm:$0x1] }
 0x680   : > { %v16330_v46 = vrot.slane %v16328_v12, 4  ;;  %v16335_v49 = vrot.slane %v25321_v53, 5  ;;  %v16338_v3 = vrot.slane %v25332_v18, 5  ;;  %v25353_v50 = vld [vmem:[#allocation4 + $0x64] sm:$0xf]  ;;  %v16342_v41 = vrot.slane %v25334_v47, 5 }
 0x681   : > { %v25344_v37 = vsel %vm21573_vm8, %v18105_v9, %v16328_v12  ;;  %v16260_v63 = vld [vmem:[#allocation4 + $0x54] sm:$0xe]  ;;  %v16345_v59 = vrot.slane %v25340_v27, 5  ;;  %v25378_v25 = vld [vmem:[#allocation4 + $0x68] sm:$0x1]  ;;  %v16352_v39 = vrot.slane %v25351_v20, 5 }
 0x682   : > { %26293 = vst [vmem:[#allocation30_spill] sm:$0xff] %v25344_v37  ;;  %v25348_v57 = vsel %vm21573_vm8, %v16330_v46, %v16331_v29  ;;  %v26302_v55 = vld [vmem:[#allocation21_spill] sm:$0xff]  ;;  %v25389_v11 = vld [vmem:[#allocation4 + $0x70] sm:$0xf]  ;;  %v25402_v9 = vld [vmem:[#allocation4 + $0x7c] sm:$0xf] }
 0x683   : > { %26294 = vst [vmem:[#allocation31_spill] sm:$0xff] %v25348_v57  ;;  %v25472_v7 = vld [vmem:[#allocation4 + $0xac] sm:$0xf]  ;;  %v15535_v37 = vld [vmem:[#allocation4 + $0x60] sm:$0xf] }
 0x685   : > { %19597 = vmatmul.mubr.msk.bf16.gmra.mrb[88].mxu0 %vm1958_vm12, %v17953_v45  ;;  %v16257_v45 = vld [vmem:[#allocation4 + $0x30] sm:$0xe] }
 0x686   : > { %19600 = vmatprep.mubr.msk.bf16.mxu0 %vm1958_vm12, %v17954_v28  ;;  %v26291_v28 = vld [vmem:[#allocation16_spill] sm:$0xff]  ;;  %v18106_v51 = vrot.slane %v16257_v45, 9  ;;  %v18109_v45 = vrot.slane %v16260_v63, 9 }
 0x687   : > { %v26292_v33 = vcombine.low %v26290_v43, %v26291_v28  ;;  %v16356_v43 = vrot.slane %v25358_v22, 5  ;;  %v16262_v28 = vld [vmem:[#allocation4 + $0x6c] sm:$0xe] }
 0x688   : > { %v25362_v60 = vsel %vm21573_vm8, %v18106_v51, %v16335_v49  ;;  %v16363_v51 = vrot.slane %v25353_v50, 5 }
 0x689   : > { %26295 = vst [vmem:[#allocation32_spill] sm:$0xff] %v25362_v60 }
 0x68a   : > { %v16365_v63 = vrot.slane %v16363_v51, 4 }
 0x68d   : > { %19601 = vmatmul.mubr.msk.bf16.gmra.mrb[92].mxu0 %vm1958_vm12, %v17955_v0  ;;  %v16337_v0 = vrot.slane %v16335_v49, 4 }
 0x68e   : > { %19608 = vmatprep.mubr.msk.bf16.mxu0 %vm1958_vm12, %v17994_v40  ;;  %v16259_v40 = vld [vmem:[#allocation4 + $0x48] sm:$0xe] }
 0x68f   : > { %v25366_v15 = vsel %vm21573_vm8, %v16337_v0, %v16338_v3  ;;  %v18108_v24 = vrot.slane %v16259_v40, 9  ;;  %v25415_v0 = vsel %vm21573_vm8, %v18109_v45, %v16356_v43  ;;  %v16358_v3 = vrot.slane %v16356_v43, 4  ;;  %v16264_v45 = vld [vmem:[#allocation4 + $0x84] sm:$0xe]  ;;  %v25442_v43 = vld [vmem:[#allocation4 + $0x8c] sm:$0x1] }
 0x690   : > { %26296 = vst [vmem:[#allocation33_spill] sm:$0xff] %v25366_v15  ;;  %26307 = vst [vmem:[#allocation38_spill] sm:$0xff] %v25415_v0  ;;  %v16359_v40 = vrot.slane %v25376_v10, 5  ;;  %v15633_v0 = vshll.u32 %v25332_v18, 16  ;;  %v20868_v15 = vld [vmem:[#allocation4 + $0xc0] sm:$0xff]  }
 0x695   : > { %19609 = vmatmul.mubr.msk.bf16.vlgmr.msra.gmra.mrb[64].mxu0 %vm1958_vm12, %v17995_v2  ;;  %v18107_v2 = vrot.slane %v16258_v21, 9  ;;  %v26312_v21 = vld [vmem:[#allocation23_spill] sm:$0xff] }
 0x696   : > { %19641 = vmatpush3.bf16.msra.mxu0 %v25147_v14  ;;  %19612 = vmatprep.mubr.msk.bf16.mxu0 %vm1958_vm12, %v26274_v32  ;;  %v26278_v14 = vld [vmem:[#allocation49_spill] sm:$0xff]  ;;  %v16344_v32 = vrot.slane %v16342_v41, 4 }
 0x697   : > { %19642 = vmatprep.subr.bf16.mxu0 %v20851_v8  ;;  %v26280_v48 = vcombine.low %v26278_v14, %v26279_v1  ;;  %v26297_v14 = vld [vmem:[#allocation18_spill] sm:$0xff]  ;;  %v26298_v1 = vld [vmem:[#allocation19_spill] sm:$0xff] }
 0x69a   : > { %19643 = vmatpush3.bf16.msra.mxu0 %v20851_v8  ;;  %v16349_v8 = vrot.slane %v25338_v34, 5 }
 0x69b   : > { %19676 = vmatprep.subr.bf16.mxu0 %v25298_v6 }
 0x69c   : > { %v16351_v58 = vrot.slane %v16349_v8, 4  ;;  %v25397_v12 = vsel %vm21573_vm8, %v18108_v24, %v16349_v8  ;;  %v25426_v24 = vld [vmem:[#allocation4 + $0x88] sm:$0xf] }
 0x69d   : > { %19613 = vmatmul.mubr.msk.bf16.gmra.mrb[68].mxu0 %vm1958_vm12, %v26277_v42  ;;  %v16261_v42 = vld [vmem:[#allocation4 + $0x60] sm:$0xe]  ;;  %26305 = vst [vmem:[#allocation36_spill] sm:$0xff] %v25397_v12 }
 0x69e   : > { %19616 = vmatprep.mubr.msk.bf16.mxu0 %vm1958_vm12, %v26280_v48  ;;  %v26299_v48 = vcombine.low %v26297_v14, %v26298_v1  ;;  %v25408_v29 = vsel %vm21573_vm8, %v16351_v58, %v16352_v39  ;;  %v18110_v49 = vrot.slane %v16261_v42, 9  ;;  %v25430_v42 = vsel %vm21573_vm8, %v16358_v3, %v16359_v40  ;;  %v25434_v58 = vld [vmem:[#allocation4 + $0x94] sm:$0xf]  ;;  %v16265_v3 = vld [vmem:[#allocation4 + $0x90] sm:$0xe]  ;;  %v26311_v40 = vld [vmem:[#allocation22_spill] sm:$0xff] }
 0x69f   : > { %26306 = vst [vmem:[#allocation37_spill] sm:$0xff] %v25408_v29  ;;  %26309 = vst [vmem:[#allocation9_spill] sm:$0xff] %v25430_v42  ;;  %v18111_v14 = vrot.slane %v16262_v28, 9  ;;  %v26313_v46 = vcombine.low %v26311_v40, %v26312_v21  ;;  %v25451_v39 = vld [vmem:[#allocation4 + $0x98] sm:$0x1]  ;;  %v16384_v21 = vrot.slane %v25426_v24, 5 }
 0x6a0   : > { %v25422_v8 = vsel %vm21573_vm8, %v18110_v49, %v16363_v51  ;;  %v26317_v40 = vld [vmem:[#allocation24_spill] sm:$0xff]  ;;  %v18114_v31 = vrot.slane %v16265_v3, 9 }
 0x6a1   : > { %26308 = vst [vmem:[#allocation8_spill] sm:$0xff] %v25422_v8 }
 0x6a5   : > { %19617 = vmatmul.mubr.msk.bf16.gmra.mrb[72].mxu0 %vm1958_vm12, %v26283_v13  ;;  %v25382_v13 = vsel %vm21573_vm8, %v18107_v2, %v16342_v41  ;;  %v16263_v41 = vld [vmem:[#allocation4 + $0x78] sm:$0xe]  ;;  %v25418_v2 = vld [vmem:[#allocation4 + $0x80] sm:$0x1] }
 0x6a6   : > { %19620 = vmatprep.mubr.msk.bf16.mxu0 %vm1958_vm12, %v26286_v5  ;;  %26300 = vst [vmem:[#allocation34_spill] sm:$0xff] %v25382_v13  ;;  %v26301_v5 = vld [vmem:[#allocation20_spill] sm:$0xff]  ;;  %v16380_v51 = vrot.slane %v25418_v2, 5 }
 0x6a7   : > { %v26303_v36 = vcombine.low %v26301_v5, %v26302_v55 }
 0x6ad   : > { %19621 = vmatmul.mubr.msk.bf16.gmra.mrb[76].mxu0 %vm1958_vm12, %v26289_v52  ;;  %v25393_v52 = vsel %vm21573_vm8, %v16344_v32, %v16345_v59  ;;  %v16366_v32 = vrot.slane %v25378_v25, 5  ;;  %v16370_v59 = vrot.slane %v25389_v11, 5  ;;  %v26347_v23 = vld [vmem:[#allocation34_spill] sm:$0xff] }
 0x6ae   : > { %19624 = vmatprep.mubr.msk.bf16.mxu0 %vm1958_vm12, %v26292_v33  ;;  %26304 = vst [vmem:[#allocation35_spill] sm:$0xff] %v25393_v52  ;;  %v25400_v33 = vld [vmem:[#allocation4 + $0x74] sm:$0x1] }
 0x6af   : > { %v16373_v1 = vrot.slane %v25400_v33, 5  ;;  %v25440_v5 = vsel %vm21573_vm8, %v16365_v63, %v16366_v32  ;;  %v16372_v55 = vrot.slane %v16370_v59, 4  ;;  %v25453_v63 = vld [vmem:[#allocation4 + $0xa0] sm:$0xf] }
 0x6b0   : > { %26310 = vst [vmem:[#allocation10_spill] sm:$0xff] %v25440_v5  ;;  %v25486_v5 = vld [vmem:[#allocation4 + $0xb0] sm:$0x1] }
 0x6b1   : > { %v25461_v32 = vsel %vm21573_vm8, %v16372_v55, %v16373_v1  ;;  %v18113_v1 = vrot.slane %v16264_v45, 9  ;;  %v16266_v55 = vld [vmem:[#allocation4 + $0x9c] sm:$0xe] }
 0x6b2   : > { %26315 = vst [vmem:[#allocation40_spill] sm:$0xff] %v25461_v32  ;;  %v25494_v32 = vld [vmem:[#allocation4 + $0xb8] sm:$0xf] }
 0x6b5   : > { %19625 = vmatmul.mubr.msk.bf16.gmra.mrb[80].mxu0 %vm1958_vm12, %v26299_v48  ;;  %v16377_v48 = vrot.slane %v25402_v9, 5 }
 0x6b6   : > { %19628 = vmatprep.mubr.msk.bf16.mxu0 %vm1958_vm12, %v26303_v36  ;;  %v18112_v36 = vrot.slane %v16263_v41, 9  ;;  %v25457_v41 = vsel %vm21573_vm8, %v18111_v14, %v16370_v59  ;;  %v16398_v59 = vrot.slane %v25453_v63, 5 }
 0x6b7   : > { %v16379_v49 = vrot.slane %v16377_v48, 4  ;;  %26314 = vst [vmem:[#allocation39_spill] sm:$0xff] %v25457_v41 }
 0x6b8   : > { %v25465_v28 = vsel %vm21573_vm8, %v18112_v36, %v16377_v48  ;;  %v16391_v48 = vrot.slane %v25434_v58, 5  ;;  %v16267_v36 = vld [vmem:[#allocation4 + $0xa8] sm:$0xe]  ;;  %v16400_v8 = vrot.slane %v16398_v59, 4 }
 0x6b9   : > { %26316 = vst [vmem:[#allocation41_spill] sm:$0xff] %v25465_v28  ;;  %v25478_v14 = vsel %vm21573_vm8, %v16379_v49, %v16380_v51  ;;  %v25490_v49 = vsel %vm21573_vm8, %v18113_v1, %v16384_v21  ;;  %v16394_v51 = vrot.slane %v25451_v39, 5  ;;  %v16405_v28 = vrot.slane %v25472_v7, 5 }
 0x6ba   : > { %26320 = vst [vmem:[#allocation42_spill] sm:$0xff] %v25478_v14  ;;  %26321 = vst [vmem:[#allocation43_spill] sm:$0xff] %v25490_v49  ;;  %v16393_v45 = vrot.slane %v16391_v48, 4  ;;  %v25502_v3 = vsel %vm21573_vm8, %v18114_v31, %v16391_v48  ;;  %v18115_v14 = vrot.slane %v16266_v55, 9  ;;  %v18116_v31 = vrot.slane %v16267_v36, 9 }
 0x6bb   : > { %26323 = vst [vmem:[#allocation11_spill] sm:$0xff] %v25502_v3  ;;  %v16407_v48 = vrot.slane %v16405_v28, 4  ;;  %v16408_v55 = vrot.slane %v25486_v5, 5  ;;  %v16269_v36 = vld [vmem:[#allocation4 + $0xc0] sm:$0xe] }
 0x6bc   : > { %v25511_v41 = vsel %vm21573_vm8, %v16393_v45, %v16394_v51  ;;  %v25519_v42 = vsel %vm21573_vm8, %v18115_v14, %v16398_v59  ;;  %v16412_v45 = vrot.slane %v25494_v32, 5  ;;  %v26327_v51 = vld [vmem:[#allocation26_spill] sm:$0xff]  ;;  %v25536_v59 = vsel %vm21573_vm8, %v18116_v31, %v16405_v28  ;;  %v16268_v14 = vld [vmem:[#allocation4 + $0xb4] sm:$0xe] }
 0x6bd   : > { %19629 = vmatmul.mubr.msk.bf16.gmra.mrb[84].mxu0 %vm1958_vm12, %v26313_v46  ;;  %v26318_v46 = vld [vmem:[#allocation25_spill] sm:$0xff]  ;;  %26324 = vst [vmem:[#allocation17_spill] sm:$0xff] %v25511_v41  ;;  %26325 = vst [vmem:[#allocation45_spill] sm:$0xff] %v25519_v42  ;;  %v18117_v28 = vrot.slane %v16268_v14, 9 }
 0x6be   : > { %v26319_v62 = vcombine.low %v26317_v40, %v26318_v46  ;;  %v16387_v46 = vrot.slane %v25442_v43, 5  ;;  %26330 = vst [vmem:[#allocation47_spill] sm:$0xff] %v25536_v59  ;;  %v16414_v31 = vrot.slane %v16412_v45, 4 }
 0x6c0   : > { %19632 = vmatprep.mubr.msk.bf16.mxu0 %vm1958_vm12, %v26319_v62  ;;  %v16386_v62 = vrot.slane %v16384_v21, 4  ;;  %v25505_v21 = vld [vmem:[#allocation4 + $0xc4] sm:$0xf] }
 0x6c2   : > { %v25498_v40 = vsel %vm21573_vm8, %v16386_v62, %v16387_v46  ;;  %v16401_v62 = vrot.slane %v25481_v4, 5  ;;  %v25530_v46 = vld [vmem:[#allocation4 + $0xbc] sm:$0x1] }
 0x6c3   : > { %26322 = vst [vmem:[#allocation44_spill] sm:$0xff] %v25498_v40  ;;  %v26328_v40 = vld [vmem:[#allocation27_spill] sm:$0xff] }
 0x6c4   : > { %v25523_v1 = vsel %vm21573_vm8, %v16400_v8, %v16401_v62  ;;  %v26329_v49 = vcombine.low %v26327_v51, %v26328_v40  ;;  %v25540_v8 = vsel %vm21573_vm8, %v16407_v48, %v16408_v55  ;;  %v16419_v62 = vrot.slane %v25505_v21, 5  ;;  %v25549_v51 = vld [vmem:[#allocation4 + $0xc8] sm:$0x1] }
 0x6c5   : > { %26326 = vst [vmem:[#allocation46_spill] sm:$0xff] %v25523_v1  ;;  %26331 = vst [vmem:[#allocation48_spill] sm:$0xff] %v25540_v8  ;;  %v26332_v40 = vcombine.low %v25070_v26, %v25074_v17  ;;  %v16415_v1 = vrot.slane %v25530_v46, 5  ;;  %v25554_v55 = vsel %vm21573_vm8, %v18117_v28, %v16412_v45  ;;  %v18118_v17 = vrot.slane %v16269_v36, 9  ;;  %v20852_v8 = vld [vmem:[#allocation4 + $0x18] sm:$0xff]   ;;  %v20854_v36 = vld [vmem:[#allocation4 + $0x24] sm:$0xff]  }
 0x6c6   : > { %19633 = vmatmul.mubr.msk.bf16.gmra.mrb[88].mxu0 %vm1958_vm12, %v26329_v49  ;;  %v16421_v48 = vrot.slane %v16419_v62, 4  ;;  %26333 = vst [vmem:[#allocation49_spill] sm:$0xff] %v25554_v55  ;;  %v26337_v45 = vcombine.low %v25080_v16, %v25084_v54  ;;  %v20855_v28 = vld [vmem:[#allocation4 + $0x30] sm:$0xff]   ;;  %v20856_v54 = vld [vmem:[#allocation4 + $0x3c] sm:$0xff]   ;;  %v20866_v55 = vld [vmem:[#allocation4 + $0xa8] sm:$0xff]  }
 0x6c7   : > { %19636 = vmatprep.mubr.msk.bf16.mxu0 %vm1958_vm12, %v26332_v40  ;;  %v25558_v26 = vsel %vm21573_vm8, %v16414_v31, %v16415_v1  ;;  %v16422_v40 = vrot.slane %v25549_v51, 5  ;;  %v25565_v14 = vsel %vm21573_vm8, %v18118_v17, %v16419_v62  ;;  %v20862_v62 = vld [vmem:[%s26036_s6 + $0x78] sm:$0xff]   ;;  %v25587_v16 = vld [vmem:[%s26036_s6 + $0x80] sm:$0xff]   ;;  %v20861_v17 = vld [vmem:[#allocation4 + $0x78] sm:$0xff]  }
 0x6c8   : > { %26334 = vst [vmem:[#allocation50_spill] sm:$0xff] %v25558_v26  ;;  %26335 = vst [vmem:[#allocation51_spill] sm:$0xff] %v25565_v14  ;;  %v20858_v31 = vld [vmem:[#allocation4 + $0x54] sm:$0xff]   ;;  %v20865_v14 = vld [vmem:[#allocation4 + $0x9c] sm:$0xff]   ;;  %v15627_v26 = vshrl.u32 %v25321_v53, 16 }
 0x6c9   : > { %v25569_v59 = vsel %vm21573_vm8, %v16421_v48, %v16422_v40  ;;  %v20859_v48 = vld [vmem:[#allocation4 + $0x60] sm:$0xff]   ;;  %v15517_v40 = vld [vmem:[#allocation4 + $0x18] sm:$0xf] }
 0x6ca   : > { %26336 = vst [vmem:[#allocation53_spill] sm:$0xff] %v25569_v59  ;;  %v15523_v59 = vld [vmem:[#allocation4 + $0x30] sm:$0xf] }
 0x6ce   : > { %19637 = vmatmul.mubr.msk.bf16.gmra.mrb[92].mxu0 %vm1958_vm12, %v26337_v45  ;;  %v20863_v45 = vld [vmem:[#allocation4 + $0x84] sm:$0xff]  }
 0x6cf   : > { %19644 = vmatprep.mubr.msk.bf16.mxu0 %vm1958_vm12, %v20852_v8  ;;  %v20857_v8 = vld [vmem:[#allocation4 + $0x48] sm:$0xff]  }
 0x6d6   : > { %19645 = vmatmul.mubr.msk.bf16.vlgmr.msra.gmra.mrb[64].mxu0 %vm1958_vm12, %v20854_v36  ;;  %v20864_v36 = vld [vmem:[#allocation4 + $0x90] sm:$0xff]  }
 0x6d7   : > { %19677 = vmatpush3.bf16.msra.mxu0 %v25298_v6  ;;  %19648 = vmatprep.mubr.msk.bf16.mxu0 %vm1958_vm12, %v20855_v28  ;;  %v20860_v6 = vld [vmem:[#allocation4 + $0x6c] sm:$0xff]   ;;  %v15569_v28 = vshll.u32 %v15517_v40, 16 }
 0x6d8   : > { %19678 = vmatprep.subr.bf16.mxu0 %v20862_v62 }
 0x6d9   : > { %v15571_v1 = vrot.slane %v15569_v28, 5  ;;  %v15614_v28 = vshrl.u32 %v15523_v59, 16 }
 0x6db   : > { %19679 = vmatpush3.bf16.msra.mxu0 %v20862_v62  ;;  %v15566_v62 = vshrl.u32 %v15517_v40, 16  ;;  %v15623_v40 = vshll.u32 %v25321_v53, 16  ;;  %v15609_v53 = vshll.u32 %v25319_v30, 16  ;;  %v20867_v30 = vld [vmem:[#allocation4 + $0xb4] sm:$0xff]  }
 0x6dc   : > { %19712 = vmatprep.subr.bf16.mxu0 %v25587_v16 }
 0x6dd   : > { %v25617_v13 = vrot.slane %v15609_v53, 5  ;;  %v25636_v53 = vld [vmem:[#allocation4 + $0xd4] sm:$0x1] }
 0x6de   : > { %19649 = vmatmul.mubr.msk.bf16.gmra.mrb[68].mxu0 %vm1958_vm12, %v20856_v54  ;;  %v15575_v54 = vshll.u32 %v25201_v61, 16 }
 0x6df   : > { %19652 = vmatprep.mubr.msk.bf16.mxu0 %vm1958_vm12, %v20857_v8  ;;  %v15579_v8 = vshrl.u32 %v25201_v61, 16  ;;  %v15585_v61 = vshll.u32 %v25206_v44, 16  ;;  %v25614_v44 = vrot.slane %v15623_v40, 5 }
 0x6e1   : > { %v15581_v49 = vrot.slane %v15579_v8, 4  ;;  %v15529_v8 = vld [vmem:[#allocation4 + $0x48] sm:$0xf] }
 0x6e6   : > { %19653 = vmatmul.mubr.msk.bf16.gmra.mrb[72].mxu0 %vm1958_vm12, %v20858_v31  ;;  %v15599_v31 = vshll.u32 %v25317_v38, 16 }
 0x6e7   : > { %19656 = vmatprep.mubr.msk.bf16.mxu0 %vm1958_vm12, %v20859_v48  ;;  %v15603_v48 = vshrl.u32 %v25317_v38, 16 }
 0x6e9   : > { %v15605_v42 = vrot.slane %v15603_v48, 4  ;;  %v15587_v48 = vrot.slane %v15585_v61, 5  ;;  %v15665_v61 = vshll.u32 %v15529_v8, 16 }
 0x6eb   : > { %v15667_v57 = vrot.slane %v15665_v61, 5 }
 0x6ee   : > { %19657 = vmatmul.mubr.msk.bf16.gmra.mrb[76].mxu0 %vm1958_vm12, %v20860_v6  ;;  %v15568_v6 = vrot.slane %v15566_v62, 4 }
 0x6ef   : > { %19660 = vmatprep.mubr.msk.bf16.mxu0 %vm1958_vm12, %v20861_v17  ;;  %v25602_v17 = vrot.slane %v15575_v54, 5  ;;  %v15617_v54 = vshll.u32 %v15523_v59, 16  ;;  %v15616_v59 = vrot.slane %v15614_v28, 4 }
 0x6f0   : > { %v15572_v38 = vor.u32 %v15571_v1, %v15568_v6  ;;  %v15526_v1 = vld [vmem:[#allocation4 + $0x3c] sm:$0xf]  ;;  %v15662_v6 = vshrl.u32 %v15529_v8, 16  ;;  %v25634_v8 = vld [vmem:[#allocation4 + $0xd0] sm:$0xf] }
 0x6f1   : > { %v15582_v62 = vor.u32 %v15581_v49, %v25602_v17  ;;  %v15619_v12 = vrot.slane %v15617_v54, 5  ;;  %v15638_v40 = vshrl.u32 %v15526_v1, 16  ;;  %v15675_v54 = vshrl.u32 %v25338_v34, 16 }
 0x6f2   : > { %v15573_v49 = vrot.slane %v15572_v38, 4  ;;  %v15647_v38 = vshll.u32 %v25334_v47, 16  ;;  %v15664_v28 = vrot.slane %v15662_v6, 4  ;;  %v16426_v6 = vrot.slane %v25634_v8, 5 }
 0x6f3   : > { %v15583_v29 = vrot.slane %v15582_v62, 4  ;;  %v15651_v62 = vshrl.u32 %v25334_v47, 16 }
 0x6f4   : > { %v25641_v60 = vrot.slane %v15647_v38, 5  ;;  %v16428_v35 = vrot.slane %v16426_v6, 4  ;;  %v15710_v38 = vshrl.u32 %v15535_v37, 16 }
 0x6f6   : > { %19661 = vmatmul.mubr.msk.bf16.gmra.mrb[80].mxu0 %vm1958_vm12, %v20863_v45  ;;  %v15520_v45 = vld [vmem:[#allocation4 + $0x24] sm:$0xf] }
 0x6f7   : > { %19664 = vmatprep.mubr.msk.bf16.mxu0 %vm1958_vm12, %v20864_v36  ;;  %v25607_v36 = vrot.slane %v15599_v31, 5  ;;  %v15590_v41 = vshrl.u32 %v15520_v45, 16  ;;  %v15593_v3 = vshll.u32 %v15520_v45, 16  ;;  %v15629_v31 = vrot.slane %v15627_v26, 4 }
 0x6f8   : > { %v25619_v45 = vrot.slane %v15633_v0, 5  ;;  %v15641_v26 = vshll.u32 %v15526_v1, 16  ;;  %v15578_v0 = vsel %vm21913_vm15, %v15573_v49, %v25602_v17  ;;  %v16270_v1 = vld [vmem:[#allocation4 + $0xcc] sm:$0xe]  ;;  %v16429_v17 = vrot.slane %v25636_v53, 5 }
 0x6f9   : > { %v15592_v52 = vrot.slane %v15590_v41, 4  ;;  %v15630_v18 = vor.u32 %v15629_v31, %v25614_v44  ;;  %v15588_v41 = vsel %vm21913_vm15, %v15583_v29, %v15587_v48  ;;  %v15620_v31 = vor.u32 %v15619_v12, %v15616_v59 }
 0x6fa   : > { %v15640_v29 = vrot.slane %v15638_v40, 4  ;;  %v15643_v48 = vrot.slane %v15641_v26, 5  ;;  %v15699_v40 = vshrl.u32 %v25358_v22, 16  ;;  %v25653_v26 = vsel %vm21573_vm8, %v16428_v35, %v16429_v17 }
 0x6fb   : > { %v15631_v49 = vrot.slane %v15630_v18, 4  ;;  %v15695_v18 = vshll.u32 %v25358_v22, 16  ;;  %v18070_v61 = vcombine.low %v15578_v0, %v15588_v41  ;;  %v15719_v17 = vshll.u32 %v25353_v50, 16 }
 0x6fc   : > { %v15644_v19 = vor.u32 %v15643_v48, %v15640_v29 }
 0x6fd   : > { %v15636_v22 = vsel %vm21913_vm15, %v15631_v49, %v25619_v45  ;;  %v15723_v45 = vshrl.u32 %v25353_v50, 16  ;;  %v15681_v49 = vshll.u32 %v25351_v20, 16  ;;  %v15705_v50 = vshll.u32 %v25376_v10, 16 }
 0x6fe   : > { %19665 = vmatmul.mubr.msk.bf16.gmra.mrb[84].mxu0 %vm1958_vm12, %v20865_v14  ;;  %v15606_v14 = vor.u32 %v15605_v42, %v25607_v36 }
 0x6ff   : > { %19668 = vmatprep.mubr.msk.bf16.mxu0 %vm1958_vm12, %v20866_v55  ;;  %v15595_v55 = vrot.slane %v15593_v3, 5  ;;  %v15671_v3 = vshll.u32 %v25338_v34, 16  ;;  %v15653_v34 = vrot.slane %v15651_v62, 4  ;;  %v15713_v62 = vshll.u32 %v15535_v37, 16 }
 0x700   : > { %v25622_v42 = vrot.slane %v15606_v14, 4  ;;  %v15532_v14 = vld [vmem:[#allocation4 + $0x54] sm:$0xf]  ;;  %v15668_v37 = vor.u32 %v15667_v57, %v15664_v28  ;;  %v15657_v28 = vshll.u32 %v25340_v27, 16  ;;  %v20871_v27 = vld [vmem:[%s26036_s6 + $0x88] sm:$0xff]  }
 0x701   : > { %v15596_v47 = vor.u32 %v15595_v55, %v15592_v52  ;;  %v15677_v52 = vrot.slane %v15675_v54, 4  ;;  %v15686_v12 = vshrl.u32 %v15532_v14, 16  ;;  %v15689_v55 = vshll.u32 %v15532_v14, 16 }
 0x702   : > { %v15612_v14 = vsel %vm21913_vm15, %v25622_v42, %v25617_v13  ;;  %v15654_v35 = vor.u32 %v15653_v34, %v25641_v60  ;;  %v15701_v13 = vrot.slane %v15699_v40, 4  ;;  %v15712_v42 = vrot.slane %v15710_v38, 4 }
 0x703   : > { %v15597_v54 = vrot.slane %v15596_v47, 4  ;;  %v15688_v41 = vrot.slane %v15686_v12, 4  ;;  %v15691_v47 = vrot.slane %v15689_v55, 5  ;;  %v15669_v34 = vrot.slane %v15668_v37, 4 }
 0x704   : > { %v15659_v20 = vrot.slane %v15657_v28, 5  ;;  %v15683_v38 = vrot.slane %v15681_v49, 5  ;;  %v15707_v37 = vrot.slane %v15705_v50, 5  ;;  %v15547_v50 = vld [vmem:[#allocation4 + $0x90] sm:$0xf] }
 0x705   : > { %v15692_v55 = vor.u32 %v15691_v47, %v15688_v41 }
 0x706   : > { %19669 = vmatmul.mubr.msk.bf16.gmra.mrb[88].mxu0 %vm1958_vm12, %v20867_v30  ;;  %v18119_v30 = vrot.slane %v16270_v1, 9  ;;  %v15621_v1 = vrot.slane %v15620_v31, 4  ;;  %v15715_v31 = vrot.slane %v15713_v62, 5  ;;  %v15743_v62 = vshll.u32 %v25389_v11, 16 }
 0x707   : > { %19672 = vmatprep.mubr.msk.bf16.mxu0 %vm1958_vm12, %v20868_v15  ;;  %v25643_v15 = vrot.slane %v15671_v3, 5 }
 0x708   : > { %v25647_v59 = vsel %vm21573_vm8, %v18119_v30, %v16426_v6  ;;  %v25668_v6 = vrot.slane %v15695_v18, 5  ;;  %v15626_v57 = vsel %vm21913_vm15, %v15621_v1, %v25614_v44  ;;  %v15645_v30 = vrot.slane %v15644_v19, 4  ;;  %v15538_v18 = vld [vmem:[#allocation4 + $0x6c] sm:$0xf]  ;;  %v15541_v19 = vld [vmem:[#allocation4 + $0x78] sm:$0xf] }
 0x709   : > { %v18139_v3 = vcombine.low %v25647_v59, %v25653_v26  ;;  %v15678_v0 = vor.u32 %v15677_v52, %v25643_v15  ;;  %v18072_v48 = vcombine.low %v15626_v57, %v15636_v22  ;;  %v15655_v52 = vrot.slane %v15654_v35, 4 }
 0x70a   : > { %v15716_v40 = vor.u32 %v15715_v31, %v15712_v42  ;;  %v15725_v44 = vrot.slane %v15723_v45, 4  ;;  %v15650_v10 = vsel %vm21913_vm15, %v15645_v30, %v25641_v60  ;;  %v15734_v1 = vshrl.u32 %v15538_v18, 16 }
 0x70b   : > { %v15679_v12 = vrot.slane %v15678_v0, 4  ;;  %v15737_v22 = vshll.u32 %v15538_v18, 16  ;;  %v15729_v60 = vshll.u32 %v25378_v25, 16  ;;  %v15693_v0 = vrot.slane %v15692_v55, 4 }
 0x70c   : > { %v15717_v47 = vrot.slane %v15716_v40, 4  ;;  %v15758_v42 = vshrl.u32 %v15541_v19, 16  ;;  %v15761_v31 = vshll.u32 %v15541_v19, 16  ;;  %v15771_v57 = vshrl.u32 %v25402_v9, 16 }
 0x70d   : > { %v15684_v35 = vsel %vm21913_vm15, %v15679_v12, %v15683_v38  ;;  %v15739_v45 = vrot.slane %v15737_v22, 5  ;;  %v15698_v25 = vsel %vm21913_vm15, %v15693_v0, %v25668_v6  ;;  %v15731_v30 = vrot.slane %v15729_v60, 5 }
 0x70e   : > { %19673 = vmatmul.mubr.msk.bf16.gmra.mrb[92].mxu0 %vm1958_vm12, %v20869_v56  ;;  %v15602_v56 = vsel %vm21913_vm15, %v15597_v54, %v25607_v36  ;;  %v15702_v36 = vor.u32 %v15701_v13, %v25668_v6  ;;  %v15747_v54 = vshrl.u32 %v25389_v11, 16  ;;  %v15660_v11 = vsel %vm21913_vm15, %v15655_v52, %v15659_v20 }
 0x70f   : > { %19680 = vmatprep.mubr.msk.bf16.mxu0 %vm1958_vm12, %v18070_v61  ;;  %v18071_v29 = vcombine.low %v15602_v56, %v15612_v14  ;;  %v25682_v61 = vrot.slane %v15719_v17, 5  ;;  %v15674_v14 = vsel %vm21913_vm15, %v15669_v34, %v25643_v15  ;;  %v25704_v13 = vrot.slane %v15743_v62, 5  ;;  %v15544_v34 = vld [vmem:[#allocation4 + $0x84] sm:$0xf] }
 0x710   : > { %v15703_v41 = vrot.slane %v15702_v36, 4  ;;  %v15736_v17 = vrot.slane %v15734_v1, 4  ;;  %v15767_v56 = vshll.u32 %v25402_v9, 16  ;;  %v18073_v28 = vcombine.low %v15650_v10, %v15660_v11 }
 0x711   : > { %v15726_v15 = vor.u32 %v15725_v44, %v25682_v61  ;;  %v18074_v49 = vcombine.low %v15674_v14, %v15684_v35  ;;  %v15760_v9 = vrot.slane %v15758_v42, 4  ;;  %v15763_v55 = vrot.slane %v15761_v31, 5  ;;  %v15550_v42 = vld [vmem:[#allocation4 + $0x9c] sm:$0xf] }
 0x712   : > { %v15740_v18 = vor.u32 %v15739_v45, %v15736_v17  ;;  %v15753_v6 = vshll.u32 %v25400_v33, 16  ;;  %v15769_v36 = vrot.slane %v15767_v56, 5  ;;  %v15773_v40 = vrot.slane %v15771_v57, 4 }
 0x713   : > { %v15727_v52 = vrot.slane %v15726_v15, 4  ;;  %v15782_v44 = vshrl.u32 %v15544_v34, 16  ;;  %v15795_v20 = vshrl.u32 %v25426_v24, 16  ;;  %v15806_v38 = vshrl.u32 %v15547_v50, 16 }
 0x714   : > { %v15809_v62 = vshll.u32 %v15547_v50, 16  ;;  %v15819_v10 = vshrl.u32 %v25434_v58, 16  ;;  %v15764_v22 = vor.u32 %v15763_v55, %v15760_v9  ;;  %v15741_v19 = vrot.slane %v15740_v18, 4  ;;  %v15553_v55 = vld [vmem:[#allocation4 + $0xa8] sm:$0xf] }
 0x715   : > { %v15732_v33 = vsel %vm21913_vm15, %v15727_v52, %v15731_v30  ;;  %v15755_v11 = vrot.slane %v15753_v6, 5  ;;  %v15774_v35 = vor.u32 %v15773_v40, %v15769_v36  ;;  %v15784_v60 = vrot.slane %v15782_v44, 4 }
 0x716   : > { %19681 = vmatmul.mubr.msk.bf16.vlgmr.msra.gmra.mrb[64].mxu0 %vm1958_vm12, %v18071_v29  ;;  %v15708_v29 = vsel %vm21913_vm15, %v15703_v41, %v15707_v37  ;;  %v15777_v37 = vshll.u32 %v25418_v2, 16  ;;  %v15797_v41 = vrot.slane %v15795_v20, 4  ;;  %v15811_v15 = vrot.slane %v15809_v62, 5 }
 0x717   : > { %19713 = vmatpush3.bf16.msra.mxu0 %v25587_v16  ;;  %19684 = vmatprep.mubr.msk.bf16.mxu0 %vm1958_vm12, %v18072_v48  ;;  %v15749_v16 = vrot.slane %v15747_v54, 4  ;;  %v15722_v48 = vsel %vm21913_vm15, %v15717_v47, %v25682_v61  ;;  %v15791_v61 = vshll.u32 %v25426_v24, 16  ;;  %v15815_v54 = vshll.u32 %v25434_v58, 16 }
 0x718   : > { %19714 = vmatprep.subr.bf16.mxu0 %v20871_v27  ;;  %v18075_v14 = vcombine.low %v15698_v25, %v15708_v29  ;;  %v15808_v47 = vrot.slane %v15806_v38, 4  ;;  %v15821_v58 = vrot.slane %v15819_v10, 4  ;;  %v18076_v31 = vcombine.low %v15722_v48, %v15732_v33 }
 0x719   : > { %v15750_v12 = vor.u32 %v15749_v16, %v25704_v13  ;;  %v25727_v24 = vrot.slane %v15791_v61, 5  ;;  %v25729_v16 = vrot.slane %v15815_v54, 5  ;;  %v15765_v45 = vrot.slane %v15764_v22, 4 }
 0x71a   : > { %v15746_v2 = vsel %vm21913_vm15, %v15741_v19, %v25704_v13  ;;  %v15775_v56 = vrot.slane %v15774_v35, 4  ;;  %v15833_v25 = vshll.u32 %v15550_v42, 16  ;;  %v15779_v48 = vrot.slane %v15777_v37, 5 }
 0x71b   : > { %19715 = vmatpush3.bf16.msra.mxu0 %v20871_v27  ;;  %v15785_v27 = vshll.u32 %v15544_v34, 16  ;;  %v15751_v1 = vrot.slane %v15750_v12, 4  ;;  %v15812_v30 = vor.u32 %v15811_v15, %v15808_v47  ;;  %v15822_v34 = vor.u32 %v15821_v58, %v25729_v16 }
 0x71c   : > { %v15770_v52 = vsel %vm21913_vm15, %v15765_v45, %v15769_v36  ;;  %v15801_v12 = vshll.u32 %v25442_v43, 16  ;;  %v15839_v13 = vshll.u32 %v25453_v63, 16  ;;  %v15843_v9 = vshrl.u32 %v25453_v63, 16 }
 0x71d   : > { %v15787_v0 = vrot.slane %v15785_v27, 5  ;;  %v15756_v17 = vsel %vm21913_vm15, %v15751_v1, %v15755_v11  ;;  %v15780_v50 = vsel %vm21913_vm15, %v15775_v56, %v15779_v48  ;;  %v15825_v18 = vshll.u32 %v25451_v39, 16  ;;  %v15562_v48 = vld [vmem:[#allocation4 + $0xcc] sm:$0xf] }
 0x71e   : > { %19685 = vmatmul.mubr.msk.bf16.gmra.mrb[68].mxu0 %vm1958_vm12, %v18073_v28  ;;  %v15798_v28 = vor.u32 %v15797_v41, %v25727_v24  ;;  %v18077_v29 = vcombine.low %v15746_v2, %v15756_v17  ;;  %v15863_v6 = vshll.u32 %v25472_v7, 16  ;;  %v15867_v40 = vshrl.u32 %v25472_v7, 16  ;;  %v15556_v7 = vld [vmem:[#allocation4 + $0xb4] sm:$0xf] }
 0x71f   : > { %19688 = vmatprep.mubr.msk.bf16.mxu0 %vm1958_vm12, %v18074_v49  ;;  %v15788_v57 = vor.u32 %v15787_v0, %v15784_v60  ;;  %v15830_v49 = vshrl.u32 %v15550_v42, 16  ;;  %v15835_v36 = vrot.slane %v15833_v25, 5  ;;  %v15813_v20 = vrot.slane %v15812_v30, 4  ;;  %v15559_v42 = vld [vmem:[#allocation4 + $0xc0] sm:$0xf] }
 0x720   : > { %v15799_v27 = vrot.slane %v15798_v28, 4  ;;  %v15823_v43 = vrot.slane %v15822_v34, 4  ;;  %v15854_v38 = vshrl.u32 %v15553_v55, 16  ;;  %v15857_v62 = vshll.u32 %v15553_v55, 16 }
 0x721   : > { %v15789_v44 = vrot.slane %v15788_v57, 4  ;;  %v15832_v61 = vrot.slane %v15830_v49, 4  ;;  %v18078_v54 = vcombine.low %v15770_v52, %v15780_v50  ;;  %v15803_v63 = vrot.slane %v15801_v12, 5 }
 0x722   : > { %v25750_v10 = vrot.slane %v15839_v13, 5  ;;  %v15827_v39 = vrot.slane %v15825_v18, 5  ;;  %v25753_v33 = vrot.slane %v15863_v6, 5  ;;  %v15869_v1 = vrot.slane %v15867_v40, 4 }
 0x723   : > { %v15794_v22 = vsel %vm21913_vm15, %v15789_v44, %v25727_v24  ;;  %v15804_v19 = vsel %vm21913_vm15, %v15799_v27, %v15803_v63  ;;  %v15836_v11 = vor.u32 %v15835_v36, %v15832_v61  ;;  %v15849_v35 = vshll.u32 %v25481_v4, 16 }
 0x724   : > { %v15818_v37 = vsel %vm21913_vm15, %v15813_v20, %v25729_v16  ;;  %v15828_v60 = vsel %vm21913_vm15, %v15823_v43, %v15827_v39  ;;  %v15856_v0 = vrot.slane %v15854_v38, 4  ;;  %v15859_v41 = vrot.slane %v15857_v62, 5 }
 0x725   : > { %v15878_v15 = vshrl.u32 %v15556_v7, 16  ;;  %v15887_v24 = vshll.u32 %v25494_v32, 16  ;;  %v15891_v58 = vshrl.u32 %v25494_v32, 16  ;;  %v15881_v4 = vshll.u32 %v15556_v7, 16 }
 0x726   : > { %19689 = vmatmul.mubr.msk.bf16.gmra.mrb[72].mxu0 %vm1958_vm12, %v18075_v14  ;;  %v15845_v14 = vrot.slane %v15843_v9, 4  ;;  %v15911_v17 = vshll.u32 %v25505_v21, 16  ;;  %v15915_v16 = vshrl.u32 %v25505_v21, 16  ;;  %v18079_v45 = vcombine.low %v15794_v22, %v15804_v19 }
 0x727   : > { %19692 = vmatprep.mubr.msk.bf16.mxu0 %vm1958_vm12, %v18076_v31  ;;  %v15870_v31 = vor.u32 %v15869_v1, %v25753_v33  ;;  %v18080_v2 = vcombine.low %v15818_v37, %v15828_v60  ;;  %v15837_v56 = vrot.slane %v15836_v11, 4  ;;  %v15851_v57 = vrot.slane %v15849_v35, 5 }
 0x728   : > { %v15846_v47 = vor.u32 %v15845_v14, %v25750_v10  ;;  %v15860_v28 = vor.u32 %v15859_v41, %v15856_v0  ;;  %v15873_v49 = vshll.u32 %v25486_v5, 16  ;;  %v15902_v25 = vshrl.u32 %v15559_v42, 16 }
 0x729   : > { %v15880_v32 = vrot.slane %v15878_v15, 4  ;;  %v15889_v34 = vrot.slane %v15887_v24, 5  ;;  %v15893_v52 = vrot.slane %v15891_v58, 4  ;;  %v15871_v12 = vrot.slane %v15870_v31, 4 }
 0x72a   : > { %v15847_v30 = vrot.slane %v15846_v47, 4  ;;  %v15883_v13 = vrot.slane %v15881_v4, 5  ;;  %v15913_v9 = vrot.slane %v15911_v17, 5  ;;  %v15917_v21 = vrot.slane %v15915_v16, 4 }
 0x72b   : > { %v15926_v55 = vshrl.u32 %v15562_v48, 16  ;;  %v15929_v50 = vshll.u32 %v15562_v48, 16  ;;  %v15935_v18 = vshll.u32 %v25634_v8, 16  ;;  %v15939_v5 = vshrl.u32 %v25634_v8, 16  ;;  %v26344_v48 = vld [vmem:[#allocation32_spill] sm:$0xff] }
 0x72c   : > { %v15861_v6 = vrot.slane %v15860_v28, 4  ;;  %v15875_v40 = vrot.slane %v15873_v49, 5  ;;  %v15904_v44 = vrot.slane %v15902_v25, 4  ;;  %v15842_v61 = vsel %vm21913_vm15, %v15837_v56, %v25750_v10  ;;  %v26338_v56 = vld [vmem:[#allocation29_spill] sm:$0xff]  ;;  %v26341_v49 = vld [vmem:[#allocation30_spill] sm:$0xff]  ;;  %v26342_v25 = vld [vmem:[#allocation31_spill] sm:$0xff] }
 0x72d   : > { %v15852_v36 = vsel %vm21913_vm15, %v15847_v30, %v15851_v57  ;;  %v15894_v20 = vor.u32 %v15893_v52, %v15889_v34  ;;  %v15884_v38 = vor.u32 %v15883_v13, %v15880_v32  ;;  %v15897_v62 = vshll.u32 %v25530_v46, 16  ;;  %v26339_v57 = vld [vmem:[#allocation28_spill] sm:$0xff]  ;;  %v26345_v30 = vld [vmem:[#allocation33_spill] sm:$0xff] }
 0x72e   : > { %19693 = vmatmul.mubr.msk.bf16.gmra.mrb[76].mxu0 %vm1958_vm12, %v18077_v29  ;;  %v15905_v29 = vshll.u32 %v15559_v42, 16  ;;  %v15876_v43 = vsel %vm21913_vm15, %v15871_v12, %v15875_v40  ;;  %v15928_v8 = vrot.slane %v15926_v55, 4  ;;  %v15931_v63 = vrot.slane %v15929_v50, 5  ;;  %v26350_v12 = vld [vmem:[#allocation36_spill] sm:$0xff]  ;;  %v26351_v13 = vld [vmem:[#allocation37_spill] sm:$0xff]  ;;  %v26359_v40 = vld [vmem:[#allocation39_spill] sm:$0xff] }
 0x72f   : > { %19696 = vmatprep.mubr.msk.bf16.mxu0 %vm1958_vm12, %v18078_v54  ;;  %v15918_v54 = vor.u32 %v15917_v21, %v15913_v9  ;;  %v15937_v14 = vrot.slane %v15935_v18, 5  ;;  %v15941_v39 = vrot.slane %v15939_v5, 4  ;;  %v18081_v1 = vcombine.low %v15842_v61, %v15852_v36  ;;  %v26353_v21 = vld [vmem:[#allocation38_spill] sm:$0xff]  ;;  %v26354_v55 = vld [vmem:[#allocation9_spill] sm:$0xff]  ;;  %v26356_v18 = vld [vmem:[#allocation8_spill] sm:$0xff] }
 0x730   : > { %v15907_v27 = vrot.slane %v15905_v29, 5  ;;  %v15866_v10 = vsel %vm21913_vm15, %v15861_v6, %v25753_v33  ;;  %v15921_v22 = vshll.u32 %v25549_v51, 16  ;;  %v15895_v11 = vrot.slane %v15894_v20, 4  ;;  %v26357_v5 = vld [vmem:[#allocation10_spill] sm:$0xff]  ;;  %v26362_v61 = vld [vmem:[#allocation41_spill] sm:$0xff] }
 0x731   : > { %v18082_v19 = vcombine.low %v15866_v10, %v15876_v43  ;;  %v15899_v35 = vrot.slane %v15897_v62, 5  ;;  %v15919_v37 = vrot.slane %v15918_v54, 4  ;;  %v15885_v46 = vrot.slane %v15884_v38, 4  ;;  %v26363_v36 = vld [vmem:[#allocation42_spill] sm:$0xff]  ;;  %v26365_v43 = vld [vmem:[#allocation43_spill] sm:$0xff]  ;;  %v26366_v38 = vld [vmem:[#allocation44_spill] sm:$0xff] }
 0x732   : > { %v15908_v7 = vor.u32 %v15907_v27, %v15904_v44  ;;  %v15932_v60 = vor.u32 %v15931_v63, %v15928_v8  ;;  %v15942_v0 = vor.u32 %v15941_v39, %v15937_v14  ;;  %v15945_v41 = vshll.u32 %v25636_v53, 16  ;;  %v26360_v44 = vld [vmem:[#allocation40_spill] sm:$0xff]  ;;  %v26368_v54 = vld [vmem:[#allocation11_spill] sm:$0xff]  ;;  %v26369_v8 = vld [vmem:[#allocation17_spill] sm:$0xff] }
 0x733   : > { %v15923_v15 = vrot.slane %v15921_v22, 5  ;;  %v15900_v33 = vsel %vm21913_vm15, %v15895_v11, %v15899_v35  ;;  %v15890_v24 = vsel %vm21913_vm15, %v15885_v46, %v15889_v34  ;;  %v26340_v28 = vcombine.low %v26338_v56, %v26339_v57  ;;  %v26348_v34 = vld [vmem:[#allocation35_spill] sm:$0xff]  ;;  %v26372_v39 = vld [vmem:[#allocation46_spill] sm:$0xff]  ;;  %v26381_v46 = vld [vmem:[#allocation53_spill] sm:$0xff] }
 0x734   : > { %v15909_v47 = vrot.slane %v15908_v7, 4  ;;  %v15933_v58 = vrot.slane %v15932_v60, 4  ;;  %v15943_v42 = vrot.slane %v15942_v0, 4  ;;  %v15947_v31 = vrot.slane %v15945_v41, 5  ;;  %v26374_v10 = vld [vmem:[#allocation47_spill] sm:$0xff]  ;;  %v26375_v7 = vld [vmem:[#allocation48_spill] sm:$0xff] }
 0x735   : > { %v15924_v51 = vsel %vm21913_vm15, %v15919_v37, %v15923_v15  ;;  %v18083_v4 = vcombine.low %v15890_v24, %v15900_v33  ;;  %v26343_v29 = vcombine.low %v26341_v49, %v26342_v25  ;;  %v26346_v32 = vcombine.low %v26344_v48, %v26345_v30  ;;  %v26378_v11 = vld [vmem:[#allocation50_spill] sm:$0xff]  ;;  %v26380_v37 = vld [vmem:[#allocation51_spill] sm:$0xff] }
 0x736   : > { %19697 = vmatmul.mubr.msk.bf16.gmra.mrb[80].mxu0 %vm1958_vm12, %v18079_v45  ;;  %v15914_v17 = vsel %vm21913_vm15, %v15909_v47, %v15913_v9  ;;  %v15938_v53 = vsel %vm21913_vm15, %v15933_v58, %v15937_v14  ;;  %v15948_v45 = vsel %vm21913_vm15, %v15943_v42, %v15947_v31  ;;  %v26349_v52 = vcombine.low %v26347_v23, %v26348_v34  ;;  %v26371_v14 = vld [vmem:[#allocation45_spill] sm:$0xff]  ;;  %v25876_v0 = vld [vmem:[%s26037_s7] ss:$0 sm:$0xff] }
 0x737   : > { %19700 = vmatprep.mubr.msk.bf16.mxu0 %vm1958_vm12, %v18080_v2  ;;  %v18084_v16 = vcombine.low %v15914_v17, %v15924_v51  ;;  %v18085_v2 = vcombine.low %v15938_v53, %v15948_v45  ;;  %v26352_v9 = vcombine.low %v26350_v12, %v26351_v13  ;;  %v26355_v50 = vcombine.low %v26353_v21, %v26354_v55 }
 0x738   : > { %v26358_v6 = vcombine.low %v26356_v18, %v26357_v5  ;;  %v26361_v27 = vcombine.low %v26359_v40, %v26360_v44  ;;  %v26364_v20 = vcombine.low %v26362_v61, %v26363_v36  ;;  %v26367_v62 = vcombine.low %v26365_v43, %v26366_v38 }
 0x739   : > { %v26370_v63 = vcombine.low %v26368_v54, %v26369_v8  ;;  %v26376_v22 = vcombine.low %v26374_v10, %v26375_v7  ;;  %v26382_v60 = vcombine.low %v26380_v37, %v26381_v46 }
 0x73e   : > { %19701 = vmatmul.mubr.msk.bf16.gmra.mrb[84].mxu0 %vm1958_vm12, %v18081_v1  ;;  %v26373_v1 = vcombine.low %v26371_v14, %v26372_v39 }
 0x73f   : > { %19704 = vmatprep.mubr.msk.bf16.mxu0 %vm1958_vm12, %v18082_v19  ;;  %v26377_v19 = vld [vmem:[#allocation49_spill] sm:$0xff] }
 0x740   : > { %v26379_v35 = vcombine.low %v26377_v19, %v26378_v11 }
 0x746   : > { %19705 = vmatmul.mubr.msk.bf16.gmra.mrb[88].mxu0 %vm1958_vm12, %v18083_v4 }
 0x747   : > { %19708 = vmatprep.mubr.msk.bf16.mxu0 %vm1958_vm12, %v18084_v16 }
 0x74e   : > { %19709 = vmatmul.mubr.msk.bf16.gmra.mrb[92].mxu0 %vm1958_vm12, %v18085_v2 }
 0x74f   : > { %19716 = vmatprep.mubr.msk.bf16.mxu0 %vm1958_vm12, %v26340_v28 }
 0x756   : > { %19717 = vmatmul.mubr.msk.bf16.vlgmr.msra.gmra.mrb[64].mxu0 %vm1958_vm12, %v26343_v29 }
 0x757   : > { %19720 = vmatprep.mubr.msk.bf16.mxu0 %vm1958_vm12, %v26346_v32 }
 0x75e   : > { %19721 = vmatmul.mubr.msk.bf16.gmra.mrb[68].mxu0 %vm1958_vm12, %v26349_v52 }
 0x75f   : > { %19724 = vmatprep.mubr.msk.bf16.mxu0 %vm1958_vm12, %v26352_v9 }
 0x766   : > { %19725 = vmatmul.mubr.msk.bf16.gmra.mrb[72].mxu0 %vm1958_vm12, %v26355_v50 }
 0x767   : > { %19728 = vmatprep.mubr.msk.bf16.mxu0 %vm1958_vm12, %v26358_v6 }
 0x76e   : > { %19729 = vmatmul.mubr.msk.bf16.gmra.mrb[76].mxu0 %vm1958_vm12, %v26361_v27 }
 0x76f   : > { %19732 = vmatprep.mubr.msk.bf16.mxu0 %vm1958_vm12, %v26364_v20 }
 0x776   : > { %19733 = vmatmul.mubr.msk.bf16.gmra.mrb[80].mxu0 %vm1958_vm12, %v26367_v62 }
 0x777   : > { %19736 = vmatprep.mubr.msk.bf16.mxu0 %vm1958_vm12, %v26370_v63 }
 0x77e   : > { %19737 = vmatmul.mubr.msk.bf16.gmra.mrb[84].mxu0 %vm1958_vm12, %v26373_v1 }
 0x77f   : > { %19740 = vmatprep.mubr.msk.bf16.mxu0 %vm1958_vm12, %v26376_v22 }
 0x786   : > { %19741 = vmatmul.mubr.msk.bf16.gmra.mrb[88].mxu0 %vm1958_vm12, %v26379_v35 }
 0x787   : > { %19744 = vmatprep.mubr.msk.bf16.mxu0 %vm1958_vm12, %v26382_v60 }
 0x78e   : > { %19745 = vmatmul.mubr.msk.bf16.gmra.mrb[92].mxu0 %vm1958_vm12, %v18139_v3 }
 0x829   : > { %v19718_v41 = vpop.f32.mrb[64].mxu0 }
 0x82a   : > { %v19812_v47 = vadd.f32 %v19718_v41, %v25876_v0  ;;  %v16578_v15 = vpop.f32.mrb[65].mxu0 }
 0x82b   : > { %v19813_v33 = vadd.f32 %v25876_v0, %v16578_v15  ;;  %v19719_v51 = vpop.f32.mrb[66].mxu0 }
 0x82c   : > { %v16739_v24 = vmax.f32 %v19812_v47, 0.0  ;;  %v19814_v59 = vadd.f32 %v19719_v51, %v25876_v0  ;;  %v16581_v26 = vpop.f32.mrb[67].mxu0 }
 0x82d   : > { %v16737_v3 = vmax.f32 %v19813_v33, 0.0  ;;  %v19815_v58 = vadd.f32 %v25876_v0, %v16581_v26 }
 0x82e   : > { %16771 = vst.msk [vmem:[%s25884_s25 + $0x10] sm:$0xff] %vm1958_vm12, %v16739_v24  ;;  %v16740_v42 = vmax.f32 %v19814_v59, 0.0 }
 0x82f   : > { %16769 = vst.msk [vmem:[%s25884_s25] sm:$0xff] %vm1958_vm12, %v16737_v3  ;;  %v16738_v31 = vmax.f32 %v19815_v58, 0.0 }
 0x830   : > { %16772 = vst.msk [vmem:[%s25884_s25 + $0x18] sm:$0xff] %vm1958_vm12, %v16740_v42 }
 0x831   : > { %16770 = vst.msk [vmem:[%s25884_s25 + $0x8] sm:$0xff] %vm1958_vm12, %v16738_v31  ;;  %v19722_v4 = vpop.f32.mrb[68].mxu0 }
 0x832   : > { %v19816_v17 = vadd.f32 %v19722_v4, %v25876_v0  ;;  %v16594_v16 = vpop.f32.mrb[69].mxu0 }
 0x833   : > { %v19817_v53 = vadd.f32 %v25876_v0, %v16594_v16  ;;  %v19723_v45 = vpop.f32.mrb[70].mxu0 }
 0x834   : > { %v16743_v2 = vmax.f32 %v19816_v17, 0.0  ;;  %v19818_v56 = vadd.f32 %v19723_v45, %v25876_v0  ;;  %v16597_v57 = vpop.f32.mrb[71].mxu0 }
 0x835   : > { %v16741_v28 = vmax.f32 %v19817_v53, 0.0  ;;  %v19819_v49 = vadd.f32 %v25876_v0, %v16597_v57 }
 0x836   : > { %16775 = vst.msk [vmem:[%s25884_s25 + $0x30] sm:$0xff] %vm1958_vm12, %v16743_v2  ;;  %v16744_v25 = vmax.f32 %v19818_v56, 0.0 }
 0x837   : > { %16773 = vst.msk [vmem:[%s25884_s25 + $0x20] sm:$0xff] %vm1958_vm12, %v16741_v28  ;;  %v16742_v29 = vmax.f32 %v19819_v49, 0.0 }
 0x838   : > { %16776 = vst.msk [vmem:[%s25884_s25 + $0x38] sm:$0xff] %vm1958_vm12, %v16744_v25 }
 0x839   : > { %16774 = vst.msk [vmem:[%s25884_s25 + $0x28] sm:$0xff] %vm1958_vm12, %v16742_v29  ;;  %v19726_v48 = vpop.f32.mrb[72].mxu0 }
 0x83a   : > { %v19820_v30 = vadd.f32 %v19726_v48, %v25876_v0  ;;  %v16610_v32 = vpop.f32.mrb[73].mxu0 }
 0x83b   : > { %v19821_v23 = vadd.f32 %v25876_v0, %v16610_v32  ;;  %v19727_v34 = vpop.f32.mrb[74].mxu0 }
 0x83c   : > { %v16747_v52 = vmax.f32 %v19820_v30, 0.0  ;;  %v19822_v12 = vadd.f32 %v19727_v34, %v25876_v0  ;;  %v16613_v13 = vpop.f32.mrb[75].mxu0 }
 0x83d   : > { %v16745_v9 = vmax.f32 %v19821_v23, 0.0  ;;  %v19823_v21 = vadd.f32 %v25876_v0, %v16613_v13 }
 0x83e   : > { %16779 = vst.msk [vmem:[%s25884_s25 + $0x50] sm:$0xff] %vm1958_vm12, %v16747_v52  ;;  %v16748_v55 = vmax.f32 %v19822_v12, 0.0 }
 0x83f   : > { %16777 = vst.msk [vmem:[%s25884_s25 + $0x40] sm:$0xff] %vm1958_vm12, %v16745_v9  ;;  %v16746_v50 = vmax.f32 %v19823_v21, 0.0 }
 0x840   : > { %16780 = vst.msk [vmem:[%s25884_s25 + $0x58] sm:$0xff] %vm1958_vm12, %v16748_v55 }
 0x841   : > { %16778 = vst.msk [vmem:[%s25884_s25 + $0x48] sm:$0xff] %vm1958_vm12, %v16746_v50  ;;  %v19730_v18 = vpop.f32.mrb[76].mxu0 }
 0x842   : > { %v19824_v5 = vadd.f32 %v19730_v18, %v25876_v0  ;;  %v16626_v6 = vpop.f32.mrb[77].mxu0 }
 0x843   : > { %v19825_v40 = vadd.f32 %v25876_v0, %v16626_v6  ;;  %v19731_v44 = vpop.f32.mrb[78].mxu0 }
 0x844   : > { %v16751_v27 = vmax.f32 %v19824_v5, 0.0  ;;  %v19826_v61 = vadd.f32 %v19731_v44, %v25876_v0  ;;  %v16629_v36 = vpop.f32.mrb[79].mxu0 }
 0x845   : > { %v16749_v20 = vmax.f32 %v19825_v40, 0.0  ;;  %v19827_v43 = vadd.f32 %v25876_v0, %v16629_v36 }
 0x846   : > { %16783 = vst.msk [vmem:[%s25884_s25 + $0x70] sm:$0xff] %vm1958_vm12, %v16751_v27  ;;  %v16752_v38 = vmax.f32 %v19826_v61, 0.0 }
 0x847   : > { %16781 = vst.msk [vmem:[%s25884_s25 + $0x60] sm:$0xff] %vm1958_vm12, %v16749_v20  ;;  %v16750_v62 = vmax.f32 %v19827_v43, 0.0 }
 0x848   : > { %16784 = vst.msk [vmem:[%s25884_s25 + $0x78] sm:$0xff] %vm1958_vm12, %v16752_v38 }
 0x849   : > { %16782 = vst.msk [vmem:[%s25884_s25 + $0x68] sm:$0xff] %vm1958_vm12, %v16750_v62  ;;  %v19734_v54 = vpop.f32.mrb[80].mxu0 }
 0x84a   : > { %v19828_v8 = vadd.f32 %v19734_v54, %v25876_v0  ;;  %v16642_v63 = vpop.f32.mrb[81].mxu0 }
 0x84b   : > { %v19829_v14 = vadd.f32 %v25876_v0, %v16642_v63  ;;  %v19735_v39 = vpop.f32.mrb[82].mxu0 }
 0x84c   : > { %v16755_v1 = vmax.f32 %v19828_v8, 0.0  ;;  %v19830_v10 = vadd.f32 %v19735_v39, %v25876_v0  ;;  %v16645_v7 = vpop.f32.mrb[83].mxu0 }
 0x84d   : > { %v16753_v22 = vmax.f32 %v19829_v14, 0.0  ;;  %v19831_v19 = vadd.f32 %v25876_v0, %v16645_v7 }
 0x84e   : > { %16787 = vst.msk [vmem:[%s25884_s25 + $0x90] sm:$0xff] %vm1958_vm12, %v16755_v1  ;;  %v16756_v11 = vmax.f32 %v19830_v10, 0.0 }
 0x84f   : > { %16785 = vst.msk [vmem:[%s25884_s25 + $0x80] sm:$0xff] %vm1958_vm12, %v16753_v22  ;;  %v16754_v35 = vmax.f32 %v19831_v19, 0.0 }
 0x850   : > { %16788 = vst.msk [vmem:[%s25884_s25 + $0x98] sm:$0xff] %vm1958_vm12, %v16756_v11 }
 0x851   : > { %16786 = vst.msk [vmem:[%s25884_s25 + $0x88] sm:$0xff] %vm1958_vm12, %v16754_v35  ;;  %v19738_v37 = vpop.f32.mrb[84].mxu0 }
 0x852   : > { %v19832_v46 = vadd.f32 %v19738_v37, %v25876_v0  ;;  %v16658_v60 = vpop.f32.mrb[85].mxu0 }
 0x853   : > { %v19833_v41 = vadd.f32 %v25876_v0, %v16658_v60  ;;  %v19739_v47 = vpop.f32.mrb[86].mxu0 }
 0x854   : > { %v16759_v15 = vmax.f32 %v19832_v46, 0.0  ;;  %v19834_v33 = vadd.f32 %v19739_v47, %v25876_v0  ;;  %v16661_v51 = vpop.f32.mrb[87].mxu0 }
 0x855   : > { %v16757_v24 = vmax.f32 %v19833_v41, 0.0  ;;  %v19835_v59 = vadd.f32 %v25876_v0, %v16661_v51 }
 0x856   : > { %16791 = vst.msk [vmem:[%s25884_s25 + $0xb0] sm:$0xff] %vm1958_vm12, %v16759_v15  ;;  %v16760_v26 = vmax.f32 %v19834_v33, 0.0 }
 0x857   : > { %16789 = vst.msk [vmem:[%s25884_s25 + $0xa0] sm:$0xff] %vm1958_vm12, %v16757_v24  ;;  %v16758_v3 = vmax.f32 %v19835_v59, 0.0 }
 0x858   : > { %16792 = vst.msk [vmem:[%s25884_s25 + $0xb8] sm:$0xff] %vm1958_vm12, %v16760_v26 }
 0x859   : > { %16790 = vst.msk [vmem:[%s25884_s25 + $0xa8] sm:$0xff] %vm1958_vm12, %v16758_v3  ;;  %v19742_v58 = vpop.f32.mrb[88].mxu0 }
 0x85a   : > { %v19836_v42 = vadd.f32 %v19742_v58, %v25876_v0  ;;  %v16674_v31 = vpop.f32.mrb[89].mxu0 }
 0x85b   : > { %v19837_v4 = vadd.f32 %v25876_v0, %v16674_v31  ;;  %v19743_v17 = vpop.f32.mrb[90].mxu0 }
 0x85c   : > { %v16763_v16 = vmax.f32 %v19836_v42, 0.0  ;;  %v19838_v53 = vadd.f32 %v19743_v17, %v25876_v0  ;;  %v16677_v45 = vpop.f32.mrb[91].mxu0 }
 0x85d   : > { %v16761_v2 = vmax.f32 %v19837_v4, 0.0  ;;  %v19839_v56 = vadd.f32 %v25876_v0, %v16677_v45 }
 0x85e   : > { %16795 = vst.msk [vmem:[%s25884_s25 + $0xd0] sm:$0xff] %vm1958_vm12, %v16763_v16  ;;  %v16764_v57 = vmax.f32 %v19838_v53, 0.0 }
 0x85f   : > { %16793 = vst.msk [vmem:[%s25884_s25 + $0xc0] sm:$0xff] %vm1958_vm12, %v16761_v2  ;;  %v16762_v28 = vmax.f32 %v19839_v56, 0.0 }
 0x860   : > { %16796 = vst.msk [vmem:[%s25884_s25 + $0xd8] sm:$0xff] %vm1958_vm12, %v16764_v57 }
 0x861   : > { %16794 = vst.msk [vmem:[%s25884_s25 + $0xc8] sm:$0xff] %vm1958_vm12, %v16762_v28  ;;  %v19746_v49 = vpop.f32.mrb[92].mxu0 }
 0x862   : > { %v19840_v25 = vadd.f32 %v19746_v49, %v25876_v0  ;;  %v16690_v29 = vpop.f32.mrb[93].mxu0 }
 0x863   : > { %v19841_v48 = vadd.f32 %v25876_v0, %v16690_v29  ;;  %v19747_v30 = vpop.f32.mrb[94].mxu0 }
 0x864   : > { %v16767_v32 = vmax.f32 %v19840_v25, 0.0  ;;  %v19842_v23 = vadd.f32 %v19747_v30, %v25876_v0  ;;  %v16693_v34 = vpop.f32.mrb[95].mxu0 }
 0x865   : > { %v16765_v52 = vmax.f32 %v19841_v48, 0.0  ;;  %v19843_v12 = vadd.f32 %v25876_v0, %v16693_v34 }
 0x866   : > { %16799 = vst.msk [vmem:[%s25884_s25 + $0xf0] sm:$0xff] %vm1958_vm12, %v16767_v32  ;;  %v16768_v13 = vmax.f32 %v19842_v23, 0.0 }
 0x867   : > { %16797 = vst.msk [vmem:[%s25884_s25 + $0xe0] sm:$0xff] %vm1958_vm12, %v16765_v52  ;;  %v16766_v9 = vmax.f32 %v19843_v12, 0.0 }
 0x868   : > { %16800 = vst.msk [vmem:[%s25884_s25 + $0xf8] sm:$0xff] %vm1958_vm12, %v16768_v13 }
 0x869   : > { %16798 = vst.msk [vmem:[%s25884_s25 + $0xe8] sm:$0xff] %vm1958_vm12, %v16766_v9 }
 0x86a   : > { %21049 = shalt.err (!%p21046_p3)
}
 0x86b   : > { %s21050_s18 = scalar_lea.hbm %s25977_s13, 4096  ;;  %s21054_s25 = scalar_lea.hbm %s26038_s8, 8192 }
 0x86c   : > { %p21051_p4 = scmp.ne.s32.totalorder %s25977_s13, %s21050_s18  ;;  %p21055_p9 = scmp.lt.u32.totalorder %s25977_s13, %s26038_s8 }
 0x86d   : > { %p21056_p10 = scmp.lt.u32.totalorder %s21054_s25, %s21050_s18  ;;  %p21058_p12 = scmp.lt.u32.totalorder %s21050_s18, %s25977_s13 }
 0x86e   : > { %p21052_p7 = pnand %p21051_p4, %p21187_p5 }
 0x86f   : > { %p21057_p11 = por %p21056_p10, %p21055_p9 }
 0x870   : > { %p21053_p8 = pneg %p21052_p7 }
 0x871   : > { %p21059_p13 = por %p21058_p12, %p21057_p11 }
 0x873   : > { %p21060_p0 = pnand %p21059_p13, %p21053_p8 }
 0x875   : > { %21063 = shalt.err (!%p21060_p0)
}
 0x876   : > { %s21102_s12 = smov 128   ;;  %s21103_s17 = smov 8  }
 0x877   : > { %20612 = dma.vmem_to_hbm [thread:$0]  (%p21187_p5), %s25979_s26, 4096, %s25977_s13, %s25989_s9, %s21102_s12, %s21102_s12, %s21103_s17  }
 0x878 PF: > { %p20618_p1 = scmp.ge.s32.totalorder %s21098_s30, 2  ;;  %s16830_s20 = sand.u32 1, %s21086_s27  }
 0x879   : > { %s16831_s21 = scalar_lea.sflag [#allocation6], %s16830_s20 }
 0x87a   : > { %p20615_p2 = pnand %p20618_p1, %p21191_p6 }
 0x87c   : > { %21081 = dma.done.wait (!%p20615_p2), %s16831_s21, 4096  }
 0x87d   : > { %21083 = vsyncadd (!%p20615_p2), %s16831_s21, 4294963200  ;;  %p18_p3 = scmp.ge.s32.totalorder %s21174_s11, 4   ;;  %s26383_s27 = smov %s21090_s28 }
 0x87e   : > { %s26384_s28 = smov %s21094_s29  ;;  %s26385_s29 = smov %s21185_s14 }
 0x87f   : > { %s26386_s30 = smov %s21174_s11  ;;  %20 = sbr.rel (!%p18_p3) target bundleno = 3 (0x3), region = 120 }
 0x886   :  { %16836 = vsyncpa [#allocation6], 1 }
 0x887   :  { %16838 = vsyncpa [#allocation6 + $0x1], 1 }

</bundles_post_ra>
